<compile_context>
chip_gen: v5e
topology: v5e:2x2
jax: 0.10.0
libtpu: 0.0.40
codegen_flags: <defaults>
</compile_context>

<pallas_src>
import jax
import jax.numpy as jnp
from jax.experimental import pallas as pl
from jax.experimental.pallas import tpu as pltpu

INPUT_DIM = 10
DIMS = [INPUT_DIM, 128, 256, 512, 1024]
OUT_DIM = 784
OUT_DIM_PADDED = 896  # 7 * 128 -> lane-dense final matmul tile + unmasked store
BN_EPS = 1e-5
LEAKY_SLOPE = 0.01


def _pack_offsets():
    """Layout of the single packed f32 parameter vector.

    [g1, beta1, g2, beta2, g3, beta3, g4, beta4, b5]; every offset and size is
    a multiple of 128 so in-kernel slices are lane-aligned.
    """
    off = {}
    cur = 0
    for i, d in enumerate(DIMS[1:]):
        off[f"g{i + 1}"] = (cur, d)
        cur += d
        off[f"b{i + 1}"] = (cur, d)
        cur += d
    off["b5"] = (cur, OUT_DIM_PADDED)
    cur += OUT_DIM_PADDED
    return off, cur


PACK_OFF, PACK_LEN = _pack_offsets()  # PACK_LEN == 4736 == 37 * 128


def _generator_kernel(x_ref, pvec_ref, w1_ref, w2_ref, w3_ref, w4_hbm, w5_hbm,
                      o_ref, w4_buf, w5_buf, dma_sems):
    """Fused: 4 x (Linear + BatchNorm1d(train) + LeakyReLU) + Linear + Tanh."""
    # Kick off the two big weight DMAs immediately so they overlap layers 1-3.
    cp4 = pltpu.make_async_copy(w4_hbm, w4_buf, dma_sems.at[0])
    cp5 = pltpu.make_async_copy(w5_hbm, w5_buf, dma_sems.at[1])
    cp4.start()
    cp5.start()

    def pvec(name):
        start, size = PACK_OFF[name]
        return pvec_ref[:, start:start + size]  # static, 128-aligned slice

    def up_block(h_bf16, w_bf16, gamma, beta):
        # Linear on the MXU: bf16 x bf16 -> f32 accumulate. The Linear bias is
        # omitted on purpose: BatchNorm's mean subtraction cancels it exactly.
        y = jnp.dot(h_bf16, w_bf16, preferred_element_type=jnp.float32)
        # BatchNorm1d, training mode (biased batch statistics over axis 0),
        # affine folded into a single scale on the centered values. All f32.
        mean = jnp.mean(y, axis=0, keepdims=True)
        yc = y - mean
        var = jnp.mean(yc * yc, axis=0, keepdims=True)
        y = yc * (gamma * jax.lax.rsqrt(var + BN_EPS)) + beta
        # LeakyReLU(0.01) in f32; cast to bf16 only as the next MXU input.
        y = jnp.maximum(y, LEAKY_SLOPE * y)
        return y.astype(jnp.bfloat16)

    h = x_ref[...].astype(jnp.bfloat16)
    h = up_block(h, w1_ref[...], pvec("g1"), pvec("b1"))
    h = up_block(h, w2_ref[...], pvec("g2"), pvec("b2"))
    h = up_block(h, w3_ref[...], pvec("g3"), pvec("b3"))
    cp4.wait()
    h = up_block(h, w4_buf[...], pvec("g4"), pvec("b4"))
    cp5.wait()
    # Final Linear(1024, 896-padded) + Tanh; padded lanes are zero -> tanh(0)=0
    # and get sliced off in the wrapper.
    y = jnp.dot(h, w5_buf[...], preferred_element_type=jnp.float32) + pvec("b5")
    o_ref[...] = jnp.tanh(y)


def init_params(key):
    """Deployment-format synthetic params.

    Weights are bf16 (DMA compression), pre-transposed to (in, out); the final
    Linear is zero-padded to OUT_DIM_PADDED output columns. All remaining
    small parameters live in one packed f32 vector of shape (1, PACK_LEN).
    """
    keys = jax.random.split(key, 14)
    ks = iter(keys)
    ws = []
    for in_d, out_d in zip(DIMS[:-1], DIMS[1:]):
        w = (jax.random.normal(next(ks), (in_d, out_d), jnp.float32) * 0.02
             ).astype(jnp.bfloat16)
        ws.append(w)
    w5 = jax.random.normal(next(ks), (DIMS[-1], OUT_DIM), jnp.float32) * 0.02
    w5 = jnp.pad(w5, ((0, 0), (0, OUT_DIM_PADDED - OUT_DIM))).astype(jnp.bfloat16)

    pieces = []
    for d in DIMS[1:]:
        gamma = 1.0 + 0.1 * jax.random.normal(next(ks), (d,), jnp.float32)
        beta = 0.1 * jax.random.normal(next(ks), (d,), jnp.float32)
        pieces += [gamma, beta]
    b5 = jax.random.normal(next(ks), (OUT_DIM,), jnp.float32) * 0.02
    b5 = jnp.pad(b5, (0, OUT_DIM_PADDED - OUT_DIM))
    pieces.append(b5)
    pvec = jnp.concatenate(pieces).reshape(1, PACK_LEN)

    return ws[0], ws[1], ws[2], ws[3], w5, pvec


@jax.jit
def vanilla_generator(x, params):
    """x: (B, 10) float32  ->  (B, 1, 28, 28) float32 (NCHW)."""
    w1, w2, w3, w4, w5, pvec = params
    batch = x.shape[0]
    vmem = pltpu.MemorySpace.VMEM
    out_padded = pl.pallas_call(
        _generator_kernel,
        out_shape=jax.ShapeDtypeStruct((batch, OUT_DIM_PADDED), jnp.float32),
        in_specs=[
            pl.BlockSpec(memory_space=vmem),    # x
            pl.BlockSpec(memory_space=vmem),    # packed gamma/beta/b5
            pl.BlockSpec(memory_space=vmem),    # w1 (10x128)
            pl.BlockSpec(memory_space=vmem),    # w2 (128x256)
            pl.BlockSpec(memory_space=vmem),    # w3 (256x512)
            pl.BlockSpec(memory_space=pl.ANY),  # w4 -> manual overlapped DMA
            pl.BlockSpec(memory_space=pl.ANY),  # w5 -> manual overlapped DMA
        ],
        out_specs=pl.BlockSpec(memory_space=vmem),
        scratch_shapes=[
            pltpu.VMEM((DIMS[3], DIMS[4]), jnp.bfloat16),        # w4 buffer
            pltpu.VMEM((DIMS[4], OUT_DIM_PADDED), jnp.bfloat16),  # w5 buffer
            pltpu.SemaphoreType.DMA((2,)),
        ],
        # Actual footprint < 4 MiB; 32 MiB is valid on v5e/v6e/v7x.
        compiler_params=pltpu.CompilerParams(vmem_limit_bytes=32 * 1024 * 1024),
    )(x, pvec, w1, w2, w3, w4, w5)
    # Drop lane padding, then match x.view(-1, 1, 28, 28) in PyTorch.
    return out_padded[:, :OUT_DIM].reshape(batch, 1, 28, 28)


def _reference(x, params):
    """Pure-JAX reference using the same bf16-in / f32-accumulate math."""
    w1, w2, w3, w4, w5, pvec = params

    def ps(name):
        s, n = PACK_OFF[name]
        return pvec[:, s:s + n]

    h = x.astype(jnp.bfloat16)
    for w, g, b in zip((w1, w2, w3, w4),
                       ("g1", "g2", "g3", "g4"),
                       ("b1", "b2", "b3", "b4")):
        y = jnp.dot(h, w, preferred_element_type=jnp.float32)
        mean = jnp.mean(y, axis=0, keepdims=True)
        yc = y - mean
        var = jnp.mean(yc * yc, axis=0, keepdims=True)
        y = yc * (ps(g) * jax.lax.rsqrt(var + BN_EPS)) + ps(b)
        y = jnp.maximum(y, LEAKY_SLOPE * y)
        h = y.astype(jnp.bfloat16)
    y = jnp.dot(h, w5, preferred_element_type=jnp.float32) + ps("b5")
    return jnp.tanh(y)[:, :OUT_DIM].reshape(-1, 1, 28, 28)


if __name__ == "__main__":
    key = jax.random.PRNGKey(0)
    k_params, k_x = jax.random.split(key)
    params = init_params(k_params)
    batch = 8
    x = jax.random.normal(k_x, (batch, INPUT_DIM), jnp.float32)

    out = jax.block_until_ready(vanilla_generator(x, params))
    ref = _reference(x, params)

    assert out.shape == (batch, 1, 28, 28)
    err = float(jnp.max(jnp.abs(out - ref)))
    # Both paths use bf16 MXU inputs with f32 accumulation; differences are
    # accumulation-order level, well under this tolerance.
    assert jnp.allclose(out, ref, atol=2e-2, rtol=2e-2), f"max abs err = {err}"
    print("KERNEL_OK")
</pallas_src>

<mosaic_0001>
module attributes {stable_mosaic.version = 11 : i64} {
  func.func @_generator_kernel(%arg0: memref<8x10xf32, #tpu.memory_space<vmem>>, %arg1: memref<1x4736xf32, #tpu.memory_space<vmem>>, %arg2: memref<10x128xbf16, #tpu.memory_space<vmem>>, %arg3: memref<128x256xbf16, #tpu.memory_space<vmem>>, %arg4: memref<256x512xbf16, #tpu.memory_space<vmem>>, %arg5: memref<512x1024xbf16, #tpu.memory_space<any>>, %arg6: memref<1024x896xbf16, #tpu.memory_space<any>>, %arg7: memref<8x896xf32, #tpu.memory_space<vmem>>, %arg8: memref<512x1024xbf16, #tpu.memory_space<vmem>>, %arg9: memref<1024x896xbf16, #tpu.memory_space<vmem>>, %arg10: memref<2x!tpu.dma_semaphore, #tpu.memory_space<semaphore_mem>>) attributes {dimension_semantics = [], scalar_prefetch = 0 : i64, scratch_operands = 3 : i64, tpu.core_type = #tpu.core_type<tc>} {
    %c0_i32 = arith.constant 0 : i32
    %0 = tpu.memref_slice %arg10[%c0_i32] : memref<2x!tpu.dma_semaphore, #tpu.memory_space<semaphore_mem>> -> memref<1x!tpu.dma_semaphore, #tpu.memory_space<semaphore_mem>>
    %1 = tpu.memref_squeeze %0 : memref<1x!tpu.dma_semaphore, #tpu.memory_space<semaphore_mem>> -> memref<!tpu.dma_semaphore, #tpu.memory_space<semaphore_mem>>
    tpu.enqueue_dma source(%arg5 : memref<512x1024xbf16, #tpu.memory_space<any>>) target(%arg8 : memref<512x1024xbf16, #tpu.memory_space<vmem>>) target_semaphore(%1 : memref<!tpu.dma_semaphore, #tpu.memory_space<semaphore_mem>>)
    %c1_i32 = arith.constant 1 : i32
    %2 = tpu.memref_slice %arg10[%c1_i32] : memref<2x!tpu.dma_semaphore, #tpu.memory_space<semaphore_mem>> -> memref<1x!tpu.dma_semaphore, #tpu.memory_space<semaphore_mem>>
    %3 = tpu.memref_squeeze %2 : memref<1x!tpu.dma_semaphore, #tpu.memory_space<semaphore_mem>> -> memref<!tpu.dma_semaphore, #tpu.memory_space<semaphore_mem>>
    tpu.enqueue_dma source(%arg6 : memref<1024x896xbf16, #tpu.memory_space<any>>) target(%arg9 : memref<1024x896xbf16, #tpu.memory_space<vmem>>) target_semaphore(%3 : memref<!tpu.dma_semaphore, #tpu.memory_space<semaphore_mem>>)
    %c0 = arith.constant 0 : index
    %c0_0 = arith.constant 0 : index
    %4 = vector.load %arg0[%c0, %c0_0] : memref<8x10xf32, #tpu.memory_space<vmem>>, vector<8x10xf32>
    %5 = arith.truncf %4 : vector<8x10xf32> to vector<8x10xbf16>
    %c0_1 = arith.constant 0 : index
    %c0_2 = arith.constant 0 : index
    %6 = vector.load %arg2[%c0_1, %c0_2] : memref<10x128xbf16, #tpu.memory_space<vmem>>, vector<10x128xbf16>
    %c0_3 = arith.constant 0 : index
    %c0_4 = arith.constant 0 : index
    %7 = vector.load %arg1[%c0_3, %c0_4] : memref<1x4736xf32, #tpu.memory_space<vmem>>, vector<1x128xf32>
    %c0_5 = arith.constant 0 : index
    %c128 = arith.constant 128 : index
    %8 = vector.load %arg1[%c0_5, %c128] : memref<1x4736xf32, #tpu.memory_space<vmem>>, vector<1x128xf32>
    %cst = arith.constant dense<0.000000e+00> : vector<8x128xf32>
    %9 = tpu.matmul %5, %6, %cst {dimension_numbers = #tpu.dot_dimension_numbers<[1], [0], [0], [1], [0, 0, 1, 1], [], []>} : vector<8x10xbf16>, vector<10x128xbf16>, vector<8x128xf32> -> vector<8x128xf32>
    %cst_6 = arith.constant dense<0.000000e+00> : vector<128xf32>
    %10 = vector.multi_reduction <add>, %9, %cst_6 [0] : vector<8x128xf32> to vector<128xf32>
    %11 = vector.shape_cast %10 : vector<128xf32> to vector<1x128xf32>
    %cst_7 = arith.constant 8.000000e+00 : f32
    %12 = vector.broadcast %cst_7 : f32 to vector<1x128xf32>
    %13 = arith.divf %11, %12 : vector<1x128xf32>
    %14 = vector.broadcast %13 : vector<1x128xf32> to vector<8x128xf32>
    %15 = arith.subf %9, %14 : vector<8x128xf32>
    %16 = arith.mulf %15, %15 : vector<8x128xf32>
    %cst_8 = arith.constant dense<0.000000e+00> : vector<128xf32>
    %17 = vector.multi_reduction <add>, %16, %cst_8 [0] : vector<8x128xf32> to vector<128xf32>
    %18 = vector.shape_cast %17 : vector<128xf32> to vector<1x128xf32>
    %cst_9 = arith.constant 8.000000e+00 : f32
    %19 = vector.broadcast %cst_9 : f32 to vector<1x128xf32>
    %20 = arith.divf %18, %19 : vector<1x128xf32>
    %cst_10 = arith.constant 9.99999974E-6 : f32
    %21 = vector.broadcast %cst_10 : f32 to vector<1x128xf32>
    %22 = arith.addf %20, %21 : vector<1x128xf32>
    %23 = math.rsqrt %22 : vector<1x128xf32>
    %24 = arith.mulf %7, %23 : vector<1x128xf32>
    %25 = vector.broadcast %24 : vector<1x128xf32> to vector<8x128xf32>
    %26 = arith.mulf %15, %25 : vector<8x128xf32>
    %27 = vector.broadcast %8 : vector<1x128xf32> to vector<8x128xf32>
    %28 = arith.addf %26, %27 : vector<8x128xf32>
    %cst_11 = arith.constant 0.00999999977 : f32
    %29 = vector.broadcast %cst_11 : f32 to vector<8x128xf32>
    %30 = arith.mulf %29, %28 : vector<8x128xf32>
    %31 = arith.maximumf %28, %30 : vector<8x128xf32>
    %32 = arith.truncf %31 : vector<8x128xf32> to vector<8x128xbf16>
    %c0_12 = arith.constant 0 : index
    %c0_13 = arith.constant 0 : index
    %33 = vector.load %arg3[%c0_12, %c0_13] : memref<128x256xbf16, #tpu.memory_space<vmem>>, vector<128x256xbf16>
    %c0_14 = arith.constant 0 : index
    %c256 = arith.constant 256 : index
    %34 = vector.load %arg1[%c0_14, %c256] : memref<1x4736xf32, #tpu.memory_space<vmem>>, vector<1x256xf32>
    %c0_15 = arith.constant 0 : index
    %c512 = arith.constant 512 : index
    %35 = vector.load %arg1[%c0_15, %c512] : memref<1x4736xf32, #tpu.memory_space<vmem>>, vector<1x256xf32>
    %cst_16 = arith.constant dense<0.000000e+00> : vector<8x256xf32>
    %36 = tpu.matmul %32, %33, %cst_16 {dimension_numbers = #tpu.dot_dimension_numbers<[1], [0], [0], [1], [0, 0, 1, 1], [], []>} : vector<8x128xbf16>, vector<128x256xbf16>, vector<8x256xf32> -> vector<8x256xf32>
    %cst_17 = arith.constant dense<0.000000e+00> : vector<256xf32>
    %37 = vector.multi_reduction <add>, %36, %cst_17 [0] : vector<8x256xf32> to vector<256xf32>
    %38 = vector.shape_cast %37 : vector<256xf32> to vector<1x256xf32>
    %cst_18 = arith.constant 8.000000e+00 : f32
    %39 = vector.broadcast %cst_18 : f32 to vector<1x256xf32>
    %40 = arith.divf %38, %39 : vector<1x256xf32>
    %41 = vector.broadcast %40 : vector<1x256xf32> to vector<8x256xf32>
    %42 = arith.subf %36, %41 : vector<8x256xf32>
    %43 = arith.mulf %42, %42 : vector<8x256xf32>
    %cst_19 = arith.constant dense<0.000000e+00> : vector<256xf32>
    %44 = vector.multi_reduction <add>, %43, %cst_19 [0] : vector<8x256xf32> to vector<256xf32>
    %45 = vector.shape_cast %44 : vector<256xf32> to vector<1x256xf32>
    %cst_20 = arith.constant 8.000000e+00 : f32
    %46 = vector.broadcast %cst_20 : f32 to vector<1x256xf32>
    %47 = arith.divf %45, %46 : vector<1x256xf32>
    %cst_21 = arith.constant 9.99999974E-6 : f32
    %48 = vector.broadcast %cst_21 : f32 to vector<1x256xf32>
    %49 = arith.addf %47, %48 : vector<1x256xf32>
    %50 = math.rsqrt %49 : vector<1x256xf32>
    %51 = arith.mulf %34, %50 : vector<1x256xf32>
    %52 = vector.broadcast %51 : vector<1x256xf32> to vector<8x256xf32>
    %53 = arith.mulf %42, %52 : vector<8x256xf32>
    %54 = vector.broadcast %35 : vector<1x256xf32> to vector<8x256xf32>
    %55 = arith.addf %53, %54 : vector<8x256xf32>
    %cst_22 = arith.constant 0.00999999977 : f32
    %56 = vector.broadcast %cst_22 : f32 to vector<8x256xf32>
    %57 = arith.mulf %56, %55 : vector<8x256xf32>
    %58 = arith.maximumf %55, %57 : vector<8x256xf32>
    %59 = arith.truncf %58 : vector<8x256xf32> to vector<8x256xbf16>
    %c0_23 = arith.constant 0 : index
    %c0_24 = arith.constant 0 : index
    %60 = vector.load %arg4[%c0_23, %c0_24] : memref<256x512xbf16, #tpu.memory_space<vmem>>, vector<256x512xbf16>
    %c0_25 = arith.constant 0 : index
    %c768 = arith.constant 768 : index
    %61 = vector.load %arg1[%c0_25, %c768] : memref<1x4736xf32, #tpu.memory_space<vmem>>, vector<1x512xf32>
    %c0_26 = arith.constant 0 : index
    %c1280 = arith.constant 1280 : index
    %62 = vector.load %arg1[%c0_26, %c1280] : memref<1x4736xf32, #tpu.memory_space<vmem>>, vector<1x512xf32>
    %cst_27 = arith.constant dense<0.000000e+00> : vector<8x512xf32>
    %63 = tpu.matmul %59, %60, %cst_27 {dimension_numbers = #tpu.dot_dimension_numbers<[1], [0], [0], [1], [0, 0, 1, 1], [], []>} : vector<8x256xbf16>, vector<256x512xbf16>, vector<8x512xf32> -> vector<8x512xf32>
    %cst_28 = arith.constant dense<0.000000e+00> : vector<512xf32>
    %64 = vector.multi_reduction <add>, %63, %cst_28 [0] : vector<8x512xf32> to vector<512xf32>
    %65 = vector.shape_cast %64 : vector<512xf32> to vector<1x512xf32>
    %cst_29 = arith.constant 8.000000e+00 : f32
    %66 = vector.broadcast %cst_29 : f32 to vector<1x512xf32>
    %67 = arith.divf %65, %66 : vector<1x512xf32>
    %68 = vector.broadcast %67 : vector<1x512xf32> to vector<8x512xf32>
    %69 = arith.subf %63, %68 : vector<8x512xf32>
    %70 = arith.mulf %69, %69 : vector<8x512xf32>
    %cst_30 = arith.constant dense<0.000000e+00> : vector<512xf32>
    %71 = vector.multi_reduction <add>, %70, %cst_30 [0] : vector<8x512xf32> to vector<512xf32>
    %72 = vector.shape_cast %71 : vector<512xf32> to vector<1x512xf32>
    %cst_31 = arith.constant 8.000000e+00 : f32
    %73 = vector.broadcast %cst_31 : f32 to vector<1x512xf32>
    %74 = arith.divf %72, %73 : vector<1x512xf32>
    %cst_32 = arith.constant 9.99999974E-6 : f32
    %75 = vector.broadcast %cst_32 : f32 to vector<1x512xf32>
    %76 = arith.addf %74, %75 : vector<1x512xf32>
    %77 = math.rsqrt %76 : vector<1x512xf32>
    %78 = arith.mulf %61, %77 : vector<1x512xf32>
    %79 = vector.broadcast %78 : vector<1x512xf32> to vector<8x512xf32>
    %80 = arith.mulf %69, %79 : vector<8x512xf32>
    %81 = vector.broadcast %62 : vector<1x512xf32> to vector<8x512xf32>
    %82 = arith.addf %80, %81 : vector<8x512xf32>
    %cst_33 = arith.constant 0.00999999977 : f32
    %83 = vector.broadcast %cst_33 : f32 to vector<8x512xf32>
    %84 = arith.mulf %83, %82 : vector<8x512xf32>
    %85 = arith.maximumf %82, %84 : vector<8x512xf32>
    %86 = arith.truncf %85 : vector<8x512xf32> to vector<8x512xbf16>
    %c0_i32_34 = arith.constant 0 : i32
    %87 = tpu.memref_slice %arg10[%c0_i32_34] : memref<2x!tpu.dma_semaphore, #tpu.memory_space<semaphore_mem>> -> memref<1x!tpu.dma_semaphore, #tpu.memory_space<semaphore_mem>>
    %88 = tpu.memref_squeeze %87 : memref<1x!tpu.dma_semaphore, #tpu.memory_space<semaphore_mem>> -> memref<!tpu.dma_semaphore, #tpu.memory_space<semaphore_mem>>
    tpu.wait_dma2 semaphore(%88 : memref<!tpu.dma_semaphore, #tpu.memory_space<semaphore_mem>>) src(%arg5 : memref<512x1024xbf16, #tpu.memory_space<any>>) dst(%arg8 : memref<512x1024xbf16, #tpu.memory_space<vmem>>)
    %c0_35 = arith.constant 0 : index
    %c0_36 = arith.constant 0 : index
    %89 = vector.load %arg8[%c0_35, %c0_36] : memref<512x1024xbf16, #tpu.memory_space<vmem>>, vector<512x1024xbf16>
    %c0_37 = arith.constant 0 : index
    %c1792 = arith.constant 1792 : index
    %90 = vector.load %arg1[%c0_37, %c1792] : memref<1x4736xf32, #tpu.memory_space<vmem>>, vector<1x1024xf32>
    %c0_38 = arith.constant 0 : index
    %c2816 = arith.constant 2816 : index
    %91 = vector.load %arg1[%c0_38, %c2816] : memref<1x4736xf32, #tpu.memory_space<vmem>>, vector<1x1024xf32>
    %cst_39 = arith.constant dense<0.000000e+00> : vector<8x1024xf32>
    %92 = tpu.matmul %86, %89, %cst_39 {dimension_numbers = #tpu.dot_dimension_numbers<[1], [0], [0], [1], [0, 0, 1, 1], [], []>} : vector<8x512xbf16>, vector<512x1024xbf16>, vector<8x1024xf32> -> vector<8x1024xf32>
    %cst_40 = arith.constant dense<0.000000e+00> : vector<1024xf32>
    %93 = vector.multi_reduction <add>, %92, %cst_40 [0] : vector<8x1024xf32> to vector<1024xf32>
    %94 = vector.shape_cast %93 : vector<1024xf32> to vector<1x1024xf32>
    %cst_41 = arith.constant 8.000000e+00 : f32
    %95 = vector.broadcast %cst_41 : f32 to vector<1x1024xf32>
    %96 = arith.divf %94, %95 : vector<1x1024xf32>
    %97 = vector.broadcast %96 : vector<1x1024xf32> to vector<8x1024xf32>
    %98 = arith.subf %92, %97 : vector<8x1024xf32>
    %99 = arith.mulf %98, %98 : vector<8x1024xf32>
    %cst_42 = arith.constant dense<0.000000e+00> : vector<1024xf32>
    %100 = vector.multi_reduction <add>, %99, %cst_42 [0] : vector<8x1024xf32> to vector<1024xf32>
    %101 = vector.shape_cast %100 : vector<1024xf32> to vector<1x1024xf32>
    %cst_43 = arith.constant 8.000000e+00 : f32
    %102 = vector.broadcast %cst_43 : f32 to vector<1x1024xf32>
    %103 = arith.divf %101, %102 : vector<1x1024xf32>
    %cst_44 = arith.constant 9.99999974E-6 : f32
    %104 = vector.broadcast %cst_44 : f32 to vector<1x1024xf32>
    %105 = arith.addf %103, %104 : vector<1x1024xf32>
    %106 = math.rsqrt %105 : vector<1x1024xf32>
    %107 = arith.mulf %90, %106 : vector<1x1024xf32>
    %108 = vector.broadcast %107 : vector<1x1024xf32> to vector<8x1024xf32>
    %109 = arith.mulf %98, %108 : vector<8x1024xf32>
    %110 = vector.broadcast %91 : vector<1x1024xf32> to vector<8x1024xf32>
    %111 = arith.addf %109, %110 : vector<8x1024xf32>
    %cst_45 = arith.constant 0.00999999977 : f32
    %112 = vector.broadcast %cst_45 : f32 to vector<8x1024xf32>
    %113 = arith.mulf %112, %111 : vector<8x1024xf32>
    %114 = arith.maximumf %111, %113 : vector<8x1024xf32>
    %115 = arith.truncf %114 : vector<8x1024xf32> to vector<8x1024xbf16>
    %c1_i32_46 = arith.constant 1 : i32
    %116 = tpu.memref_slice %arg10[%c1_i32_46] : memref<2x!tpu.dma_semaphore, #tpu.memory_space<semaphore_mem>> -> memref<1x!tpu.dma_semaphore, #tpu.memory_space<semaphore_mem>>
    %117 = tpu.memref_squeeze %116 : memref<1x!tpu.dma_semaphore, #tpu.memory_space<semaphore_mem>> -> memref<!tpu.dma_semaphore, #tpu.memory_space<semaphore_mem>>
    tpu.wait_dma2 semaphore(%117 : memref<!tpu.dma_semaphore, #tpu.memory_space<semaphore_mem>>) src(%arg6 : memref<1024x896xbf16, #tpu.memory_space<any>>) dst(%arg9 : memref<1024x896xbf16, #tpu.memory_space<vmem>>)
    %c0_47 = arith.constant 0 : index
    %c0_48 = arith.constant 0 : index
    %118 = vector.load %arg9[%c0_47, %c0_48] : memref<1024x896xbf16, #tpu.memory_space<vmem>>, vector<1024x896xbf16>
    %cst_49 = arith.constant dense<0.000000e+00> : vector<8x896xf32>
    %119 = tpu.matmul %115, %118, %cst_49 {dimension_numbers = #tpu.dot_dimension_numbers<[1], [0], [0], [1], [0, 0, 1, 1], [], []>} : vector<8x1024xbf16>, vector<1024x896xbf16>, vector<8x896xf32> -> vector<8x896xf32>
    %c0_50 = arith.constant 0 : index
    %c3840 = arith.constant 3840 : index
    %120 = vector.load %arg1[%c0_50, %c3840] : memref<1x4736xf32, #tpu.memory_space<vmem>>, vector<1x896xf32>
    %121 = vector.broadcast %120 : vector<1x896xf32> to vector<8x896xf32>
    %122 = arith.addf %119, %121 : vector<8x896xf32>
    %123 = math.tanh %122 : vector<8x896xf32>
    %c0_51 = arith.constant 0 : index
    %c0_52 = arith.constant 0 : index
    %124 = vector.load %arg7[%c0_51, %c0_52] : memref<8x896xf32, #tpu.memory_space<vmem>>, vector<8x896xf32>
    tpu.vector_store %arg7[%c0_51, %c0_52], %123 {strides = array<i32>} : memref<8x896xf32, #tpu.memory_space<vmem>>, vector<8x896xf32>,
    return
  }
}

</mosaic_0001>

<bundles_post_ra>
// kernel: vanilla_generator.1
= control target key start
LH: loop header
LB: loop body
LE: loop exit
PB: predicated region body
PF: predicated region fallthrough
CT: control target
= control target key end

     0   :  { %12 = vsyncpa [#allocation6], 0  ;;  %s11550_s0 = inlined_call_operand.hbm [shape: f32[8,10], index: 0, kind: input, shape index: {}]   ;;  %s11551_s1 = inlined_call_operand.hbm [shape: f32[1,4736], index: 1, kind: input, shape index: {}]   ;;  %s11552_s2 = inlined_call_operand.hbm [shape: bf16[10,128], index: 2, kind: input, shape index: {}]   ;;  %s11553_s3 = inlined_call_operand.hbm [shape: bf16[128,256], index: 3, kind: input, shape index: {}]   ;;  %s11554_s4 = inlined_call_operand.hbm [shape: bf16[256,512], index: 4, kind: input, shape index: {}]   ;;  %s11555_s5 = inlined_call_operand.hbm [shape: bf16[512,1024], index: 5, kind: input, shape index: {}]   ;;  %s11556_s6 = inlined_call_operand.hbm [shape: bf16[1024,896], index: 6, kind: input, shape index: {}]   ;;  %s11557_s7 = inlined_call_operand.vmem [shape: f32[8,896], index: 7, kind: output, shape index: {}]  }
   0x1   :  { %13 = vsyncpa [#allocation8], 0  ;;  %s31_s26 = sshll.u32 %s11551_s1, 4  ;;  %s32_s26 = int_to_ptr.hbm [resolvable:$true] %s31_s26 }
   0x2   :  { %14 = vsyncpa [#allocation11], 0  ;;  %s11100_s27 = smov [#allocation7]   ;;  %s54_s8 = sshll.u32 %s11553_s3, 4  ;;  %s55_s8 = int_to_ptr.hbm [resolvable:$true] %s54_s8 }
   0x3   :  { %s33_s28 = sshll.u32 %s11100_s27, 4  ;;  %s11101_s9 = smov [#allocation10]   ;;  %s34_s28 = int_to_ptr.vmem [resolvable:$true] %s33_s28 }
   0x4   :  { %36 = dma.hbm_to_vmem [thread:$0]  %s32_s26, 592, %s34_s28, [#allocation8]  }
   0x5   :  { %s56_s10 = sshll.u32 %s11101_s9, 4  ;;  %s11102_s11 = smov 128   ;;  %s57_s10 = int_to_ptr.vmem [resolvable:$true] %s56_s10 }
   0x6   :  { %s11103_s12 = smov 8   ;;  %s20_s1 = sshll.u32 %s11550_s0, 4  ;;  %s21_s1 = int_to_ptr.hbm [resolvable:$true] %s20_s1 }
   0x7   :  { %62 = dma.hbm_to_vmem [thread:$0]  %s55_s8, 2048, %s57_s10, [#allocation11], %s11102_s11, %s11102_s11, %s11103_s12  }
   0x8   :  { %s11104_s15 = smov [#allocation5]   ;;  %s41_s3 = sshll.u32 %s11552_s2, 4  ;;  %s42_s3 = int_to_ptr.hbm [resolvable:$true] %s41_s3 }
   0x9   :  { %s22_s16 = sshll.u32 %s11104_s15, 4  ;;  %s11105_s19 = smov [#allocation9]   ;;  %s23_s16 = int_to_ptr.vmem [resolvable:$true] %s22_s16 }
   0xa   :  { %25 = dma.hbm_to_vmem [thread:$0]  %s21_s1, 128, %s23_s16, [#allocation6]  }
   0xb   :  { %s43_s20 = sshll.u32 %s11105_s19, 4  ;;  %s11106_s21 = smov 64   ;;  %s44_s20 = int_to_ptr.vmem [resolvable:$true] %s43_s20 }
   0xc   :  { %s11107_s22 = smov 4   ;;  %s67_s0 = sshll.u32 %s11554_s4, 4  ;;  %s68_s0 = int_to_ptr.hbm [resolvable:$true] %s67_s0 }
   0xd   :  { %49 = dma.hbm_to_vmem [thread:$0]  %s42_s3, 128, %s44_s20, [#allocation8], %s11106_s21, %s11106_s21, %s11107_s22  }
   0xe   :  { %s11108_s25 = smov [#allocation12]   ;;  %s11109_s27 = smov 256  }
   0xf   :  { %s69_s26 = sshll.u32 %s11108_s25, 4  ;;  %s11110_s28 = smov 16   ;;  %s70_s26 = int_to_ptr.vmem [resolvable:$true] %s69_s26 }
  0x10   :  { %75 = dma.hbm_to_vmem [thread:$0]  %s68_s0, 8192, %s70_s26, [#allocation11], %s11109_s27, %s11109_s27, %s11110_s28  }
  0x11   :  { %11090 = dma.done.wait [#allocation6], 128  }
  0x12   :  { %11091 = vsyncadd [#allocation6], 4294967168 }
  0x13   :  { %11092 = dma.done.wait [#allocation8], 720  }
  0x14   :  { %11093 = vsyncadd [#allocation8], 4294966576 }
  0x15   :  { %11094 = dma.done.wait [#allocation11], 10240  }
  0x16   :  { %11095 = vsyncadd [#allocation11], 4294957056  ;;  %v6933_v0 = vld [vmem:[#allocation9] sm:$0xf]  ;;  %v10074_v1 = vld [vmem:[#allocation9] sm:$0x10] }
  0x17   :  { %vm139_vm0 = vcmask 1044480   ;;  %v124_v2 = vld [vmem:[#allocation5] sm:$0xff]  ;;  %v6934_v3 = vor.u32 %v10074_v1, %v6933_v0  ;;  %vm135_vm1 = vcmask 80896   ;;  %v11111_v6 = vmov 8.0   ;;  %v10090_v13 = vld [vmem:[#allocation10 + $0x74] sm:$0xf0] }
  0x18   :  { %v125_v5 = vpack.c.bf16 %v124_v2, %v124_v2  ;;  %10874 = vrcp.f32 %v11111_v6  ;;  %v6994_v12 = vld [vmem:[#allocation10 + $0x70] sm:$0xf]  ;;  %v10089_v16 = vld [vmem:[#allocation10 + $0x74] sm:$0xf]  ;;  %v6996_v17 = vld [vmem:[#allocation10 + $0x78] sm:$0xf0] }
  0x19   :  { %v141_v4 = vsel %vm139_vm0, %v6934_v3, 0  ;;  %v6995_v15 = vor.u32 %v10090_v13, %v6994_v12  ;;  %v6999_v19 = vor.u32 %v10089_v16, %v6996_v17  ;;  %v6986_v21 = vld [vmem:[#allocation10 + $0x60] sm:$0xf]  ;;  %v10088_v22 = vld [vmem:[#allocation10 + $0x64] sm:$0xf0]  ;;  %vm383_vm11 = vcmask 1040384  }
  0x1a   :  { %150 = vmatpush.bf16.msra.mxu0 %v141_v4  ;;  %v6987_v24 = vor.u32 %v10088_v22, %v6986_v21  ;;  %v10087_v25 = vld [vmem:[#allocation10 + $0x64] sm:$0xf]  ;;  %v6988_v26 = vld [vmem:[#allocation10 + $0x68] sm:$0xf0]  ;;  %v6978_v31 = vld [vmem:[#allocation10 + $0x50] sm:$0xf] }
  0x1b   :  { %300 = vmatpush.bf16.msra.mxu1 %v6995_v15  ;;  %313 = vmatpush.bf16.msra.mxu2 %v6999_v19  ;;  %v6991_v28 = vor.u32 %v10087_v25, %v6988_v26  ;;  %v10086_v32 = vld [vmem:[#allocation10 + $0x54] sm:$0xf0]  ;;  %v10085_v35 = vld [vmem:[#allocation10 + $0x54] sm:$0xf]  ;;  %v6980_v36 = vld [vmem:[#allocation10 + $0x58] sm:$0xf0] }
  0x1c   :  { %v6979_v34 = vor.u32 %v10086_v32, %v6978_v31  ;;  %v6983_v38 = vor.u32 %v10085_v35, %v6980_v36  ;;  %v6970_v40 = vld [vmem:[#allocation10 + $0x40] sm:$0xf]  ;;  %v10084_v41 = vld [vmem:[#allocation10 + $0x44] sm:$0xf0]  ;;  %v10083_v42 = vld [vmem:[#allocation10 + $0x44] sm:$0xf] }
  0x1d   :  { %6935 = vmatmul.msk.bf16.vlgmr.msra.gmra.mxu0 %vm135_vm1, %v125_v5  ;;  %v6971_v43 = vor.u32 %v10084_v41, %v6970_v40  ;;  %v6972_v44 = vld [vmem:[#allocation10 + $0x48] sm:$0xf0]  ;;  %v6962_v48 = vld [vmem:[#allocation10 + $0x30] sm:$0xf]  ;;  %v10082_v49 = vld [vmem:[#allocation10 + $0x34] sm:$0xf0] }
  0x1e   :  { %v10875_v7 = vpop.eup %10874  ;;  %v6975_v46 = vor.u32 %v10083_v42, %v6972_v44  ;;  %v10081_v50 = vld [vmem:[#allocation10 + $0x34] sm:$0xf]  ;;  %v6963_v51 = vor.u32 %v10082_v49, %v6962_v48  ;;  %v6964_v52 = vld [vmem:[#allocation10 + $0x38] sm:$0xf0]  ;;  %v6954_v56 = vld [vmem:[#allocation10 + $0x20] sm:$0xf] }
  0x1f   :  { %v163_v8 = vmul.f32 8.0, %v10875_v7  ;;  %vm167_vm2 = vweird.f32 %v10875_v7  ;;  %301 = vmatpush.bf16.msra.mxu1 %v6987_v24  ;;  %314 = vmatpush.bf16.msra.mxu2 %v6991_v28  ;;  %v6967_v54 = vor.u32 %v10081_v50, %v6964_v52  ;;  %v10080_v57 = vld [vmem:[#allocation10 + $0x24] sm:$0xf0]  ;;  %v10079_v58 = vld [vmem:[#allocation10 + $0x24] sm:$0xf]  ;;  %s104_s29 = sshll.u32 %s11555_s5, 4  ;;  %s105_s29 = int_to_ptr.hbm [resolvable:$true] %s104_s29 }
  0x20   :  { %v6955_v59 = vor.u32 %v10080_v57, %v6954_v56  ;;  %v6956_v60 = vld [vmem:[#allocation10 + $0x28] sm:$0xf0]  ;;  %v6946_v0 = vld [vmem:[#allocation10 + $0x10] sm:$0xf]  ;;  %v10078_v1 = vld [vmem:[#allocation10 + $0x14] sm:$0xf0] }
  0x21   :  { %v164_v9 = vsub.f32 1.0, %v163_v8  ;;  %v6959_v62 = vor.u32 %v10079_v58, %v6956_v60  ;;  %v10077_v2 = vld [vmem:[#allocation10 + $0x14] sm:$0xf]  ;;  %v6947_v3 = vor.u32 %v10078_v1, %v6946_v0  ;;  %v6948_v4 = vld [vmem:[#allocation10 + $0x18] sm:$0xf0]  ;;  %s11112_s30 = smov [#allocation2]  }
  0x22   :  { %v6938_v5 = vld [vmem:[#allocation10] sm:$0xf]  ;;  %v10076_v6 = vld [vmem:[#allocation10 + $0x4] sm:$0xf0]  ;;  %v6951_v8 = vor.u32 %v10077_v2, %v6948_v4  ;;  %v128_v21 = vld [vmem:[#allocation7] sm:$0x1] }
  0x23   :  { %v165_v14 = vmul.f32 %v10875_v7, %v164_v9  ;;  %302 = vmatpush.bf16.msra.mxu1 %v6979_v34  ;;  %315 = vmatpush.bf16.msra.mxu2 %v6983_v38  ;;  %v10075_v9 = vld [vmem:[#allocation10 + $0x4] sm:$0xf]  ;;  %v10873_v26 = vld [vmem:[#allocation7 + $0x1] ss:$0 sm:$0xff]  ;;  %v7114_v32 = vld [vmem:[#allocation12 + $0xe0] sm:$0xf] }
  0x24   :  { %v10121_v34 = vld [vmem:[#allocation12 + $0xec] sm:$0xf0]  ;;  %v7242_v35 = vld [vmem:[#allocation12 + $0x1e0] sm:$0xf]  ;;  %v10119_v38 = vld [vmem:[#allocation12 + $0xe4] sm:$0xf] }
  0x25   :  { %v166_v23 = vadd.f32 %v10875_v7, %v165_v14  ;;  %v7115_v36 = vor.u32 %v10121_v34, %v7114_v32  ;;  %v10151_v42 = vld [vmem:[#allocation12 + $0x1e4] sm:$0xf]  ;;  %v10117_v48 = vld [vmem:[#allocation12 + $0xcc] sm:$0xf0]  ;;  %v7226_v50 = vld [vmem:[#allocation12 + $0x1c0] sm:$0xf] }
  0x26   :  { %v10115_v52 = vld [vmem:[#allocation12 + $0xc4] sm:$0xf]  ;;  %v7228_v57 = vld [vmem:[#allocation12 + $0x1d0] sm:$0xf0]  ;;  %v7210_v1 = vld [vmem:[#allocation12 + $0x1a0] sm:$0xf] }
  0x27   :  { %v11169_v33 = vsel %vm167_vm2, %v10875_v7, %v166_v23  ;;  %303 = vmatpush.bf16.msra.mxu1 %v6971_v43  ;;  %316 = vmatpush.bf16.msra.mxu2 %v6975_v46  ;;  %v7244_v43 = vld [vmem:[#allocation12 + $0x1f0] sm:$0xf0]  ;;  %v10147_v56 = vld [vmem:[#allocation12 + $0x1c4] sm:$0xf]  ;;  %v10145_v2 = vld [vmem:[#allocation12 + $0x1ac] sm:$0xf0] }
  0x28   :  { %793 = vmatpush.bf16.msra.mxu3 %v7115_v36  ;;  %v10105_v32 = vld [vmem:[#allocation12 + $0x6c] sm:$0xf0]  ;;  %v7178_v34 = vld [vmem:[#allocation12 + $0x160] sm:$0xf]  ;;  %s106_s8 = sshll.u32 %s11112_s30, 4  ;;  %s118_s11 = sshll.u32 %s11556_s6, 4  ;;  %s107_s8 = int_to_ptr.vmem [resolvable:$true] %s106_s8  ;;  %s119_s11 = int_to_ptr.hbm [resolvable:$true] %s118_s11 }
  0x29   :  { %109 = dma.hbm_to_vmem [thread:$0]  %s105_s29, 32768, %s107_s8, [#allocation4] }
  0x2a   :  { %s11113_s12 = smov [#allocation3]  }
  0x2b   :  { %304 = vmatpush.bf16.msra.mxu1 %v6963_v51  ;;  %317 = vmatpush.bf16.msra.mxu2 %v6967_v54  ;;  %v10149_v51 = vld [vmem:[#allocation12 + $0x1cc] sm:$0xf0]  ;;  %s120_s13 = sshll.u32 %s11113_s12, 4  ;;  %s121_s13 = int_to_ptr.vmem [resolvable:$true] %s120_s13 }
  0x2c   :  { %v7227_v54 = vor.u32 %v10149_v51, %v7226_v50  ;;  %v7034_v50 = vld [vmem:[#allocation12 + $0x40] sm:$0xf]  ;;  %v10101_v51 = vld [vmem:[#allocation12 + $0x4c] sm:$0xf0]  ;;  %123 = dma.hbm_to_vmem [thread:$0]  %s119_s11, 57344, %s121_s13, [#allocation4 + $0x1] }
  0x2f   :  { %305 = vmatpush.bf16.msra.mxu1 %v6955_v59  ;;  %318 = vmatpush.bf16.msra.mxu2 %v6959_v62  ;;  %v7231_v59 = vor.u32 %v10147_v56, %v7228_v57  ;;  %v10113_v62 = vld [vmem:[#allocation12 + $0xac] sm:$0xf0] }
  0x33   :  { %306 = vmatpush.bf16.msra.mxu1 %v6947_v3  ;;  %319 = vmatpush.bf16.msra.mxu2 %v6951_v8  ;;  %v10111_v3 = vld [vmem:[#allocation12 + $0xa4] sm:$0xf] }
  0x34   :  { %v10143_v8 = vld [vmem:[#allocation12 + $0x1a4] sm:$0xf] }
  0x9a   :  { %v152_v10 = vpop.f32.mrf.mxu0 }
  0x9b   :  { %v156_v11 = vrot.slane %v152_v10, 4 }
  0x9d   :  { %v157_v18 = vadd.f32 %v156_v11, %v152_v10  ;;  %v6939_v11 = vor.u32 %v10076_v6, %v6938_v5  ;;  %v7211_v6 = vor.u32 %v10145_v2, %v7210_v1  ;;  %v7018_v2 = vld [vmem:[#allocation12 + $0x20] sm:$0xf] }
  0x9f   :  { %v158_v20 = vrot.slane %v157_v18, 2  ;;  %307 = vmatpush.bf16.msra.mxu1 %v6939_v11  ;;  %v7212_v11 = vld [vmem:[#allocation12 + $0x1b0] sm:$0xf0] }
  0xa1   :  { %v159_v27 = vadd.f32 %v158_v20, %v157_v18 }
  0xa2   :  { %v154_v29 = vpop.f32.mrf.mxu0 }
  0xa3   :  { %v160_v30 = vrot.slane %v159_v27, 1 }
  0xa5   :  { %v161_v37 = vadd.f32 %v160_v30, %v159_v27 }
  0xa7   :  { %v169_v39 = vmul.f32 %v11169_v33, %v161_v37  ;;  %v10153_v37 = vld [vmem:[#allocation12 + $0x1ec] sm:$0xf0] }
  0xa8   :  { %v7243_v40 = vor.u32 %v10153_v37, %v7242_v35  ;;  %v10137_v37 = vld [vmem:[#allocation12 + $0x16c] sm:$0xf0] }
  0xa9   :  { %v170_v45 = vsub.f32 %v152_v10, %v169_v39  ;;  %v6940_v10 = vld [vmem:[#allocation10 + $0x8] sm:$0xf0]  ;;  %v7116_v39 = vld [vmem:[#allocation12 + $0xf0] sm:$0xf0] }
  0xaa   :  { %v6943_v13 = vor.u32 %v10075_v9, %v6940_v10  ;;  %v7119_v41 = vor.u32 %v10119_v38, %v7116_v39  ;;  %806 = vmatpush.bf16.msrb.mxu0 %v7243_v40  ;;  %v10103_v38 = vld [vmem:[#allocation12 + $0x64] sm:$0xf]  ;;  %v7052_v39 = vld [vmem:[#allocation12 + $0x70] sm:$0xf0] }
  0xab   :  { %v171_v47 = vmul.f32 %v170_v45, %v170_v45 }
  0xac   :  { %320 = vmatpush.bf16.msra.mxu2 %v6943_v13  ;;  %819 = vmatpush.bf16.msrb.mxu1 %v7119_v41 }
  0xad   :  { %v172_v53 = vrot.slane %v171_v47, 4 }
  0xae   :  { %807 = vmatpush.bf16.msrb.mxu0 %v7227_v54  ;;  %v10099_v54 = vld [vmem:[#allocation12 + $0x44] sm:$0xf] }
  0xaf   :  { %v173_v55 = vadd.f32 %v172_v53, %v171_v47  ;;  %v7098_v47 = vld [vmem:[#allocation12 + $0xc0] sm:$0xf] }
  0xb0   :  { %v7099_v49 = vor.u32 %v10117_v48, %v7098_v47 }
  0xb1   :  { %v174_v61 = vrot.slane %v173_v55, 2 }
  0xb2   :  { %794 = vmatpush.bf16.msra.mxu3 %v7099_v49  ;;  %808 = vmatpush.bf16.msrb.mxu0 %v7211_v6  ;;  %v10129_v6 = vld [vmem:[#allocation12 + $0x12c] sm:$0xf0] }
  0xb3   :  { %v175_v63 = vadd.f32 %v174_v61, %v173_v55  ;;  %v7100_v55 = vld [vmem:[#allocation12 + $0xd0] sm:$0xf0]  ;;  %v7082_v61 = vld [vmem:[#allocation12 + $0xa0] sm:$0xf] }
  0xb4   :  { %v7103_v58 = vor.u32 %v10115_v52, %v7100_v55  ;;  %v7083_v0 = vor.u32 %v10113_v62, %v7082_v61  ;;  %v7162_v52 = vld [vmem:[#allocation12 + $0x140] sm:$0xf]  ;;  %v7036_v55 = vld [vmem:[#allocation12 + $0x50] sm:$0xf0] }
  0xb5   :  { %v176_v7 = vrot.slane %v175_v63, 1  ;;  %v7164_v61 = vld [vmem:[#allocation12 + $0x150] sm:$0xf0] }
  0xb6   :  { %820 = vmatpush.bf16.msrb.mxu1 %v7103_v58  ;;  %795 = vmatpush.bf16.msra.mxu3 %v7083_v0 }
  0xb7   :  { %v177_v12 = vadd.f32 %v176_v7, %v175_v63  ;;  %v7084_v7 = vld [vmem:[#allocation12 + $0xb0] sm:$0xf0] }
  0xb8   :  { %v7087_v10 = vor.u32 %v10111_v3, %v7084_v7  ;;  %v10097_v3 = vld [vmem:[#allocation12 + $0x2c] sm:$0xf0]  ;;  %v10095_v7 = vld [vmem:[#allocation12 + $0x24] sm:$0xf] }
  0xb9   :  { %v178_v14 = vmul.f32 %v177_v12, %v11169_v33 }
  0xba   :  { %821 = vmatpush.bf16.msrb.mxu1 %v7087_v10 }
  0xbb   :  { %v179_v15 = vadd.f32 1e-05, %v178_v14  ;;  %v7215_v14 = vor.u32 %v10143_v8, %v7212_v11  ;;  %v7020_v8 = vld [vmem:[#allocation12 + $0x30] sm:$0xf0] }
  0xbd   :  { %10876 = vrsqrt.f32 %v179_v15  ;;  %vm186_vm4 = vweird.f32 %v179_v15 }
  0xc3   :  { %v10877_v16 = vpop.eup %10876 }
  0xc4   :  { %v181_v17 = vmul.f32 %v10877_v16, %v179_v15  ;;  %vm187_vm3 = vweird.f32 %v10877_v16  ;;  %v7066_v15 = vld [vmem:[#allocation12 + $0x80] sm:$0xf] }
  0xc5   :  { %vm188_vm5 = vmor %vm186_vm4, %vm187_vm3 }
  0xc6   :  { %v182_v18 = vmul.f32 %v10877_v16, %v181_v17 }
  0xc8   :  { %v183_v19 = vmul.f32 0.5, %v182_v18  ;;  %v7194_v18 = vld [vmem:[#allocation12 + $0x180] sm:$0xf] }
  0xca   :  { %v184_v20 = vsub.f32 1.5, %v183_v19 }
  0xcc   :  { %v185_v22 = vmul.f32 %v10877_v16, %v184_v20 }
  0xce   :  { %v189_v23 = vsel %vm188_vm5, %v10877_v16, %v185_v22  ;;  %v10109_v16 = vld [vmem:[#allocation12 + $0x8c] sm:$0xf0]  ;;  %v10107_v22 = vld [vmem:[#allocation12 + $0x84] sm:$0xf] }
  0xcf   :  { %v190_v24 = vmul.f32 %v189_v23, %v128_v21  ;;  %v7067_v17 = vor.u32 %v10109_v16, %v7066_v15  ;;  %v10141_v21 = vld [vmem:[#allocation12 + $0x18c] sm:$0xf0] }
  0xd0   :  { %v7195_v23 = vor.u32 %v10141_v21, %v7194_v18  ;;  %v10093_v18 = vld [vmem:[#allocation12 + $0xc] sm:$0xf0] }
  0xd1   :  { %v192_v25 = vperm.slane %v190_v24, 0  ;;  %796 = vmatpush.bf16.msra.mxu3 %v7067_v17  ;;  %v7068_v24 = vld [vmem:[#allocation12 + $0x90] sm:$0xf0]  ;;  %v7002_v17 = vld [vmem:[#allocation12] sm:$0xf] }
  0xd2   :  { %809 = vmatpush.bf16.msrb.mxu0 %v7195_v23  ;;  %v10125_v21 = vld [vmem:[#allocation12 + $0x10c] sm:$0xf0] }
  0xd3   :  { %v194_v27 = vmul.f32 %v192_v25, %v170_v45  ;;  %v7247_v45 = vor.u32 %v10151_v42, %v7244_v43  ;;  %v10139_v25 = vld [vmem:[#allocation12 + $0x184] sm:$0xf]  ;;  %v7179_v42 = vor.u32 %v10137_v37, %v7178_v34  ;;  %v7055_v43 = vor.u32 %v10103_v38, %v7052_v39  ;;  %v7250_v37 = vld [vmem:[#allocation12 + $0x1e8] sm:$0xf]  ;;  %v10154_v38 = vld [vmem:[#allocation12 + $0x1f4] sm:$0xf0] }
  0xd4   :  { %v7251_v39 = vor.u32 %v10154_v38, %v7250_v37  ;;  %v7060_v38 = vld [vmem:[#allocation12 + $0x78] sm:$0xf0] }
  0xd5   :  { %v198_v28 = vadd.f32 %v10873_v26, %v194_v27  ;;  %832 = vmatpush.bf16.msrb.mxu2 %v7247_v45  ;;  %v7196_v26 = vld [vmem:[#allocation12 + $0x190] sm:$0xf0]  ;;  %v10135_v45 = vld [vmem:[#allocation12 + $0x164] sm:$0xf] }
  0xd6   :  { %810 = vmatpush.bf16.msrb.mxu0 %v7179_v42  ;;  %v7124_v42 = vld [vmem:[#allocation12 + $0xf8] sm:$0xf0] }
  0xd7   :  { %v199_v29 = vmul.f32 0.01, %v198_v28 }
  0xd9   :  { %v200_v30 = vmax.f32 %v198_v28, %v199_v29  ;;  %833 = vmatpush.bf16.msrb.mxu2 %v7231_v59  ;;  %v7071_v29 = vor.u32 %v10107_v22, %v7068_v24  ;;  %v7039_v59 = vor.u32 %v10099_v54, %v7036_v55  ;;  %v10091_v22 = vld [vmem:[#allocation12 + $0x4] sm:$0xf]  ;;  %v10116_v54 = vld [vmem:[#allocation12 + $0xcc] sm:$0xf] }
  0xdb   :  { %v201_v31 = vpack.c.bf16 %v200_v30, %v200_v30  ;;  %v7199_v30 = vor.u32 %v10139_v25, %v7196_v26  ;;  %822 = vmatpush.bf16.msrb.mxu1 %v7071_v29  ;;  %v7004_v26 = vld [vmem:[#allocation12 + $0x10] sm:$0xf0] }
  0xdc   :  { %v7132_v29 = vld [vmem:[#allocation12 + $0x110] sm:$0xf0] }
  0xdd   :  { %308 = vmatmul.bf16.vlgmr.msra.gmra.mxu1 %v201_v31  ;;  %321 = vmatmul.bf16.vlgmr.msra.gmra.mxu2 %v201_v31  ;;  %v7050_v31 = vld [vmem:[#allocation12 + $0x60] sm:$0xf] }
  0xde   :  { %834 = vmatpush.bf16.msrb.mxu2 %v7215_v14  ;;  %v7051_v36 = vor.u32 %v10105_v32, %v7050_v31  ;;  %v7148_v14 = vld [vmem:[#allocation12 + $0x130] sm:$0xf0]  ;;  %v10122_v31 = vld [vmem:[#allocation12 + $0xf4] sm:$0xf0] }
  0xdf   :  { %823 = vmatpush.bf16.msrb.mxu1 %v7055_v43  ;;  %v10152_v43 = vld [vmem:[#allocation12 + $0x1ec] sm:$0xf] }
  0xe0   :  { %797 = vmatpush.bf16.msra.mxu3 %v7051_v36 }
  0xe2   :  { %835 = vmatpush.bf16.msrb.mxu2 %v7199_v30  ;;  %v7122_v30 = vld [vmem:[#allocation12 + $0xe8] sm:$0xf] }
  0xe3   :  { %824 = vmatpush.bf16.msrb.mxu1 %v7039_v59  ;;  %v7123_v36 = vor.u32 %v10122_v31, %v7122_v30  ;;  %v10106_v30 = vld [vmem:[#allocation12 + $0x74] sm:$0xf0] }
 0x15a   :  { %v11173_v44 = vpop.f32.mrf.mxu1 }
 0x15b   :  { %v326_v46 = vrot.slane %v11173_v44, 4 }
 0x15d   :  { %v327_v53 = vadd.f32 %v326_v46, %v11173_v44  ;;  %v7180_v46 = vld [vmem:[#allocation12 + $0x170] sm:$0xf0] }
 0x15e   :  { %v7183_v47 = vor.u32 %v10135_v45, %v7180_v46 }
 0x15f   :  { %v328_v60 = vrot.slane %v327_v53, 2 }
 0x160   :  { %v11177_v63 = vpop.f32.mrf.mxu2  ;;  %836 = vmatpush.bf16.msrb.mxu2 %v7183_v47 }
 0x161   :  { %v329_v4 = vadd.f32 %v328_v60, %v327_v53  ;;  %v332_v5 = vrot.slane %v11177_v63, 4  ;;  %v7035_v53 = vor.u32 %v10101_v51, %v7034_v50  ;;  %v10131_v60 = vld [vmem:[#allocation12 + $0x144] sm:$0xf]  ;;  %v10118_v50 = vld [vmem:[#allocation12 + $0xd4] sm:$0xf0] }
 0x162   :  { %v311_v9 = vpop.f32.mrf.mxu1  ;;  %v7167_v62 = vor.u32 %v10131_v60, %v7164_v61  ;;  %v10148_v60 = vld [vmem:[#allocation12 + $0x1cc] sm:$0xf]  ;;  %v7236_v61 = vld [vmem:[#allocation12 + $0x1d8] sm:$0xf0] }
 0x163   :  { %v330_v12 = vrot.slane %v329_v4, 1  ;;  %v333_v13 = vadd.f32 %v332_v5, %v11177_v63  ;;  %798 = vmatpush.bf16.msra.mxu3 %v7035_v53  ;;  %v7019_v5 = vor.u32 %v10097_v3, %v7018_v2  ;;  %v7234_v53 = vld [vmem:[#allocation12 + $0x1c8] sm:$0xf]  ;;  %v10114_v3 = vld [vmem:[#allocation12 + $0xb4] sm:$0xf0] }
 0x164   :  { %837 = vmatpush.bf16.msrb.mxu2 %v7167_v62  ;;  %v7090_v2 = vld [vmem:[#allocation12 + $0xa8] sm:$0xf] }
 0x165   :  { %v331_v19 = vadd.f32 %v330_v12, %v329_v4  ;;  %v334_v20 = vrot.slane %v333_v13, 2  ;;  %v7146_v4 = vld [vmem:[#allocation12 + $0x120] sm:$0xf]  ;;  %v7023_v12 = vor.u32 %v10095_v7, %v7020_v8  ;;  %v10112_v7 = vld [vmem:[#allocation12 + $0xac] sm:$0xf] }
 0x166   :  { %v7147_v11 = vor.u32 %v10129_v6, %v7146_v4  ;;  %v7218_v4 = vld [vmem:[#allocation12 + $0x1a8] sm:$0xf]  ;;  %v10146_v6 = vld [vmem:[#allocation12 + $0x1b4] sm:$0xf0]  ;;  %v7092_v8 = vld [vmem:[#allocation12 + $0xb8] sm:$0xf0] }
 0x167   :  { %v338_v27 = vmul.f32 %v331_v19, %v11169_v33  ;;  %v335_v28 = vadd.f32 %v334_v20, %v333_v13  ;;  %v10127_v13 = vld [vmem:[#allocation12 + $0x124] sm:$0xf]  ;;  %799 = vmatpush.bf16.msra.mxu3 %v7019_v5  ;;  %v7003_v19 = vor.u32 %v10093_v18, %v7002_v17  ;;  %v7130_v20 = vld [vmem:[#allocation12 + $0x100] sm:$0xf]  ;;  %825 = vmatpush.bf16.msrb.mxu1 %v7023_v12  ;;  %v10144_v12 = vld [vmem:[#allocation12 + $0x1ac] sm:$0xf] }
 0x168   :  { %v324_v35 = vpop.f32.mrf.mxu2  ;;  %v7131_v25 = vor.u32 %v10125_v21, %v7130_v20  ;;  %v7091_v5 = vor.u32 %v10114_v3, %v7090_v2  ;;  %v10142_v18 = vld [vmem:[#allocation12 + $0x194] sm:$0xf0]  ;;  %v7154_v2 = vld [vmem:[#allocation12 + $0x128] sm:$0xf] }
 0x169   :  { %v11183_v40 = vsub.f32 %v11173_v44, %v338_v27  ;;  %v336_v41 = vrot.slane %v335_v28, 1  ;;  %v10133_v44 = vld [vmem:[#allocation12 + $0x14c] sm:$0xf0]  ;;  %v10123_v27 = vld [vmem:[#allocation12 + $0x104] sm:$0xf] }
 0x16a   :  { %v7163_v58 = vor.u32 %v10133_v44, %v7162_v52  ;;  %v7135_v35 = vor.u32 %v10123_v27, %v7132_v29  ;;  %v10150_v44 = vld [vmem:[#allocation12 + $0x1d4] sm:$0xf0]  ;;  %v7058_v29 = vld [vmem:[#allocation12 + $0x68] sm:$0xf] }
 0x16b   :  { %v342_v48 = vmul.f32 %v11183_v40, %v11183_v40  ;;  %v337_v49 = vadd.f32 %v336_v41, %v335_v28  ;;  %800 = vmatpush.bf16.msra.mxu3 %v7003_v19  ;;  %v7007_v28 = vor.u32 %v10091_v22, %v7004_v26  ;;  %v10120_v41 = vld [vmem:[#allocation12 + $0xec] sm:$0xf]  ;;  %v7076_v22 = vld [vmem:[#allocation12 + $0x98] sm:$0xf0]  ;;  %v10130_v3 = vld [vmem:[#allocation12 + $0x134] sm:$0xf0] }
 0x16c   :  { %811 = vmatpush.bf16.msrb.mxu0 %v7163_v58  ;;  %v7127_v47 = vor.u32 %v10120_v41, %v7124_v42  ;;  %v7108_v58 = vld [vmem:[#allocation12 + $0xd8] sm:$0xf0]  ;;  %v10108_v19 = vld [vmem:[#allocation12 + $0x8c] sm:$0xf] }
 0x16d   :  { %v344_v56 = vrot.slane %v342_v48, 4  ;;  %v339_v57 = vmul.f32 %v337_v49, %v11169_v33  ;;  %826 = vmatpush.bf16.msrb.mxu1 %v7007_v28  ;;  %v7106_v49 = vld [vmem:[#allocation12 + $0xc8] sm:$0xf]  ;;  %v7111_v59 = vor.u32 %v10116_v54, %v7108_v58  ;;  %v7079_v26 = vor.u32 %v10108_v19, %v7076_v22  ;;  %v7188_v41 = vld [vmem:[#allocation12 + $0x178] sm:$0xf0] }
 0x16e   :  { %v7107_v52 = vor.u32 %v10118_v50, %v7106_v49  ;;  %v7170_v49 = vld [vmem:[#allocation12 + $0x148] sm:$0xf]  ;;  %v10134_v50 = vld [vmem:[#allocation12 + $0x154] sm:$0xf0]  ;;  %v7044_v54 = vld [vmem:[#allocation12 + $0x58] sm:$0xf0] }
 0x16f   :  { %v345_v0 = vadd.f32 %v344_v56, %v342_v48  ;;  %v11189_v1 = vsub.f32 %v11177_v63, %v339_v57  ;;  %v7151_v63 = vor.u32 %v10127_v13, %v7148_v14  ;;  %v7252_v48 = vld [vmem:[#allocation12 + $0x1f8] sm:$0xf0]  ;;  %845 = vmatpush.bf16.msrb.mxu3 %v7123_v36  ;;  %v7235_v57 = vor.u32 %v10150_v44, %v7234_v53  ;;  %v10104_v36 = vld [vmem:[#allocation12 + $0x6c] sm:$0xf] }
 0x170   :  { %812 = vmatpush.bf16.msrb.mxu0 %v7147_v11  ;;  %v7255_v51 = vor.u32 %v10152_v43, %v7252_v48  ;;  %v7095_v11 = vor.u32 %v10112_v7, %v7092_v8  ;;  %v7220_v13 = vld [vmem:[#allocation12 + $0x1b8] sm:$0xf0]  ;;  %v7063_v43 = vor.u32 %v10104_v36, %v7060_v38  ;;  %v7171_v44 = vor.u32 %v10134_v50, %v7170_v49 }
 0x171   :  { %v346_v9 = vrot.slane %v345_v0, 2  ;;  %v343_v10 = vmul.f32 %v11189_v1, %v11189_v1  ;;  %838 = vmatpush.bf16.msrb.mxu2 %v7151_v63  ;;  %871 = vmatpush.bf16.msra.mxu1 %v7127_v47  ;;  %v7223_v14 = vor.u32 %v10144_v12, %v7220_v13  ;;  %v7074_v63 = vld [vmem:[#allocation12 + $0x88] sm:$0xf]  ;;  %v10102_v47 = vld [vmem:[#allocation12 + $0x54] sm:$0xf0] }
 0x172   :  { %v10094_v13 = vld [vmem:[#allocation12 + $0x14] sm:$0xf0]  ;;  %v7012_v19 = vld [vmem:[#allocation12 + $0x18] sm:$0xf0] }
 0x173   :  { %v347_v15 = vadd.f32 %v346_v9, %v345_v0  ;;  %v350_v16 = vrot.slane %v343_v10, 4  ;;  %v7239_v0 = vor.u32 %v10148_v60, %v7236_v61  ;;  %846 = vmatpush.bf16.msrb.mxu3 %v7107_v52  ;;  %v7026_v60 = vld [vmem:[#allocation12 + $0x28] sm:$0xf]  ;;  %v7140_v22 = vld [vmem:[#allocation12 + $0x118] sm:$0xf0] }
 0x174   :  { %813 = vmatpush.bf16.msrb.mxu0 %v7131_v25 }
 0x175   :  { %v348_v23 = vrot.slane %v347_v15, 1  ;;  %v351_v24 = vadd.f32 %v350_v16, %v343_v10  ;;  %839 = vmatpush.bf16.msrb.mxu2 %v7135_v35  ;;  %872 = vmatpush.bf16.msra.mxu1 %v7111_v59  ;;  %v7219_v10 = vor.u32 %v10146_v6, %v7218_v4  ;;  %v7202_v16 = vld [vmem:[#allocation12 + $0x188] sm:$0xf]  ;;  %v10138_v35 = vld [vmem:[#allocation12 + $0x174] sm:$0xf0] }
 0x176   :  { %v7203_v21 = vor.u32 %v10142_v18, %v7202_v16  ;;  %v7172_v59 = vld [vmem:[#allocation12 + $0x158] sm:$0xf0]  ;;  %v10096_v4 = vld [vmem:[#allocation12 + $0x2c] sm:$0xf] }
 0x177   :  { %v349_v32 = vadd.f32 %v348_v23, %v347_v15  ;;  %v352_v34 = vrot.slane %v351_v24, 2  ;;  %v10110_v15 = vld [vmem:[#allocation12 + $0x94] sm:$0xf0]  ;;  %847 = vmatpush.bf16.msrb.mxu3 %v7091_v5  ;;  %v10140_v23 = vld [vmem:[#allocation12 + $0x18c] sm:$0xf] }
 0x178   :  { %858 = vmatpush.bf16.msra.mxu0 %v7251_v39  ;;  %v7075_v20 = vor.u32 %v10110_v15, %v7074_v63  ;;  %v10136_v39 = vld [vmem:[#allocation12 + $0x16c] sm:$0xf]  ;;  %v7028_v5 = vld [vmem:[#allocation12 + $0x38] sm:$0xf0]  ;;  %v10126_v63 = vld [vmem:[#allocation12 + $0x114] sm:$0xf0] }
 0x179   :  { %v356_v45 = vmul.f32 %v349_v32, %v11169_v33  ;;  %v353_v46 = vadd.f32 %v352_v34, %v351_v24  ;;  %884 = vmatpush.bf16.msra.mxu2 %v7255_v51  ;;  %v7204_v24 = vld [vmem:[#allocation12 + $0x198] sm:$0xf0]  ;;  %873 = vmatpush.bf16.msra.mxu1 %v7095_v11  ;;  %v7059_v32 = vor.u32 %v10106_v30, %v7058_v29  ;;  %v7186_v34 = vld [vmem:[#allocation12 + $0x168] sm:$0xf]  ;;  %v10100_v51 = vld [vmem:[#allocation12 + $0x4c] sm:$0xf] }
 0x17a   :  { %v7207_v28 = vor.u32 %v10140_v23, %v7204_v24  ;;  %v7187_v37 = vor.u32 %v10138_v35, %v7186_v34  ;;  %v7047_v58 = vor.u32 %v10100_v51, %v7044_v54  ;;  %v10128_v6 = vld [vmem:[#allocation12 + $0x12c] sm:$0xf]  ;;  %v7010_v11 = vld [vmem:[#allocation12 + $0x8] sm:$0xf]  ;;  %v7031_v12 = vor.u32 %v10096_v4, %v7028_v5  ;;  %v218_v29 = vld [vmem:[#allocation7 + $0x2] sm:$0x3] }
 0x17b   :  { %v11194_v55 = vadd.f32 1e-05, %v356_v45  ;;  %v354_v56 = vrot.slane %v353_v46, 1  ;;  %848 = vmatpush.bf16.msrb.mxu3 %v7075_v20  ;;  %v7191_v45 = vor.u32 %v10136_v39, %v7188_v41  ;;  %v10092_v18 = vld [vmem:[#allocation12 + $0xc] sm:$0xf]  ;;  %v7011_v24 = vor.u32 %v10094_v13, %v7010_v11 }
 0x17c   :  { %859 = vmatpush.bf16.msra.mxu0 %v7235_v57 }
 0x17d   :  { %10878 = vrsqrt.f32 %v11194_v55  ;;  %v355_v62 = vadd.f32 %v354_v56, %v353_v46  ;;  %885 = vmatpush.bf16.msra.mxu2 %v7239_v0  ;;  %874 = vmatpush.bf16.msra.mxu1 %v7079_v26  ;;  %v7042_v46 = vld [vmem:[#allocation12 + $0x48] sm:$0xf]  ;;  %v10132_v56 = vld [vmem:[#allocation12 + $0x14c] sm:$0xf]  ;;  %v10098_v0 = vld [vmem:[#allocation12 + $0x34] sm:$0xf0]  ;;  %vm366_vm10 = vweird.f32 %v11194_v55 }
 0x17e   :  { %v7043_v53 = vor.u32 %v10102_v47, %v7042_v46  ;;  %v7027_v8 = vor.u32 %v10098_v0, %v7026_v60 }
 0x17f   :  { %v357_v9 = vmul.f32 %v355_v62, %v11169_v33  ;;  %849 = vmatpush.bf16.msrb.mxu3 %v7059_v32  ;;  %v7175_v62 = vor.u32 %v10132_v56, %v7172_v59  ;;  %v219_v32 = vld [vmem:[#allocation7 + $0x4] sm:$0x3] }
 0x180   :  { %860 = vmatpush.bf16.msra.mxu0 %v7219_v10  ;;  %v7156_v10 = vld [vmem:[#allocation12 + $0x138] sm:$0xf0]  ;;  %v396_v38 = vperm.slane %v219_v32, 1 }
 0x181   :  { %v11198_v17 = vadd.f32 1e-05, %v357_v9  ;;  %886 = vmatpush.bf16.msra.mxu2 %v7223_v14  ;;  %875 = vmatpush.bf16.msra.mxu1 %v7063_v43  ;;  %v7155_v9 = vor.u32 %v10130_v3, %v7154_v2  ;;  %v7138_v14 = vld [vmem:[#allocation12 + $0x108] sm:$0xf]  ;;  %v7159_v16 = vor.u32 %v10128_v6, %v7156_v10 }
 0x182   :  { %v7139_v26 = vor.u32 %v10126_v63, %v7138_v14 }
 0x183   :  { %v11200_v25 = vpop.eup %10878  ;;  %10880 = vrsqrt.f32 %v11198_v17  ;;  %850 = vmatpush.bf16.msrb.mxu3 %v7043_v53  ;;  %vm376_vm7 = vweird.f32 %v11198_v17 }
 0x184   :  { %v361_v27 = vmul.f32 %v11200_v25, %v11194_v55  ;;  %861 = vmatpush.bf16.msra.mxu0 %v7203_v21  ;;  %v10124_v21 = vld [vmem:[#allocation12 + $0x10c] sm:$0xf]  ;;  %vm367_vm8 = vweird.f32 %v11200_v25 }
 0x185   :  { %887 = vmatpush.bf16.msra.mxu2 %v7207_v28  ;;  %876 = vmatpush.bf16.msra.mxu1 %v7047_v58  ;;  %vm368_vm12 = vmor %vm366_vm10, %vm367_vm8  ;;  %vm1013_vm8 = vcmask 1042434   ;;  %vm1015_vm10 = vcmask 1041408  }
 0x186   :  { %v362_v31 = vmul.f32 %v11200_v25, %v361_v27  ;;  %v7015_v27 = vor.u32 %v10092_v18, %v7012_v19 }
 0x187   :  { %851 = vmatpush.bf16.msrb.mxu3 %v7027_v8 }
 0x188   :  { %v363_v42 = vmul.f32 0.5, %v362_v31  ;;  %862 = vmatpush.bf16.msra.mxu0 %v7187_v37  ;;  %v395_v37 = vperm.slane %v219_v32, 0 }
 0x189   :  { %v11206_v48 = vpop.eup %10880  ;;  %888 = vmatpush.bf16.msra.mxu2 %v7191_v45  ;;  %877 = vmatpush.bf16.msra.mxu1 %v7031_v12 }
 0x18a   :  { %v371_v52 = vmul.f32 %v11206_v48, %v11198_v17  ;;  %v364_v57 = vsub.f32 1.5, %v363_v42  ;;  %vm377_vm6 = vweird.f32 %v11206_v48  ;;  %v7143_v17 = vor.u32 %v10124_v21, %v7140_v22 }
 0x18b   :  { %vm378_vm9 = vmor %vm376_vm7, %vm377_vm6  ;;  %852 = vmatpush.bf16.msrb.mxu3 %v7011_v24 }
 0x18c   :  { %v372_v61 = vmul.f32 %v11206_v48, %v371_v52  ;;  %863 = vmatpush.bf16.msra.mxu0 %v7171_v44  ;;  %v365_v20 = vmul.f32 %v11200_v25, %v364_v57 }
 0x18d   :  { %889 = vmatpush.bf16.msra.mxu2 %v7175_v62  ;;  %878 = vmatpush.bf16.msra.mxu1 %v7015_v27 }
 0x18e   :  { %v373_v7 = vmul.f32 0.5, %v372_v61  ;;  %v369_v31 = vsel %vm368_vm12, %v11200_v25, %v365_v20 }
 0x190   :  { %v374_v15 = vsub.f32 1.5, %v373_v7  ;;  %864 = vmatpush.bf16.msra.mxu0 %v7155_v9 }
 0x191   :  { %890 = vmatpush.bf16.msra.mxu2 %v7159_v16 }
 0x192   :  { %v375_v23 = vmul.f32 %v11206_v48, %v374_v15 }
 0x194   :  { %v379_v28 = vsel %vm378_vm9, %v11206_v48, %v375_v23  ;;  %865 = vmatpush.bf16.msra.mxu0 %v7139_v26 }
 0x195   :  { %v382_v30 = vrot.slane %v379_v28, 7  ;;  %891 = vmatpush.bf16.msra.mxu2 %v7143_v17 }
 0x197   :  { %v384_v34 = vsel %vm383_vm11, %v369_v31, %v382_v30 }
 0x198   :  { %v386_v35 = vmul.f32 %v384_v34, %v218_v29 }
 0x19a   :  { %v388_v55 = vperm.slane %v386_v35, 0  ;;  %v389_v36 = vperm.slane %v386_v35, 1 }
 0x19c   :  { %v393_v39 = vmul.f32 %v389_v36, %v11189_v1  ;;  %v392_v41 = vmul.f32 %v388_v55, %v11183_v40 }
 0x19e   :  { %v400_v42 = vadd.f32 %v396_v38, %v393_v39  ;;  %v399_v43 = vadd.f32 %v395_v37, %v392_v41 }
 0x1a0   :  { %v402_v45 = vmul.f32 0.01, %v400_v42  ;;  %v401_v25 = vmul.f32 0.01, %v399_v43 }
 0x1a2   :  { %v403_v46 = vmax.f32 %v399_v43, %v401_v25  ;;  %v404_v47 = vmax.f32 %v400_v42, %v402_v45 }
 0x1a4   :  { %v405_v48 = vpack.c.bf16 %v403_v46, %v403_v46  ;;  %v406_v49 = vpack.c.bf16 %v404_v47, %v404_v47 }
 0x1a6   :  { %801 = vmatmul.bf16.vlgmr.msra.gmra.mxu3 %v405_v48  ;;  %814 = vmatmul.bf16.vlgmr.msrb.gmra.mxu0 %v406_v49 }
 0x1a7   :  { %827 = vmatmul.bf16.vlgmr.msrb.gmra.mxu1 %v405_v48  ;;  %840 = vmatmul.bf16.vlgmr.msrb.gmra.mxu2 %v406_v49 }
 0x1b6   :  { %853 = vmatmul.bf16.vlgmr.msrb.gmra.mxu3 %v405_v48  ;;  %866 = vmatmul.bf16.vlgmr.msra.gmra.mxu0 %v406_v49 }
 0x1b7   :  { %879 = vmatmul.bf16.vlgmr.msra.gmra.mxu1 %v405_v48  ;;  %892 = vmatmul.bf16.vlgmr.msra.gmra.mxu2 %v406_v49 }
 0x223   :  { %v815_v40 = vpop.f32.mrf.mxu0 }
 0x224   :  { %v828_v1 = vpop.f32.mrf.mxu1 }
 0x229   :  { %v802_v50 = vpop.f32.mrf.mxu3 }
 0x22a   :  { %v816_v51 = vadd.f32 %v815_v40, %v802_v50  ;;  %v841_v52 = vpop.f32.mrf.mxu2 }
 0x22b   :  { %v842_v53 = vadd.f32 %v841_v52, %v828_v1  ;;  %v817_v44 = vpop.f32.mrf.mxu0 }
 0x22c   :  { %v897_v54 = vrot.slane %v816_v51, 4  ;;  %v830_v56 = vpop.f32.mrf.mxu1 }
 0x22d   :  { %v903_v57 = vrot.slane %v842_v53, 4 }
 0x22e   :  { %v898_v58 = vadd.f32 %v897_v54, %v816_v51 }
 0x22f   :  { %v904_v59 = vadd.f32 %v903_v57, %v842_v53 }
 0x230   :  { %v899_v60 = vrot.slane %v898_v58, 2 }
 0x231   :  { %v905_v61 = vrot.slane %v904_v59, 2  ;;  %v804_v62 = vpop.f32.mrf.mxu3 }
 0x232   :  { %v900_v0 = vadd.f32 %v899_v60, %v898_v58  ;;  %v843_v2 = vpop.f32.mrf.mxu2 }
 0x233   :  { %v906_v3 = vadd.f32 %v905_v61, %v904_v59  ;;  %v867_v4 = vpop.f32.mrf.mxu0 }
 0x234   :  { %v901_v5 = vrot.slane %v900_v0, 1  ;;  %v880_v6 = vpop.f32.mrf.mxu1 }
 0x235   :  { %v907_v7 = vrot.slane %v906_v3, 1 }
 0x236   :  { %v902_v8 = vadd.f32 %v901_v5, %v900_v0 }
 0x237   :  { %v908_v9 = vadd.f32 %v907_v7, %v906_v3 }
 0x238   :  { %v921_v10 = vmul.f32 %v902_v8, %v11169_v33 }
 0x239   :  { %v922_v11 = vmul.f32 %v908_v9, %v11169_v33  ;;  %v854_v12 = vpop.f32.mrf.mxu3 }
 0x23a   :  { %v11234_v13 = vsub.f32 %v816_v51, %v921_v10  ;;  %v868_v14 = vadd.f32 %v867_v4, %v854_v12  ;;  %v893_v63 = vpop.f32.mrf.mxu2 }
 0x23b   :  { %v11236_v15 = vsub.f32 %v842_v53, %v922_v11  ;;  %v894_v16 = vadd.f32 %v893_v63, %v880_v6  ;;  %v869_v18 = vpop.f32.mrf.mxu0 }
 0x23c   :  { %v929_v19 = vmul.f32 %v11234_v13, %v11234_v13  ;;  %v909_v20 = vrot.slane %v868_v14, 4  ;;  %v882_v21 = vpop.f32.mrf.mxu1 }
 0x23d   :  { %v930_v22 = vmul.f32 %v11236_v15, %v11236_v15  ;;  %v915_v23 = vrot.slane %v894_v16, 4 }
 0x23e   :  { %v933_v24 = vrot.slane %v929_v19, 4  ;;  %v910_v26 = vadd.f32 %v909_v20, %v868_v14 }
 0x23f   :  { %v939_v27 = vrot.slane %v930_v22, 4  ;;  %v916_v28 = vadd.f32 %v915_v23, %v894_v16 }
 0x240   :  { %v934_v17 = vadd.f32 %v933_v24, %v929_v19  ;;  %v911_v29 = vrot.slane %v910_v26, 2 }
 0x241   :  { %v940_v30 = vadd.f32 %v939_v27, %v930_v22  ;;  %v917_v31 = vrot.slane %v916_v28, 2  ;;  %v856_v32 = vpop.f32.mrf.mxu3 }
 0x242   :  { %v935_v34 = vrot.slane %v934_v17, 2  ;;  %v912_v35 = vadd.f32 %v911_v29, %v910_v26  ;;  %v895_v55 = vpop.f32.mrf.mxu2 }
 0x243   :  { %v941_v36 = vrot.slane %v940_v30, 2  ;;  %v918_v37 = vadd.f32 %v917_v31, %v916_v28 }
 0x244   :  { %v936_v38 = vadd.f32 %v935_v34, %v934_v17  ;;  %v913_v39 = vrot.slane %v912_v35, 1 }
 0x245   :  { %v942_v41 = vadd.f32 %v941_v36, %v940_v30  ;;  %v919_v42 = vrot.slane %v918_v37, 1 }
 0x246   :  { %v937_v43 = vrot.slane %v936_v38, 1  ;;  %v914_v45 = vadd.f32 %v913_v39, %v912_v35 }
 0x247   :  { %v943_v25 = vrot.slane %v942_v41, 1  ;;  %v920_v46 = vadd.f32 %v919_v42, %v918_v37 }
 0x248   :  { %v923_v47 = vmul.f32 %v914_v45, %v11169_v33  ;;  %v938_v48 = vadd.f32 %v937_v43, %v936_v38  ;;  %v471_v45 = vld [vmem:[#allocation7 + $0x6] sm:$0xf] }
 0x249   :  { %v944_v49 = vadd.f32 %v943_v25, %v942_v41  ;;  %v924_v40 = vmul.f32 %v920_v46, %v11169_v33  ;;  %v472_v46 = vld [vmem:[#allocation7 + $0xa] sm:$0xf] }
 0x24a   :  { %v11244_v1 = vsub.f32 %v868_v14, %v923_v47  ;;  %v957_v53 = vmul.f32 %v938_v48, %v11169_v33 }
 0x24b   :  { %v958_v50 = vmul.f32 %v944_v49, %v11169_v33  ;;  %v11247_v51 = vsub.f32 %v894_v16, %v924_v40 }
 0x24c   :  { %v931_v52 = vmul.f32 %v11244_v1, %v11244_v1  ;;  %v961_v59 = vadd.f32 1e-05, %v957_v53  ;;  %v1035_v53 = vperm.slane %v472_v46, 2 }
 0x24d   :  { %v962_v44 = vadd.f32 1e-05, %v958_v50  ;;  %v932_v54 = vmul.f32 %v11247_v51, %v11247_v51  ;;  %v1033_v50 = vperm.slane %v472_v46, 0 }
 0x24e   :  { %v945_v56 = vrot.slane %v931_v52, 4  ;;  %vm971_vm7 = vweird.f32 %v961_v59 }
 0x24f   :  { %10882 = vrsqrt.f32 %v962_v44  ;;  %v951_v57 = vrot.slane %v932_v54, 4  ;;  %vm981_vm14 = vweird.f32 %v962_v44 }
 0x250   :  { %v946_v58 = vadd.f32 %v945_v56, %v931_v52  ;;  %10884 = vrsqrt.f32 %v961_v59  ;;  %v1034_v52 = vperm.slane %v472_v46, 1 }
 0x251   :  { %v952_v60 = vadd.f32 %v951_v57, %v932_v54 }
 0x252   :  { %v947_v61 = vrot.slane %v946_v58, 2 }
 0x253   :  { %v953_v62 = vrot.slane %v952_v60, 2 }
 0x254   :  { %v948_v0 = vadd.f32 %v947_v61, %v946_v58 }
 0x255   :  { %v10883_v2 = vpop.eup %10882  ;;  %v954_v3 = vadd.f32 %v953_v62, %v952_v60 }
 0x256   :  { %v949_v4 = vrot.slane %v948_v0, 1  ;;  %v976_v6 = vmul.f32 %v10883_v2, %v962_v44  ;;  %v10885_v10 = vpop.eup %10884  ;;  %vm982_vm13 = vweird.f32 %v10883_v2  ;;  %v1036_v44 = vperm.slane %v472_v46, 3 }
 0x257   :  { %v955_v5 = vrot.slane %v954_v3, 1  ;;  %v966_v16 = vmul.f32 %v10885_v10, %v961_v59  ;;  %vm983_vm15 = vmor %vm981_vm14, %vm982_vm13  ;;  %vm972_vm3 = vweird.f32 %v10885_v10 }
 0x258   :  { %v950_v7 = vadd.f32 %v949_v4, %v948_v0  ;;  %v977_v12 = vmul.f32 %v10883_v2, %v976_v6  ;;  %vm973_vm9 = vmor %vm971_vm7, %vm972_vm3 }
 0x259   :  { %v956_v8 = vadd.f32 %v955_v5, %v954_v3  ;;  %v967_v19 = vmul.f32 %v10885_v10, %v966_v16 }
 0x25a   :  { %v959_v9 = vmul.f32 %v950_v7, %v11169_v33  ;;  %v978_v18 = vmul.f32 0.5, %v977_v12 }
 0x25b   :  { %v960_v11 = vmul.f32 %v956_v8, %v11169_v33  ;;  %v968_v24 = vmul.f32 0.5, %v967_v19 }
 0x25c   :  { %v963_v14 = vadd.f32 1e-05, %v959_v9  ;;  %v979_v21 = vsub.f32 1.5, %v978_v18 }
 0x25d   :  { %v964_v63 = vadd.f32 1e-05, %v960_v11  ;;  %v969_v30 = vsub.f32 1.5, %v968_v24 }
 0x25e   :  { %10886 = vrsqrt.f32 %v963_v14  ;;  %v980_v28 = vmul.f32 %v10883_v2, %v979_v21  ;;  %vm991_vm2 = vweird.f32 %v963_v14 }
 0x25f   :  { %10888 = vrsqrt.f32 %v964_v63  ;;  %v970_v36 = vmul.f32 %v10885_v10, %v969_v30  ;;  %vm1001_vm5 = vweird.f32 %v964_v63 }
 0x260   :  { %v984_v34 = vsel %vm983_vm15, %v10883_v2, %v980_v28 }
 0x261   :  { %v1009_v38 = vrot.slane %v984_v34, 7  ;;  %v974_v25 = vsel %vm973_vm9, %v10885_v10, %v970_v36 }
 0x263   :  { %v1012_v47 = vsel %vm383_vm11, %v974_v25, %v1009_v38 }
 0x264   :  { %v10887_v20 = vpop.eup %10886 }
 0x265   :  { %v10889_v22 = vpop.eup %10888  ;;  %v986_v23 = vmul.f32 %v10887_v20, %v963_v14  ;;  %vm992_vm0 = vweird.f32 %v10887_v20 }
 0x266   :  { %v996_v26 = vmul.f32 %v10889_v22, %v964_v63  ;;  %vm1002_vm1 = vweird.f32 %v10889_v22  ;;  %vm993_vm4 = vmor %vm991_vm2, %vm992_vm0 }
 0x267   :  { %v987_v27 = vmul.f32 %v10887_v20, %v986_v23  ;;  %vm1003_vm6 = vmor %vm1001_vm5, %vm1002_vm1 }
 0x268   :  { %v997_v17 = vmul.f32 %v10889_v22, %v996_v26 }
 0x269   :  { %v988_v29 = vmul.f32 0.5, %v987_v27 }
 0x26a   :  { %v998_v31 = vmul.f32 0.5, %v997_v17 }
 0x26b   :  { %v989_v32 = vsub.f32 1.5, %v988_v29 }
 0x26c   :  { %v999_v35 = vsub.f32 1.5, %v998_v31 }
 0x26d   :  { %v990_v55 = vmul.f32 %v10887_v20, %v989_v32 }
 0x26e   :  { %v1000_v37 = vmul.f32 %v10889_v22, %v999_v35 }
 0x26f   :  { %v994_v39 = vsel %vm993_vm4, %v10887_v20, %v990_v55 }
 0x270   :  { %v1010_v41 = vrot.slane %v994_v39, 6  ;;  %v1004_v42 = vsel %vm1003_vm6, %v10889_v22, %v1000_v37 }
 0x271   :  { %v1011_v43 = vrot.slane %v1004_v42, 5 }
 0x273   :  { %v1014_v48 = vsel %vm1013_vm8, %v1010_v41, %v1011_v43 }
 0x274   :  { %v1016_v49 = vsel %vm1015_vm10, %v1012_v47, %v1014_v48 }
 0x275   :  { %v1018_v40 = vmul.f32 %v1016_v49, %v471_v45 }
 0x277   :  { %v1020_v54 = vperm.slane %v1018_v40, 0  ;;  %v1021_v56 = vperm.slane %v1018_v40, 1  ;;  %v1022_v57 = vperm.slane %v1018_v40, 2  ;;  %v1023_v58 = vperm.slane %v1018_v40, 3 }
 0x279   :  { %v1028_v59 = vmul.f32 %v1020_v54, %v11234_v13  ;;  %v1029_v60 = vmul.f32 %v1021_v56, %v11236_v15  ;;  %v1030_v61 = vmul.f32 %v1022_v57, %v11244_v1  ;;  %v1031_v62 = vmul.f32 %v1023_v58, %v11247_v51 }
 0x27b   :  { %v1041_v0 = vadd.f32 %v1033_v50, %v1028_v59  ;;  %v1042_v2 = vadd.f32 %v1034_v52, %v1029_v60  ;;  %v1043_v3 = vadd.f32 %v1035_v53, %v1030_v61  ;;  %v1044_v4 = vadd.f32 %v1036_v44, %v1031_v62 }
 0x27d   :  { %v1045_v5 = vmul.f32 0.01, %v1041_v0  ;;  %v1046_v6 = vmul.f32 0.01, %v1042_v2  ;;  %v1047_v7 = vmul.f32 0.01, %v1043_v3 }
 0x27e   :  { %v1048_v8 = vmul.f32 0.01, %v1044_v4 }
 0x27f   :  { %v1049_v9 = vmax.f32 %v1041_v0, %v1045_v5  ;;  %v1050_v10 = vmax.f32 %v1042_v2, %v1046_v6  ;;  %v1051_v11 = vmax.f32 %v1043_v3, %v1047_v7 }
 0x280   :  { %v1052_v12 = vmax.f32 %v1044_v4, %v1048_v8 }
 0x281   :  { %v11263_v14 = vpack.c.bf16 %v1049_v9, %v1049_v9  ;;  %v11265_v13 = vpack.c.bf16 %v1050_v10, %v1050_v10  ;;  %v11267_v15 = vpack.c.bf16 %v1051_v11, %v1051_v11 }
 0x282   :  { %v11269_v1 = vpack.c.bf16 %v1052_v12, %v1052_v12 }
 0x283   :  { %11096 = dma.done.wait [#allocation4], 32768 }
 0x284   :  { %11097 = vsyncadd [#allocation4], 4294934528  ;;  %v7482_v51 = vld [vmem:[#allocation2 + $0x1c0] sm:$0xf] }
 0x285   :  { %v10215_v63 = vld [vmem:[#allocation2 + $0x1dc] sm:$0xf0] }
 0x286   :  { %v7738_v16 = vld [vmem:[#allocation2 + $0x3c0] sm:$0xf]  ;;  %v7483_v18 = vor.u32 %v10215_v63, %v7482_v51 }
 0x287   :  { %v10279_v19 = vld [vmem:[#allocation2 + $0x3dc] sm:$0xf0] }
 0x288   :  { %v7994_v20 = vld [vmem:[#allocation2 + $0x5c0] sm:$0xf]  ;;  %v7739_v22 = vor.u32 %v10279_v19, %v7738_v16  ;;  %2599 = vmatpush.bf16.msra.mxu3 %v7483_v18 }
 0x289   :  { %v10343_v21 = vld [vmem:[#allocation2 + $0x5dc] sm:$0xf0] }
 0x28a   :  { %v7995_v23 = vor.u32 %v10343_v21, %v7994_v20  ;;  %v8250_v24 = vld [vmem:[#allocation2 + $0x7c0] sm:$0xf]  ;;  %2612 = vmatpush.bf16.msrb.mxu0 %v7739_v22 }
 0x28b   :  { %v10407_v26 = vld [vmem:[#allocation2 + $0x7dc] sm:$0xf0] }
 0x28c   :  { %v7450_v27 = vld [vmem:[#allocation2 + $0x180] sm:$0xf]  ;;  %v8251_v28 = vor.u32 %v10407_v26, %v8250_v24  ;;  %2625 = vmatpush.bf16.msrb.mxu1 %v7995_v23 }
 0x28d   :  { %v10207_v17 = vld [vmem:[#allocation2 + $0x19c] sm:$0xf0] }
 0x28e   :  { %v7706_v29 = vld [vmem:[#allocation2 + $0x380] sm:$0xf]  ;;  %v7451_v31 = vor.u32 %v10207_v17, %v7450_v27  ;;  %2638 = vmatpush.bf16.msrb.mxu2 %v8251_v28 }
 0x28f   :  { %v10271_v30 = vld [vmem:[#allocation2 + $0x39c] sm:$0xf0] }
 0x290   :  { %v7707_v32 = vor.u32 %v10271_v30, %v7706_v29  ;;  %v7962_v34 = vld [vmem:[#allocation2 + $0x580] sm:$0xf]  ;;  %2600 = vmatpush.bf16.msra.mxu3 %v7451_v31 }
 0x291   :  { %v10335_v35 = vld [vmem:[#allocation2 + $0x59c] sm:$0xf0] }
 0x292   :  { %v8218_v55 = vld [vmem:[#allocation2 + $0x780] sm:$0xf]  ;;  %v7963_v36 = vor.u32 %v10335_v35, %v7962_v34  ;;  %2613 = vmatpush.bf16.msrb.mxu0 %v7707_v32 }
 0x293   :  { %v10399_v37 = vld [vmem:[#allocation2 + $0x79c] sm:$0xf0] }
 0x294   :  { %v7418_v38 = vld [vmem:[#allocation2 + $0x140] sm:$0xf]  ;;  %v8219_v41 = vor.u32 %v10399_v37, %v8218_v55  ;;  %2626 = vmatpush.bf16.msrb.mxu1 %v7963_v36 }
 0x295   :  { %v10199_v39 = vld [vmem:[#allocation2 + $0x15c] sm:$0xf0] }
 0x296   :  { %v7674_v42 = vld [vmem:[#allocation2 + $0x340] sm:$0xf]  ;;  %v7419_v25 = vor.u32 %v10199_v39, %v7418_v38  ;;  %2639 = vmatpush.bf16.msrb.mxu2 %v8219_v41 }
 0x297   :  { %v10263_v43 = vld [vmem:[#allocation2 + $0x35c] sm:$0xf0] }
 0x298   :  { %v7930_v45 = vld [vmem:[#allocation2 + $0x540] sm:$0xf]  ;;  %v7675_v49 = vor.u32 %v10263_v43, %v7674_v42  ;;  %2601 = vmatpush.bf16.msra.mxu3 %v7419_v25 }
 0x299   :  { %v10327_v46 = vld [vmem:[#allocation2 + $0x55c] sm:$0xf0] }
 0x29a   :  { %v8186_v47 = vld [vmem:[#allocation2 + $0x740] sm:$0xf]  ;;  %v7931_v40 = vor.u32 %v10327_v46, %v7930_v45  ;;  %2614 = vmatpush.bf16.msrb.mxu0 %v7675_v49  ;;  %v10211_v49 = vld [vmem:[#allocation2 + $0x1c4] sm:$0xf] }
 0x29b   :  { %v10391_v48 = vld [vmem:[#allocation2 + $0x75c] sm:$0xf0] }
 0x29c   :  { %v7386_v50 = vld [vmem:[#allocation2 + $0x100] sm:$0xf]  ;;  %v8187_v44 = vor.u32 %v10391_v48, %v8186_v47  ;;  %2627 = vmatpush.bf16.msrb.mxu1 %v7931_v40  ;;  %v7484_v40 = vld [vmem:[#allocation2 + $0x1e0] sm:$0xf0] }
 0x29d   :  { %v10191_v52 = vld [vmem:[#allocation2 + $0x11c] sm:$0xf0] }
 0x29e   :  { %v7642_v53 = vld [vmem:[#allocation2 + $0x300] sm:$0xf]  ;;  %v7387_v60 = vor.u32 %v10191_v52, %v7386_v50  ;;  %2640 = vmatpush.bf16.msrb.mxu2 %v8187_v44  ;;  %v10275_v50 = vld [vmem:[#allocation2 + $0x3c4] sm:$0xf] }
 0x29f   :  { %v10255_v54 = vld [vmem:[#allocation2 + $0x31c] sm:$0xf0]  ;;  %v10339_v44 = vld [vmem:[#allocation2 + $0x5c4] sm:$0xf] }
 0x2a0   :  { %v7898_v56 = vld [vmem:[#allocation2 + $0x500] sm:$0xf]  ;;  %v7643_v61 = vor.u32 %v10255_v54, %v7642_v53  ;;  %2602 = vmatpush.bf16.msra.mxu3 %v7387_v60  ;;  %v7740_v53 = vld [vmem:[#allocation2 + $0x3e0] sm:$0xf0] }
 0x2a1   :  { %v10319_v57 = vld [vmem:[#allocation2 + $0x51c] sm:$0xf0]  ;;  %v7996_v54 = vld [vmem:[#allocation2 + $0x5e0] sm:$0xf0] }
 0x2a2   :  { %v8154_v58 = vld [vmem:[#allocation2 + $0x700] sm:$0xf]  ;;  %v7899_v62 = vor.u32 %v10319_v57, %v7898_v56  ;;  %2615 = vmatpush.bf16.msrb.mxu0 %v7643_v61  ;;  %v7487_v61 = vor.u32 %v10211_v49, %v7484_v40  ;;  %v8124_v49 = vld [vmem:[#allocation2 + $0x6e0] sm:$0xf0] }
 0x2a3   :  { %v10383_v59 = vld [vmem:[#allocation2 + $0x71c] sm:$0xf0] }
 0x2a4   :  { %v7354_v0 = vld [vmem:[#allocation2 + $0xc0] sm:$0xf]  ;;  %v8155_v4 = vor.u32 %v10383_v59, %v8154_v58  ;;  %2628 = vmatpush.bf16.msrb.mxu1 %v7899_v62  ;;  %v10403_v58 = vld [vmem:[#allocation2 + $0x7c4] sm:$0xf]  ;;  %v7743_v62 = vor.u32 %v10275_v50, %v7740_v53 }
 0x2a5   :  { %v10183_v2 = vld [vmem:[#allocation2 + $0xdc] sm:$0xf0]  ;;  %v8252_v59 = vld [vmem:[#allocation2 + $0x7e0] sm:$0xf0] }
 0x2a6   :  { %v7610_v3 = vld [vmem:[#allocation2 + $0x2c0] sm:$0xf]  ;;  %v7355_v10 = vor.u32 %v10183_v2, %v7354_v0  ;;  %2641 = vmatpush.bf16.msrb.mxu2 %v8155_v4  ;;  %v7999_v0 = vor.u32 %v10339_v44, %v7996_v54  ;;  %v10203_v2 = vld [vmem:[#allocation2 + $0x184] sm:$0xf] }
 0x2a7   :  { %v10247_v5 = vld [vmem:[#allocation2 + $0x2dc] sm:$0xf0]  ;;  %v10267_v4 = vld [vmem:[#allocation2 + $0x384] sm:$0xf] }
 0x2a8   :  { %v7866_v6 = vld [vmem:[#allocation2 + $0x4c0] sm:$0xf]  ;;  %v7611_v11 = vor.u32 %v10247_v5, %v7610_v3  ;;  %2603 = vmatpush.bf16.msra.mxu3 %v7355_v10  ;;  %v7452_v3 = vld [vmem:[#allocation2 + $0x1a0] sm:$0xf0]  ;;  %v8255_v5 = vor.u32 %v10403_v58, %v8252_v59 }
 0x2a9   :  { %v10311_v7 = vld [vmem:[#allocation2 + $0x4dc] sm:$0xf0]  ;;  %v8220_v10 = vld [vmem:[#allocation2 + $0x7a0] sm:$0xf0] }
 0x2aa   :  { %v8122_v8 = vld [vmem:[#allocation2 + $0x6c0] sm:$0xf]  ;;  %v7867_v12 = vor.u32 %v10311_v7, %v7866_v6  ;;  %2616 = vmatpush.bf16.msrb.mxu0 %v7611_v11  ;;  %v7708_v6 = vld [vmem:[#allocation2 + $0x3a0] sm:$0xf0]  ;;  %v7455_v11 = vor.u32 %v10203_v2, %v7452_v3 }
 0x2ab   :  { %v10375_v9 = vld [vmem:[#allocation2 + $0x6dc] sm:$0xf0]  ;;  %v10331_v7 = vld [vmem:[#allocation2 + $0x584] sm:$0xf] }
 0x2ac   :  { %v7322_v51 = vld [vmem:[#allocation2 + $0x80] sm:$0xf]  ;;  %v8123_v18 = vor.u32 %v10375_v9, %v8122_v8  ;;  %2629 = vmatpush.bf16.msrb.mxu1 %v7867_v12  ;;  %v7964_v8 = vld [vmem:[#allocation2 + $0x5a0] sm:$0xf0]  ;;  %v7711_v12 = vor.u32 %v10267_v4, %v7708_v6 }
 0x2ad   :  { %v10175_v63 = vld [vmem:[#allocation2 + $0x9c] sm:$0xf0]  ;;  %v10395_v9 = vld [vmem:[#allocation2 + $0x784] sm:$0xf] }
 0x2ae   :  { %v7578_v16 = vld [vmem:[#allocation2 + $0x280] sm:$0xf]  ;;  %v7323_v24 = vor.u32 %v10175_v63, %v7322_v51  ;;  %2642 = vmatpush.bf16.msrb.mxu2 %v8123_v18  ;;  %v7967_v51 = vor.u32 %v10331_v7, %v7964_v8  ;;  %v10195_v63 = vld [vmem:[#allocation2 + $0x144] sm:$0xf] }
 0x2af   :  { %v10239_v19 = vld [vmem:[#allocation2 + $0x29c] sm:$0xf0]  ;;  %v10259_v18 = vld [vmem:[#allocation2 + $0x344] sm:$0xf] }
 0x2b0   :  { %v7834_v20 = vld [vmem:[#allocation2 + $0x480] sm:$0xf]  ;;  %v7579_v26 = vor.u32 %v10239_v19, %v7578_v16  ;;  %2604 = vmatpush.bf16.msra.mxu3 %v7323_v24  ;;  %v7420_v16 = vld [vmem:[#allocation2 + $0x160] sm:$0xf0]  ;;  %v8223_v19 = vor.u32 %v10395_v9, %v8220_v10 }
 0x2b1   :  { %v10303_v21 = vld [vmem:[#allocation2 + $0x49c] sm:$0xf0]  ;;  %v8188_v24 = vld [vmem:[#allocation2 + $0x760] sm:$0xf0] }
 0x2b2   :  { %v8090_v22 = vld [vmem:[#allocation2 + $0x680] sm:$0xf]  ;;  %v7835_v27 = vor.u32 %v10303_v21, %v7834_v20  ;;  %2617 = vmatpush.bf16.msrb.mxu0 %v7579_v26  ;;  %v7676_v20 = vld [vmem:[#allocation2 + $0x360] sm:$0xf0]  ;;  %v7423_v26 = vor.u32 %v10195_v63, %v7420_v16 }
 0x2b3   :  { %v10367_v23 = vld [vmem:[#allocation2 + $0x69c] sm:$0xf0]  ;;  %v10323_v21 = vld [vmem:[#allocation2 + $0x544] sm:$0xf] }
 0x2b4   :  { %v7290_v28 = vld [vmem:[#allocation2 + $0x40] sm:$0xf]  ;;  %v8091_v30 = vor.u32 %v10367_v23, %v8090_v22  ;;  %2630 = vmatpush.bf16.msrb.mxu1 %v7835_v27  ;;  %v7932_v22 = vld [vmem:[#allocation2 + $0x560] sm:$0xf0]  ;;  %v7679_v27 = vor.u32 %v10259_v18, %v7676_v20 }
 0x2b5   :  { %v10167_v17 = vld [vmem:[#allocation2 + $0x5c] sm:$0xf0]  ;;  %v10387_v23 = vld [vmem:[#allocation2 + $0x744] sm:$0xf] }
 0x2b6   :  { %v7546_v29 = vld [vmem:[#allocation2 + $0x240] sm:$0xf]  ;;  %v7291_v36 = vor.u32 %v10167_v17, %v7290_v28  ;;  %2643 = vmatpush.bf16.msrb.mxu2 %v8091_v30  ;;  %v7935_v28 = vor.u32 %v10323_v21, %v7932_v22  ;;  %v10187_v17 = vld [vmem:[#allocation2 + $0x104] sm:$0xf] }
 0x2b7   :  { %v10231_v31 = vld [vmem:[#allocation2 + $0x25c] sm:$0xf0]  ;;  %v10251_v30 = vld [vmem:[#allocation2 + $0x304] sm:$0xf] }
 0x2b8   :  { %v7802_v32 = vld [vmem:[#allocation2 + $0x440] sm:$0xf]  ;;  %v7547_v39 = vor.u32 %v10231_v31, %v7546_v29  ;;  %2605 = vmatpush.bf16.msra.mxu3 %v7291_v36  ;;  %v7388_v29 = vld [vmem:[#allocation2 + $0x120] sm:$0xf0]  ;;  %v8191_v31 = vor.u32 %v10387_v23, %v8188_v24 }
 0x2b9   :  { %v10295_v34 = vld [vmem:[#allocation2 + $0x45c] sm:$0xf0]  ;;  %v8156_v36 = vld [vmem:[#allocation2 + $0x720] sm:$0xf0] }
 0x2ba   :  { %v8058_v35 = vld [vmem:[#allocation2 + $0x640] sm:$0xf]  ;;  %v7803_v41 = vor.u32 %v10295_v34, %v7802_v32  ;;  %2618 = vmatpush.bf16.msrb.mxu0 %v7547_v39  ;;  %v7644_v32 = vld [vmem:[#allocation2 + $0x320] sm:$0xf0] }
 0x2bb   :  { %v10359_v55 = vld [vmem:[#allocation2 + $0x65c] sm:$0xf0]  ;;  %v10315_v34 = vld [vmem:[#allocation2 + $0x504] sm:$0xf] }
 0x2bc   :  { %v7258_v37 = vld [vmem:[#allocation2] sm:$0xf]  ;;  %v8059_v25 = vor.u32 %v10359_v55, %v8058_v35  ;;  %2631 = vmatpush.bf16.msrb.mxu1 %v7803_v41  ;;  %v7900_v35 = vld [vmem:[#allocation2 + $0x520] sm:$0xf0] }
 0x2bd   :  { %v10159_v38 = vld [vmem:[#allocation2 + $0x1c] sm:$0xf0]  ;;  %v10379_v55 = vld [vmem:[#allocation2 + $0x704] sm:$0xf]  ;;  %v7903_v39 = vor.u32 %v10315_v34, %v7900_v35 }
 0x2be   :  { %v7514_v42 = vld [vmem:[#allocation2 + $0x200] sm:$0xf]  ;;  %v7259_v52 = vor.u32 %v10159_v38, %v7258_v37  ;;  %2644 = vmatpush.bf16.msrb.mxu2 %v8059_v25  ;;  %v7391_v37 = vor.u32 %v10187_v17, %v7388_v29  ;;  %v7647_v38 = vor.u32 %v10251_v30, %v7644_v32  ;;  %v10179_v41 = vld [vmem:[#allocation2 + $0xc4] sm:$0xf]  ;;  %v7746_v17 = vld [vmem:[#allocation2 + $0x3c8] sm:$0xf] }
 0x2bf   :  { %v10223_v43 = vld [vmem:[#allocation2 + $0x21c] sm:$0xf0]  ;;  %v7612_v25 = vld [vmem:[#allocation2 + $0x2e0] sm:$0xf0]  ;;  %v10280_v30 = vld [vmem:[#allocation2 + $0x3e4] sm:$0xf0] }
 0x2c0   :  { %v7770_v45 = vld [vmem:[#allocation2 + $0x400] sm:$0xf]  ;;  %v7515_v56 = vor.u32 %v10223_v43, %v7514_v42  ;;  %2606 = vmatpush.bf16.msra.mxu3 %v7259_v52  ;;  %v7356_v42 = vld [vmem:[#allocation2 + $0xe0] sm:$0xf0]  ;;  %v10344_v32 = vld [vmem:[#allocation2 + $0x5e4] sm:$0xf0] }
 0x2c1   :  { %v10287_v46 = vld [vmem:[#allocation2 + $0x41c] sm:$0xf0]  ;;  %v10243_v43 = vld [vmem:[#allocation2 + $0x2c4] sm:$0xf]  ;;  %v7359_v40 = vor.u32 %v10179_v41, %v7356_v42  ;;  %v7458_v42 = vld [vmem:[#allocation2 + $0x188] sm:$0xf] }
 0x2c2   :  { %v8026_v47 = vld [vmem:[#allocation2 + $0x600] sm:$0xf]  ;;  %v7771_v57 = vor.u32 %v10287_v46, %v7770_v45  ;;  %2619 = vmatpush.bf16.msrb.mxu0 %v7515_v56  ;;  %v8159_v45 = vor.u32 %v10379_v55, %v8156_v36  ;;  %v10307_v46 = vld [vmem:[#allocation2 + $0x4c4] sm:$0xf]  ;;  %v7615_v50 = vor.u32 %v10243_v43, %v7612_v25  ;;  %v8258_v55 = vld [vmem:[#allocation2 + $0x7c8] sm:$0xf] }
 0x2c3   :  { %v10351_v48 = vld [vmem:[#allocation2 + $0x61c] sm:$0xf0]  ;;  %2607 = vmatmul.bf16.vlgmr.msra.gmra.mxu3 %v11263_v14  ;;  %v10171_v53 = vld [vmem:[#allocation2 + $0x84] sm:$0xf]  ;;  %v10408_v36 = vld [vmem:[#allocation2 + $0x7e4] sm:$0xf0] }
 0x2c4   :  { %v8027_v60 = vor.u32 %v10351_v48, %v8026_v47  ;;  %2632 = vmatpush.bf16.msrb.mxu1 %v7771_v57  ;;  %2651 = vmatpush.bf16.msrb.mxu3 %v7487_v61  ;;  %v7868_v47 = vld [vmem:[#allocation2 + $0x4e0] sm:$0xf0]  ;;  %v10208_v43 = vld [vmem:[#allocation2 + $0x1a4] sm:$0xf0]  ;;  %v8259_v25 = vor.u32 %v10408_v36, %v8258_v55 }
 0x2c5   :  { %2620 = vmatmul.bf16.vlgmr.msrb.gmra.mxu0 %v11265_v13  ;;  %v10371_v48 = vld [vmem:[#allocation2 + $0x6c4] sm:$0xf]  ;;  %v7871_v52 = vor.u32 %v10307_v46, %v7868_v47  ;;  %v10272_v46 = vld [vmem:[#allocation2 + $0x3a4] sm:$0xf0] }
 0x2c6   :  { %2645 = vmatpush.bf16.msrb.mxu2 %v8027_v60  ;;  %2664 = vmatpush.bf16.msra.mxu0 %v7743_v62  ;;  %v7324_v44 = vld [vmem:[#allocation2 + $0xa0] sm:$0xf0]  ;;  %v8127_v56 = vor.u32 %v10371_v48, %v8124_v49  ;;  %v7970_v47 = vld [vmem:[#allocation2 + $0x588] sm:$0xf] }
 0x2c7   :  { %2633 = vmatmul.bf16.vlgmr.msrb.gmra.mxu1 %v11267_v15  ;;  %v10235_v54 = vld [vmem:[#allocation2 + $0x284] sm:$0xf]  ;;  %v7327_v62 = vor.u32 %v10171_v53, %v7324_v44  ;;  %v10336_v48 = vld [vmem:[#allocation2 + $0x5a4] sm:$0xf0] }
 0x2c8   :  { %2677 = vmatpush.bf16.msra.mxu1 %v7999_v0  ;;  %2652 = vmatpush.bf16.msrb.mxu3 %v7455_v11  ;;  %v7580_v57 = vld [vmem:[#allocation2 + $0x2a0] sm:$0xf0]  ;;  %v8226_v49 = vld [vmem:[#allocation2 + $0x788] sm:$0xf]  ;;  %v7971_v53 = vor.u32 %v10336_v48, %v7970_v47 }
 0x2c9   :  { %2646 = vmatmul.bf16.vlgmr.msrb.gmra.mxu2 %v11269_v1  ;;  %v10299_v58 = vld [vmem:[#allocation2 + $0x484] sm:$0xf]  ;;  %v7583_v0 = vor.u32 %v10235_v54, %v7580_v57  ;;  %v7426_v44 = vld [vmem:[#allocation2 + $0x148] sm:$0xf] }
 0x2ca   :  { %2690 = vmatpush.bf16.msra.mxu2 %v8255_v5  ;;  %2665 = vmatpush.bf16.msra.mxu0 %v7711_v12  ;;  %v7836_v59 = vld [vmem:[#allocation2 + $0x4a0] sm:$0xf0]  ;;  %v10200_v54 = vld [vmem:[#allocation2 + $0x164] sm:$0xf0] }
 0x2cb   :  { %v10363_v60 = vld [vmem:[#allocation2 + $0x684] sm:$0xf]  ;;  %v7839_v2 = vor.u32 %v10299_v58, %v7836_v59  ;;  %v10264_v58 = vld [vmem:[#allocation2 + $0x364] sm:$0xf0] }
 0x2cc   :  { %2678 = vmatpush.bf16.msra.mxu1 %v7967_v51  ;;  %2653 = vmatpush.bf16.msrb.mxu3 %v7423_v26  ;;  %v8092_v61 = vld [vmem:[#allocation2 + $0x6a0] sm:$0xf0]  ;;  %v7938_v59 = vld [vmem:[#allocation2 + $0x548] sm:$0xf] }
 0x2cd   :  { %v10163_v3 = vld [vmem:[#allocation2 + $0x44] sm:$0xf]  ;;  %v8095_v6 = vor.u32 %v10363_v60, %v8092_v61  ;;  %v10328_v60 = vld [vmem:[#allocation2 + $0x564] sm:$0xf0] }
 0x2ce   :  { %2691 = vmatpush.bf16.msra.mxu2 %v8223_v19  ;;  %2666 = vmatpush.bf16.msra.mxu0 %v7679_v27  ;;  %v7292_v4 = vld [vmem:[#allocation2 + $0x60] sm:$0xf0]  ;;  %v7490_v27 = vld [vmem:[#allocation2 + $0x1c8] sm:$0xf] }
 0x2cf   :  { %v10227_v5 = vld [vmem:[#allocation2 + $0x244] sm:$0xf]  ;;  %v7295_v12 = vor.u32 %v10163_v3, %v7292_v4  ;;  %v8194_v61 = vld [vmem:[#allocation2 + $0x748] sm:$0xf]  ;;  %v7939_v3 = vor.u32 %v10328_v60, %v7938_v59 }
 0x2d0   :  { %2679 = vmatpush.bf16.msra.mxu1 %v7935_v28  ;;  %2654 = vmatpush.bf16.msrb.mxu3 %v7391_v37  ;;  %v7548_v7 = vld [vmem:[#allocation2 + $0x260] sm:$0xf0]  ;;  %v10216_v28 = vld [vmem:[#allocation2 + $0x1e4] sm:$0xf0] }
 0x2d1   :  { %v10291_v8 = vld [vmem:[#allocation2 + $0x444] sm:$0xf]  ;;  %v7551_v16 = vor.u32 %v10227_v5, %v7548_v7  ;;  %v7394_v4 = vld [vmem:[#allocation2 + $0x108] sm:$0xf] }
 0x2d2   :  { %2692 = vmatpush.bf16.msra.mxu2 %v8191_v31  ;;  %2667 = vmatpush.bf16.msra.mxu0 %v7647_v38  ;;  %v7804_v9 = vld [vmem:[#allocation2 + $0x460] sm:$0xf0]  ;;  %v8002_v31 = vld [vmem:[#allocation2 + $0x5c8] sm:$0xf]  ;;  %v7491_v38 = vor.u32 %v10216_v28, %v7490_v27 }
 0x2d3   :  { %v10355_v10 = vld [vmem:[#allocation2 + $0x644] sm:$0xf]  ;;  %v7807_v18 = vor.u32 %v10291_v8, %v7804_v9  ;;  %v8003_v41 = vor.u32 %v10344_v32, %v8002_v31  ;;  %v10192_v5 = vld [vmem:[#allocation2 + $0x124] sm:$0xf0] }
 0x2d4   :  { %2680 = vmatpush.bf16.msra.mxu1 %v7903_v39  ;;  %2655 = vmatpush.bf16.msrb.mxu3 %v7359_v40  ;;  %v8060_v11 = vld [vmem:[#allocation2 + $0x660] sm:$0xf0]  ;;  %v7747_v39 = vor.u32 %v10280_v30, %v7746_v17  ;;  %v10400_v40 = vld [vmem:[#allocation2 + $0x7a4] sm:$0xf0] }
 0x2d5   :  { %v10155_v51 = vld [vmem:[#allocation2 + $0x4] sm:$0xf]  ;;  %v8063_v22 = vor.u32 %v10355_v10, %v8060_v11  ;;  %v8227_v57 = vor.u32 %v10400_v40, %v8226_v49  ;;  %v10256_v8 = vld [vmem:[#allocation2 + $0x324] sm:$0xf0] }
 0x2d6   :  { %2693 = vmatpush.bf16.msra.mxu2 %v8159_v45  ;;  %2668 = vmatpush.bf16.msra.mxu0 %v7615_v50  ;;  %v7260_v63 = vld [vmem:[#allocation2 + $0x20] sm:$0xf0]  ;;  %v7714_v45 = vld [vmem:[#allocation2 + $0x388] sm:$0xf]  ;;  %v7459_v50 = vor.u32 %v10208_v43, %v7458_v42 }
 0x2d7   :  { %v10219_v19 = vld [vmem:[#allocation2 + $0x204] sm:$0xf]  ;;  %v7263_v29 = vor.u32 %v10155_v51, %v7260_v63  ;;  %v7906_v9 = vld [vmem:[#allocation2 + $0x508] sm:$0xf]  ;;  %v7395_v51 = vor.u32 %v10192_v5, %v7394_v4  ;;  %v10276_v4 = vld [vmem:[#allocation2 + $0x3cc] sm:$0xf] }
 0x2d8   :  { %2681 = vmatpush.bf16.msra.mxu1 %v7871_v52  ;;  %2656 = vmatpush.bf16.msrb.mxu3 %v7327_v62  ;;  %v7516_v20 = vld [vmem:[#allocation2 + $0x220] sm:$0xf0]  ;;  %v7715_v52 = vor.u32 %v10272_v46, %v7714_v45  ;;  %v10392_v62 = vld [vmem:[#allocation2 + $0x764] sm:$0xf0] }
 0x2d9   :  { %v10283_v21 = vld [vmem:[#allocation2 + $0x404] sm:$0xf]  ;;  %v7519_v34 = vor.u32 %v10219_v19, %v7516_v20  ;;  %v8195_v7 = vor.u32 %v10392_v62, %v8194_v61  ;;  %v10320_v10 = vld [vmem:[#allocation2 + $0x524] sm:$0xf0] }
 0x2da   :  { %2694 = vmatpush.bf16.msra.mxu2 %v8127_v56  ;;  %2669 = vmatpush.bf16.msra.mxu0 %v7583_v0  ;;  %v7772_v23 = vld [vmem:[#allocation2 + $0x420] sm:$0xf0]  ;;  %v7682_v56 = vld [vmem:[#allocation2 + $0x348] sm:$0xf]  ;;  %v7427_v0 = vor.u32 %v10200_v54, %v7426_v44 }
 0x2db   :  { %v10347_v24 = vld [vmem:[#allocation2 + $0x604] sm:$0xf]  ;;  %v7775_v35 = vor.u32 %v10283_v21, %v7772_v23  ;;  %v8162_v11 = vld [vmem:[#allocation2 + $0x708] sm:$0xf] }
 0x2dc   :  { %2682 = vmatpush.bf16.msra.mxu1 %v7839_v2  ;;  %v8028_v26 = vld [vmem:[#allocation2 + $0x620] sm:$0xf0]  ;;  %2657 = vmatpush.bf16.msrb.mxu3 %v7295_v12  ;;  %v7683_v2 = vor.u32 %v10264_v58, %v7682_v56  ;;  %v10384_v12 = vld [vmem:[#allocation2 + $0x724] sm:$0xf0] }
 0x2dd   :  { %v8031_v37 = vor.u32 %v10347_v24, %v8028_v26  ;;  %v10184_v19 = vld [vmem:[#allocation2 + $0xe4] sm:$0xf0]  ;;  %v8163_v21 = vor.u32 %v10384_v12, %v8162_v11  ;;  %v10404_v11 = vld [vmem:[#allocation2 + $0x7cc] sm:$0xf] }
 0x2de   :  { %2695 = vmatpush.bf16.msra.mxu2 %v8095_v6  ;;  %2670 = vmatpush.bf16.msra.mxu0 %v7551_v16  ;;  %v7650_v6 = vld [vmem:[#allocation2 + $0x308] sm:$0xf]  ;;  %v7907_v16 = vor.u32 %v10320_v10, %v7906_v9  ;;  %v8260_v12 = vld [vmem:[#allocation2 + $0x7e8] sm:$0xf0] }
 0x2df   :  { %v7651_v63 = vor.u32 %v10256_v8, %v7650_v6  ;;  %v7618_v20 = vld [vmem:[#allocation2 + $0x2c8] sm:$0xf]  ;;  %v7748_v6 = vld [vmem:[#allocation2 + $0x3e8] sm:$0xf0] }
 0x2e0   :  { %2683 = vmatpush.bf16.msra.mxu1 %v7807_v18  ;;  %2658 = vmatpush.bf16.msrb.mxu3 %v7263_v29  ;;  %v7362_v18 = vld [vmem:[#allocation2 + $0xc8] sm:$0xf]  ;;  %v8004_v8 = vld [vmem:[#allocation2 + $0x5e8] sm:$0xf0] }
 0x2e1   :  { %v7874_v23 = vld [vmem:[#allocation2 + $0x4c8] sm:$0xf]  ;;  %v7363_v28 = vor.u32 %v10184_v19, %v7362_v18  ;;  %v10204_v19 = vld [vmem:[#allocation2 + $0x18c] sm:$0xf] }
 0x2e2   :  { %2696 = vmatpush.bf16.msra.mxu2 %v8063_v22  ;;  %2671 = vmatpush.bf16.msra.mxu0 %v7519_v34  ;;  %v10248_v22 = vld [vmem:[#allocation2 + $0x2e4] sm:$0xf0] }
 0x2e3   :  { %2659 = vmatmul.bf16.vlgmr.msrb.gmra.mxu3 %v11263_v14  ;;  %v10312_v24 = vld [vmem:[#allocation2 + $0x4e4] sm:$0xf0]  ;;  %v7619_v17 = vor.u32 %v10248_v22, %v7618_v20  ;;  %v7460_v20 = vld [vmem:[#allocation2 + $0x1a8] sm:$0xf0]  ;;  %v8263_v22 = vor.u32 %v10404_v11, %v8260_v12 }
 0x2e4   :  { %2684 = vmatpush.bf16.msra.mxu1 %v7775_v35  ;;  %2703 = vmatpush.bf16.msra.mxu3 %v7491_v38  ;;  %v8130_v26 = vld [vmem:[#allocation2 + $0x6c8] sm:$0xf]  ;;  %v7875_v29 = vor.u32 %v10312_v24, %v7874_v23  ;;  %v7716_v23 = vld [vmem:[#allocation2 + $0x3a8] sm:$0xf0] }
 0x2e5   :  { %2672 = vmatmul.bf16.vlgmr.msra.gmra.mxu0 %v11265_v13  ;;  %v10376_v27 = vld [vmem:[#allocation2 + $0x6e4] sm:$0xf0]  ;;  %v10332_v24 = vld [vmem:[#allocation2 + $0x58c] sm:$0xf] }
 0x2e6   :  { %2697 = vmatpush.bf16.msra.mxu2 %v8031_v37  ;;  %2716 = vmatpush.bf16.msrb.mxu0 %v7747_v39  ;;  %v7330_v30 = vld [vmem:[#allocation2 + $0x88] sm:$0xf]  ;;  %v8131_v34 = vor.u32 %v10376_v27, %v8130_v26  ;;  %v7972_v26 = vld [vmem:[#allocation2 + $0x5a8] sm:$0xf0] }
 0x2e7   :  { %2685 = vmatmul.bf16.vlgmr.msra.gmra.mxu1 %v11267_v15  ;;  %v10176_v31 = vld [vmem:[#allocation2 + $0xa4] sm:$0xf0]  ;;  %v10396_v27 = vld [vmem:[#allocation2 + $0x78c] sm:$0xf] }
 0x2e8   :  { %2729 = vmatpush.bf16.msrb.mxu1 %v8003_v41  ;;  %2704 = vmatpush.bf16.msra.mxu3 %v7459_v50  ;;  %v7586_v32 = vld [vmem:[#allocation2 + $0x288] sm:$0xf]  ;;  %v7331_v39 = vor.u32 %v10176_v31, %v7330_v30  ;;  %v7975_v30 = vor.u32 %v10332_v24, %v7972_v26  ;;  %v10196_v31 = vld [vmem:[#allocation2 + $0x14c] sm:$0xf] }
 0x2e9   :  { %2698 = vmatmul.bf16.vlgmr.msra.gmra.mxu2 %v11269_v1  ;;  %v10240_v35 = vld [vmem:[#allocation2 + $0x2a4] sm:$0xf0]  ;;  %v10300_v11 = vld [vmem:[#allocation2 + $0x48c] sm:$0xf] }
 0x2ea   :  { %2742 = vmatpush.bf16.msrb.mxu2 %v8259_v25  ;;  %2717 = vmatpush.bf16.msrb.mxu0 %v7715_v52  ;;  %v7842_v55 = vld [vmem:[#allocation2 + $0x488] sm:$0xf]  ;;  %v7587_v41 = vor.u32 %v10240_v35, %v7586_v32  ;;  %v7428_v32 = vld [vmem:[#allocation2 + $0x168] sm:$0xf0] }
 0x2eb   :  { %v10304_v36 = vld [vmem:[#allocation2 + $0x4a4] sm:$0xf0]  ;;  %v7844_v12 = vld [vmem:[#allocation2 + $0x4a8] sm:$0xf0] }
 0x2ec   :  { %2730 = vmatpush.bf16.msrb.mxu1 %v7971_v53  ;;  %2705 = vmatpush.bf16.msra.mxu3 %v7427_v0  ;;  %v8098_v37 = vld [vmem:[#allocation2 + $0x688] sm:$0xf]  ;;  %v7843_v42 = vor.u32 %v10304_v36, %v7842_v55  ;;  %v7684_v55 = vld [vmem:[#allocation2 + $0x368] sm:$0xf0] }
 0x2ed   :  { %v10368_v38 = vld [vmem:[#allocation2 + $0x6a4] sm:$0xf0]  ;;  %v10324_v36 = vld [vmem:[#allocation2 + $0x54c] sm:$0xf] }
 0x2ee   :  { %2743 = vmatpush.bf16.msrb.mxu2 %v8227_v57  ;;  %2718 = vmatpush.bf16.msrb.mxu0 %v7683_v2  ;;  %v7298_v43 = vld [vmem:[#allocation2 + $0x48] sm:$0xf]  ;;  %v8099_v46 = vor.u32 %v10368_v38, %v8098_v37  ;;  %v10212_v2 = vld [vmem:[#allocation2 + $0x1cc] sm:$0xf] }
 0x2ef   :  { %v10168_v45 = vld [vmem:[#allocation2 + $0x64] sm:$0xf0]  ;;  %v7940_v37 = vld [vmem:[#allocation2 + $0x568] sm:$0xf0] }
 0x2f0   :  { %2731 = vmatpush.bf16.msrb.mxu1 %v7939_v3  ;;  %2706 = vmatpush.bf16.msra.mxu3 %v7395_v51  ;;  %v7554_v25 = vld [vmem:[#allocation2 + $0x248] sm:$0xf]  ;;  %v7299_v52 = vor.u32 %v10168_v45, %v7298_v43  ;;  %v7492_v3 = vld [vmem:[#allocation2 + $0x1e8] sm:$0xf0]  ;;  %v7943_v43 = vor.u32 %v10324_v36, %v7940_v37 }
 0x2f1   :  { %v10232_v47 = vld [vmem:[#allocation2 + $0x264] sm:$0xf0]  ;;  %v10388_v38 = vld [vmem:[#allocation2 + $0x74c] sm:$0xf] }
 0x2f2   :  { %2744 = vmatpush.bf16.msrb.mxu2 %v8195_v7  ;;  %2719 = vmatpush.bf16.msrb.mxu0 %v7651_v63  ;;  %v7810_v48 = vld [vmem:[#allocation2 + $0x448] sm:$0xf]  ;;  %v7555_v54 = vor.u32 %v10232_v47, %v7554_v25  ;;  %v10340_v7 = vld [vmem:[#allocation2 + $0x5cc] sm:$0xf]  ;;  %v7495_v63 = vor.u32 %v10212_v2, %v7492_v3 }
 0x2f3   :  { %v10296_v49 = vld [vmem:[#allocation2 + $0x464] sm:$0xf0]  ;;  %v8007_v18 = vor.u32 %v10340_v7, %v8004_v8  ;;  %v10188_v45 = vld [vmem:[#allocation2 + $0x10c] sm:$0xf] }
 0x2f4   :  { %2732 = vmatpush.bf16.msrb.mxu1 %v7907_v16  ;;  %2707 = vmatpush.bf16.msra.mxu3 %v7363_v28  ;;  %v8066_v40 = vld [vmem:[#allocation2 + $0x648] sm:$0xf]  ;;  %v7811_v56 = vor.u32 %v10296_v49, %v7810_v48  ;;  %v7751_v16 = vor.u32 %v10276_v4, %v7748_v6  ;;  %v8228_v28 = vld [vmem:[#allocation2 + $0x7a8] sm:$0xf0] }
 0x2f5   :  { %v10360_v50 = vld [vmem:[#allocation2 + $0x664] sm:$0xf0]  ;;  %v8231_v35 = vor.u32 %v10396_v27, %v8228_v28  ;;  %v7396_v25 = vld [vmem:[#allocation2 + $0x128] sm:$0xf0] }
 0x2f6   :  { %2745 = vmatpush.bf16.msrb.mxu2 %v8163_v21  ;;  %2720 = vmatpush.bf16.msrb.mxu0 %v7619_v17  ;;  %v7266_v53 = vld [vmem:[#allocation2 + $0x8] sm:$0xf]  ;;  %v8067_v60 = vor.u32 %v10360_v50, %v8066_v40  ;;  %v10268_v21 = vld [vmem:[#allocation2 + $0x38c] sm:$0xf]  ;;  %v7463_v17 = vor.u32 %v10204_v19, %v7460_v20  ;;  %v7847_v19 = vor.u32 %v10300_v11, %v7844_v12  ;;  %v10265_v11 = vld [vmem:[#allocation2 + $0x36c] sm:$0xf0] }
 0x2f7   :  { %v10160_v44 = vld [vmem:[#allocation2 + $0x24] sm:$0xf0]  ;;  %v7652_v48 = vld [vmem:[#allocation2 + $0x328] sm:$0xf0]  ;;  %v7946_v12 = vld [vmem:[#allocation2 + $0x550] sm:$0xf] }
 0x2f8   :  { %2733 = vmatpush.bf16.msrb.mxu1 %v7875_v29  ;;  %2708 = vmatpush.bf16.msra.mxu3 %v7331_v39  ;;  %v7522_v57 = vld [vmem:[#allocation2 + $0x208] sm:$0xf]  ;;  %v7267_v5 = vor.u32 %v10160_v44, %v7266_v53  ;;  %v7719_v29 = vor.u32 %v10268_v21, %v7716_v23  ;;  %v8196_v39 = vld [vmem:[#allocation2 + $0x768] sm:$0xf0]  ;;  %v7399_v53 = vor.u32 %v10188_v45, %v7396_v25  ;;  %v7754_v45 = vld [vmem:[#allocation2 + $0x3d0] sm:$0xf] }
 0x2f9   :  { %v10224_v58 = vld [vmem:[#allocation2 + $0x224] sm:$0xf0]  ;;  %v8199_v47 = vor.u32 %v10388_v38, %v8196_v39  ;;  %v10316_v49 = vld [vmem:[#allocation2 + $0x50c] sm:$0xf] }
 0x2fa   :  { %2746 = vmatpush.bf16.msrb.mxu2 %v8131_v34  ;;  %2721 = vmatpush.bf16.msrb.mxu0 %v7587_v41  ;;  %v7778_v59 = vld [vmem:[#allocation2 + $0x408] sm:$0xf]  ;;  %v7523_v9 = vor.u32 %v10224_v58, %v7522_v57  ;;  %v10260_v34 = vld [vmem:[#allocation2 + $0x34c] sm:$0xf]  ;;  %v7431_v41 = vor.u32 %v10196_v31, %v7428_v32 }
 0x2fb   :  { %v10288_v61 = vld [vmem:[#allocation2 + $0x424] sm:$0xf0]  ;;  %v7908_v40 = vld [vmem:[#allocation2 + $0x528] sm:$0xf0] }
 0x2fc   :  { %2734 = vmatpush.bf16.msrb.mxu1 %v7843_v42  ;;  %v8034_v62 = vld [vmem:[#allocation2 + $0x608] sm:$0xf]  ;;  %2709 = vmatpush.bf16.msra.mxu3 %v7299_v52  ;;  %v7779_v10 = vor.u32 %v10288_v61, %v7778_v59  ;;  %v7687_v42 = vor.u32 %v10260_v34, %v7684_v55  ;;  %v10380_v50 = vld [vmem:[#allocation2 + $0x70c] sm:$0xf] }
 0x2fd   :  { %v10352_v0 = vld [vmem:[#allocation2 + $0x624] sm:$0xf0]  ;;  %v8164_v52 = vld [vmem:[#allocation2 + $0x728] sm:$0xf0] }
 0x2fe   :  { %2747 = vmatpush.bf16.msrb.mxu2 %v8099_v46  ;;  %2722 = vmatpush.bf16.msrb.mxu0 %v7555_v54  ;;  %v8035_v51 = vor.u32 %v10352_v0, %v8034_v62  ;;  %v10252_v46 = vld [vmem:[#allocation2 + $0x30c] sm:$0xf]  ;;  %v7911_v54 = vor.u32 %v10316_v49, %v7908_v40  ;;  %v8167_v59 = vor.u32 %v10380_v50, %v8164_v52  ;;  %v8266_v50 = vld [vmem:[#allocation2 + $0x7d0] sm:$0xf] }
 0x2ff   :  { %v7655_v44 = vor.u32 %v10252_v46, %v7652_v48  ;;  %v7364_v57 = vld [vmem:[#allocation2 + $0xe8] sm:$0xf0]  ;;  %v10281_v46 = vld [vmem:[#allocation2 + $0x3ec] sm:$0xf0] }
 0x300   :  { %2735 = vmatpush.bf16.msrb.mxu1 %v7811_v56  ;;  %2710 = vmatpush.bf16.msra.mxu3 %v7267_v5  ;;  %v10180_v56 = vld [vmem:[#allocation2 + $0xcc] sm:$0xf]  ;;  %v10345_v48 = vld [vmem:[#allocation2 + $0x5ec] sm:$0xf0] }
 0x301   :  { %v10244_v58 = vld [vmem:[#allocation2 + $0x2cc] sm:$0xf]  ;;  %v7367_v3 = vor.u32 %v10180_v56, %v7364_v57  ;;  %v10409_v52 = vld [vmem:[#allocation2 + $0x7ec] sm:$0xf0] }
 0x302   :  { %2748 = vmatpush.bf16.msrb.mxu2 %v8067_v60  ;;  %2723 = vmatpush.bf16.msrb.mxu0 %v7523_v9  ;;  %v7620_v60 = vld [vmem:[#allocation2 + $0x2e8] sm:$0xf0]  ;;  %v7466_v57 = vld [vmem:[#allocation2 + $0x190] sm:$0xf] }
 0x303   :  { %2711 = vmatmul.bf16.vlgmr.msra.gmra.mxu3 %v11263_v14  ;;  %v10308_v61 = vld [vmem:[#allocation2 + $0x4cc] sm:$0xf]  ;;  %v7623_v4 = vor.u32 %v10244_v58, %v7620_v60  ;;  %v10209_v58 = vld [vmem:[#allocation2 + $0x1ac] sm:$0xf0]  ;;  %v8267_v60 = vor.u32 %v10409_v52, %v8266_v50 }
 0x304   :  { %2736 = vmatpush.bf16.msrb.mxu1 %v7779_v10  ;;  %2755 = vmatpush.bf16.msrb.mxu3 %v7495_v63  ;;  %v7876_v62 = vld [vmem:[#allocation2 + $0x4e8] sm:$0xf0]  ;;  %v7850_v50 = vld [vmem:[#allocation2 + $0x490] sm:$0xf] }
 0x305   :  { %2724 = vmatmul.bf16.vlgmr.msrb.gmra.mxu0 %v11265_v13  ;;  %v10372_v0 = vld [vmem:[#allocation2 + $0x6cc] sm:$0xf]  ;;  %v7879_v5 = vor.u32 %v10308_v61, %v7876_v62  ;;  %v10273_v61 = vld [vmem:[#allocation2 + $0x3ac] sm:$0xf0] }
 0x306   :  { %2749 = vmatpush.bf16.msrb.mxu2 %v8035_v51  ;;  %2768 = vmatpush.bf16.msra.mxu0 %v7751_v16  ;;  %v8132_v2 = vld [vmem:[#allocation2 + $0x6e8] sm:$0xf0]  ;;  %v7978_v62 = vld [vmem:[#allocation2 + $0x590] sm:$0xf] }
 0x307   :  { %2737 = vmatmul.bf16.vlgmr.msrb.gmra.mxu1 %v11267_v15  ;;  %v10172_v6 = vld [vmem:[#allocation2 + $0x8c] sm:$0xf]  ;;  %v8135_v9 = vor.u32 %v10372_v0, %v8132_v2  ;;  %v10337_v0 = vld [vmem:[#allocation2 + $0x5ac] sm:$0xf0] }
 0x308   :  { %2781 = vmatpush.bf16.msra.mxu1 %v8007_v18  ;;  %2756 = vmatpush.bf16.msrb.mxu3 %v7463_v17  ;;  %v7332_v7 = vld [vmem:[#allocation2 + $0xa8] sm:$0xf0]  ;;  %v8234_v2 = vld [vmem:[#allocation2 + $0x790] sm:$0xf] }
 0x309   :  { %2750 = vmatmul.bf16.vlgmr.msrb.gmra.mxu2 %v11269_v1  ;;  %v10236_v8 = vld [vmem:[#allocation2 + $0x28c] sm:$0xf]  ;;  %v7335_v16 = vor.u32 %v10172_v6, %v7332_v7  ;;  %v7979_v6 = vor.u32 %v10337_v0, %v7978_v62  ;;  %v7434_v7 = vld [vmem:[#allocation2 + $0x150] sm:$0xf] }
 0x30a   :  { %2794 = vmatpush.bf16.msra.mxu2 %v8263_v22  ;;  %2769 = vmatpush.bf16.msra.mxu0 %v7719_v29  ;;  %v7588_v10 = vld [vmem:[#allocation2 + $0x2a8] sm:$0xf0]  ;;  %v10305_v52 = vld [vmem:[#allocation2 + $0x4ac] sm:$0xf0] }
 0x30b   :  { %v10364_v51 = vld [vmem:[#allocation2 + $0x68c] sm:$0xf]  ;;  %v7591_v18 = vor.u32 %v10236_v8, %v7588_v10  ;;  %v10201_v8 = vld [vmem:[#allocation2 + $0x16c] sm:$0xf0] }
 0x30c   :  { %2782 = vmatpush.bf16.msra.mxu1 %v7975_v30  ;;  %2757 = vmatpush.bf16.msrb.mxu3 %v7431_v41  ;;  %v8100_v63 = vld [vmem:[#allocation2 + $0x6a8] sm:$0xf0]  ;;  %v10233_v62 = vld [vmem:[#allocation2 + $0x26c] sm:$0xf0] }
 0x30d   :  { %v10164_v20 = vld [vmem:[#allocation2 + $0x4c] sm:$0xf]  ;;  %v8103_v23 = vor.u32 %v10364_v51, %v8100_v63  ;;  %v10329_v51 = vld [vmem:[#allocation2 + $0x56c] sm:$0xf0] }
 0x30e   :  { %2795 = vmatpush.bf16.msra.mxu2 %v8231_v35  ;;  %2770 = vmatpush.bf16.msra.mxu0 %v7687_v42  ;;  %v7300_v21 = vld [vmem:[#allocation2 + $0x68] sm:$0xf0]  ;;  %v7498_v42 = vld [vmem:[#allocation2 + $0x1d0] sm:$0xf] }
 0x30f   :  { %v10228_v22 = vld [vmem:[#allocation2 + $0x24c] sm:$0xf]  ;;  %v7303_v29 = vor.u32 %v10164_v20, %v7300_v21  ;;  %v8202_v63 = vld [vmem:[#allocation2 + $0x750] sm:$0xf]  ;;  %v7947_v20 = vor.u32 %v10329_v51, %v7946_v12 }
 0x310   :  { %2783 = vmatpush.bf16.msra.mxu1 %v7943_v43  ;;  %2758 = vmatpush.bf16.msrb.mxu3 %v7399_v53  ;;  %v7556_v24 = vld [vmem:[#allocation2 + $0x268] sm:$0xf0]  ;;  %v10217_v43 = vld [vmem:[#allocation2 + $0x1ec] sm:$0xf0] }
 0x311   :  { %v10292_v26 = vld [vmem:[#allocation2 + $0x44c] sm:$0xf]  ;;  %v7559_v32 = vor.u32 %v10228_v22, %v7556_v24  ;;  %v7402_v21 = vld [vmem:[#allocation2 + $0x110] sm:$0xf] }
 0x312   :  { %2796 = vmatpush.bf16.msra.mxu2 %v8199_v47  ;;  %2771 = vmatpush.bf16.msra.mxu0 %v7655_v44  ;;  %v7812_v27 = vld [vmem:[#allocation2 + $0x468] sm:$0xf0]  ;;  %v8010_v47 = vld [vmem:[#allocation2 + $0x5d0] sm:$0xf]  ;;  %v7499_v44 = vor.u32 %v10217_v43, %v7498_v42 }
 0x313   :  { %v10356_v28 = vld [vmem:[#allocation2 + $0x64c] sm:$0xf]  ;;  %v7815_v34 = vor.u32 %v10292_v26, %v7812_v27  ;;  %v8011_v56 = vor.u32 %v10345_v48, %v8010_v47  ;;  %v10193_v22 = vld [vmem:[#allocation2 + $0x12c] sm:$0xf0] }
 0x314   :  { %2784 = vmatpush.bf16.msra.mxu1 %v7911_v54  ;;  %2759 = vmatpush.bf16.msrb.mxu3 %v7367_v3  ;;  %v8068_v17 = vld [vmem:[#allocation2 + $0x668] sm:$0xf0]  ;;  %v7755_v54 = vor.u32 %v10281_v46, %v7754_v45  ;;  %v10401_v3 = vld [vmem:[#allocation2 + $0x7ac] sm:$0xf0] }
 0x315   :  { %v10156_v30 = vld [vmem:[#allocation2 + $0xc] sm:$0xf]  ;;  %v8071_v37 = vor.u32 %v10356_v28, %v8068_v17  ;;  %v8235_v10 = vor.u32 %v10401_v3, %v8234_v2  ;;  %v10257_v26 = vld [vmem:[#allocation2 + $0x32c] sm:$0xf0] }
 0x316   :  { %2797 = vmatpush.bf16.msra.mxu2 %v8167_v59  ;;  %2772 = vmatpush.bf16.msra.mxu0 %v7623_v4  ;;  %v7268_v31 = vld [vmem:[#allocation2 + $0x28] sm:$0xf0]  ;;  %v7722_v59 = vld [vmem:[#allocation2 + $0x390] sm:$0xf]  ;;  %v7467_v4 = vor.u32 %v10209_v58, %v7466_v57  ;;  %v7851_v57 = vor.u32 %v10305_v52, %v7850_v50  ;;  %v7692_v50 = vld [vmem:[#allocation2 + $0x370] sm:$0xf0] }
 0x317   :  { %v10220_v35 = vld [vmem:[#allocation2 + $0x20c] sm:$0xf]  ;;  %v7271_v25 = vor.u32 %v10156_v30, %v7268_v31  ;;  %v7914_v27 = vld [vmem:[#allocation2 + $0x510] sm:$0xf]  ;;  %v7403_v30 = vor.u32 %v10193_v22, %v7402_v21  ;;  %v10277_v21 = vld [vmem:[#allocation2 + $0x3d4] sm:$0xf] }
 0x318   :  { %2785 = vmatpush.bf16.msra.mxu1 %v7879_v5  ;;  %2760 = vmatpush.bf16.msrb.mxu3 %v7335_v16  ;;  %v7524_v55 = vld [vmem:[#allocation2 + $0x228] sm:$0xf0]  ;;  %v7723_v5 = vor.u32 %v10273_v61, %v7722_v59  ;;  %v10393_v16 = vld [vmem:[#allocation2 + $0x76c] sm:$0xf0]  ;;  %v10325_v52 = vld [vmem:[#allocation2 + $0x554] sm:$0xf] }
 0x319   :  { %v10284_v36 = vld [vmem:[#allocation2 + $0x40c] sm:$0xf]  ;;  %v7527_v49 = vor.u32 %v10220_v35, %v7524_v55  ;;  %v8203_v24 = vor.u32 %v10393_v16, %v8202_v63  ;;  %v10321_v28 = vld [vmem:[#allocation2 + $0x52c] sm:$0xf0] }
 0x31a   :  { %2798 = vmatpush.bf16.msra.mxu2 %v8135_v9  ;;  %2773 = vmatpush.bf16.msra.mxu0 %v7591_v18  ;;  %v7780_v38 = vld [vmem:[#allocation2 + $0x428] sm:$0xf0]  ;;  %v7690_v9 = vld [vmem:[#allocation2 + $0x350] sm:$0xf]  ;;  %v7435_v18 = vor.u32 %v10201_v8, %v7434_v7 }
 0x31b   :  { %v10348_v39 = vld [vmem:[#allocation2 + $0x60c] sm:$0xf]  ;;  %v7783_v40 = vor.u32 %v10284_v36, %v7780_v38  ;;  %v8170_v17 = vld [vmem:[#allocation2 + $0x710] sm:$0xf] }
 0x31c   :  { %2786 = vmatpush.bf16.msra.mxu1 %v7847_v19  ;;  %v8036_v41 = vld [vmem:[#allocation2 + $0x628] sm:$0xf0]  ;;  %2761 = vmatpush.bf16.msrb.mxu3 %v7303_v29  ;;  %v7691_v19 = vor.u32 %v10265_v11, %v7690_v9  ;;  %v10385_v29 = vld [vmem:[#allocation2 + $0x72c] sm:$0xf0] }
 0x31d   :  { %v8039_v53 = vor.u32 %v10348_v39, %v8036_v41  ;;  %v10185_v35 = vld [vmem:[#allocation2 + $0xec] sm:$0xf0]  ;;  %v8171_v36 = vor.u32 %v10385_v29, %v8170_v17  ;;  %v10405_v17 = vld [vmem:[#allocation2 + $0x7d4] sm:$0xf] }
 0x31e   :  { %2799 = vmatpush.bf16.msra.mxu2 %v8103_v23  ;;  %2774 = vmatpush.bf16.msra.mxu0 %v7559_v32  ;;  %v7658_v23 = vld [vmem:[#allocation2 + $0x310] sm:$0xf]  ;;  %v7915_v32 = vor.u32 %v10321_v28, %v7914_v27  ;;  %v8268_v29 = vld [vmem:[#allocation2 + $0x7f0] sm:$0xf0] }
 0x31f   :  { %v7659_v31 = vor.u32 %v10257_v26, %v7658_v23  ;;  %v7626_v55 = vld [vmem:[#allocation2 + $0x2d0] sm:$0xf]  ;;  %v7756_v23 = vld [vmem:[#allocation2 + $0x3f0] sm:$0xf0] }
 0x320   :  { %2787 = vmatpush.bf16.msra.mxu1 %v7815_v34  ;;  %2762 = vmatpush.bf16.msrb.mxu3 %v7271_v25  ;;  %v7370_v34 = vld [vmem:[#allocation2 + $0xd0] sm:$0xf]  ;;  %v8012_v26 = vld [vmem:[#allocation2 + $0x5f0] sm:$0xf0] }
 0x321   :  { %v7882_v38 = vld [vmem:[#allocation2 + $0x4d0] sm:$0xf]  ;;  %v7371_v43 = vor.u32 %v10185_v35, %v7370_v34  ;;  %v10205_v35 = vld [vmem:[#allocation2 + $0x194] sm:$0xf] }
 0x322   :  { %2800 = vmatpush.bf16.msra.mxu2 %v8071_v37  ;;  %2775 = vmatpush.bf16.msra.mxu0 %v7527_v49  ;;  %v10249_v37 = vld [vmem:[#allocation2 + $0x2ec] sm:$0xf0] }
 0x323   :  { %2763 = vmatmul.bf16.vlgmr.msrb.gmra.mxu3 %v11263_v14  ;;  %v10313_v39 = vld [vmem:[#allocation2 + $0x4ec] sm:$0xf0]  ;;  %v7627_v45 = vor.u32 %v10249_v37, %v7626_v55  ;;  %v7468_v55 = vld [vmem:[#allocation2 + $0x1b0] sm:$0xf0]  ;;  %v8271_v37 = vor.u32 %v10405_v17, %v8268_v29 }
 0x324   :  { %2788 = vmatpush.bf16.msra.mxu1 %v7783_v40  ;;  %2807 = vmatpush.bf16.msra.mxu3 %v7499_v44  ;;  %v8138_v41 = vld [vmem:[#allocation2 + $0x6d0] sm:$0xf]  ;;  %v7883_v25 = vor.u32 %v10313_v39, %v7882_v38  ;;  %v7724_v38 = vld [vmem:[#allocation2 + $0x3b0] sm:$0xf0] }
 0x325   :  { %2776 = vmatmul.bf16.vlgmr.msra.gmra.mxu0 %v11265_v13  ;;  %v10377_v42 = vld [vmem:[#allocation2 + $0x6ec] sm:$0xf0]  ;;  %v10333_v39 = vld [vmem:[#allocation2 + $0x594] sm:$0xf] }
 0x326   :  { %2801 = vmatpush.bf16.msra.mxu2 %v8039_v53  ;;  %2820 = vmatpush.bf16.msrb.mxu0 %v7755_v54  ;;  %v7338_v46 = vld [vmem:[#allocation2 + $0x90] sm:$0xf]  ;;  %v8139_v49 = vor.u32 %v10377_v42, %v8138_v41  ;;  %v7980_v41 = vld [vmem:[#allocation2 + $0x5b0] sm:$0xf0] }
 0x327   :  { %2789 = vmatmul.bf16.vlgmr.msra.gmra.mxu1 %v11267_v15  ;;  %v10177_v47 = vld [vmem:[#allocation2 + $0xac] sm:$0xf0]  ;;  %v10397_v42 = vld [vmem:[#allocation2 + $0x794] sm:$0xf] }
 0x328   :  { %2833 = vmatpush.bf16.msrb.mxu1 %v8011_v56  ;;  %2808 = vmatpush.bf16.msra.mxu3 %v7467_v4  ;;  %v7594_v48 = vld [vmem:[#allocation2 + $0x290] sm:$0xf]  ;;  %v7339_v54 = vor.u32 %v10177_v47, %v7338_v46  ;;  %v7983_v46 = vor.u32 %v10333_v39, %v7980_v41  ;;  %v10197_v47 = vld [vmem:[#allocation2 + $0x154] sm:$0xf] }
 0x329   :  { %2802 = vmatmul.bf16.vlgmr.msra.gmra.mxu2 %v11269_v1  ;;  %v10241_v40 = vld [vmem:[#allocation2 + $0x2ac] sm:$0xf0]  ;;  %v10237_v17 = vld [vmem:[#allocation2 + $0x294] sm:$0xf] }
 0x32a   :  { %2846 = vmatpush.bf16.msrb.mxu2 %v8267_v60  ;;  %2821 = vmatpush.bf16.msrb.mxu0 %v7723_v5  ;;  %v8106_v53 = vld [vmem:[#allocation2 + $0x690] sm:$0xf]  ;;  %v7595_v56 = vor.u32 %v10241_v40, %v7594_v48  ;;  %v7436_v48 = vld [vmem:[#allocation2 + $0x170] sm:$0xf0] }
 0x32b   :  { %v10369_v44 = vld [vmem:[#allocation2 + $0x6ac] sm:$0xf0] }
 0x32c   :  { %2834 = vmatpush.bf16.msrb.mxu1 %v7979_v6  ;;  %2809 = vmatpush.bf16.msra.mxu3 %v7435_v18  ;;  %v7306_v58 = vld [vmem:[#allocation2 + $0x50] sm:$0xf]  ;;  %v8107_v61 = vor.u32 %v10369_v44, %v8106_v53  ;;  %v7948_v53 = vld [vmem:[#allocation2 + $0x570] sm:$0xf0] }
 0x32d   :  { %v10169_v59 = vld [vmem:[#allocation2 + $0x6c] sm:$0xf0]  ;;  %v10389_v44 = vld [vmem:[#allocation2 + $0x754] sm:$0xf] }
 0x32e   :  { %2847 = vmatpush.bf16.msrb.mxu2 %v8235_v10  ;;  %2822 = vmatpush.bf16.msrb.mxu0 %v7691_v19  ;;  %v7562_v60 = vld [vmem:[#allocation2 + $0x250] sm:$0xf]  ;;  %v7307_v5 = vor.u32 %v10169_v59, %v7306_v58  ;;  %v10213_v19 = vld [vmem:[#allocation2 + $0x1d4] sm:$0xf]  ;;  %v7951_v58 = vor.u32 %v10325_v52, %v7948_v53 }
 0x32f   :  { %v7818_v0 = vld [vmem:[#allocation2 + $0x450] sm:$0xf]  ;;  %v7563_v8 = vor.u32 %v10233_v62, %v7562_v60  ;;  %v10189_v59 = vld [vmem:[#allocation2 + $0x114] sm:$0xf] }
 0x330   :  { %2835 = vmatpush.bf16.msrb.mxu1 %v7947_v20  ;;  %2810 = vmatpush.bf16.msra.mxu3 %v7403_v30  ;;  %v10297_v2 = vld [vmem:[#allocation2 + $0x46c] sm:$0xf0]  ;;  %v7500_v20 = vld [vmem:[#allocation2 + $0x1f0] sm:$0xf0] }
 0x331   :  { %v8074_v3 = vld [vmem:[#allocation2 + $0x650] sm:$0xf]  ;;  %v7819_v9 = vor.u32 %v10297_v2, %v7818_v0  ;;  %v7404_v60 = vld [vmem:[#allocation2 + $0x130] sm:$0xf0] }
 0x332   :  { %2848 = vmatpush.bf16.msrb.mxu2 %v8203_v24  ;;  %2823 = vmatpush.bf16.msrb.mxu0 %v7659_v31  ;;  %v10361_v4 = vld [vmem:[#allocation2 + $0x66c] sm:$0xf0]  ;;  %v10341_v24 = vld [vmem:[#allocation2 + $0x5d4] sm:$0xf]  ;;  %v7503_v31 = vor.u32 %v10213_v19, %v7500_v20 }
 0x333   :  { %v7274_v6 = vld [vmem:[#allocation2 + $0x10] sm:$0xf]  ;;  %v8075_v51 = vor.u32 %v10361_v4, %v8074_v3  ;;  %v8015_v34 = vor.u32 %v10341_v24, %v8012_v26  ;;  %v7660_v0 = vld [vmem:[#allocation2 + $0x330] sm:$0xf0] }
 0x334   :  { %2836 = vmatpush.bf16.msrb.mxu1 %v7915_v32  ;;  %2811 = vmatpush.bf16.msra.mxu3 %v7371_v43  ;;  %v10161_v7 = vld [vmem:[#allocation2 + $0x2c] sm:$0xf0]  ;;  %v7759_v32 = vor.u32 %v10277_v21, %v7756_v23  ;;  %v8236_v43 = vld [vmem:[#allocation2 + $0x7b0] sm:$0xf0] }
 0x335   :  { %v7530_v10 = vld [vmem:[#allocation2 + $0x210] sm:$0xf]  ;;  %v7275_v22 = vor.u32 %v10161_v7, %v7274_v6  ;;  %v8239_v40 = vor.u32 %v10397_v42, %v8236_v43  ;;  %v10317_v2 = vld [vmem:[#allocation2 + $0x514] sm:$0xf]  ;;  %v7407_v6 = vor.u32 %v10189_v59, %v7404_v60 }
 0x336   :  { %2849 = vmatpush.bf16.msrb.mxu2 %v8171_v36  ;;  %2824 = vmatpush.bf16.msrb.mxu0 %v7627_v45  ;;  %v10225_v11 = vld [vmem:[#allocation2 + $0x22c] sm:$0xf0]  ;;  %v10269_v36 = vld [vmem:[#allocation2 + $0x394] sm:$0xf]  ;;  %v7471_v45 = vor.u32 %v10205_v35, %v7468_v55 }
 0x337   :  { %v7786_v12 = vld [vmem:[#allocation2 + $0x410] sm:$0xf]  ;;  %v7531_v27 = vor.u32 %v10225_v11, %v7530_v10  ;;  %v7916_v3 = vld [vmem:[#allocation2 + $0x530] sm:$0xf0] }
 0x338   :  { %2837 = vmatpush.bf16.msrb.mxu1 %v7883_v25  ;;  %2812 = vmatpush.bf16.msra.mxu3 %v7339_v54  ;;  %v10289_v63 = vld [vmem:[#allocation2 + $0x42c] sm:$0xf0]  ;;  %v7727_v25 = vor.u32 %v10269_v36, %v7724_v38  ;;  %v8204_v54 = vld [vmem:[#allocation2 + $0x770] sm:$0xf0] }
 0x339   :  { %v8042_v16 = vld [vmem:[#allocation2 + $0x610] sm:$0xf]  ;;  %v7787_v28 = vor.u32 %v10289_v63, %v7786_v12  ;;  %v8207_v62 = vor.u32 %v10389_v44, %v8204_v54  ;;  %v10381_v4 = vld [vmem:[#allocation2 + $0x714] sm:$0xf] }
 0x33a   :  { %2850 = vmatpush.bf16.msrb.mxu2 %v8139_v49  ;;  %2825 = vmatpush.bf16.msrb.mxu0 %v7595_v56  ;;  %v10353_v18 = vld [vmem:[#allocation2 + $0x62c] sm:$0xf0]  ;;  %v10261_v49 = vld [vmem:[#allocation2 + $0x354] sm:$0xf]  ;;  %v7439_v56 = vor.u32 %v10197_v47, %v7436_v48 }
 0x33b   :  { %v8043_v30 = vor.u32 %v10353_v18, %v8042_v16  ;;  %v10181_v10 = vld [vmem:[#allocation2 + $0xd4] sm:$0xf] }
 0x33c   :  { %2838 = vmatpush.bf16.msrb.mxu1 %v7851_v57  ;;  %2813 = vmatpush.bf16.msra.mxu3 %v7307_v5  ;;  %v7695_v57 = vor.u32 %v10261_v49, %v7692_v50  ;;  %v8172_v5 = vld [vmem:[#allocation2 + $0x730] sm:$0xf0] }
 0x33d   :  { %v7372_v11 = vld [vmem:[#allocation2 + $0xf0] sm:$0xf0]  ;;  %v8175_v63 = vor.u32 %v10381_v4, %v8172_v5 }
 0x33e   :  { %2851 = vmatpush.bf16.msrb.mxu2 %v8107_v61  ;;  %2826 = vmatpush.bf16.msrb.mxu0 %v7563_v8  ;;  %v10253_v61 = vld [vmem:[#allocation2 + $0x314] sm:$0xf] }
 0x33f   :  { %v7663_v8 = vor.u32 %v10253_v61, %v7660_v0  ;;  %v10245_v12 = vld [vmem:[#allocation2 + $0x2d4] sm:$0xf] }
 0x340   :  { %2839 = vmatpush.bf16.msrb.mxu1 %v7819_v9  ;;  %2814 = vmatpush.bf16.msra.mxu3 %v7275_v22  ;;  %v7919_v9 = vor.u32 %v10317_v2, %v7916_v3  ;;  %v7628_v16 = vld [vmem:[#allocation2 + $0x2f0] sm:$0xf0]  ;;  %v7375_v22 = vor.u32 %v10181_v10, %v7372_v11  ;;  %v7762_v10 = vld [vmem:[#allocation2 + $0x3d8] sm:$0xf] }
 0x341   :  { %v10309_v18 = vld [vmem:[#allocation2 + $0x4d4] sm:$0xf]  ;;  %v7631_v23 = vor.u32 %v10245_v12, %v7628_v16  ;;  %v10282_v11 = vld [vmem:[#allocation2 + $0x3f4] sm:$0xf0] }
 0x342   :  { %2852 = vmatpush.bf16.msrb.mxu2 %v8075_v51  ;;  %2827 = vmatpush.bf16.msrb.mxu0 %v7531_v27  ;;  %v2621_v7 = vpop.f32.mrf.mxu0  ;;  %v7884_v19 = vld [vmem:[#allocation2 + $0x4f0] sm:$0xf0]  ;;  %v10346_v16 = vld [vmem:[#allocation2 + $0x5f4] sm:$0xf0] }
 0x343   :  { %2815 = vmatmul.bf16.vlgmr.msra.gmra.mxu3 %v11263_v14  ;;  %v10373_v20 = vld [vmem:[#allocation2 + $0x6d4] sm:$0xf]  ;;  %v7887_v24 = vor.u32 %v10309_v18, %v7884_v19 }
 0x344   :  { %2840 = vmatpush.bf16.msrb.mxu1 %v7787_v28  ;;  %2859 = vmatpush.bf16.msrb.mxu3 %v7503_v31  ;;  %v2634_v51 = vpop.f32.mrf.mxu1  ;;  %v8140_v21 = vld [vmem:[#allocation2 + $0x6f0] sm:$0xf0] }
 0x345   :  { %2828 = vmatmul.bf16.vlgmr.msrb.gmra.mxu0 %v11265_v13  ;;  %v10173_v27 = vld [vmem:[#allocation2 + $0x94] sm:$0xf]  ;;  %v8143_v29 = vor.u32 %v10373_v20, %v8140_v21  ;;  %v8274_v20 = vld [vmem:[#allocation2 + $0x7d8] sm:$0xf] }
 0x346   :  { %2853 = vmatpush.bf16.msrb.mxu2 %v8043_v30  ;;  %2872 = vmatpush.bf16.msra.mxu0 %v7759_v32  ;;  %v2608_v26 = vpop.f32.mrf.mxu3  ;;  %v7340_v28 = vld [vmem:[#allocation2 + $0xb0] sm:$0xf0]  ;;  %v10410_v21 = vld [vmem:[#allocation2 + $0x7f4] sm:$0xf0] }
 0x347   :  { %2841 = vmatmul.bf16.vlgmr.msrb.gmra.mxu1 %v11267_v15  ;;  %v2622_v30 = vadd.f32 %v2621_v7, %v2608_v26  ;;  %v7596_v31 = vld [vmem:[#allocation2 + $0x2b0] sm:$0xf0]  ;;  %v7343_v38 = vor.u32 %v10173_v27, %v7340_v28  ;;  %v7506_v7 = vld [vmem:[#allocation2 + $0x1d8] sm:$0xf]  ;;  %v7763_v27 = vor.u32 %v10282_v11, %v7762_v10 }
 0x348   :  { %2885 = vmatpush.bf16.msra.mxu1 %v8015_v34  ;;  %2860 = vmatpush.bf16.msrb.mxu3 %v7471_v45  ;;  %v10301_v32 = vld [vmem:[#allocation2 + $0x494] sm:$0xf]  ;;  %v7599_v41 = vor.u32 %v10237_v17, %v7596_v31  ;;  %v7474_v26 = vld [vmem:[#allocation2 + $0x198] sm:$0xf] }
 0x349   :  { %2854 = vmatmul.bf16.vlgmr.msrb.gmra.mxu2 %v11269_v1  ;;  %v7852_v34 = vld [vmem:[#allocation2 + $0x4b0] sm:$0xf0]  ;;  %v10210_v17 = vld [vmem:[#allocation2 + $0x1b4] sm:$0xf0] }
 0x34a   :  { %2898 = vmatpush.bf16.msra.mxu2 %v8271_v37  ;;  %2873 = vmatpush.bf16.msra.mxu0 %v7727_v25  ;;  %v10365_v55 = vld [vmem:[#allocation2 + $0x694] sm:$0xf]  ;;  %v2635_v37 = vadd.f32 %v2634_v51, %v2622_v30  ;;  %v2623_v39 = vpop.f32.mrf.mxu0  ;;  %v7855_v42 = vor.u32 %v10301_v32, %v7852_v34  ;;  %v10274_v30 = vld [vmem:[#allocation2 + $0x3b4] sm:$0xf0]  ;;  %v8275_v32 = vor.u32 %v10410_v21, %v8274_v20 }
 0x34b   :  { %v8108_v36 = vld [vmem:[#allocation2 + $0x6b0] sm:$0xf0]  ;;  %v7986_v34 = vld [vmem:[#allocation2 + $0x598] sm:$0xf] }
 0x34c   :  { %2886 = vmatpush.bf16.msra.mxu1 %v7983_v46  ;;  %2861 = vmatpush.bf16.msrb.mxu3 %v7439_v56  ;;  %v2647_v35 = vpop.f32.mrf.mxu2  ;;  %v10165_v43 = vld [vmem:[#allocation2 + $0x54] sm:$0xf]  ;;  %v2636_v46 = vpop.f32.mrf.mxu1  ;;  %v8111_v47 = vor.u32 %v10365_v55, %v8108_v36  ;;  %v8242_v55 = vld [vmem:[#allocation2 + $0x798] sm:$0xf] }
 0x34d   :  { %v7308_v45 = vld [vmem:[#allocation2 + $0x70] sm:$0xf0]  ;;  %v11291_v48 = vadd.f32 %v2647_v35, %v2635_v37  ;;  %v10338_v35 = vld [vmem:[#allocation2 + $0x5b4] sm:$0xf0] }
 0x34e   :  { %2899 = vmatpush.bf16.msra.mxu2 %v8239_v40  ;;  %2874 = vmatpush.bf16.msra.mxu0 %v7695_v57  ;;  %v10229_v25 = vld [vmem:[#allocation2 + $0x254] sm:$0xf]  ;;  %v7311_v56 = vor.u32 %v10165_v43, %v7308_v45  ;;  %v2610_v2 = vpop.f32.mrf.mxu3  ;;  %v10402_v36 = vld [vmem:[#allocation2 + $0x7b4] sm:$0xf0] }
 0x34f   :  { %v7564_v49 = vld [vmem:[#allocation2 + $0x270] sm:$0xf0]  ;;  %v3015_v54 = vrot.slane %v11291_v48, 4  ;;  %v10202_v43 = vld [vmem:[#allocation2 + $0x174] sm:$0xf0]  ;;  %v8243_v46 = vor.u32 %v10402_v36, %v8242_v55 }
 0x350   :  { %2887 = vmatpush.bf16.msra.mxu1 %v7951_v58  ;;  %2862 = vmatpush.bf16.msrb.mxu3 %v7407_v6  ;;  %v10293_v40 = vld [vmem:[#allocation2 + $0x454] sm:$0xf]  ;;  %v7567_v59 = vor.u32 %v10229_v25, %v7564_v49  ;;  %v7698_v45 = vld [vmem:[#allocation2 + $0x358] sm:$0xf] }
 0x351   :  { %v7820_v50 = vld [vmem:[#allocation2 + $0x470] sm:$0xf0]  ;;  %v3016_v3 = vadd.f32 %v3015_v54, %v11291_v48  ;;  %v7954_v49 = vld [vmem:[#allocation2 + $0x558] sm:$0xf] }
 0x352   :  { %2900 = vmatpush.bf16.msra.mxu2 %v8207_v62  ;;  %2875 = vmatpush.bf16.msra.mxu0 %v7663_v8  ;;  %v10357_v52 = vld [vmem:[#allocation2 + $0x654] sm:$0xf]  ;;  %v7823_v60 = vor.u32 %v10293_v40, %v7820_v50  ;;  %v10330_v40 = vld [vmem:[#allocation2 + $0x574] sm:$0xf0] }
 0x353   :  { %v8076_v53 = vld [vmem:[#allocation2 + $0x670] sm:$0xf0]  ;;  %v3017_v12 = vrot.slane %v3016_v3, 2  ;;  %v8210_v50 = vld [vmem:[#allocation2 + $0x758] sm:$0xf] }
 0x354   :  { %2888 = vmatpush.bf16.msra.mxu1 %v7919_v9  ;;  %2863 = vmatpush.bf16.msrb.mxu3 %v7375_v22  ;;  %v10157_v44 = vld [vmem:[#allocation2 + $0x14] sm:$0xf]  ;;  %v8079_v4 = vor.u32 %v10357_v52, %v8076_v53  ;;  %v2649_v8 = vpop.f32.mrf.mxu2  ;;  %v10218_v9 = vld [vmem:[#allocation2 + $0x1f4] sm:$0xf0] }
 0x355   :  { %v7276_v57 = vld [vmem:[#allocation2 + $0x30] sm:$0xf0]  ;;  %v3018_v22 = vadd.f32 %v3017_v12, %v3016_v3  ;;  %v10394_v52 = vld [vmem:[#allocation2 + $0x774] sm:$0xf0] }
 0x356   :  { %2901 = vmatpush.bf16.msra.mxu2 %v8175_v63  ;;  %2876 = vmatpush.bf16.msra.mxu0 %v7631_v23  ;;  %v10221_v58 = vld [vmem:[#allocation2 + $0x214] sm:$0xf]  ;;  %v7279_v51 = vor.u32 %v10157_v44, %v7276_v57  ;;  %v8018_v63 = vld [vmem:[#allocation2 + $0x5d8] sm:$0xf] }
 0x357   :  { %v7532_v61 = vld [vmem:[#allocation2 + $0x230] sm:$0xf0]  ;;  %v8019_v28 = vor.u32 %v10346_v16, %v8018_v63  ;;  %v3019_v31 = vrot.slane %v3018_v22, 1  ;;  %v7410_v57 = vld [vmem:[#allocation2 + $0x118] sm:$0xf] }
 0x358   :  { %2889 = vmatpush.bf16.msra.mxu1 %v7887_v24  ;;  %2864 = vmatpush.bf16.msrb.mxu3 %v7343_v38  ;;  %v10285_v62 = vld [vmem:[#allocation2 + $0x414] sm:$0xf]  ;;  %v7535_v18 = vor.u32 %v10221_v58, %v7532_v61  ;;  %v7507_v24 = vor.u32 %v10218_v9, %v7506_v7  ;;  %v7475_v38 = vor.u32 %v10210_v17, %v7474_v26  ;;  %v10194_v58 = vld [vmem:[#allocation2 + $0x134] sm:$0xf0] }
 0x359   :  { %v7788_v0 = vld [vmem:[#allocation2 + $0x430] sm:$0xf0]  ;;  %v3020_v37 = vadd.f32 %v3019_v31, %v3018_v22  ;;  %v10258_v61 = vld [vmem:[#allocation2 + $0x334] sm:$0xf0] }
 0x35a   :  { %2902 = vmatpush.bf16.msra.mxu2 %v8143_v29  ;;  %2877 = vmatpush.bf16.msra.mxu0 %v7599_v41  ;;  %v10349_v5 = vld [vmem:[#allocation2 + $0x614] sm:$0xf]  ;;  %v7791_v19 = vor.u32 %v10285_v62, %v7788_v0  ;;  %v7730_v29 = vld [vmem:[#allocation2 + $0x398] sm:$0xf]  ;;  %v7987_v41 = vor.u32 %v10338_v35, %v7986_v34 }
 0x35b   :  { %v8044_v6 = vld [vmem:[#allocation2 + $0x630] sm:$0xf0]  ;;  %v7731_v39 = vor.u32 %v10274_v30, %v7730_v29  ;;  %v3063_v25 = vmul.f32 %v3020_v37, %v11169_v33  ;;  %v7922_v62 = vld [vmem:[#allocation2 + $0x518] sm:$0xf] }
 0x35c   :  { %2890 = vmatpush.bf16.msra.mxu1 %v7855_v42  ;;  %2865 = vmatpush.bf16.msrb.mxu3 %v7311_v56  ;;  %v8047_v23 = vor.u32 %v10349_v5, %v8044_v6  ;;  %v7442_v42 = vld [vmem:[#allocation2 + $0x158] sm:$0xf]  ;;  %v7955_v56 = vor.u32 %v10330_v40, %v7954_v49 }
 0x35d   :  { %v11300_v53 = vsub.f32 %v11291_v48, %v3063_v25  ;;  %v7443_v44 = vor.u32 %v10202_v43, %v7442_v42  ;;  %v10322_v0 = vld [vmem:[#allocation2 + $0x534] sm:$0xf0] }
 0x35e   :  { %2903 = vmatpush.bf16.msra.mxu2 %v8111_v47  ;;  %2878 = vmatpush.bf16.msra.mxu0 %v7567_v59  ;;  %v10266_v47 = vld [vmem:[#allocation2 + $0x374] sm:$0xf0]  ;;  %v7923_v7 = vor.u32 %v10322_v0, %v7922_v62 }
 0x35f   :  { %v7699_v54 = vor.u32 %v10266_v47, %v7698_v45  ;;  %v7666_v59 = vld [vmem:[#allocation2 + $0x318] sm:$0xf]  ;;  %v3079_v48 = vmul.f32 %v11300_v53, %v11300_v53 }
 0x360   :  { %2891 = vmatpush.bf16.msra.mxu1 %v7823_v60  ;;  %2866 = vmatpush.bf16.msrb.mxu3 %v7279_v51  ;;  %v8211_v60 = vor.u32 %v10394_v52, %v8210_v50  ;;  %v8178_v2 = vld [vmem:[#allocation2 + $0x718] sm:$0xf]  ;;  %v7667_v6 = vor.u32 %v10258_v61, %v7666_v59 }
 0x361   :  { %v10386_v3 = vld [vmem:[#allocation2 + $0x734] sm:$0xf0]  ;;  %v3087_v20 = vrot.slane %v3079_v48, 4 }
 0x362   :  { %2904 = vmatpush.bf16.msra.mxu2 %v8079_v4  ;;  %2879 = vmatpush.bf16.msra.mxu0 %v7535_v18  ;;  %v7411_v4 = vor.u32 %v10194_v58, %v7410_v57  ;;  %v2673_v5 = vpop.f32.mrf.mxu0  ;;  %v7378_v8 = vld [vmem:[#allocation2 + $0xd8] sm:$0xf]  ;;  %v8179_v12 = vor.u32 %v10386_v3, %v8178_v2 }
 0x363   :  { %2867 = vmatmul.bf16.vlgmr.msrb.gmra.mxu3 %v11263_v14  ;;  %v10186_v9 = vld [vmem:[#allocation2 + $0xf4] sm:$0xf0]  ;;  %v3088_v36 = vadd.f32 %v3087_v20, %v3079_v48  ;;  %v8020_v20 = vld [vmem:[#allocation2 + $0x5f8] sm:$0xf0] }
 0x364   :  { %2892 = vmatpush.bf16.msra.mxu1 %v7791_v19  ;;  %2911 = vmatpush.bf16.msra.mxu3 %v7507_v24  ;;  %v7634_v10 = vld [vmem:[#allocation2 + $0x2d8] sm:$0xf]  ;;  %v2686_v11 = vpop.f32.mrf.mxu1  ;;  %v7379_v21 = vor.u32 %v10186_v9, %v7378_v8  ;;  %v10214_v9 = vld [vmem:[#allocation2 + $0x1dc] sm:$0xf] }
 0x365   :  { %2880 = vmatmul.bf16.vlgmr.msra.gmra.mxu0 %v11265_v13  ;;  %v10250_v51 = vld [vmem:[#allocation2 + $0x2f4] sm:$0xf0]  ;;  %v3089_v57 = vrot.slane %v3088_v36, 2 }
 0x366   :  { %2905 = vmatpush.bf16.msra.mxu2 %v8047_v23  ;;  %2924 = vmatpush.bf16.msrb.mxu0 %v7763_v27  ;;  %v7890_v63 = vld [vmem:[#allocation2 + $0x4d8] sm:$0xf]  ;;  %v7635_v22 = vor.u32 %v10250_v51, %v7634_v10  ;;  %v2660_v24 = vpop.f32.mrf.mxu3  ;;  %v7764_v51 = vld [vmem:[#allocation2 + $0x3f8] sm:$0xf0] }
 0x367   :  { %2893 = vmatmul.bf16.vlgmr.msra.gmra.mxu1 %v11267_v15  ;;  %v10314_v16 = vld [vmem:[#allocation2 + $0x4f4] sm:$0xf0]  ;;  %v2674_v29 = vadd.f32 %v2673_v5, %v2660_v24  ;;  %v8276_v24 = vld [vmem:[#allocation2 + $0x7f8] sm:$0xf0] }
 0x368   :  { %2937 = vmatpush.bf16.msrb.mxu1 %v8019_v28  ;;  %2912 = vmatpush.bf16.msra.mxu3 %v7475_v38  ;;  %v8146_v18 = vld [vmem:[#allocation2 + $0x6d8] sm:$0xf]  ;;  %v7891_v23 = vor.u32 %v10314_v16, %v7890_v63  ;;  %v3090_v63 = vadd.f32 %v3089_v57, %v3088_v36  ;;  %v7956_v57 = vld [vmem:[#allocation2 + $0x578] sm:$0xf0] }
 0x369   :  { %2906 = vmatmul.bf16.vlgmr.msra.gmra.mxu2 %v11269_v1  ;;  %v10378_v19 = vld [vmem:[#allocation2 + $0x6f4] sm:$0xf0]  ;;  %v2687_v37 = vadd.f32 %v2686_v11, %v2674_v29  ;;  %v7508_v11 = vld [vmem:[#allocation2 + $0x1f8] sm:$0xf0] }
 0x36a   :  { %2950 = vmatpush.bf16.msrb.mxu2 %v8275_v32  ;;  %2925 = vmatpush.bf16.msrb.mxu0 %v7731_v39  ;;  %v7346_v26 = vld [vmem:[#allocation2 + $0x98] sm:$0xf]  ;;  %v8147_v17 = vor.u32 %v10378_v19, %v8146_v18  ;;  %v2675_v39 = vpop.f32.mrf.mxu0  ;;  %v10342_v19 = vld [vmem:[#allocation2 + $0x5dc] sm:$0xf] }
 0x36b   :  { %v10178_v27 = vld [vmem:[#allocation2 + $0xb4] sm:$0xf0]  ;;  %v10398_v39 = vld [vmem:[#allocation2 + $0x79c] sm:$0xf] }
 0x36c   :  { %2938 = vmatpush.bf16.msrb.mxu1 %v7987_v41  ;;  %2913 = vmatpush.bf16.msra.mxu3 %v7443_v44  ;;  %v7602_v28 = vld [vmem:[#allocation2 + $0x298] sm:$0xf]  ;;  %v2699_v34 = vpop.f32.mrf.mxu2  ;;  %v7347_v38 = vor.u32 %v10178_v27, %v7346_v26 }
 0x36d   :  { %v10242_v30 = vld [vmem:[#allocation2 + $0x2b4] sm:$0xf0]  ;;  %v11305_v49 = vadd.f32 %v2699_v34, %v2687_v37  ;;  %v7732_v34 = vld [vmem:[#allocation2 + $0x3b8] sm:$0xf0] }
 0x36e   :  { %2951 = vmatpush.bf16.msrb.mxu2 %v8243_v46  ;;  %2926 = vmatpush.bf16.msrb.mxu0 %v7699_v54  ;;  %v7858_v31 = vld [vmem:[#allocation2 + $0x498] sm:$0xf]  ;;  %v7603_v41 = vor.u32 %v10242_v30, %v7602_v28  ;;  %v2688_v46 = vpop.f32.mrf.mxu1  ;;  %v7511_v28 = vor.u32 %v10214_v9, %v7508_v11  ;;  %v8023_v30 = vor.u32 %v10342_v19, %v8020_v20  ;;  %v10334_v37 = vld [vmem:[#allocation2 + $0x59c] sm:$0xf] }
 0x36f   :  { %v10306_v32 = vld [vmem:[#allocation2 + $0x4b4] sm:$0xf0]  ;;  %v3021_v58 = vrot.slane %v11305_v49, 4  ;;  %v10198_v46 = vld [vmem:[#allocation2 + $0x15c] sm:$0xf] }
 0x370   :  { %2939 = vmatpush.bf16.msrb.mxu1 %v7955_v56  ;;  %2914 = vmatpush.bf16.msra.mxu3 %v7411_v4  ;;  %v8114_v35 = vld [vmem:[#allocation2 + $0x698] sm:$0xf]  ;;  %v7859_v42 = vor.u32 %v10306_v32, %v7858_v31  ;;  %v2662_v4 = vpop.f32.mrf.mxu3  ;;  %v7476_v31 = vld [vmem:[#allocation2 + $0x1b8] sm:$0xf0] }
 0x371   :  { %v10370_v55 = vld [vmem:[#allocation2 + $0x6b4] sm:$0xf0]  ;;  %v3022_v5 = vadd.f32 %v3021_v58, %v11305_v49  ;;  %v10270_v32 = vld [vmem:[#allocation2 + $0x39c] sm:$0xf] }
 0x372   :  { %2952 = vmatpush.bf16.msrb.mxu2 %v8211_v60  ;;  %2927 = vmatpush.bf16.msrb.mxu0 %v7667_v6  ;;  %v7314_v43 = vld [vmem:[#allocation2 + $0x58] sm:$0xf]  ;;  %v8115_v47 = vor.u32 %v10370_v55, %v8114_v35  ;;  %v3091_v35 = vrot.slane %v3090_v63, 1  ;;  %v10390_v58 = vld [vmem:[#allocation2 + $0x75c] sm:$0xf] }
 0x373   :  { %v10170_v45 = vld [vmem:[#allocation2 + $0x74] sm:$0xf0]  ;;  %v3023_v16 = vrot.slane %v3022_v5, 2  ;;  %v10382_v9 = vld [vmem:[#allocation2 + $0x71c] sm:$0xf] }
 0x374   :  { %2940 = vmatpush.bf16.msrb.mxu1 %v7923_v7  ;;  %2915 = vmatpush.bf16.msra.mxu3 %v7379_v21  ;;  %v7570_v25 = vld [vmem:[#allocation2 + $0x258] sm:$0xf]  ;;  %v7315_v59 = vor.u32 %v10170_v45, %v7314_v43  ;;  %v2701_v10 = vpop.f32.mrf.mxu2  ;;  %v7735_v45 = vor.u32 %v10270_v32, %v7732_v34  ;;  %v7380_v19 = vld [vmem:[#allocation2 + $0xf8] sm:$0xf0] }
 0x375   :  { %v10234_v40 = vld [vmem:[#allocation2 + $0x274] sm:$0xf0]  ;;  %v3024_v26 = vadd.f32 %v3023_v16, %v3022_v5  ;;  %v8180_v10 = vld [vmem:[#allocation2 + $0x738] sm:$0xf0] }
 0x376   :  { %2953 = vmatpush.bf16.msrb.mxu2 %v8179_v12  ;;  %2928 = vmatpush.bf16.msrb.mxu0 %v7635_v22  ;;  %v7826_v50 = vld [vmem:[#allocation2 + $0x458] sm:$0xf]  ;;  %v7571_v62 = vor.u32 %v10234_v40, %v7570_v25  ;;  %v10278_v12 = vld [vmem:[#allocation2 + $0x3dc] sm:$0xf] }
 0x377   :  { %v10298_v52 = vld [vmem:[#allocation2 + $0x474] sm:$0xf0]  ;;  %v7767_v29 = vor.u32 %v10278_v12, %v7764_v51  ;;  %v3025_v55 = vrot.slane %v3024_v26, 1  ;;  %v10262_v40 = vld [vmem:[#allocation2 + $0x35c] sm:$0xf] }
 0x378   :  { %2941 = vmatpush.bf16.msrb.mxu1 %v7891_v23  ;;  %v8082_v44 = vld [vmem:[#allocation2 + $0x658] sm:$0xf]  ;;  %2916 = vmatpush.bf16.msra.mxu3 %v7347_v38  ;;  %v7827_v0 = vor.u32 %v10298_v52, %v7826_v50  ;;  %v10406_v23 = vld [vmem:[#allocation2 + $0x7dc] sm:$0xf]  ;;  %v3092_v50 = vadd.f32 %v3091_v35, %v3090_v63 }
 0x379   :  { %v10362_v54 = vld [vmem:[#allocation2 + $0x674] sm:$0xf0]  ;;  %v8279_v36 = vor.u32 %v10406_v23, %v8276_v24  ;;  %v7988_v38 = vld [vmem:[#allocation2 + $0x5b8] sm:$0xf0] }
 0x37a   :  { %2954 = vmatpush.bf16.msrb.mxu2 %v8147_v17  ;;  %v7282_v56 = vld [vmem:[#allocation2 + $0x18] sm:$0xf]  ;;  %2929 = vmatpush.bf16.msrb.mxu0 %v7603_v41  ;;  %v8083_v6 = vor.u32 %v10362_v54, %v8082_v44  ;;  %v10206_v17 = vld [vmem:[#allocation2 + $0x19c] sm:$0xf]  ;;  %v7991_v25 = vor.u32 %v10334_v37, %v7988_v38  ;;  %v3135_v4 = vmul.f32 %v3092_v50, %v11169_v33 }
 0x37b   :  { %v10162_v60 = vld [vmem:[#allocation2 + $0x34] sm:$0xf0]  ;;  %v8244_v41 = vld [vmem:[#allocation2 + $0x7b8] sm:$0xf0]  ;;  %v7479_v43 = vor.u32 %v10206_v17, %v7476_v31 }
 0x37c   :  { %v7538_v61 = vld [vmem:[#allocation2 + $0x218] sm:$0xf]  ;;  %2942 = vmatpush.bf16.msrb.mxu1 %v7859_v42  ;;  %2917 = vmatpush.bf16.msra.mxu3 %v7315_v59  ;;  %v7283_v18 = vor.u32 %v10162_v60, %v7282_v56  ;;  %v3026_v42 = vadd.f32 %v3025_v55, %v3024_v26  ;;  %v8247_v44 = vor.u32 %v10398_v39, %v8244_v41  ;;  %v7700_v54 = vld [vmem:[#allocation2 + $0x378] sm:$0xf0]  ;;  %v11320_v23 = vadd.f32 1e-05, %v3135_v4 }
 0x37d   :  { %v10226_v2 = vld [vmem:[#allocation2 + $0x234] sm:$0xf0]  ;;  %v10326_v56 = vld [vmem:[#allocation2 + $0x55c] sm:$0xf]  ;;  %v8183_v26 = vor.u32 %v10382_v9, %v8180_v10 }
 0x37e   :  { %v7794_v3 = vld [vmem:[#allocation2 + $0x418] sm:$0xf]  ;;  %2955 = vmatpush.bf16.msrb.mxu2 %v8115_v47  ;;  %2930 = vmatpush.bf16.msrb.mxu0 %v7571_v62  ;;  %v7539_v21 = vor.u32 %v10226_v2, %v7538_v61  ;;  %v7444_v47 = vld [vmem:[#allocation2 + $0x178] sm:$0xf0]  ;;  %v3064_v52 = vmul.f32 %v3026_v42, %v11169_v33  ;;  %v7703_v62 = vor.u32 %v10262_v40, %v7700_v54  ;;  %10890 = vrsqrt.f32 %v11320_v23 }
 0x37f   :  { %v10290_v48 = vld [vmem:[#allocation2 + $0x434] sm:$0xf0]  ;;  %v8212_v59 = vld [vmem:[#allocation2 + $0x778] sm:$0xf0]  ;;  %v7447_v61 = vor.u32 %v10198_v46, %v7444_v47  ;;  %vm3157_vm14 = vweird.f32 %v11320_v23 }
 0x380   :  { %v8050_v7 = vld [vmem:[#allocation2 + $0x618] sm:$0xf]  ;;  %2943 = vmatpush.bf16.msrb.mxu1 %v7827_v0  ;;  %v7795_v22 = vor.u32 %v10290_v48, %v7794_v3  ;;  %2918 = vmatpush.bf16.msra.mxu3 %v7283_v18  ;;  %v11314_v60 = vsub.f32 %v11305_v49, %v3064_v52  ;;  %v7959_v0 = vor.u32 %v10326_v56, %v7956_v57  ;;  %v10190_v2 = vld [vmem:[#allocation2 + $0x11c] sm:$0xf] }
 0x381   :  { %v10354_v8 = vld [vmem:[#allocation2 + $0x634] sm:$0xf0]  ;;  %v7412_v3 = vld [vmem:[#allocation2 + $0x138] sm:$0xf0] }
 0x382   :  { %2956 = vmatpush.bf16.msrb.mxu2 %v8083_v6  ;;  %v8051_v27 = vor.u32 %v10354_v8, %v8050_v7  ;;  %2931 = vmatpush.bf16.msrb.mxu0 %v7539_v21  ;;  %v10254_v48 = vld [vmem:[#allocation2 + $0x31c] sm:$0xf]  ;;  %v3080_v5 = vmul.f32 %v11314_v60, %v11314_v60  ;;  %v8215_v6 = vor.u32 %v10390_v58, %v8212_v59  ;;  %v2725_v63 = vpop.f32.mrf.mxu0 }
 0x383   :  { %2919 = vmatmul.bf16.vlgmr.msra.gmra.mxu3 %v11263_v14  ;;  %v7668_v49 = vld [vmem:[#allocation2 + $0x338] sm:$0xf0]  ;;  %v7415_v12 = vor.u32 %v10190_v2, %v7412_v3 }
 0x384   :  { %2944 = vmatpush.bf16.msrb.mxu1 %v7795_v22  ;;  %2963 = vmatpush.bf16.msrb.mxu3 %v7511_v28  ;;  %v10318_v7 = vld [vmem:[#allocation2 + $0x51c] sm:$0xf]  ;;  %v3093_v11 = vrot.slane %v3080_v5, 4  ;;  %v7671_v16 = vor.u32 %v10254_v48, %v7668_v49  ;;  %v2738_v22 = vpop.f32.mrf.mxu1  ;;  %v11323_v49 = vpop.eup %10890 }
 0x385   :  { %2932 = vmatmul.bf16.vlgmr.msrb.gmra.mxu0 %v11265_v13  ;;  %v7924_v8 = vld [vmem:[#allocation2 + $0x538] sm:$0xf0]  ;;  %vm3158_vm15 = vweird.f32 %v11323_v49 }
 0x386   :  { %2957 = vmatpush.bf16.msrb.mxu2 %v8051_v27  ;;  %2976 = vmatpush.bf16.msra.mxu0 %v7767_v29  ;;  %v10182_v51 = vld [vmem:[#allocation2 + $0xdc] sm:$0xf]  ;;  %v7927_v18 = vor.u32 %v10318_v7, %v7924_v8  ;;  %v3094_v24 = vadd.f32 %v3093_v11, %v3080_v5  ;;  %v2712_v35 = vpop.f32.mrf.mxu3  ;;  %vm3159_vm1 = vmor %vm3157_vm14, %vm3158_vm15  ;;  %vm3249_vm14 = vcmask 1044484  }
 0x387   :  { %2945 = vmatmul.bf16.vlgmr.msrb.gmra.mxu1 %v11267_v15  ;;  %v10246_v20 = vld [vmem:[#allocation2 + $0x2dc] sm:$0xf]  ;;  %v7383_v31 = vor.u32 %v10182_v51, %v7380_v19  ;;  %v2726_v41 = vadd.f32 %v2725_v63, %v2712_v35 }
 0x388   :  { %2989 = vmatpush.bf16.msra.mxu1 %v8023_v30  ;;  %2964 = vmatpush.bf16.msrb.mxu3 %v7479_v43  ;;  %v7636_v21 = vld [vmem:[#allocation2 + $0x2f8] sm:$0xf0]  ;;  %v3095_v30 = vrot.slane %v3094_v24, 2 }
 0x389   :  { %2958 = vmatmul.bf16.vlgmr.msrb.gmra.mxu2 %v11269_v1  ;;  %v10310_v27 = vld [vmem:[#allocation2 + $0x4dc] sm:$0xf]  ;;  %v7639_v32 = vor.u32 %v10246_v20, %v7636_v21  ;;  %v2739_v50 = vadd.f32 %v2738_v22, %v2726_v41 }
 0x38a   :  { %3002 = vmatpush.bf16.msra.mxu2 %v8279_v36  ;;  %2977 = vmatpush.bf16.msra.mxu0 %v7735_v45  ;;  %v7892_v28 = vld [vmem:[#allocation2 + $0x4f8] sm:$0xf0]  ;;  %v3096_v38 = vadd.f32 %v3095_v30, %v3094_v24 }
 0x38b   :  { %v10374_v17 = vld [vmem:[#allocation2 + $0x6dc] sm:$0xf]  ;;  %v7895_v34 = vor.u32 %v10310_v27, %v7892_v28  ;;  %v3152_v27 = vmul.f32 %v11323_v49, %v11320_v23 }
 0x38c   :  { %2990 = vmatpush.bf16.msra.mxu1 %v7991_v25  ;;  %2965 = vmatpush.bf16.msrb.mxu3 %v7447_v61  ;;  %v8148_v29 = vld [vmem:[#allocation2 + $0x6f8] sm:$0xf0]  ;;  %v2751_v25 = vpop.f32.mrf.mxu2  ;;  %v3097_v40 = vrot.slane %v3096_v38, 1  ;;  %v2740_v61 = vpop.f32.mrf.mxu1 }
 0x38d   :  { %v10174_v55 = vld [vmem:[#allocation2 + $0x9c] sm:$0xf]  ;;  %v8151_v39 = vor.u32 %v10374_v17, %v8148_v29  ;;  %v2752_v2 = vadd.f32 %v2751_v25, %v2739_v50 }
 0x38e   :  { %3003 = vmatpush.bf16.msra.mxu2 %v8247_v44  ;;  %2978 = vmatpush.bf16.msra.mxu0 %v7703_v62  ;;  %v7348_v36 = vld [vmem:[#allocation2 + $0xb8] sm:$0xf0]  ;;  %v2727_v44 = vpop.f32.mrf.mxu0  ;;  %v3098_v62 = vadd.f32 %v3097_v40, %v3096_v38 }
 0x38f   :  { %v10238_v37 = vld [vmem:[#allocation2 + $0x29c] sm:$0xf]  ;;  %v7351_v52 = vor.u32 %v10174_v55, %v7348_v36  ;;  %v3027_v8 = vrot.slane %v2752_v2, 4  ;;  %v3153_v55 = vmul.f32 %v11323_v49, %v3152_v27 }
 0x390   :  { %2991 = vmatpush.bf16.msra.mxu1 %v7959_v0  ;;  %2966 = vmatpush.bf16.msrb.mxu3 %v7415_v12  ;;  %v7604_v42 = vld [vmem:[#allocation2 + $0x2b8] sm:$0xf0]  ;;  %v3136_v7 = vmul.f32 %v3098_v62, %v11169_v33 }
 0x391   :  { %v10302_v43 = vld [vmem:[#allocation2 + $0x49c] sm:$0xf]  ;;  %v7607_v54 = vor.u32 %v10238_v37, %v7604_v42  ;;  %v3028_v20 = vadd.f32 %v3027_v8, %v2752_v2 }
 0x392   :  { %3004 = vmatpush.bf16.msra.mxu2 %v8215_v6  ;;  %2979 = vmatpush.bf16.msra.mxu0 %v7671_v16  ;;  %v7860_v45 = vld [vmem:[#allocation2 + $0x4b8] sm:$0xf0]  ;;  %v3144_v19 = vadd.f32 1e-05, %v3136_v7 }
 0x393   :  { %v10366_v46 = vld [vmem:[#allocation2 + $0x69c] sm:$0xf]  ;;  %v7863_v56 = vor.u32 %v10302_v43, %v7860_v45  ;;  %v3029_v29 = vrot.slane %v3028_v20, 2 }
 0x394   :  { %2992 = vmatpush.bf16.msra.mxu1 %v7927_v18  ;;  %v8116_v47 = vld [vmem:[#allocation2 + $0x6b8] sm:$0xf0]  ;;  %2967 = vmatpush.bf16.msrb.mxu3 %v7383_v31  ;;  %v2714_v18 = vpop.f32.mrf.mxu3  ;;  %10892 = vrsqrt.f32 %v3144_v19  ;;  %vm3167_vm12 = vweird.f32 %v3144_v19 }
 0x395   :  { %v10166_v57 = vld [vmem:[#allocation2 + $0x5c] sm:$0xf]  ;;  %v8119_v0 = vor.u32 %v10366_v46, %v8116_v47 }
 0x396   :  { %3005 = vmatpush.bf16.msra.mxu2 %v8183_v26  ;;  %2980 = vmatpush.bf16.msra.mxu0 %v7639_v32  ;;  %v7316_v58 = vld [vmem:[#allocation2 + $0x78] sm:$0xf0]  ;;  %v2753_v26 = vpop.f32.mrf.mxu2 }
 0x397   :  { %v10230_v59 = vld [vmem:[#allocation2 + $0x25c] sm:$0xf]  ;;  %v7319_v9 = vor.u32 %v10166_v57, %v7316_v58 }
 0x398   :  { %2993 = vmatpush.bf16.msra.mxu1 %v7895_v34  ;;  %v7572_v3 = vld [vmem:[#allocation2 + $0x278] sm:$0xf0]  ;;  %2968 = vmatpush.bf16.msrb.mxu3 %v7351_v52  ;;  %v3030_v34 = vadd.f32 %v3029_v29, %v3028_v20 }
 0x399   :  { %v10294_v48 = vld [vmem:[#allocation2 + $0x45c] sm:$0xf]  ;;  %v7575_v11 = vor.u32 %v10230_v59, %v7572_v3 }
 0x39a   :  { %3006 = vmatpush.bf16.msra.mxu2 %v8151_v39  ;;  %v7828_v4 = vld [vmem:[#allocation2 + $0x478] sm:$0xf0]  ;;  %2981 = vmatpush.bf16.msra.mxu0 %v7607_v54  ;;  %v3031_v36 = vrot.slane %v3030_v34, 1  ;;  %v10893_v37 = vpop.eup %10892  ;;  %v3154_v39 = vmul.f32 0.5, %v3153_v55 }
 0x39b   :  { %v10358_v5 = vld [vmem:[#allocation2 + $0x65c] sm:$0xf]  ;;  %v7831_v12 = vor.u32 %v10294_v48, %v7828_v4  ;;  %v3162_v41 = vmul.f32 %v10893_v37, %v3144_v19  ;;  %vm3168_vm13 = vweird.f32 %v10893_v37 }
 0x39c   :  { %v8084_v6 = vld [vmem:[#allocation2 + $0x678] sm:$0xf0]  ;;  %2994 = vmatpush.bf16.msra.mxu1 %v7863_v56  ;;  %2969 = vmatpush.bf16.msrb.mxu3 %v7319_v9  ;;  %v3032_v38 = vadd.f32 %v3031_v36, %v3030_v34  ;;  %v3155_v25 = vsub.f32 1.5, %v3154_v39  ;;  %vm3169_vm0 = vmor %vm3167_vm12, %vm3168_vm13 }
 0x39d   :  { %v10158_v10 = vld [vmem:[#allocation2 + $0x1c] sm:$0xf]  ;;  %v8087_v21 = vor.u32 %v10358_v5, %v8084_v6  ;;  %v3163_v43 = vmul.f32 %v10893_v37, %v3162_v41 }
 0x39e   :  { %v7284_v51 = vld [vmem:[#allocation2 + $0x38] sm:$0xf0]  ;;  %3007 = vmatpush.bf16.msra.mxu2 %v8119_v0  ;;  %2982 = vmatpush.bf16.msra.mxu0 %v7575_v11  ;;  %v3065_v42 = vmul.f32 %v3032_v38, %v11169_v33  ;;  %v3156_v52 = vmul.f32 %v11323_v49, %v3155_v25 }
 0x39f   :  { %v10222_v63 = vld [vmem:[#allocation2 + $0x21c] sm:$0xf]  ;;  %v7287_v30 = vor.u32 %v10158_v10, %v7284_v51  ;;  %v3164_v46 = vmul.f32 0.5, %v3163_v43 }
 0x3a0   :  { %v7540_v16 = vld [vmem:[#allocation2 + $0x238] sm:$0xf0]  ;;  %2995 = vmatpush.bf16.msra.mxu1 %v7831_v12  ;;  %v11334_v45 = vsub.f32 %v2752_v2, %v3065_v42  ;;  %v3160_v56 = vsel %vm3159_vm1, %v11323_v49, %v3156_v52 }
 0x3a1   :  { %v10286_v22 = vld [vmem:[#allocation2 + $0x41c] sm:$0xf]  ;;  %v7543_v31 = vor.u32 %v10222_v63, %v7540_v16  ;;  %2970 = vmatpush.bf16.msrb.mxu3 %v7287_v30  ;;  %v3165_v40 = vsub.f32 1.5, %v3164_v46 }
 0x3a2   :  { %v7796_v24 = vld [vmem:[#allocation2 + $0x438] sm:$0xf0]  ;;  %3008 = vmatpush.bf16.msra.mxu2 %v8087_v21  ;;  %v3081_v47 = vmul.f32 %v11334_v45, %v11334_v45  ;;  %v2777_v50 = vpop.f32.mrf.mxu0 }
 0x3a3   :  { %v10350_v28 = vld [vmem:[#allocation2 + $0x61c] sm:$0xf]  ;;  %v7799_v32 = vor.u32 %v10286_v22, %v7796_v24  ;;  %2983 = vmatpush.bf16.msra.mxu0 %v7543_v31 }
 0x3a4   :  { %v8052_v17 = vld [vmem:[#allocation2 + $0x638] sm:$0xf0]  ;;  %2971 = vmatmul.bf16.vlgmr.msrb.gmra.mxu3 %v11263_v14  ;;  %v3099_v14 = vrot.slane %v3081_v47, 4 }
 0x3a5   :  { %v8055_v35 = vor.u32 %v10350_v28, %v8052_v17  ;;  %2996 = vmatpush.bf16.msra.mxu1 %v7799_v32 }
 0x3a6   :  { %2984 = vmatmul.bf16.vlgmr.msra.gmra.mxu0 %v11265_v13  ;;  %v3166_v13 = vmul.f32 %v10893_v37, %v3165_v40  ;;  %v3100_v54 = vadd.f32 %v3099_v14, %v3081_v47  ;;  %v2764_v57 = vpop.f32.mrf.mxu3 }
 0x3a7   :  { %3009 = vmatpush.bf16.msra.mxu2 %v8055_v35  ;;  %v2778_v59 = vadd.f32 %v2777_v50, %v2764_v57 }
 0x3a8   :  { %2997 = vmatmul.bf16.vlgmr.msra.gmra.mxu1 %v11267_v15  ;;  %v2790_v15 = vpop.f32.mrf.mxu1  ;;  %v3101_v62 = vrot.slane %v3100_v54, 2 }
 0x3a9   :  { %v2791_v0 = vadd.f32 %v2790_v15, %v2778_v59 }
 0x3aa   :  { %3010 = vmatmul.bf16.vlgmr.msra.gmra.mxu2 %v11269_v1  ;;  %v3170_v1 = vsel %vm3169_vm0, %v10893_v37, %v3166_v13  ;;  %v2779_v23 = vpop.f32.mrf.mxu0  ;;  %v3102_v48 = vadd.f32 %v3101_v62, %v3100_v54 }
 0x3ab   :  { %v3239_v44 = vrot.slane %v3170_v1, 7 }
 0x3ac   :  { %v2803_v61 = vpop.f32.mrf.mxu2  ;;  %v3103_v8 = vrot.slane %v3102_v48, 1 }
 0x3ad   :  { %v11343_v58 = vsel %vm383_vm11, %v3160_v56, %v3239_v44  ;;  %v2804_v3 = vadd.f32 %v2803_v61, %v2791_v0 }
 0x3ae   :  { %v2766_v5 = vpop.f32.mrf.mxu3  ;;  %v3104_v49 = vadd.f32 %v3103_v8, %v3102_v48 }
 0x3af   :  { %v3033_v4 = vrot.slane %v2804_v3, 4 }
 0x3b0   :  { %v2792_v2 = vpop.f32.mrf.mxu1  ;;  %v3137_v51 = vmul.f32 %v3104_v49, %v11169_v33 }
 0x3b1   :  { %v3034_v6 = vadd.f32 %v3033_v4, %v2804_v3 }
 0x3b2   :  { %v3145_v18 = vadd.f32 1e-05, %v3137_v51 }
 0x3b3   :  { %v3035_v9 = vrot.slane %v3034_v6, 2 }
 0x3b4   :  { %v2805_v7 = vpop.f32.mrf.mxu2  ;;  %10894 = vrsqrt.f32 %v3145_v18  ;;  %vm3177_vm11 = vweird.f32 %v3145_v18 }
 0x3b5   :  { %v3036_v10 = vadd.f32 %v3035_v9, %v3034_v6 }
 0x3b7   :  { %v3037_v11 = vrot.slane %v3036_v10, 1 }
 0x3b9   :  { %v3038_v12 = vadd.f32 %v3037_v11, %v3036_v10 }
 0x3ba   :  { %v10895_v30 = vpop.eup %10894 }
 0x3bb   :  { %v3066_v63 = vmul.f32 %v3038_v12, %v11169_v33  ;;  %v3172_v37 = vmul.f32 %v10895_v30, %v3145_v18  ;;  %vm3178_vm2 = vweird.f32 %v10895_v30 }
 0x3bc   :  { %vm3179_vm5 = vmor %vm3177_vm11, %vm3178_vm2 }
 0x3bd   :  { %v11347_v16 = vsub.f32 %v2804_v3, %v3066_v63  ;;  %v3173_v46 = vmul.f32 %v10895_v30, %v3172_v37 }
 0x3bf   :  { %v3082_v19 = vmul.f32 %v11347_v16, %v11347_v16  ;;  %v3174_v14 = vmul.f32 0.5, %v3173_v46 }
 0x3c1   :  { %v3105_v20 = vrot.slane %v3082_v19, 4  ;;  %v3175_v15 = vsub.f32 1.5, %v3174_v14 }
 0x3c2   :  { %v2829_v21 = vpop.f32.mrf.mxu0 }
 0x3c3   :  { %v3106_v24 = vadd.f32 %v3105_v20, %v3082_v19  ;;  %v3176_v57 = vmul.f32 %v10895_v30, %v3175_v15 }
 0x3c4   :  { %v2842_v22 = vpop.f32.mrf.mxu1 }
 0x3c5   :  { %v3107_v26 = vrot.slane %v3106_v24, 2  ;;  %v3180_v2 = vsel %vm3179_vm5, %v10895_v30, %v3176_v57  ;;  %vm3253_vm5 = vcmask 1045508  }
 0x3c6   :  { %v2816_v27 = vpop.f32.mrf.mxu3  ;;  %v3240_v5 = vrot.slane %v3180_v2, 6 }
 0x3c7   :  { %v3108_v28 = vadd.f32 %v3107_v26, %v3106_v24  ;;  %v2830_v17 = vadd.f32 %v2829_v21, %v2816_v27 }
 0x3c9   :  { %v3109_v31 = vrot.slane %v3108_v28, 1  ;;  %v2843_v32 = vadd.f32 %v2842_v22, %v2830_v17 }
 0x3ca   :  { %v2831_v34 = vpop.f32.mrf.mxu0 }
 0x3cb   :  { %v3110_v55 = vadd.f32 %v3109_v31, %v3108_v28 }
 0x3cc   :  { %v2855_v29 = vpop.f32.mrf.mxu2  ;;  %v2844_v35 = vpop.f32.mrf.mxu1 }
 0x3cd   :  { %v2856_v36 = vadd.f32 %v2855_v29, %v2843_v32  ;;  %v3138_v38 = vmul.f32 %v3110_v55, %v11169_v33 }
 0x3ce   :  { %v2818_v41 = vpop.f32.mrf.mxu3 }
 0x3cf   :  { %v3039_v39 = vrot.slane %v2856_v36, 4  ;;  %v3146_v42 = vadd.f32 1e-05, %v3138_v38 }
 0x3d1   :  { %v3040_v43 = vadd.f32 %v3039_v39, %v2856_v36  ;;  %10896 = vrsqrt.f32 %v3146_v42  ;;  %vm3187_vm3 = vweird.f32 %v3146_v42 }
 0x3d3   :  { %v3041_v47 = vrot.slane %v3040_v43, 2 }
 0x3d4   :  { %v2857_v25 = vpop.f32.mrf.mxu2 }
 0x3d5   :  { %v3042_v40 = vadd.f32 %v3041_v47, %v3040_v43 }
 0x3d7   :  { %v3043_v50 = vrot.slane %v3042_v40, 1  ;;  %v10897_v52 = vpop.eup %10896 }
 0x3d8   :  { %v3182_v1 = vmul.f32 %v10897_v52, %v3146_v42  ;;  %vm3188_vm4 = vweird.f32 %v10897_v52 }
 0x3d9   :  { %v3044_v13 = vadd.f32 %v3043_v50, %v3042_v40  ;;  %vm3189_vm6 = vmor %vm3187_vm3, %vm3188_vm4  ;;  %vm3251_vm4 = vcmask 1046534  }
 0x3da   :  { %v3183_v54 = vmul.f32 %v10897_v52, %v3182_v1 }
 0x3db   :  { %v3067_v44 = vmul.f32 %v3044_v13, %v11169_v33 }
 0x3dc   :  { %v3184_v59 = vmul.f32 0.5, %v3183_v54 }
 0x3dd   :  { %v11353_v56 = vsub.f32 %v2856_v36, %v3067_v44 }
 0x3de   :  { %v3185_v62 = vsub.f32 1.5, %v3184_v59 }
 0x3df   :  { %v3083_v61 = vmul.f32 %v11353_v56, %v11353_v56 }
 0x3e0   :  { %v3186_v3 = vmul.f32 %v10897_v52, %v3185_v62 }
 0x3e1   :  { %v3111_v0 = vrot.slane %v3083_v61, 4 }
 0x3e2   :  { %v2881_v23 = vpop.f32.mrf.mxu0  ;;  %v3190_v4 = vsel %vm3189_vm6, %v10897_v52, %v3186_v3  ;;  %vm3255_vm6 = vcmask 1043456  }
 0x3e3   :  { %v3241_v6 = vrot.slane %v3190_v4, 5  ;;  %v3112_v7 = vadd.f32 %v3111_v0, %v3083_v61 }
 0x3e4   :  { %v2894_v48 = vpop.f32.mrf.mxu1 }
 0x3e5   :  { %v3247_v9 = vsel %vm1013_vm8, %v3240_v5, %v3241_v6  ;;  %v3113_v12 = vrot.slane %v3112_v7, 2 }
 0x3e6   :  { %v2868_v8 = vpop.f32.mrf.mxu3  ;;  %v11360_v11 = vsel %vm1015_vm10, %v11343_v58, %v3247_v9 }
 0x3e7   :  { %v2882_v10 = vadd.f32 %v2881_v23, %v2868_v8  ;;  %v3114_v20 = vadd.f32 %v3113_v12, %v3112_v7 }
 0x3e9   :  { %v2895_v51 = vadd.f32 %v2894_v48, %v2882_v10  ;;  %v3115_v27 = vrot.slane %v3114_v20, 1 }
 0x3ea   :  { %v2883_v63 = vpop.f32.mrf.mxu0 }
 0x3eb   :  { %v3116_v29 = vadd.f32 %v3115_v27, %v3114_v20 }
 0x3ec   :  { %v2907_v49 = vpop.f32.mrf.mxu2  ;;  %v2896_v18 = vpop.f32.mrf.mxu1 }
 0x3ed   :  { %v2908_v19 = vadd.f32 %v2907_v49, %v2895_v51  ;;  %v3139_v32 = vmul.f32 %v3116_v29, %v11169_v33 }
 0x3ee   :  { %v2870_v22 = vpop.f32.mrf.mxu3 }
 0x3ef   :  { %v3045_v21 = vrot.slane %v2908_v19, 4  ;;  %v3147_v35 = vadd.f32 1e-05, %v3139_v32 }
 0x3f1   :  { %v3046_v24 = vadd.f32 %v3045_v21, %v2908_v19  ;;  %10898 = vrsqrt.f32 %v3147_v35  ;;  %vm3197_vm7 = vweird.f32 %v3147_v35 }
 0x3f3   :  { %v3047_v28 = vrot.slane %v3046_v24, 2 }
 0x3f4   :  { %v2909_v26 = vpop.f32.mrf.mxu2 }
 0x3f5   :  { %v3048_v17 = vadd.f32 %v3047_v28, %v3046_v24 }
 0x3f7   :  { %v3049_v30 = vrot.slane %v3048_v17, 1  ;;  %v10899_v47 = vpop.eup %10898 }
 0x3f8   :  { %v3192_v1 = vmul.f32 %v10899_v47, %v3147_v35  ;;  %vm3198_vm8 = vweird.f32 %v10899_v47 }
 0x3f9   :  { %v3050_v31 = vadd.f32 %v3049_v30, %v3048_v17  ;;  %vm3199_vm12 = vmor %vm3197_vm7, %vm3198_vm8 }
 0x3fa   :  { %v3193_v0 = vmul.f32 %v10899_v47, %v3192_v1 }
 0x3fb   :  { %v3068_v58 = vmul.f32 %v3050_v31, %v11169_v33 }
 0x3fc   :  { %v3194_v3 = vmul.f32 0.5, %v3193_v0 }
 0x3fd   :  { %v11364_v34 = vsub.f32 %v2908_v19, %v3068_v58 }
 0x3fe   :  { %v3195_v6 = vsub.f32 1.5, %v3194_v3 }
 0x3ff   :  { %v3084_v55 = vmul.f32 %v11364_v34, %v11364_v34 }
 0x400   :  { %v3196_v49 = vmul.f32 %v10899_v47, %v3195_v6 }
 0x401   :  { %v3117_v36 = vrot.slane %v3084_v55, 4 }
 0x402   :  { %v2933_v37 = vpop.f32.mrf.mxu0  ;;  %v3200_v21 = vsel %vm3199_vm12, %v10899_v47, %v3196_v49 }
 0x403   :  { %v3118_v39 = vadd.f32 %v3117_v36, %v3084_v55  ;;  %v3242_v27 = vrot.slane %v3200_v21, 4  ;;  %v1317_v21 = vld [vmem:[#allocation7 + $0xe] sm:$0xff] }
 0x404   :  { %v2946_v38 = vpop.f32.mrf.mxu1 }
 0x405   :  { %v3119_v41 = vrot.slane %v3118_v39, 2 }
 0x406   :  { %v2920_v42 = vpop.f32.mrf.mxu3 }
 0x407   :  { %v3120_v43 = vadd.f32 %v3119_v41, %v3118_v39  ;;  %v2934_v25 = vadd.f32 %v2933_v37, %v2920_v42 }
 0x409   :  { %v3121_v40 = vrot.slane %v3120_v43, 1  ;;  %v2947_v14 = vadd.f32 %v2946_v38, %v2934_v25 }
 0x40a   :  { %v2935_v50 = vpop.f32.mrf.mxu0 }
 0x40b   :  { %v3122_v13 = vadd.f32 %v3121_v40, %v3120_v43 }
 0x40c   :  { %v2959_v46 = vpop.f32.mrf.mxu2  ;;  %v2948_v52 = vpop.f32.mrf.mxu1 }
 0x40d   :  { %v2960_v15 = vadd.f32 %v2959_v46, %v2947_v14  ;;  %v3140_v44 = vmul.f32 %v3122_v13, %v11169_v33 }
 0x40e   :  { %v2922_v57 = vpop.f32.mrf.mxu3 }
 0x40f   :  { %v3051_v54 = vrot.slane %v2960_v15, 4  ;;  %v3148_v59 = vadd.f32 1e-05, %v3140_v44 }
 0x411   :  { %v3052_v61 = vadd.f32 %v3051_v54, %v2960_v15  ;;  %10900 = vrsqrt.f32 %v3148_v59  ;;  %vm3207_vm9 = vweird.f32 %v3148_v59 }
 0x413   :  { %v3053_v23 = vrot.slane %v3052_v61, 2 }
 0x414   :  { %v2961_v62 = vpop.f32.mrf.mxu2 }
 0x415   :  { %v3054_v2 = vadd.f32 %v3053_v23, %v3052_v61 }
 0x417   :  { %v3055_v48 = vrot.slane %v3054_v2, 1  ;;  %v10901_v4 = vpop.eup %10900 }
 0x418   :  { %v3202_v7 = vmul.f32 %v10901_v4, %v3148_v59  ;;  %vm3208_vm10 = vweird.f32 %v10901_v4 }
 0x419   :  { %v3056_v5 = vadd.f32 %v3055_v48, %v3054_v2  ;;  %vm3209_vm13 = vmor %vm3207_vm9, %vm3208_vm10 }
 0x41a   :  { %v3203_v9 = vmul.f32 %v10901_v4, %v3202_v7 }
 0x41b   :  { %v3069_v8 = vmul.f32 %v3056_v5, %v11169_v33 }
 0x41c   :  { %v3204_v12 = vmul.f32 0.5, %v3203_v9 }
 0x41d   :  { %v11370_v10 = vsub.f32 %v2960_v15, %v3069_v8 }
 0x41e   :  { %v3205_v63 = vsub.f32 1.5, %v3204_v12 }
 0x41f   :  { %v3085_v51 = vmul.f32 %v11370_v10, %v11370_v10 }
 0x420   :  { %v3206_v22 = vmul.f32 %v10901_v4, %v3205_v63 }
 0x421   :  { %v3123_v20 = vrot.slane %v3085_v51, 4 }
 0x422   :  { %v3210_v24 = vsel %vm3209_vm13, %v10901_v4, %v3206_v22 }
 0x423   :  { %v2985_v18 = vpop.f32.mrf.mxu0  ;;  %v3124_v26 = vadd.f32 %v3123_v20, %v3085_v51  ;;  %v3243_v28 = vrot.slane %v3210_v24, 3  ;;  %v1318_v20 = vld [vmem:[#allocation7 + $0x16] sm:$0xff] }
 0x425   :  { %v2998_v19 = vpop.f32.mrf.mxu1  ;;  %v3250_v30 = vsel %vm3249_vm14, %v3242_v27, %v3243_v28  ;;  %v3125_v32 = vrot.slane %v3124_v26, 2  ;;  %v3285_v27 = vperm.slane %v1318_v20, 0 }
 0x427   :  { %v2972_v17 = vpop.f32.mrf.mxu3  ;;  %v3126_v37 = vadd.f32 %v3125_v32, %v3124_v26  ;;  %v3289_v32 = vperm.slane %v1318_v20, 4 }
 0x428   :  { %v2986_v29 = vadd.f32 %v2985_v18, %v2972_v17  ;;  %v3286_v17 = vperm.slane %v1318_v20, 1 }
 0x429   :  { %v3127_v43 = vrot.slane %v3126_v37, 1 }
 0x42a   :  { %v2999_v58 = vadd.f32 %v2998_v19, %v2986_v29  ;;  %v3287_v29 = vperm.slane %v1318_v20, 2 }
 0x42b   :  { %v2987_v35 = vpop.f32.mrf.mxu0  ;;  %v3128_v47 = vadd.f32 %v3127_v43, %v3126_v37 }
 0x42c   :  { %v3291_v35 = vperm.slane %v1318_v20, 6 }
 0x42d   :  { %v3011_v31 = vpop.f32.mrf.mxu2  ;;  %v3000_v55 = vpop.f32.mrf.mxu1  ;;  %v3141_v50 = vmul.f32 %v3128_v47, %v11169_v33 }
 0x42e   :  { %v3012_v36 = vadd.f32 %v3011_v31, %v2999_v58  ;;  %v3288_v31 = vperm.slane %v1318_v20, 3  ;;  %v3290_v58 = vperm.slane %v1318_v20, 5  ;;  %v3292_v55 = vperm.slane %v1318_v20, 7 }
 0x42f   :  { %v2974_v39 = vpop.f32.mrf.mxu3  ;;  %v3149_v15 = vadd.f32 1e-05, %v3141_v50 }
 0x430   :  { %v3057_v38 = vrot.slane %v3012_v36, 4 }
 0x431   :  { %10902 = vrsqrt.f32 %v3149_v15  ;;  %vm3217_vm0 = vweird.f32 %v3149_v15 }
 0x432   :  { %v3058_v41 = vadd.f32 %v3057_v38, %v3012_v36 }
 0x434   :  { %v3059_v25 = vrot.slane %v3058_v41, 2 }
 0x435   :  { %v3013_v42 = vpop.f32.mrf.mxu2 }
 0x436   :  { %v3060_v46 = vadd.f32 %v3059_v25, %v3058_v41 }
 0x437   :  { %v10903_v61 = vpop.eup %10902 }
 0x438   :  { %v3061_v40 = vrot.slane %v3060_v46, 1  ;;  %v3212_v23 = vmul.f32 %v10903_v61, %v3149_v15  ;;  %vm3218_vm15 = vweird.f32 %v10903_v61 }
 0x439   :  { %vm3219_vm11 = vmor %vm3217_vm0, %vm3218_vm15 }
 0x43a   :  { %v3062_v14 = vadd.f32 %v3061_v40, %v3060_v46  ;;  %v3213_v48 = vmul.f32 %v10903_v61, %v3212_v23 }
 0x43c   :  { %v3070_v52 = vmul.f32 %v3062_v14, %v11169_v33  ;;  %v3214_v4 = vmul.f32 0.5, %v3213_v48 }
 0x43e   :  { %v11376_v13 = vsub.f32 %v3012_v36, %v3070_v52  ;;  %v3215_v6 = vsub.f32 1.5, %v3214_v4 }
 0x440   :  { %v3086_v1 = vmul.f32 %v11376_v13, %v11376_v13  ;;  %v3216_v9 = vmul.f32 %v10903_v61, %v3215_v6 }
 0x442   :  { %v3129_v44 = vrot.slane %v3086_v1, 4  ;;  %v3220_v51 = vsel %vm3219_vm11, %v10903_v61, %v3216_v9 }
 0x443   :  { %v3244_v18 = vrot.slane %v3220_v51, 2 }
 0x444   :  { %v3130_v54 = vadd.f32 %v3129_v44, %v3086_v1 }
 0x446   :  { %v3131_v57 = vrot.slane %v3130_v54, 2 }
 0x448   :  { %v3132_v59 = vadd.f32 %v3131_v57, %v3130_v54 }
 0x44a   :  { %v3133_v62 = vrot.slane %v3132_v59, 1 }
 0x44c   :  { %v3134_v0 = vadd.f32 %v3133_v62, %v3132_v59 }
 0x44e   :  { %v3142_v2 = vmul.f32 %v3134_v0, %v11169_v33 }
 0x450   :  { %v3150_v3 = vadd.f32 1e-05, %v3142_v2 }
 0x452   :  { %10904 = vrsqrt.f32 %v3150_v3  ;;  %vm3227_vm2 = vweird.f32 %v3150_v3 }
 0x458   :  { %v10905_v5 = vpop.eup %10904 }
 0x459   :  { %v3222_v7 = vmul.f32 %v10905_v5, %v3150_v3  ;;  %vm3228_vm1 = vweird.f32 %v10905_v5 }
 0x45a   :  { %vm3229_vm3 = vmor %vm3227_vm2, %vm3228_vm1 }
 0x45b   :  { %v3223_v8 = vmul.f32 %v10905_v5, %v3222_v7 }
 0x45d   :  { %v3224_v49 = vmul.f32 0.5, %v3223_v8 }
 0x45f   :  { %v3225_v12 = vsub.f32 1.5, %v3224_v49 }
 0x461   :  { %v3226_v63 = vmul.f32 %v10905_v5, %v3225_v12 }
 0x463   :  { %v3230_v33 = vsel %vm3229_vm3, %v10905_v5, %v3226_v63 }
 0x464   :  { %v3245_v19 = vrot.slane %v3230_v33, 1 }
 0x466   :  { %v3252_v22 = vsel %vm3251_vm4, %v3244_v18, %v3245_v19 }
 0x467   :  { %v3254_v24 = vsel %vm3253_vm5, %v3250_v30, %v3252_v22 }
 0x468   :  { %v3256_v26 = vsel %vm3255_vm6, %v11360_v11, %v3254_v24 }
 0x469   :  { %v3258_v28 = vmul.f32 %v3256_v26, %v1317_v21 }
 0x46b   :  { %v3260_v36 = vperm.slane %v3258_v28, 0  ;;  %v3261_v37 = vperm.slane %v3258_v28, 1  ;;  %v3262_v38 = vperm.slane %v3258_v28, 2  ;;  %v3263_v39 = vperm.slane %v3258_v28, 3 }
 0x46c   :  { %v3264_v41 = vperm.slane %v3258_v28, 4  ;;  %v3265_v42 = vperm.slane %v3258_v28, 5  ;;  %v3266_v43 = vperm.slane %v3258_v28, 6  ;;  %v3267_v25 = vperm.slane %v3258_v28, 7 }
 0x46d   :  { %v3276_v30 = vmul.f32 %v3260_v36, %v11300_v53  ;;  %v3277_v11 = vmul.f32 %v3261_v37, %v11314_v60  ;;  %v3278_v46 = vmul.f32 %v3262_v38, %v11334_v45  ;;  %v3279_v47 = vmul.f32 %v3263_v39, %v11347_v16 }
 0x46e   :  { %v3280_v40 = vmul.f32 %v3264_v41, %v11353_v56  ;;  %v3281_v14 = vmul.f32 %v3265_v42, %v11364_v34  ;;  %v3282_v50 = vmul.f32 %v3266_v43, %v11370_v10  ;;  %v3283_v52 = vmul.f32 %v3267_v25, %v11376_v13 }
 0x46f   :  { %v3301_v15 = vadd.f32 %v3285_v27, %v3276_v30  ;;  %v3302_v1 = vadd.f32 %v3286_v17, %v3277_v11  ;;  %v3303_v44 = vadd.f32 %v3287_v29, %v3278_v46  ;;  %v3304_v54 = vadd.f32 %v3288_v31, %v3279_v47 }
 0x470   :  { %v3305_v57 = vadd.f32 %v3289_v32, %v3280_v40  ;;  %v3306_v53 = vadd.f32 %v3290_v58, %v3281_v14  ;;  %v3307_v59 = vadd.f32 %v3291_v35, %v3282_v50  ;;  %v3308_v60 = vadd.f32 %v3292_v55, %v3283_v52 }
 0x471   :  { %v3309_v61 = vmul.f32 0.01, %v3301_v15  ;;  %v3310_v45 = vmul.f32 0.01, %v3302_v1  ;;  %v3311_v62 = vmul.f32 0.01, %v3303_v44 }
 0x472   :  { %v3312_v16 = vmul.f32 0.01, %v3304_v54  ;;  %v3313_v0 = vmul.f32 0.01, %v3305_v57  ;;  %v3314_v56 = vmul.f32 0.01, %v3306_v53 }
 0x473   :  { %v3315_v23 = vmul.f32 0.01, %v3307_v59  ;;  %v3316_v34 = vmul.f32 0.01, %v3308_v60  ;;  %v3317_v2 = vmax.f32 %v3301_v15, %v3309_v61  ;;  %v3318_v10 = vmax.f32 %v3302_v1, %v3310_v45 }
 0x474   :  { %v3319_v3 = vmax.f32 %v3303_v44, %v3311_v62  ;;  %v3320_v13 = vmax.f32 %v3304_v54, %v3312_v16  ;;  %v3321_v48 = vmax.f32 %v3305_v57, %v3313_v0  ;;  %v3322_v4 = vmax.f32 %v3306_v53, %v3314_v56 }
 0x475   :  { %v3323_v5 = vmax.f32 %v3307_v59, %v3315_v23  ;;  %v3324_v6 = vmax.f32 %v3308_v60, %v3316_v34  ;;  %v11390_v7 = vpack.c.bf16 %v3317_v2, %v3317_v2  ;;  %v11392_v8 = vpack.c.bf16 %v3318_v10, %v3318_v10 }
 0x476   :  { %v11394_v9 = vpack.c.bf16 %v3319_v3, %v3319_v3  ;;  %v11396_v49 = vpack.c.bf16 %v3320_v13, %v3320_v13  ;;  %v11398_v12 = vpack.c.bf16 %v3321_v48, %v3321_v48  ;;  %v11400_v51 = vpack.c.bf16 %v3322_v4, %v3322_v4 }
 0x477   :  { %v11402_v63 = vpack.c.bf16 %v3323_v5, %v3323_v5  ;;  %v11404_v33 = vpack.c.bf16 %v3324_v6, %v3324_v6 }
 0x478   :  { %11098 = dma.done.wait [#allocation4 + $0x1], 57344 }
 0x479   :  { %11099 = vsyncadd [#allocation4 + $0x1], 4294909952  ;;  %v8478_v18 = vld [vmem:[#allocation3 + $0x188] sm:$0xf]  ;;  %v10463_v19 = vld [vmem:[#allocation3 + $0x1a0] sm:$0xf0] }
 0x47a   :  { %v8702_v20 = vld [vmem:[#allocation3 + $0x348] sm:$0xf]  ;;  %v8479_v21 = vor.u32 %v10463_v19, %v8478_v18  ;;  %v10519_v22 = vld [vmem:[#allocation3 + $0x360] sm:$0xf0]  ;;  %v8450_v31 = vld [vmem:[#allocation3 + $0x150] sm:$0xf] }
 0x47b   :  { %v9150_v24 = vld [vmem:[#allocation3 + $0x6c8] sm:$0xf]  ;;  %v10631_v26 = vld [vmem:[#allocation3 + $0x6e0] sm:$0xf0]  ;;  %v8703_v27 = vor.u32 %v10519_v22, %v8702_v20  ;;  %v10456_v58 = vld [vmem:[#allocation3 + $0x168] sm:$0xf0] }
 0x47c   :  { %v9151_v28 = vor.u32 %v10631_v26, %v9150_v24  ;;  %v8926_v17 = vld [vmem:[#allocation3 + $0x508] sm:$0xf]  ;;  %v10575_v29 = vld [vmem:[#allocation3 + $0x520] sm:$0xf0]  ;;  %6169 = vmatpush.bf16.msra.mxu3 %v8479_v21  ;;  %v8674_v35 = vld [vmem:[#allocation3 + $0x310] sm:$0xf]  ;;  %v8451_v36 = vor.u32 %v10456_v58, %v8450_v31 }
 0x47d   :  { %v8927_v32 = vor.u32 %v10575_v29, %v8926_v17  ;;  %v10512_v55 = vld [vmem:[#allocation3 + $0x328] sm:$0xf0]  ;;  %6182 = vmatpush.bf16.msrb.mxu0 %v8703_v27  ;;  %v9122_v38 = vld [vmem:[#allocation3 + $0x690] sm:$0xf]  ;;  %v8422_v25 = vld [vmem:[#allocation3 + $0x118] sm:$0xf] }
 0x47e   :  { %6208 = vmatpush.bf16.msrb.mxu2 %v9151_v28  ;;  %v8675_v37 = vor.u32 %v10512_v55, %v8674_v35  ;;  %v10624_v39 = vld [vmem:[#allocation3 + $0x6a8] sm:$0xf0]  ;;  %v8898_v41 = vld [vmem:[#allocation3 + $0x4d0] sm:$0xf]  ;;  %v10449_v30 = vld [vmem:[#allocation3 + $0x130] sm:$0xf0] }
 0x47f   :  { %6195 = vmatpush.bf16.msrb.mxu1 %v8927_v32  ;;  %v9123_v42 = vor.u32 %v10624_v39, %v9122_v38  ;;  %v10568_v43 = vld [vmem:[#allocation3 + $0x4e8] sm:$0xf0]  ;;  %v8646_v46 = vld [vmem:[#allocation3 + $0x2d8] sm:$0xf]  ;;  %v10505_v47 = vld [vmem:[#allocation3 + $0x2f0] sm:$0xf0]  ;;  %v8423_v14 = vor.u32 %v10449_v30, %v8422_v25 }
 0x480   :  { %v8899_v11 = vor.u32 %v10568_v43, %v8898_v41  ;;  %v9094_v40 = vld [vmem:[#allocation3 + $0x658] sm:$0xf]  ;;  %6170 = vmatpush.bf16.msra.mxu3 %v8451_v36  ;;  %v10617_v50 = vld [vmem:[#allocation3 + $0x670] sm:$0xf0]  ;;  %v8647_v1 = vor.u32 %v10505_v47, %v8646_v46  ;;  %v8394_v54 = vld [vmem:[#allocation3 + $0xe0] sm:$0xf] }
 0x481   :  { %v8870_v52 = vld [vmem:[#allocation3 + $0x498] sm:$0xf]  ;;  %v10561_v15 = vld [vmem:[#allocation3 + $0x4b0] sm:$0xf0]  ;;  %6183 = vmatpush.bf16.msrb.mxu0 %v8675_v37  ;;  %v9095_v44 = vor.u32 %v10617_v50, %v9094_v40  ;;  %v10442_v57 = vld [vmem:[#allocation3 + $0xf8] sm:$0xf0] }
 0x482   :  { %6209 = vmatpush.bf16.msrb.mxu2 %v9123_v42  ;;  %v8618_v53 = vld [vmem:[#allocation3 + $0x2a0] sm:$0xf]  ;;  %v8871_v59 = vor.u32 %v10561_v15, %v8870_v52  ;;  %v10498_v60 = vld [vmem:[#allocation3 + $0x2b8] sm:$0xf0]  ;;  %v8395_v0 = vor.u32 %v10442_v57, %v8394_v54  ;;  %v8366_v34 = vld [vmem:[#allocation3 + $0xa8] sm:$0xf] }
 0x483   :  { %6196 = vmatpush.bf16.msrb.mxu1 %v8899_v11  ;;  %v9066_v61 = vld [vmem:[#allocation3 + $0x620] sm:$0xf]  ;;  %v10610_v45 = vld [vmem:[#allocation3 + $0x638] sm:$0xf0]  ;;  %v8619_v56 = vor.u32 %v10498_v60, %v8618_v53  ;;  %v10435_v2 = vld [vmem:[#allocation3 + $0xc0] sm:$0xf0] }
 0x484   :  { %v8842_v62 = vld [vmem:[#allocation3 + $0x460] sm:$0xf]  ;;  %v10554_v16 = vld [vmem:[#allocation3 + $0x478] sm:$0xf0]  ;;  %6171 = vmatpush.bf16.msra.mxu3 %v8423_v14  ;;  %v9067_v23 = vor.u32 %v10610_v45, %v9066_v61  ;;  %v8590_v10 = vld [vmem:[#allocation3 + $0x268] sm:$0xf]  ;;  %v8367_v18 = vor.u32 %v10435_v2, %v8366_v34 }
 0x485   :  { %6184 = vmatpush.bf16.msrb.mxu0 %v8647_v1  ;;  %v8843_v3 = vor.u32 %v10554_v16, %v8842_v62  ;;  %v10491_v13 = vld [vmem:[#allocation3 + $0x280] sm:$0xf0]  ;;  %v9038_v48 = vld [vmem:[#allocation3 + $0x5e8] sm:$0xf]  ;;  %v8338_v21 = vld [vmem:[#allocation3 + $0x70] sm:$0xf] }
 0x486   :  { %6210 = vmatpush.bf16.msrb.mxu2 %v9095_v44  ;;  %v10603_v4 = vld [vmem:[#allocation3 + $0x600] sm:$0xf0]  ;;  %v8814_v5 = vld [vmem:[#allocation3 + $0x428] sm:$0xf]  ;;  %v8591_v19 = vor.u32 %v10491_v13, %v8590_v10  ;;  %v10428_v22 = vld [vmem:[#allocation3 + $0x88] sm:$0xf0] }
 0x487   :  { %6197 = vmatpush.bf16.msrb.mxu1 %v8871_v59  ;;  %v10547_v6 = vld [vmem:[#allocation3 + $0x440] sm:$0xf0]  ;;  %v9039_v20 = vor.u32 %v10603_v4, %v9038_v48  ;;  %v8562_v24 = vld [vmem:[#allocation3 + $0x230] sm:$0xf]  ;;  %v10484_v27 = vld [vmem:[#allocation3 + $0x248] sm:$0xf0]  ;;  %v8339_v32 = vor.u32 %v10428_v22, %v8338_v21 }
 0x488   :  { %6172 = vmatpush.bf16.msra.mxu3 %v8395_v0  ;;  %v8815_v26 = vor.u32 %v10547_v6, %v8814_v5  ;;  %v9010_v28 = vld [vmem:[#allocation3 + $0x5b0] sm:$0xf]  ;;  %v10596_v17 = vld [vmem:[#allocation3 + $0x5c8] sm:$0xf0]  ;;  %v8563_v58 = vor.u32 %v10484_v27, %v8562_v24  ;;  %v8310_v55 = vld [vmem:[#allocation3 + $0x38] sm:$0xf] }
 0x489   :  { %6185 = vmatpush.bf16.msrb.mxu0 %v8619_v56  ;;  %v8786_v29 = vld [vmem:[#allocation3 + $0x3f0] sm:$0xf]  ;;  %v10540_v31 = vld [vmem:[#allocation3 + $0x408] sm:$0xf0]  ;;  %v9011_v35 = vor.u32 %v10596_v17, %v9010_v28  ;;  %v10421_v36 = vld [vmem:[#allocation3 + $0x50] sm:$0xf0] }
 0x48a   :  { %6211 = vmatpush.bf16.msrb.mxu2 %v9067_v23  ;;  %v8534_v37 = vld [vmem:[#allocation3 + $0x1f8] sm:$0xf]  ;;  %v8787_v38 = vor.u32 %v10540_v31, %v8786_v29  ;;  %v10477_v39 = vld [vmem:[#allocation3 + $0x210] sm:$0xf0]  ;;  %v8311_v30 = vor.u32 %v10421_v36, %v8310_v55  ;;  %v8282_v11 = vld [vmem:[#allocation3] sm:$0xf] }
 0x48b   :  { %6198 = vmatpush.bf16.msrb.mxu1 %v8843_v3  ;;  %v8982_v41 = vld [vmem:[#allocation3 + $0x578] sm:$0xf]  ;;  %v10589_v42 = vld [vmem:[#allocation3 + $0x590] sm:$0xf0]  ;;  %v10414_v46 = vld [vmem:[#allocation3 + $0x18] sm:$0xf0]  ;;  %v8535_v47 = vor.u32 %v10477_v39, %v8534_v37 }
 0x48c   :  { %6173 = vmatpush.bf16.msra.mxu3 %v8367_v18  ;;  %v8758_v43 = vld [vmem:[#allocation3 + $0x3b8] sm:$0xf]  ;;  %v10533_v25 = vld [vmem:[#allocation3 + $0x3d0] sm:$0xf0]  ;;  %v8983_v40 = vor.u32 %v10589_v42, %v8982_v41  ;;  %v8506_v14 = vld [vmem:[#allocation3 + $0x1c0] sm:$0xf]  ;;  %v8283_v60 = vor.u32 %v10414_v46, %v8282_v11 }
 0x48d   :  { %6186 = vmatpush.bf16.msrb.mxu0 %v8591_v19  ;;  %v10470_v50 = vld [vmem:[#allocation3 + $0x1d8] sm:$0xf0]  ;;  %v8954_v52 = vld [vmem:[#allocation3 + $0x540] sm:$0xf]  ;;  %v8759_v15 = vor.u32 %v10533_v25, %v8758_v43  ;;  %v9374_v44 = vld [vmem:[#allocation3 + $0x888] sm:$0xf] }
 0x48e   :  { %6212 = vmatpush.bf16.msrb.mxu2 %v9039_v20  ;;  %v10582_v1 = vld [vmem:[#allocation3 + $0x558] sm:$0xf0]  ;;  %v10687_v54 = vld [vmem:[#allocation3 + $0x8a0] sm:$0xf0]  ;;  %v9598_v57 = vld [vmem:[#allocation3 + $0xa48] sm:$0xf]  ;;  %v8507_v16 = vor.u32 %v10470_v50, %v8506_v14 }
 0x48f   :  { %6199 = vmatpush.bf16.msrb.mxu1 %v8815_v26  ;;  %v10743_v53 = vld [vmem:[#allocation3 + $0xa60] sm:$0xf0]  ;;  %v10046_v59 = vld [vmem:[#allocation3 + $0xdc8] sm:$0xf]  ;;  %v8730_v45 = vld [vmem:[#allocation3 + $0x380] sm:$0xf]  ;;  %v8955_v0 = vor.u32 %v10582_v1, %v8954_v52  ;;  %v9375_v34 = vor.u32 %v10687_v54, %v9374_v44 }
 0x490   :  { %6174 = vmatpush.bf16.msra.mxu3 %v8339_v32  ;;  %v10855_v61 = vld [vmem:[#allocation3 + $0xde0] sm:$0xf0]  ;;  %v10526_v62 = vld [vmem:[#allocation3 + $0x398] sm:$0xf0]  ;;  %v9822_v56 = vld [vmem:[#allocation3 + $0xc08] sm:$0xf]  ;;  %v9599_v2 = vor.u32 %v10743_v53, %v9598_v57 }
 0x491   :  { %6187 = vmatpush.bf16.msrb.mxu0 %v8563_v58  ;;  %v10799_v23 = vld [vmem:[#allocation3 + $0xc20] sm:$0xf0]  ;;  %v9346_v10 = vld [vmem:[#allocation3 + $0x850] sm:$0xf]  ;;  %v10047_v3 = vor.u32 %v10855_v61, %v10046_v59  ;;  %v8731_v13 = vor.u32 %v10526_v62, %v8730_v45  ;;  %v10680_v48 = vld [vmem:[#allocation3 + $0x868] sm:$0xf0] }
 0x492   :  { %6213 = vmatpush.bf16.msrb.mxu2 %v9011_v35  ;;  %v9570_v4 = vld [vmem:[#allocation3 + $0xa10] sm:$0xf]  ;;  %v10736_v5 = vld [vmem:[#allocation3 + $0xa28] sm:$0xf0]  ;;  %v9823_v6 = vor.u32 %v10799_v23, %v9822_v56  ;;  %v9347_v22 = vor.u32 %v10680_v48, %v9346_v10  ;;  %v9318_v26 = vld [vmem:[#allocation3 + $0x818] sm:$0xf] }
 0x493   :  { %6200 = vmatpush.bf16.msrb.mxu1 %v8787_v38  ;;  %v10018_v18 = vld [vmem:[#allocation3 + $0xd90] sm:$0xf]  ;;  %v10848_v19 = vld [vmem:[#allocation3 + $0xda8] sm:$0xf0]  ;;  %v9571_v24 = vor.u32 %v10736_v5, %v9570_v4  ;;  %v10673_v28 = vld [vmem:[#allocation3 + $0x830] sm:$0xf0] }
 0x494   :  { %6175 = vmatpush.bf16.msra.mxu3 %v8311_v30  ;;  %v9794_v20 = vld [vmem:[#allocation3 + $0xbd0] sm:$0xf]  ;;  %v10792_v21 = vld [vmem:[#allocation3 + $0xbe8] sm:$0xf0]  ;;  %v10019_v27 = vor.u32 %v10848_v19, %v10018_v18  ;;  %v9542_v17 = vld [vmem:[#allocation3 + $0x9d8] sm:$0xf]  ;;  %v9319_v36 = vor.u32 %v10673_v28, %v9318_v26 }
 0x495   :  { %6188 = vmatpush.bf16.msrb.mxu0 %v8535_v47  ;;  %v10729_v29 = vld [vmem:[#allocation3 + $0x9f0] sm:$0xf0]  ;;  %v9795_v31 = vor.u32 %v10792_v21, %v9794_v20  ;;  %v9990_v32 = vld [vmem:[#allocation3 + $0xd58] sm:$0xf]  ;;  %v9290_v38 = vld [vmem:[#allocation3 + $0x7e0] sm:$0xf] }
 0x496   :  { %6214 = vmatpush.bf16.msrb.mxu2 %v8983_v40  ;;  %v10841_v58 = vld [vmem:[#allocation3 + $0xd70] sm:$0xf0]  ;;  %v9766_v35 = vld [vmem:[#allocation3 + $0xb98] sm:$0xf]  ;;  %v9543_v37 = vor.u32 %v10729_v29, %v9542_v17  ;;  %v10666_v41 = vld [vmem:[#allocation3 + $0x7f8] sm:$0xf0] }
 0x497   :  { %6201 = vmatpush.bf16.msrb.mxu1 %v8759_v15  ;;  %v10785_v55 = vld [vmem:[#allocation3 + $0xbb0] sm:$0xf0]  ;;  %v9991_v39 = vor.u32 %v10841_v58, %v9990_v32  ;;  %v9514_v42 = vld [vmem:[#allocation3 + $0x9a0] sm:$0xf]  ;;  %v10722_v43 = vld [vmem:[#allocation3 + $0x9b8] sm:$0xf0]  ;;  %v9291_v40 = vor.u32 %v10666_v41, %v9290_v38 }
 0x498   :  { %6176 = vmatpush.bf16.msra.mxu3 %v8283_v60  ;;  %v9767_v25 = vor.u32 %v10785_v55, %v9766_v35  ;;  %v9962_v30 = vld [vmem:[#allocation3 + $0xd20] sm:$0xf]  ;;  %v10834_v11 = vld [vmem:[#allocation3 + $0xd38] sm:$0xf0]  ;;  %v9515_v14 = vor.u32 %v10722_v43, %v9514_v42  ;;  %v9262_v50 = vld [vmem:[#allocation3 + $0x7a8] sm:$0xf] }
 0x499   :  { %6189 = vmatpush.bf16.msrb.mxu0 %v8507_v16  ;;  %v9738_v46 = vld [vmem:[#allocation3 + $0xb60] sm:$0xf]  ;;  %v10778_v47 = vld [vmem:[#allocation3 + $0xb78] sm:$0xf0]  ;;  %v9963_v52 = vor.u32 %v10834_v11, %v9962_v30  ;;  %v10659_v15 = vld [vmem:[#allocation3 + $0x7c0] sm:$0xf0] }
 0x49a   :  { %6215 = vmatpush.bf16.msrb.mxu2 %v8955_v0  ;;  %v9486_v1 = vld [vmem:[#allocation3 + $0x968] sm:$0xf]  ;;  %v10715_v44 = vld [vmem:[#allocation3 + $0x980] sm:$0xf0]  ;;  %v9739_v54 = vor.u32 %v10778_v47, %v9738_v46  ;;  %v9263_v61 = vor.u32 %v10659_v15, %v9262_v50  ;;  %v9234_v62 = vld [vmem:[#allocation3 + $0x770] sm:$0xf] }
 0x49b   :  { %6202 = vmatpush.bf16.msrb.mxu1 %v8731_v13  ;;  %6177 = vmatmul.bf16.vlgmr.msra.gmra.mxu3 %v11390_v7  ;;  %v9934_v57 = vld [vmem:[#allocation3 + $0xce8] sm:$0xf]  ;;  %v10827_v53 = vld [vmem:[#allocation3 + $0xd00] sm:$0xf0]  ;;  %v9487_v45 = vor.u32 %v10715_v44, %v9486_v1  ;;  %v10652_v0 = vld [vmem:[#allocation3 + $0x788] sm:$0xf0] }
 0x49c   :  { %6221 = vmatpush.bf16.msrb.mxu3 %v9375_v34  ;;  %6190 = vmatmul.bf16.vlgmr.msrb.gmra.mxu0 %v11392_v8  ;;  %v9710_v59 = vld [vmem:[#allocation3 + $0xb28] sm:$0xf]  ;;  %v10771_v60 = vld [vmem:[#allocation3 + $0xb40] sm:$0xf0]  ;;  %v9935_v16 = vor.u32 %v10827_v53, %v9934_v57  ;;  %v9458_v56 = vld [vmem:[#allocation3 + $0x930] sm:$0xf]  ;;  %v9235_v48 = vor.u32 %v10652_v0, %v9234_v62 }
 0x49d   :  { %6234 = vmatpush.bf16.msra.mxu0 %v9599_v2  ;;  %6216 = vmatmul.bf16.vlgmr.msrb.gmra.mxu2 %v11396_v49  ;;  %v10708_v23 = vld [vmem:[#allocation3 + $0x948] sm:$0xf0]  ;;  %v9711_v34 = vor.u32 %v10771_v60, %v9710_v59  ;;  %v9906_v2 = vld [vmem:[#allocation3 + $0xcb0] sm:$0xf]  ;;  %v9206_v5 = vld [vmem:[#allocation3 + $0x738] sm:$0xf] }
 0x49e   :  { %6260 = vmatpush.bf16.msra.mxu2 %v10047_v3  ;;  %6203 = vmatmul.bf16.vlgmr.msrb.gmra.mxu1 %v11394_v9  ;;  %v10820_v10 = vld [vmem:[#allocation3 + $0xcc8] sm:$0xf0]  ;;  %v9682_v3 = vld [vmem:[#allocation3 + $0xaf0] sm:$0xf]  ;;  %v9459_v4 = vor.u32 %v10708_v23, %v9458_v56  ;;  %v10645_v18 = vld [vmem:[#allocation3 + $0x750] sm:$0xf0] }
 0x49f   :  { %6247 = vmatpush.bf16.msra.mxu1 %v9823_v6  ;;  %v10764_v13 = vld [vmem:[#allocation3 + $0xb08] sm:$0xf0]  ;;  %v9907_v6 = vor.u32 %v10820_v10, %v9906_v2  ;;  %v9430_v19 = vld [vmem:[#allocation3 + $0x8f8] sm:$0xf]  ;;  %v10701_v20 = vld [vmem:[#allocation3 + $0x910] sm:$0xf0]  ;;  %v9207_v28 = vor.u32 %v10645_v18, %v9206_v5 }
 0x4a0   :  { %6222 = vmatpush.bf16.msrb.mxu3 %v9347_v22  ;;  %v9683_v21 = vor.u32 %v10764_v13, %v9682_v3  ;;  %v9878_v22 = vld [vmem:[#allocation3 + $0xc78] sm:$0xf]  ;;  %v9431_v17 = vor.u32 %v10701_v20, %v9430_v19  ;;  %v9178_v29 = vld [vmem:[#allocation3 + $0x700] sm:$0xf]  ;;  %v10694_v35 = vld [vmem:[#allocation3 + $0x8d8] sm:$0xf0] }
 0x4a1   :  { %6235 = vmatpush.bf16.msra.mxu0 %v9571_v24  ;;  %v10813_v24 = vld [vmem:[#allocation3 + $0xc90] sm:$0xf0]  ;;  %v9654_v26 = vld [vmem:[#allocation3 + $0xab8] sm:$0xf]  ;;  %v9402_v32 = vld [vmem:[#allocation3 + $0x8c0] sm:$0xf] }
 0x4a2   :  { %6261 = vmatpush.bf16.msra.mxu2 %v10019_v27  ;;  %v10757_v27 = vld [vmem:[#allocation3 + $0xad0] sm:$0xf0]  ;;  %v9879_v58 = vor.u32 %v10813_v24, %v9878_v22  ;;  %v9850_v55 = vld [vmem:[#allocation3 + $0xc40] sm:$0xf]  ;;  %v10460_v38 = vld [vmem:[#allocation3 + $0x18c] sm:$0xf]  ;;  %v9403_v11 = vor.u32 %v10694_v35, %v9402_v32 }
 0x4a3   :  { %6248 = vmatpush.bf16.msra.mxu1 %v9795_v31  ;;  %v10638_v31 = vld [vmem:[#allocation3 + $0x718] sm:$0xf0]  ;;  %v10516_v41 = vld [vmem:[#allocation3 + $0x34c] sm:$0xf]  ;;  %v8704_v42 = vld [vmem:[#allocation3 + $0x364] sm:$0xf0] }
 0x4a4   :  { %6223 = vmatpush.bf16.msrb.mxu3 %v9319_v36  ;;  %v10806_v36 = vld [vmem:[#allocation3 + $0xc58] sm:$0xf0]  ;;  %v10628_v43 = vld [vmem:[#allocation3 + $0x6cc] sm:$0xf]  ;;  %v9179_v30 = vor.u32 %v10638_v31, %v9178_v29  ;;  %v9626_v46 = vld [vmem:[#allocation3 + $0xa80] sm:$0xf]  ;;  %v8707_v15 = vor.u32 %v10516_v41, %v8704_v42 }
 0x4a5   :  { %6236 = vmatpush.bf16.msra.mxu0 %v9543_v37  ;;  %v9655_v37 = vor.u32 %v10757_v27, %v9654_v26  ;;  %v10750_v47 = vld [vmem:[#allocation3 + $0xa98] sm:$0xf0]  ;;  %v10572_v50 = vld [vmem:[#allocation3 + $0x50c] sm:$0xf]  ;;  %v10453_v44 = vld [vmem:[#allocation3 + $0x154] sm:$0xf] }
 0x4a6   :  { %6262 = vmatpush.bf16.msra.mxu2 %v9991_v39  ;;  %v8480_v39 = vld [vmem:[#allocation3 + $0x1a4] sm:$0xf0]  ;;  %v10509_v57 = vld [vmem:[#allocation3 + $0x314] sm:$0xf]  ;;  %v9627_v53 = vor.u32 %v10750_v47, %v9626_v46  ;;  %v8676_v59 = vld [vmem:[#allocation3 + $0x32c] sm:$0xf0] }
 0x4a7   :  { %6249 = vmatpush.bf16.msra.mxu1 %v9767_v25  ;;  %v9152_v25 = vld [vmem:[#allocation3 + $0x6e4] sm:$0xf0]  ;;  %v10621_v60 = vld [vmem:[#allocation3 + $0x694] sm:$0xf]  ;;  %v8900_v0 = vld [vmem:[#allocation3 + $0x4ec] sm:$0xf0]  ;;  %v8679_v56 = vor.u32 %v10509_v57, %v8676_v59 }
 0x4a8   :  { %6224 = vmatpush.bf16.msrb.mxu3 %v9291_v40  ;;  %v9851_v40 = vor.u32 %v10806_v36, %v9850_v55  ;;  %v9155_v1 = vor.u32 %v10628_v43, %v9152_v25  ;;  %v8424_v2 = vld [vmem:[#allocation3 + $0x134] sm:$0xf0]  ;;  %v10502_v10 = vld [vmem:[#allocation3 + $0x2dc] sm:$0xf]  ;;  %v8396_v22 = vld [vmem:[#allocation3 + $0xfc] sm:$0xf0] }
 0x4a9   :  { %6237 = vmatpush.bf16.msra.mxu0 %v9515_v14  ;;  %v8483_v14 = vor.u32 %v10460_v38, %v8480_v39  ;;  %v8648_v3 = vld [vmem:[#allocation3 + $0x2f4] sm:$0xf0]  ;;  %v10614_v13 = vld [vmem:[#allocation3 + $0x65c] sm:$0xf]  ;;  %v10495_v24 = vld [vmem:[#allocation3 + $0x2a4] sm:$0xf] }
 0x4aa   :  { %6263 = vmatpush.bf16.msra.mxu2 %v9963_v52  ;;  %v8928_v52 = vld [vmem:[#allocation3 + $0x524] sm:$0xf0]  ;;  %v8872_v18 = vld [vmem:[#allocation3 + $0x4b4] sm:$0xf0]  ;;  %v8651_v19 = vor.u32 %v10502_v10, %v8648_v3  ;;  %v8620_v26 = vld [vmem:[#allocation3 + $0x2bc] sm:$0xf0] }
 0x4ab   :  { %6250 = vmatpush.bf16.msra.mxu1 %v9739_v54  ;;  %v8452_v54 = vld [vmem:[#allocation3 + $0x16c] sm:$0xf0]  ;;  %v10607_v27 = vld [vmem:[#allocation3 + $0x624] sm:$0xf]  ;;  %v8844_v32 = vld [vmem:[#allocation3 + $0x47c] sm:$0xf0] }
 0x4ac   :  { %6225 = vmatpush.bf16.msrb.mxu3 %v9263_v61  ;;  %v9124_v61 = vld [vmem:[#allocation3 + $0x6ac] sm:$0xf0]  ;;  %v8455_v62 = vor.u32 %v10453_v44, %v8452_v54  ;;  %v10551_v31 = vld [vmem:[#allocation3 + $0x464] sm:$0xf]  ;;  %v10432_v55 = vld [vmem:[#allocation3 + $0xac] sm:$0xf] }
 0x4ad   :  { %6238 = vmatpush.bf16.msra.mxu0 %v9487_v45  ;;  %v8931_v45 = vor.u32 %v10572_v50, %v8928_v52  ;;  %v9127_v23 = vor.u32 %v10621_v60, %v9124_v61  ;;  %v8368_v36 = vld [vmem:[#allocation3 + $0xc4] sm:$0xf0]  ;;  %v10600_v39 = vld [vmem:[#allocation3 + $0x5ec] sm:$0xf]  ;;  %v8847_v42 = vor.u32 %v10551_v31, %v8844_v32  ;;  %v10425_v47 = vld [vmem:[#allocation3 + $0x74] sm:$0xf] }
 0x4ae   :  { %6264 = vmatpush.bf16.msra.mxu2 %v9935_v16  ;;  %v10565_v16 = vld [vmem:[#allocation3 + $0x4d4] sm:$0xf]  ;;  %v8592_v38 = vld [vmem:[#allocation3 + $0x284] sm:$0xf0]  ;;  %v8371_v43 = vor.u32 %v10432_v55, %v8368_v36  ;;  %v10544_v25 = vld [vmem:[#allocation3 + $0x42c] sm:$0xf] }
 0x4af   :  { %6251 = vmatpush.bf16.msra.mxu1 %v9711_v34  ;;  %v10446_v34 = vld [vmem:[#allocation3 + $0x11c] sm:$0xf]  ;;  %v9040_v41 = vld [vmem:[#allocation3 + $0x604] sm:$0xf0]  ;;  %v8564_v50 = vld [vmem:[#allocation3 + $0x24c] sm:$0xf0] }
 0x4b0   :  { %6226 = vmatpush.bf16.msrb.mxu3 %v9235_v48  ;;  %v9096_v48 = vld [vmem:[#allocation3 + $0x674] sm:$0xf0]  ;;  %v8427_v5 = vor.u32 %v10446_v34, %v8424_v2  ;;  %v9043_v46 = vor.u32 %v10600_v39, %v9040_v41  ;;  %v10593_v52 = vld [vmem:[#allocation3 + $0x5b4] sm:$0xf]  ;;  %v8788_v57 = vld [vmem:[#allocation3 + $0x40c] sm:$0xf0] }
 0x4b1   :  { %6239 = vmatpush.bf16.msra.mxu0 %v9459_v4  ;;  %v8903_v4 = vor.u32 %v10565_v16, %v8900_v0  ;;  %v9099_v20 = vor.u32 %v10614_v13, %v9096_v48  ;;  %v10537_v54 = vld [vmem:[#allocation3 + $0x3f4] sm:$0xf]  ;;  %v10418_v60 = vld [vmem:[#allocation3 + $0x3c] sm:$0xf]  ;;  %v8312_v61 = vld [vmem:[#allocation3 + $0x54] sm:$0xf0] }
 0x4b2   :  { %6265 = vmatpush.bf16.msra.mxu2 %v9907_v6  ;;  %v10558_v6 = vld [vmem:[#allocation3 + $0x49c] sm:$0xf]  ;;  %v8984_v0 = vld [vmem:[#allocation3 + $0x594] sm:$0xf0]  ;;  %v8315_v34 = vor.u32 %v10418_v60, %v8312_v61  ;;  %v10411_v10 = vld [vmem:[#allocation3 + $0x4] sm:$0xf] }
 0x4b3   :  { %6252 = vmatpush.bf16.msra.mxu1 %v9683_v21  ;;  %v10439_v21 = vld [vmem:[#allocation3 + $0xe4] sm:$0xf]  ;;  %v10586_v16 = vld [vmem:[#allocation3 + $0x57c] sm:$0xf]  ;;  %v8760_v2 = vld [vmem:[#allocation3 + $0x3d4] sm:$0xf0] }
 0x4b4   :  { %6227 = vmatpush.bf16.msrb.mxu3 %v9207_v28  ;;  %v9068_v28 = vld [vmem:[#allocation3 + $0x63c] sm:$0xf0]  ;;  %v8399_v29 = vor.u32 %v10439_v21, %v8396_v22  ;;  %v8987_v48 = vor.u32 %v10586_v16, %v8984_v0  ;;  %v10740_v22 = vld [vmem:[#allocation3 + $0xa4c] sm:$0xf]  ;;  %v9348_v41 = vld [vmem:[#allocation3 + $0x86c] sm:$0xf0] }
 0x4b5   :  { %6240 = vmatpush.bf16.msra.mxu0 %v9431_v17  ;;  %v8875_v17 = vor.u32 %v10558_v6, %v8872_v18  ;;  %v9071_v35 = vor.u32 %v10607_v27, %v9068_v28  ;;  %v8284_v3 = vld [vmem:[#allocation3 + $0x1c] sm:$0xf0]  ;;  %v10579_v6 = vld [vmem:[#allocation3 + $0x544] sm:$0xf]  ;;  %v10048_v28 = vld [vmem:[#allocation3 + $0xde4] sm:$0xf0] }
 0x4b6   :  { %6266 = vmatpush.bf16.msra.mxu2 %v9879_v58  ;;  %v8623_v58 = vor.u32 %v10495_v24, %v8620_v26  ;;  %v8956_v18 = vld [vmem:[#allocation3 + $0x55c] sm:$0xf0]  ;;  %v9600_v24 = vld [vmem:[#allocation3 + $0xa64] sm:$0xf0]  ;;  %v10852_v26 = vld [vmem:[#allocation3 + $0xdcc] sm:$0xf]  ;;  %v8287_v27 = vor.u32 %v10411_v10, %v8284_v3 }
 0x4b7   :  { %6253 = vmatpush.bf16.msra.mxu1 %v9655_v37  ;;  %v10488_v37 = vld [vmem:[#allocation3 + $0x26c] sm:$0xf]  ;;  %v8959_v32 = vor.u32 %v10579_v6, %v8956_v18  ;;  %v9603_v36 = vor.u32 %v10740_v22, %v9600_v24  ;;  %v9768_v60 = vld [vmem:[#allocation3 + $0xbb4] sm:$0xf0]  ;;  %v9292_v0 = vld [vmem:[#allocation3 + $0x7fc] sm:$0xf0] }
 0x4b8   :  { %6228 = vmatpush.bf16.msrb.mxu3 %v9179_v30  ;;  %v8816_v30 = vld [vmem:[#allocation3 + $0x444] sm:$0xf0]  ;;  %v9964_v10 = vld [vmem:[#allocation3 + $0xd3c] sm:$0xf0]  ;;  %v10775_v3 = vld [vmem:[#allocation3 + $0xb64] sm:$0xf] }
 0x4b9   :  { %6241 = vmatpush.bf16.msra.mxu0 %v9403_v11  ;;  %v8595_v11 = vor.u32 %v10488_v37, %v8592_v38  ;;  %v10677_v37 = vld [vmem:[#allocation3 + $0x854] sm:$0xf]  ;;  %v10051_v38 = vor.u32 %v10852_v26, %v10048_v28  ;;  %v9264_v18 = vld [vmem:[#allocation3 + $0x7c4] sm:$0xf0]  ;;  %v10824_v22 = vld [vmem:[#allocation3 + $0xcec] sm:$0xf] }
 0x4ba   :  { %6267 = vmatpush.bf16.msra.mxu2 %v9851_v40  ;;  %v8340_v40 = vld [vmem:[#allocation3 + $0x8c] sm:$0xf0]  ;;  %v9936_v24 = vld [vmem:[#allocation3 + $0xd04] sm:$0xf0]  ;;  %v10768_v26 = vld [vmem:[#allocation3 + $0xb2c] sm:$0xf] }
 0x4bb   :  { %6254 = vmatpush.bf16.msra.mxu1 %v9627_v53  ;;  %6229 = vmatmul.bf16.vlgmr.msrb.gmra.mxu3 %v11398_v12  ;;  %v8343_v44 = vor.u32 %v10425_v47, %v8340_v40  ;;  %v9796_v47 = vld [vmem:[#allocation3 + $0xbec] sm:$0xf0]  ;;  %v9351_v40 = vor.u32 %v10677_v37, %v9348_v41 }
 0x4bc   :  { %6273 = vmatpush.bf16.msra.mxu3 %v8483_v14  ;;  %6242 = vmatmul.bf16.vlgmr.msra.gmra.mxu0 %v11400_v51  ;;  %v10481_v14 = vld [vmem:[#allocation3 + $0x234] sm:$0xf]  ;;  %v9908_v37 = vld [vmem:[#allocation3 + $0xccc] sm:$0xf0] }
 0x4bd   :  { %6286 = vmatpush.bf16.msrb.mxu0 %v8707_v15  ;;  %6268 = vmatmul.bf16.vlgmr.msra.gmra.mxu2 %v11404_v33  ;;  %v9012_v15 = vld [vmem:[#allocation3 + $0x5cc] sm:$0xf0]  ;;  %v8567_v53 = vor.u32 %v10481_v14, %v8564_v50  ;;  %v10670_v50 = vld [vmem:[#allocation3 + $0x81c] sm:$0xf] }
 0x4be   :  { %6312 = vmatpush.bf16.msrb.mxu2 %v9155_v1  ;;  %6255 = vmatmul.bf16.vlgmr.msra.gmra.mxu1 %v11402_v63  ;;  %v8819_v1 = vor.u32 %v10544_v25, %v8816_v30  ;;  %v9015_v59 = vor.u32 %v10593_v52, %v9012_v15  ;;  %v10845_v30 = vld [vmem:[#allocation3 + $0xd94] sm:$0xf]  ;;  %v9320_v15 = vld [vmem:[#allocation3 + $0x834] sm:$0xf0] }
 0x4bf   :  { %6299 = vmatpush.bf16.msrb.mxu1 %v8931_v45  ;;  %v10474_v45 = vld [vmem:[#allocation3 + $0x1fc] sm:$0xf]  ;;  %v9323_v61 = vor.u32 %v10670_v50, %v9320_v15 }
 0x4c0   :  { %6274 = vmatpush.bf16.msra.mxu3 %v8455_v62  ;;  %v8536_v62 = vld [vmem:[#allocation3 + $0x214] sm:$0xf0]  ;;  %v10754_v50 = vld [vmem:[#allocation3 + $0xabc] sm:$0xf] }
 0x4c1   :  { %6287 = vmatpush.bf16.msrb.mxu0 %v8679_v56  ;;  %v8791_v56 = vor.u32 %v10537_v54, %v8788_v57  ;;  %v8539_v13 = vor.u32 %v10474_v45, %v8536_v62  ;;  %v10838_v57 = vld [vmem:[#allocation3 + $0xd5c] sm:$0xf]  ;;  %v10663_v62 = vld [vmem:[#allocation3 + $0x7e4] sm:$0xf] }
 0x4c2   :  { %6313 = vmatpush.bf16.msrb.mxu2 %v9127_v23  ;;  %v10530_v23 = vld [vmem:[#allocation3 + $0x3bc] sm:$0xf] }
 0x4c3   :  { %6300 = vmatpush.bf16.msrb.mxu1 %v8903_v4  ;;  %v10467_v4 = vld [vmem:[#allocation3 + $0x1c4] sm:$0xf]  ;;  %v8763_v21 = vor.u32 %v10530_v23, %v8760_v2  ;;  %v9516_v23 = vld [vmem:[#allocation3 + $0x9bc] sm:$0xf0] }
 0x4c4   :  { %6275 = vmatpush.bf16.msra.mxu3 %v8427_v5  ;;  %v8508_v5 = vld [vmem:[#allocation3 + $0x1dc] sm:$0xf0]  ;;  %v10831_v2 = vld [vmem:[#allocation3 + $0xd24] sm:$0xf] }
 0x4c5   :  { %6288 = vmatpush.bf16.msrb.mxu0 %v8651_v19  ;;  %v10684_v19 = vld [vmem:[#allocation3 + $0x88c] sm:$0xf]  ;;  %v8511_v31 = vor.u32 %v10467_v4, %v8508_v5  ;;  %v9967_v6 = vor.u32 %v10831_v2, %v9964_v10 }
 0x4c6   :  { %6314 = vmatpush.bf16.msrb.mxu2 %v9099_v20  ;;  %v9376_v20 = vld [vmem:[#allocation3 + $0x8a4] sm:$0xf0]  ;;  %v10656_v5 = vld [vmem:[#allocation3 + $0x7ac] sm:$0xf] }
 0x4c7   :  { %6301 = vmatpush.bf16.msrb.mxu1 %v8875_v17  ;;  %v10523_v17 = vld [vmem:[#allocation3 + $0x384] sm:$0xf]  ;;  %v9379_v55 = vor.u32 %v10684_v19, %v9376_v20  ;;  %v10712_v19 = vld [vmem:[#allocation3 + $0x96c] sm:$0xf]  ;;  %v9488_v20 = vld [vmem:[#allocation3 + $0x984] sm:$0xf0]  ;;  %v9267_v28 = vor.u32 %v10656_v5, %v9264_v18 }
 0x4c8   :  { %6276 = vmatpush.bf16.msra.mxu3 %v8399_v29  ;;  %v8732_v29 = vld [vmem:[#allocation3 + $0x39c] sm:$0xf0]  ;;  %v8934_v5 = vld [vmem:[#allocation3 + $0x510] sm:$0xf] }
 0x4c9   :  { %6289 = vmatpush.bf16.msrb.mxu0 %v8623_v58  ;;  %v10796_v58 = vld [vmem:[#allocation3 + $0xc0c] sm:$0xf]  ;;  %v8735_v39 = vor.u32 %v10523_v17, %v8732_v29  ;;  %v9491_v17 = vor.u32 %v10712_v19, %v9488_v20  ;;  %v10649_v29 = vld [vmem:[#allocation3 + $0x774] sm:$0xf]  ;;  %v8458_v20 = vld [vmem:[#allocation3 + $0x158] sm:$0xf] }
 0x4ca   :  { %6315 = vmatpush.bf16.msrb.mxu2 %v9071_v35  ;;  %v9824_v35 = vld [vmem:[#allocation3 + $0xc24] sm:$0xf0] }
 0x4cb   :  { %6302 = vmatpush.bf16.msrb.mxu1 %v8847_v42  ;;  %v10733_v42 = vld [vmem:[#allocation3 + $0xa14] sm:$0xf]  ;;  %v9827_v25 = vor.u32 %v10796_v58, %v9824_v35  ;;  %v9460_v35 = vld [vmem:[#allocation3 + $0x94c] sm:$0xf0] }
 0x4cc   :  { %6277 = vmatpush.bf16.msra.mxu3 %v8371_v43  ;;  %v9572_v43 = vld [vmem:[#allocation3 + $0xa2c] sm:$0xf0]  ;;  %v10705_v58 = vld [vmem:[#allocation3 + $0x934] sm:$0xf] }
 0x4cd   :  { %6290 = vmatpush.bf16.msrb.mxu0 %v8595_v11  ;;  %v10020_v11 = vld [vmem:[#allocation3 + $0xdac] sm:$0xf0]  ;;  %v9575_v14 = vor.u32 %v10733_v42, %v9572_v43  ;;  %v9463_v42 = vor.u32 %v10705_v58, %v9460_v35  ;;  %v10642_v43 = vld [vmem:[#allocation3 + $0x73c] sm:$0xf] }
 0x4ce   :  { %6316 = vmatpush.bf16.msrb.mxu2 %v9043_v46  ;;  %v10789_v46 = vld [vmem:[#allocation3 + $0xbd4] sm:$0xf]  ;;  %v10023_v52 = vor.u32 %v10845_v30, %v10020_v11  ;;  %v9208_v30 = vld [vmem:[#allocation3 + $0x754] sm:$0xf0]  ;;  %v10698_v11 = vld [vmem:[#allocation3 + $0x8fc] sm:$0xf] }
 0x4cf   :  { %6303 = vmatpush.bf16.msrb.mxu1 %v8819_v1  ;;  %v10726_v1 = vld [vmem:[#allocation3 + $0x9dc] sm:$0xf]  ;;  %v9799_v54 = vor.u32 %v10789_v46, %v9796_v47  ;;  %v9432_v46 = vld [vmem:[#allocation3 + $0x914] sm:$0xf0]  ;;  %v9211_v15 = vor.u32 %v10642_v43, %v9208_v30 }
 0x4d0   :  { %6278 = vmatpush.bf16.msra.mxu3 %v8343_v44  ;;  %v9544_v44 = vld [vmem:[#allocation3 + $0x9f4] sm:$0xf0]  ;;  %v10562_v30 = vld [vmem:[#allocation3 + $0x4b8] sm:$0xf0] }
 0x4d1   :  { %6291 = vmatpush.bf16.msrb.mxu0 %v8567_v53  ;;  %v9992_v53 = vld [vmem:[#allocation3 + $0xd74] sm:$0xf0]  ;;  %v9547_v45 = vor.u32 %v10726_v1, %v9544_v44  ;;  %v9435_v1 = vor.u32 %v10698_v11, %v9432_v46  ;;  %v10635_v44 = vld [vmem:[#allocation3 + $0x704] sm:$0xf] }
 0x4d2   :  { %6317 = vmatpush.bf16.msrb.mxu2 %v9015_v59  ;;  %v10782_v59 = vld [vmem:[#allocation3 + $0xb9c] sm:$0xf]  ;;  %v9995_v16 = vor.u32 %v10838_v57, %v9992_v53  ;;  %v10691_v57 = vld [vmem:[#allocation3 + $0x8c4] sm:$0xf] }
 0x4d3   :  { %6304 = vmatpush.bf16.msrb.mxu1 %v8791_v56  ;;  %v10719_v56 = vld [vmem:[#allocation3 + $0x9a4] sm:$0xf] }
 0x4d4   :  { %6279 = vmatpush.bf16.msra.mxu3 %v8315_v34  ;;  %v9771_v34 = vor.u32 %v10782_v59, %v9768_v60  ;;  %v9519_v4 = vor.u32 %v10719_v56, %v9516_v23  ;;  %v9404_v59 = vld [vmem:[#allocation3 + $0x8dc] sm:$0xf0]  ;;  %v10803_v60 = vld [vmem:[#allocation3 + $0xc44] sm:$0xf]  ;;  %v10520_v56 = vld [vmem:[#allocation3 + $0x368] sm:$0xf0] }
 0x4d5   :  { %6292 = vmatpush.bf16.msrb.mxu0 %v8539_v13  ;;  %v9740_v13 = vld [vmem:[#allocation3 + $0xb7c] sm:$0xf0]  ;;  %v9158_v23 = vld [vmem:[#allocation3 + $0x6d0] sm:$0xf]  ;;  %v9407_v10 = vor.u32 %v10691_v57, %v9404_v59  ;;  %v10555_v57 = vld [vmem:[#allocation3 + $0x480] sm:$0xf0] }
 0x4d6   :  { %6318 = vmatpush.bf16.msrb.mxu2 %v8987_v48  ;;  %v9295_v48 = vor.u32 %v10663_v62, %v9292_v0  ;;  %v8486_v62 = vld [vmem:[#allocation3 + $0x190] sm:$0xf] }
 0x4d7   :  { %6305 = vmatpush.bf16.msrb.mxu1 %v8763_v21  ;;  %v9743_v21 = vor.u32 %v10775_v3, %v9740_v13  ;;  %v8710_v0 = vld [vmem:[#allocation3 + $0x350] sm:$0xf]  ;;  %v10747_v3 = vld [vmem:[#allocation3 + $0xa84] sm:$0xf]  ;;  %v9628_v13 = vld [vmem:[#allocation3 + $0xa9c] sm:$0xf0] }
 0x4d8   :  { %6280 = vmatpush.bf16.msra.mxu3 %v8287_v27  ;;  %v9712_v27 = vld [vmem:[#allocation3 + $0xb44] sm:$0xf0]  ;;  %v8711_v18 = vor.u32 %v10520_v56, %v8710_v0  ;;  %v10604_v0 = vld [vmem:[#allocation3 + $0x608] sm:$0xf0] }
 0x4d9   :  { %6293 = vmatpush.bf16.msrb.mxu0 %v8511_v31  ;;  %v9939_v31 = vor.u32 %v10824_v22, %v9936_v24  ;;  %v8682_v22 = vld [vmem:[#allocation3 + $0x318] sm:$0xf]  ;;  %v9631_v24 = vor.u32 %v10747_v3, %v9628_v13 }
 0x4da   :  { %6319 = vmatpush.bf16.msrb.mxu2 %v8959_v32  ;;  %v9236_v32 = vld [vmem:[#allocation3 + $0x78c] sm:$0xf0]  ;;  %v8346_v13 = vld [vmem:[#allocation3 + $0x78] sm:$0xf] }
 0x4db   :  { %6306 = vmatpush.bf16.msrb.mxu1 %v8735_v39  ;;  %6281 = vmatmul.bf16.vlgmr.msra.gmra.mxu3 %v11390_v7  ;;  %v9684_v39 = vld [vmem:[#allocation3 + $0xb0c] sm:$0xf0]  ;;  %v9239_v41 = vor.u32 %v10649_v29, %v9236_v32  ;;  %v10569_v32 = vld [vmem:[#allocation3 + $0x4f0] sm:$0xf0] }
 0x4dc   :  { %6325 = vmatpush.bf16.msrb.mxu3 %v9379_v55  ;;  %6294 = vmatmul.bf16.vlgmr.msrb.gmra.mxu0 %v11392_v8  ;;  %v9715_v55 = vor.u32 %v10768_v26, %v9712_v27  ;;  %v10513_v26 = vld [vmem:[#allocation3 + $0x330] sm:$0xf0]  ;;  %v9130_v27 = vld [vmem:[#allocation3 + $0x698] sm:$0xf] }
 0x4dd   :  { %6338 = vmatpush.bf16.msra.mxu0 %v9603_v36  ;;  %6320 = vmatmul.bf16.vlgmr.msrb.gmra.mxu2 %v11396_v49  ;;  %v10817_v36 = vld [vmem:[#allocation3 + $0xcb4] sm:$0xf]  ;;  %v8683_v58 = vor.u32 %v10513_v26, %v8682_v22 }
 0x4de   :  { %6364 = vmatpush.bf16.msra.mxu2 %v10051_v38  ;;  %6307 = vmatmul.bf16.vlgmr.msrb.gmra.mxu1 %v11394_v9  ;;  %v10761_v38 = vld [vmem:[#allocation3 + $0xaf4] sm:$0xf] }
 0x4df   :  { %6351 = vmatpush.bf16.msra.mxu1 %v9827_v25  ;;  %v9911_v25 = vor.u32 %v10817_v36, %v9908_v37  ;;  %v9687_v47 = vor.u32 %v10761_v38, %v9684_v39  ;;  %v10450_v36 = vld [vmem:[#allocation3 + $0x138] sm:$0xf0]  ;;  %v8654_v37 = vld [vmem:[#allocation3 + $0x2e0] sm:$0xf]  ;;  %v10541_v22 = vld [vmem:[#allocation3 + $0x410] sm:$0xf0] }
 0x4e0   :  { %6326 = vmatpush.bf16.msrb.mxu3 %v9351_v40  ;;  %v10810_v40 = vld [vmem:[#allocation3 + $0xc7c] sm:$0xf]  ;;  %v9102_v39 = vld [vmem:[#allocation3 + $0x660] sm:$0xf] }
 0x4e1   :  { %6339 = vmatpush.bf16.msra.mxu0 %v9575_v14  ;;  %v9880_v14 = vld [vmem:[#allocation3 + $0xc94] sm:$0xf0]  ;;  %v10506_v38 = vld [vmem:[#allocation3 + $0x2f8] sm:$0xf0] }
 0x4e2   :  { %6365 = vmatpush.bf16.msra.mxu2 %v10023_v52  ;;  %v9656_v52 = vld [vmem:[#allocation3 + $0xad4] sm:$0xf0]  ;;  %v9883_v53 = vor.u32 %v10810_v40, %v9880_v14  ;;  %v8655_v11 = vor.u32 %v10506_v38, %v8654_v37  ;;  %v10443_v40 = vld [vmem:[#allocation3 + $0x100] sm:$0xf0]  ;;  %v8626_v14 = vld [vmem:[#allocation3 + $0x2a8] sm:$0xf] }
 0x4e3   :  { %6352 = vmatpush.bf16.msra.mxu1 %v9799_v54  ;;  %v9180_v54 = vld [vmem:[#allocation3 + $0x71c] sm:$0xf0]  ;;  %v8290_v37 = vld [vmem:[#allocation3 + $0x8] sm:$0xf]  ;;  %v10415_v38 = vld [vmem:[#allocation3 + $0x20] sm:$0xf0] }
 0x4e4   :  { %6327 = vmatpush.bf16.msrb.mxu3 %v9323_v61  ;;  %v9852_v61 = vld [vmem:[#allocation3 + $0xc5c] sm:$0xf0]  ;;  %v9183_v2 = vor.u32 %v10635_v44, %v9180_v54  ;;  %v8850_v54 = vld [vmem:[#allocation3 + $0x468] sm:$0xf] }
 0x4e5   :  { %6340 = vmatpush.bf16.msra.mxu0 %v9547_v45  ;;  %v9659_v45 = vor.u32 %v10754_v50, %v9656_v52  ;;  %v10499_v50 = vld [vmem:[#allocation3 + $0x2c0] sm:$0xf0]  ;;  %v9074_v52 = vld [vmem:[#allocation3 + $0x628] sm:$0xf]  ;;  %v8851_v56 = vor.u32 %v10555_v57, %v8850_v54 }
 0x4e6   :  { %6366 = vmatpush.bf16.msra.mxu2 %v9995_v16  ;;  %v10464_v16 = vld [vmem:[#allocation3 + $0x1a8] sm:$0xf0] }
 0x4e7   :  { %6353 = vmatpush.bf16.msra.mxu1 %v9771_v34  ;;  %v10632_v34 = vld [vmem:[#allocation3 + $0x6e8] sm:$0xf0] }
 0x4e8   :  { %6328 = vmatpush.bf16.msrb.mxu3 %v9295_v48  ;;  %v9855_v48 = vor.u32 %v10803_v60, %v9852_v61  ;;  %v9159_v19 = vor.u32 %v10632_v34, %v9158_v23  ;;  %v8374_v60 = vld [vmem:[#allocation3 + $0xb0] sm:$0xf]  ;;  %v10436_v61 = vld [vmem:[#allocation3 + $0xc8] sm:$0xf0] }
 0x4e9   :  { %6341 = vmatpush.bf16.msra.mxu0 %v9519_v4  ;;  %v8487_v4 = vor.u32 %v10464_v16, %v8486_v62  ;;  %v10492_v62 = vld [vmem:[#allocation3 + $0x288] sm:$0xf0]  ;;  %v9046_v16 = vld [vmem:[#allocation3 + $0x5f0] sm:$0xf]  ;;  %v8375_v23 = vor.u32 %v10436_v61, %v8374_v60 }
 0x4ea   :  { %6367 = vmatpush.bf16.msra.mxu2 %v9967_v6  ;;  %v10576_v6 = vld [vmem:[#allocation3 + $0x528] sm:$0xf0]  ;;  %v8822_v34 = vld [vmem:[#allocation3 + $0x430] sm:$0xf]  ;;  %v9047_v3 = vor.u32 %v10604_v0, %v9046_v16  ;;  %v10681_v0 = vld [vmem:[#allocation3 + $0x870] sm:$0xf0] }
 0x4eb   :  { %6354 = vmatpush.bf16.msra.mxu1 %v9743_v21  ;;  %v10457_v21 = vld [vmem:[#allocation3 + $0x170] sm:$0xf0] }
 0x4ec   :  { %6329 = vmatpush.bf16.msrb.mxu3 %v9267_v28  ;;  %v10625_v28 = vld [vmem:[#allocation3 + $0x6b0] sm:$0xf0]  ;;  %v8459_v29 = vor.u32 %v10457_v21, %v8458_v20  ;;  %v8794_v21 = vld [vmem:[#allocation3 + $0x3f8] sm:$0xf] }
 0x4ed   :  { %6342 = vmatpush.bf16.msra.mxu0 %v9491_v17  ;;  %v8935_v17 = vor.u32 %v10576_v6, %v8934_v5  ;;  %v9131_v35 = vor.u32 %v10625_v28, %v9130_v27  ;;  %v10485_v5 = vld [vmem:[#allocation3 + $0x250] sm:$0xf0]  ;;  %v9018_v6 = vld [vmem:[#allocation3 + $0x5b8] sm:$0xf]  ;;  %v8318_v27 = vld [vmem:[#allocation3 + $0x40] sm:$0xf] }
 0x4ee   :  { %6368 = vmatpush.bf16.msra.mxu2 %v9939_v31  ;;  %v8906_v31 = vld [vmem:[#allocation3 + $0x4d8] sm:$0xf]  ;;  %v10422_v28 = vld [vmem:[#allocation3 + $0x58] sm:$0xf0] }
 0x4ef   :  { %6355 = vmatpush.bf16.msra.mxu1 %v9715_v55  ;;  %v8430_v55 = vld [vmem:[#allocation3 + $0x120] sm:$0xf] }
 0x4f0   :  { %6330 = vmatpush.bf16.msrb.mxu3 %v9239_v41  ;;  %v10618_v41 = vld [vmem:[#allocation3 + $0x678] sm:$0xf0]  ;;  %v8431_v43 = vor.u32 %v10450_v36, %v8430_v55  ;;  %v8319_v55 = vor.u32 %v10422_v28, %v8318_v27 }
 0x4f1   :  { %6343 = vmatpush.bf16.msra.mxu0 %v9463_v42  ;;  %v8907_v42 = vor.u32 %v10569_v32, %v8906_v31  ;;  %v9103_v46 = vor.u32 %v10618_v41, %v9102_v39  ;;  %v8990_v31 = vld [vmem:[#allocation3 + $0x580] sm:$0xf]  ;;  %v10590_v32 = vld [vmem:[#allocation3 + $0x598] sm:$0xf0] }
 0x4f2   :  { %6369 = vmatpush.bf16.msra.mxu2 %v9911_v25  ;;  %v8878_v25 = vld [vmem:[#allocation3 + $0x4a0] sm:$0xf]  ;;  %v10534_v36 = vld [vmem:[#allocation3 + $0x3d8] sm:$0xf0]  ;;  %v8991_v41 = vor.u32 %v10590_v32, %v8990_v31  ;;  %v10667_v32 = vld [vmem:[#allocation3 + $0x800] sm:$0xf0] }
 0x4f3   :  { %6356 = vmatpush.bf16.msra.mxu1 %v9687_v47  ;;  %v8402_v47 = vld [vmem:[#allocation3 + $0xe8] sm:$0xf]  ;;  %v10786_v27 = vld [vmem:[#allocation3 + $0xbb8] sm:$0xf0] }
 0x4f4   :  { %6331 = vmatpush.bf16.msrb.mxu3 %v9211_v15  ;;  %v10611_v15 = vld [vmem:[#allocation3 + $0x640] sm:$0xf0]  ;;  %v8403_v44 = vor.u32 %v10443_v40, %v8402_v47  ;;  %v9606_v40 = vld [vmem:[#allocation3 + $0xa50] sm:$0xf] }
 0x4f5   :  { %6344 = vmatpush.bf16.msra.mxu0 %v9435_v1  ;;  %v8879_v1 = vor.u32 %v10562_v30, %v8878_v25  ;;  %v9075_v59 = vor.u32 %v10611_v15, %v9074_v52  ;;  %v8962_v25 = vld [vmem:[#allocation3 + $0x548] sm:$0xf]  ;;  %v10583_v30 = vld [vmem:[#allocation3 + $0x560] sm:$0xf0]  ;;  %v8291_v52 = vor.u32 %v10415_v38, %v8290_v37  ;;  %v10856_v15 = vld [vmem:[#allocation3 + $0xde8] sm:$0xf0] }
 0x4f6   :  { %6370 = vmatpush.bf16.msra.mxu2 %v9883_v53  ;;  %v8627_v53 = vor.u32 %v10499_v50, %v8626_v14  ;;  %v10744_v14 = vld [vmem:[#allocation3 + $0xa68] sm:$0xf0]  ;;  %v10054_v50 = vld [vmem:[#allocation3 + $0xdd0] sm:$0xf]  ;;  %v8963_v57 = vor.u32 %v10583_v30, %v8962_v25  ;;  %v10835_v37 = vld [vmem:[#allocation3 + $0xd40] sm:$0xf0] }
 0x4f7   :  { %6357 = vmatpush.bf16.msra.mxu1 %v9659_v45  ;;  %v8598_v45 = vld [vmem:[#allocation3 + $0x270] sm:$0xf]  ;;  %v9607_v61 = vor.u32 %v10744_v14, %v9606_v40  ;;  %v9746_v38 = vld [vmem:[#allocation3 + $0xb68] sm:$0xf]  ;;  %v10660_v30 = vld [vmem:[#allocation3 + $0x7c8] sm:$0xf0] }
 0x4f8   :  { %6332 = vmatpush.bf16.msrb.mxu3 %v9183_v2  ;;  %v10548_v2 = vld [vmem:[#allocation3 + $0x448] sm:$0xf0]  ;;  %v9942_v40 = vld [vmem:[#allocation3 + $0xcf0] sm:$0xf] }
 0x4f9   :  { %6345 = vmatpush.bf16.msra.mxu0 %v9407_v10  ;;  %v8599_v10 = vor.u32 %v10492_v62, %v8598_v45  ;;  %v9354_v45 = vld [vmem:[#allocation3 + $0x858] sm:$0xf]  ;;  %v10055_v62 = vor.u32 %v10856_v15, %v10054_v50  ;;  %v10828_v14 = vld [vmem:[#allocation3 + $0xd08] sm:$0xf0] }
 0x4fa   :  { %6371 = vmatpush.bf16.msra.mxu2 %v9855_v48  ;;  %v10429_v48 = vld [vmem:[#allocation3 + $0x90] sm:$0xf0]  ;;  %v10772_v15 = vld [vmem:[#allocation3 + $0xb48] sm:$0xf0] }
 0x4fb   :  { %6358 = vmatpush.bf16.msra.mxu1 %v9631_v24  ;;  %6333 = vmatmul.bf16.vlgmr.msrb.gmra.mxu3 %v11398_v12  ;;  %v8347_v20 = vor.u32 %v10429_v48, %v8346_v13  ;;  %v10793_v13 = vld [vmem:[#allocation3 + $0xbf0] sm:$0xf0]  ;;  %v9355_v48 = vor.u32 %v10681_v0, %v9354_v45  ;;  %v9690_v0 = vld [vmem:[#allocation3 + $0xaf8] sm:$0xf] }
 0x4fc   :  { %6377 = vmatpush.bf16.msra.mxu3 %v8487_v4  ;;  %6346 = vmatmul.bf16.vlgmr.msra.gmra.mxu0 %v11400_v51  ;;  %v8570_v4 = vld [vmem:[#allocation3 + $0x238] sm:$0xf] }
 0x4fd   :  { %6390 = vmatpush.bf16.msrb.mxu0 %v8711_v18  ;;  %6372 = vmatmul.bf16.vlgmr.msra.gmra.mxu2 %v11404_v33  ;;  %v10597_v18 = vld [vmem:[#allocation3 + $0x5d0] sm:$0xf0]  ;;  %v8571_v24 = vor.u32 %v10485_v5, %v8570_v4  ;;  %v9326_v5 = vld [vmem:[#allocation3 + $0x820] sm:$0xf] }
 0x4fe   :  { %6416 = vmatpush.bf16.msrb.mxu2 %v9159_v19  ;;  %6359 = vmatmul.bf16.vlgmr.msra.gmra.mxu1 %v11402_v63  ;;  %v8823_v19 = vor.u32 %v10548_v2, %v8822_v34  ;;  %v9019_v26 = vor.u32 %v10597_v18, %v9018_v6  ;;  %v10026_v2 = vld [vmem:[#allocation3 + $0xd98] sm:$0xf]  ;;  %v10674_v18 = vld [vmem:[#allocation3 + $0x838] sm:$0xf0] }
 0x4ff   :  { %6403 = vmatpush.bf16.msrb.mxu1 %v8935_v17  ;;  %v8542_v17 = vld [vmem:[#allocation3 + $0x200] sm:$0xf]  ;;  %v9327_v28 = vor.u32 %v10674_v18, %v9326_v5  ;;  %v10702_v5 = vld [vmem:[#allocation3 + $0x918] sm:$0xf0] }
 0x500   :  { %6378 = vmatpush.bf16.msra.mxu3 %v8459_v29  ;;  %v10478_v29 = vld [vmem:[#allocation3 + $0x218] sm:$0xf0]  ;;  %v9886_v18 = vld [vmem:[#allocation3 + $0xc80] sm:$0xf] }
 0x501   :  { %6391 = vmatpush.bf16.msrb.mxu0 %v8683_v58  ;;  %v8795_v58 = vor.u32 %v10541_v22, %v8794_v21  ;;  %v8543_v39 = vor.u32 %v10478_v29, %v8542_v17  ;;  %v9998_v22 = vld [vmem:[#allocation3 + $0xd60] sm:$0xf]  ;;  %v9298_v29 = vld [vmem:[#allocation3 + $0x7e8] sm:$0xf] }
 0x502   :  { %6417 = vmatpush.bf16.msrb.mxu2 %v9131_v35  ;;  %v8766_v35 = vld [vmem:[#allocation3 + $0x3c0] sm:$0xf] }
 0x503   :  { %6404 = vmatpush.bf16.msrb.mxu1 %v8907_v42  ;;  %v8514_v42 = vld [vmem:[#allocation3 + $0x1c8] sm:$0xf]  ;;  %v8767_v47 = vor.u32 %v10534_v36, %v8766_v35  ;;  %v10723_v35 = vld [vmem:[#allocation3 + $0x9c0] sm:$0xf0] }
 0x504   :  { %6379 = vmatpush.bf16.msra.mxu3 %v8431_v43  ;;  %v10471_v43 = vld [vmem:[#allocation3 + $0x1e0] sm:$0xf0]  ;;  %v9970_v36 = vld [vmem:[#allocation3 + $0xd28] sm:$0xf] }
 0x505   :  { %6392 = vmatpush.bf16.msrb.mxu0 %v8655_v11  ;;  %v9382_v11 = vld [vmem:[#allocation3 + $0x890] sm:$0xf]  ;;  %v8515_v54 = vor.u32 %v10471_v43, %v8514_v42  ;;  %v9971_v25 = vor.u32 %v10835_v37, %v9970_v36 }
 0x506   :  { %6418 = vmatpush.bf16.msrb.mxu2 %v9103_v46  ;;  %v10688_v46 = vld [vmem:[#allocation3 + $0x8a8] sm:$0xf0]  ;;  %v9270_v43 = vld [vmem:[#allocation3 + $0x7b0] sm:$0xf] }
 0x507   :  { %6405 = vmatpush.bf16.msrb.mxu1 %v8879_v1  ;;  %v8738_v1 = vld [vmem:[#allocation3 + $0x388] sm:$0xf]  ;;  %v9383_v60 = vor.u32 %v10688_v46, %v9382_v11  ;;  %v9494_v11 = vld [vmem:[#allocation3 + $0x970] sm:$0xf]  ;;  %v10716_v46 = vld [vmem:[#allocation3 + $0x988] sm:$0xf0] }
 0x508   :  { %6380 = vmatpush.bf16.msra.mxu3 %v8403_v44  ;;  %v10527_v44 = vld [vmem:[#allocation3 + $0x3a0] sm:$0xf0]  ;;  %v8488_v37 = vld [vmem:[#allocation3 + $0x1ac] sm:$0xf0] }
 0x509   :  { %6393 = vmatpush.bf16.msrb.mxu0 %v8627_v53  ;;  %v9830_v53 = vld [vmem:[#allocation3 + $0xc10] sm:$0xf]  ;;  %v8739_v16 = vor.u32 %v10527_v44, %v8738_v1  ;;  %v9271_v1 = vor.u32 %v10660_v30, %v9270_v43  ;;  %v9495_v44 = vor.u32 %v10716_v46, %v9494_v11  ;;  %v9634_v46 = vld [vmem:[#allocation3 + $0xa88] sm:$0xf] }
 0x50a   :  { %6419 = vmatpush.bf16.msrb.mxu2 %v9075_v59  ;;  %v10800_v59 = vld [vmem:[#allocation3 + $0xc28] sm:$0xf0]  ;;  %v9160_v43 = vld [vmem:[#allocation3 + $0x6ec] sm:$0xf0] }
 0x50b   :  { %6406 = vmatpush.bf16.msrb.mxu1 %v8851_v56  ;;  %v9578_v56 = vld [vmem:[#allocation3 + $0xa18] sm:$0xf]  ;;  %v9831_v34 = vor.u32 %v10800_v59, %v9830_v53  ;;  %v9943_v53 = vor.u32 %v10828_v14, %v9942_v40  ;;  %v10653_v59 = vld [vmem:[#allocation3 + $0x790] sm:$0xf0] }
 0x50c   :  { %6381 = vmatpush.bf16.msra.mxu3 %v8375_v23  ;;  %v10737_v23 = vld [vmem:[#allocation3 + $0xa30] sm:$0xf0] }
 0x50d   :  { %6394 = vmatpush.bf16.msrb.mxu0 %v8599_v10  ;;  %v10849_v10 = vld [vmem:[#allocation3 + $0xdb0] sm:$0xf0]  ;;  %v9579_v4 = vor.u32 %v10737_v23, %v9578_v56 }
 0x50e   :  { %6420 = vmatpush.bf16.msrb.mxu2 %v9047_v3  ;;  %v9802_v3 = vld [vmem:[#allocation3 + $0xbd8] sm:$0xf]  ;;  %v10027_v6 = vor.u32 %v10849_v10, %v10026_v2  ;;  %v10765_v56 = vld [vmem:[#allocation3 + $0xb10] sm:$0xf0]  ;;  %v9214_v10 = vld [vmem:[#allocation3 + $0x740] sm:$0xf] }
 0x50f   :  { %6407 = vmatpush.bf16.msrb.mxu1 %v8823_v19  ;;  %v9550_v19 = vld [vmem:[#allocation3 + $0x9e0] sm:$0xf]  ;;  %v9803_v21 = vor.u32 %v10793_v13, %v9802_v3 }
 0x510   :  { %6382 = vmatpush.bf16.msra.mxu3 %v8347_v20  ;;  %v10730_v20 = vld [vmem:[#allocation3 + $0x9f8] sm:$0xf0] }
 0x511   :  { %6395 = vmatpush.bf16.msrb.mxu0 %v8571_v24  ;;  %v10842_v24 = vld [vmem:[#allocation3 + $0xd78] sm:$0xf0]  ;;  %v9551_v17 = vor.u32 %v10730_v20, %v9550_v19 }
 0x512   :  { %6421 = vmatpush.bf16.msrb.mxu2 %v9019_v26  ;;  %v9774_v26 = vld [vmem:[#allocation3 + $0xba0] sm:$0xf]  ;;  %v9999_v31 = vor.u32 %v10842_v24, %v9998_v22  ;;  %v10814_v19 = vld [vmem:[#allocation3 + $0xc98] sm:$0xf0]  ;;  %v9186_v24 = vld [vmem:[#allocation3 + $0x708] sm:$0xf] }
 0x513   :  { %6408 = vmatpush.bf16.msrb.mxu1 %v8795_v58  ;;  %v9522_v58 = vld [vmem:[#allocation3 + $0x9a8] sm:$0xf]  ;;  %v10758_v22 = vld [vmem:[#allocation3 + $0xad8] sm:$0xf0] }
 0x514   :  { %6383 = vmatpush.bf16.msra.mxu3 %v8319_v55  ;;  %v9775_v55 = vor.u32 %v10786_v27, %v9774_v26  ;;  %v9523_v42 = vor.u32 %v10723_v35, %v9522_v58  ;;  %v9858_v58 = vld [vmem:[#allocation3 + $0xc48] sm:$0xf]  ;;  %v10807_v35 = vld [vmem:[#allocation3 + $0xc60] sm:$0xf0] }
 0x515   :  { %6396 = vmatpush.bf16.msrb.mxu0 %v8543_v39  ;;  %v10779_v39 = vld [vmem:[#allocation3 + $0xb80] sm:$0xf0]  ;;  %v9859_v14 = vor.u32 %v10807_v35, %v9858_v58  ;;  %v8628_v58 = vld [vmem:[#allocation3 + $0x2c4] sm:$0xf0]  ;;  %v10608_v35 = vld [vmem:[#allocation3 + $0x62c] sm:$0xf] }
 0x516   :  { %6422 = vmatpush.bf16.msrb.mxu2 %v8991_v41  ;;  %v9299_v41 = vor.u32 %v10667_v32, %v9298_v29  ;;  %v10695_v29 = vld [vmem:[#allocation3 + $0x8e0] sm:$0xf0]  ;;  %v9887_v32 = vor.u32 %v10814_v19, %v9886_v18  ;;  %v8656_v19 = vld [vmem:[#allocation3 + $0x2fc] sm:$0xf0] }
 0x517   :  { %6409 = vmatpush.bf16.msrb.mxu1 %v8767_v47  ;;  %v9747_v47 = vor.u32 %v10779_v39, %v9746_v38  ;;  %v10517_v38 = vld [vmem:[#allocation3 + $0x354] sm:$0xf]  ;;  %v11434_v39 = vld [vmem:[#allocation7 + $0x1e] sm:$0xff] }
 0x518   :  { %6384 = vmatpush.bf16.msra.mxu3 %v8291_v52  ;;  %v9718_v52 = vld [vmem:[#allocation3 + $0xb30] sm:$0xf]  ;;  %v10503_v18 = vld [vmem:[#allocation3 + $0x2e4] sm:$0xf] }
 0x519   :  { %6397 = vmatpush.bf16.msrb.mxu0 %v8515_v54  ;;  %v11426_v50 = vpop.f32.mrf.mxu0  ;;  %v9242_v54 = vld [vmem:[#allocation3 + $0x778] sm:$0xf]  ;;  %v9719_v45 = vor.u32 %v10772_v15, %v9718_v52  ;;  %v10573_v15 = vld [vmem:[#allocation3 + $0x514] sm:$0xf] }
 0x51a   :  { %6423 = vmatpush.bf16.msrb.mxu2 %v8963_v57 }
 0x51b   :  { %6410 = vmatpush.bf16.msrb.mxu1 %v8739_v16  ;;  %6385 = vmatmul.bf16.vlgmr.msra.gmra.mxu3 %v11390_v7  ;;  %v11428_v57 = vpop.f32.mrf.mxu1  ;;  %v10821_v16 = vld [vmem:[#allocation3 + $0xcd0] sm:$0xf0] }
 0x51c   :  { %6429 = vmatpush.bf16.msrb.mxu3 %v9383_v60  ;;  %6398 = vmatmul.bf16.vlgmr.msrb.gmra.mxu0 %v11392_v8  ;;  %v9466_v60 = vld [vmem:[#allocation3 + $0x938] sm:$0xf] }
 0x51d   :  { %6442 = vmatpush.bf16.msra.mxu0 %v9607_v61  ;;  %6424 = vmatmul.bf16.vlgmr.msrb.gmra.mxu2 %v11396_v49  ;;  %v10709_v61 = vld [vmem:[#allocation3 + $0x950] sm:$0xf0] }
 0x51e   :  { %6468 = vmatpush.bf16.msra.mxu2 %v10055_v62  ;;  %6411 = vmatmul.bf16.vlgmr.msrb.gmra.mxu1 %v11394_v9  ;;  %v9914_v62 = vld [vmem:[#allocation3 + $0xcb8] sm:$0xf]  ;;  %v11430_v23 = vpop.f32.mrf.mxu3  ;;  %v9467_v2 = vor.u32 %v10709_v61, %v9466_v60  ;;  %v10510_v61 = vld [vmem:[#allocation3 + $0x31c] sm:$0xf] }
 0x51f   :  { %6455 = vmatpush.bf16.msra.mxu1 %v9831_v34  ;;  %v9243_v34 = vor.u32 %v10653_v59, %v9242_v54  ;;  %v9915_v13 = vor.u32 %v10821_v16, %v9914_v62  ;;  %v10454_v59 = vld [vmem:[#allocation3 + $0x15c] sm:$0xf]  ;;  %v8460_v60 = vld [vmem:[#allocation3 + $0x174] sm:$0xf0] }
 0x520   :  { %6430 = vmatpush.bf16.msrb.mxu3 %v9355_v48  ;;  %v11432_v3 = vpop.f32.mrf.mxu2  ;;  %v10646_v48 = vld [vmem:[#allocation3 + $0x758] sm:$0xf0]  ;;  %v8684_v62 = vld [vmem:[#allocation3 + $0x334] sm:$0xf0] }
 0x521   :  { %6443 = vmatpush.bf16.msra.mxu0 %v9579_v4  ;;  %v9438_v4 = vld [vmem:[#allocation3 + $0x900] sm:$0xf]  ;;  %v6193_v20 = vpop.f32.mrf.mxu0  ;;  %v9215_v26 = vor.u32 %v10646_v48, %v9214_v10  ;;  %v10622_v16 = vld [vmem:[#allocation3 + $0x69c] sm:$0xf]  ;;  %v8908_v10 = vld [vmem:[#allocation3 + $0x4f4] sm:$0xf0]  ;;  %v8687_v48 = vor.u32 %v10510_v61, %v8684_v62 }
 0x522   :  { %6469 = vmatpush.bf16.msra.mxu2 %v10027_v6  ;;  %v9691_v6 = vor.u32 %v10765_v56, %v9690_v0  ;;  %v9439_v27 = vor.u32 %v10702_v5, %v9438_v4  ;;  %v9132_v0 = vld [vmem:[#allocation3 + $0x6b4] sm:$0xf0]  ;;  %v10447_v5 = vld [vmem:[#allocation3 + $0x124] sm:$0xf]  ;;  %v10482_v61 = vld [vmem:[#allocation3 + $0x23c] sm:$0xf] }
 0x523   :  { %6456 = vmatpush.bf16.msra.mxu1 %v9803_v21  ;;  %v9662_v21 = vld [vmem:[#allocation3 + $0xac0] sm:$0xf]  ;;  %v9135_v4 = vor.u32 %v10622_v16, %v9132_v0  ;;  %v10615_v20 = vld [vmem:[#allocation3 + $0x664] sm:$0xf]  ;;  %v8572_v62 = vld [vmem:[#allocation3 + $0x254] sm:$0xf0] }
 0x524   :  { %6431 = vmatpush.bf16.msrb.mxu3 %v9327_v28  ;;  %v10639_v28 = vld [vmem:[#allocation3 + $0x720] sm:$0xf0]  ;;  %v9663_v36 = vor.u32 %v10758_v22, %v9662_v21  ;;  %v9104_v21 = vld [vmem:[#allocation3 + $0x67c] sm:$0xf0]  ;;  %v10594_v16 = vld [vmem:[#allocation3 + $0x5bc] sm:$0xf] }
 0x525   :  { %6444 = vmatpush.bf16.msra.mxu0 %v9551_v17  ;;  %v9410_v17 = vld [vmem:[#allocation3 + $0x8c8] sm:$0xf]  ;;  %v9187_v30 = vor.u32 %v10639_v28, %v9186_v24  ;;  %v8659_v28 = vor.u32 %v10503_v18, %v8656_v19  ;;  %v9020_v0 = vld [vmem:[#allocation3 + $0x5d4] sm:$0xf0]  ;;  %v8320_v18 = vld [vmem:[#allocation3 + $0x5c] sm:$0xf0] }
 0x526   :  { %6470 = vmatpush.bf16.msra.mxu2 %v9999_v31  ;;  %v6206_v31 = vpop.f32.mrf.mxu1  ;;  %v9411_v11 = vor.u32 %v10695_v29, %v9410_v17  ;;  %v9107_v17 = vor.u32 %v10615_v20, %v9104_v21  ;;  %v10440_v29 = vld [vmem:[#allocation3 + $0xec] sm:$0xf]  ;;  %v10475_v19 = vld [vmem:[#allocation3 + $0x204] sm:$0xf]  ;;  %v8544_v20 = vld [vmem:[#allocation3 + $0x21c] sm:$0xf0] }
 0x527   :  { %6457 = vmatpush.bf16.msra.mxu1 %v9775_v55  ;;  %v10461_v55 = vld [vmem:[#allocation3 + $0x194] sm:$0xf]  ;;  %v8404_v31 = vld [vmem:[#allocation3 + $0x104] sm:$0xf0]  ;;  %v10587_v21 = vld [vmem:[#allocation3 + $0x584] sm:$0xf] }
 0x528   :  { %6432 = vmatpush.bf16.msrb.mxu3 %v9299_v41  ;;  %v8712_v41 = vld [vmem:[#allocation3 + $0x36c] sm:$0xf0]  ;;  %v6219_v40 = vpop.f32.mrf.mxu2  ;;  %v8491_v52 = vor.u32 %v10461_v55, %v8488_v37  ;;  %v9076_v55 = vld [vmem:[#allocation3 + $0x644] sm:$0xf0]  ;;  %v8407_v37 = vor.u32 %v10440_v29, %v8404_v31  ;;  %v10412_v31 = vld [vmem:[#allocation3 + $0xc] sm:$0xf] }
 0x529   :  { %6445 = vmatpush.bf16.msra.mxu0 %v9523_v42  ;;  %v10629_v42 = vld [vmem:[#allocation3 + $0x6d4] sm:$0xf]  ;;  %v8715_v54 = vor.u32 %v10517_v38, %v8712_v41  ;;  %v10552_v38 = vld [vmem:[#allocation3 + $0x46c] sm:$0xf]  ;;  %v8852_v41 = vld [vmem:[#allocation3 + $0x484] sm:$0xf0] }
 0x52a   :  { %6471 = vmatpush.bf16.msra.mxu2 %v9971_v25  ;;  %v6180_v25 = vpop.f32.mrf.mxu3  ;;  %v9048_v40 = vld [vmem:[#allocation3 + $0x60c] sm:$0xf0] }
 0x52b   :  { %6458 = vmatpush.bf16.msra.mxu1 %v9747_v47  ;;  %v10751_v47 = vld [vmem:[#allocation3 + $0xaa0] sm:$0xf0]  ;;  %v10433_v25 = vld [vmem:[#allocation3 + $0xb4] sm:$0xf] }
 0x52c   :  { %6433 = vmatpush.bf16.msrb.mxu3 %v9271_v1  ;;  %v8936_v1 = vld [vmem:[#allocation3 + $0x52c] sm:$0xf0] }
 0x52d   :  { %6446 = vmatpush.bf16.msra.mxu0 %v9495_v44  ;;  %v3851_v44 = vperm.slane %v11434_v39, 0  ;;  %v8939_v56 = vor.u32 %v10573_v15, %v8936_v1  ;;  %v10545_v1 = vld [vmem:[#allocation3 + $0x434] sm:$0xf] }
 0x52e   :  { %6472 = vmatpush.bf16.msra.mxu2 %v9943_v53  ;;  %v9163_v53 = vor.u32 %v10629_v42, %v9160_v43  ;;  %v9079_v43 = vor.u32 %v10608_v35, %v9076_v55  ;;  %v10468_v55 = vld [vmem:[#allocation3 + $0x1cc] sm:$0xf] }
 0x52f   :  { %6459 = vmatpush.bf16.msra.mxu1 %v9719_v45  ;;  %v9635_v45 = vor.u32 %v10751_v47, %v9634_v46  ;;  %v8600_v46 = vld [vmem:[#allocation3 + $0x28c] sm:$0xf0]  ;;  %v10601_v47 = vld [vmem:[#allocation3 + $0x5f4] sm:$0xf] }
 0x530   :  { %6434 = vmatpush.bf16.msrb.mxu3 %v9243_v34  ;;  %v8463_v34 = vor.u32 %v10454_v59, %v8460_v60  ;;  %v10426_v59 = vld [vmem:[#allocation3 + $0x7c] sm:$0xf]  ;;  %v8348_v60 = vld [vmem:[#allocation3 + $0x94] sm:$0xf0] }
 0x531   :  { %6447 = vmatpush.bf16.msra.mxu0 %v9467_v2  ;;  %v10566_v2 = vld [vmem:[#allocation3 + $0x4dc] sm:$0xf] }
 0x532   :  { %6473 = vmatpush.bf16.msra.mxu2 %v9915_v13  ;;  %v6179_v13 = vadd.f32 %v11430_v23, %v3851_v44  ;;  %v8911_v22 = vor.u32 %v10566_v2, %v8908_v10  ;;  %v8824_v44 = vld [vmem:[#allocation3 + $0x44c] sm:$0xf0]  ;;  %v8351_v2 = vor.u32 %v10426_v59, %v8348_v60  ;;  %v8796_v10 = vld [vmem:[#allocation3 + $0x414] sm:$0xf0] }
 0x533   :  { %6460 = vmatpush.bf16.msra.mxu1 %v9691_v6  ;;  %v8432_v6 = vld [vmem:[#allocation3 + $0x13c] sm:$0xf0] }
 0x534   :  { %6435 = vmatpush.bf16.msrb.mxu3 %v9215_v26  ;;  %v8435_v24 = vor.u32 %v10447_v5, %v8432_v6  ;;  %v6192_v23 = vadd.f32 %v11426_v50, %v6179_v13  ;;  %v10559_v26 = vld [vmem:[#allocation3 + $0x4a4] sm:$0xf]  ;;  %v9023_v5 = vor.u32 %v10594_v16, %v9020_v0  ;;  %v9356_v16 = vld [vmem:[#allocation3 + $0x874] sm:$0xf0]  ;;  %v10734_v0 = vld [vmem:[#allocation3 + $0xa1c] sm:$0xf] }
 0x535   :  { %6448 = vmatpush.bf16.msra.mxu0 %v9439_v27  ;;  %v8880_v27 = vld [vmem:[#allocation3 + $0x4bc] sm:$0xf0]  ;;  %v10419_v6 = vld [vmem:[#allocation3 + $0x44] sm:$0xf] }
 0x536   :  { %6474 = vmatpush.bf16.msra.mxu2 %v9887_v32  ;;  %v10496_v32 = vld [vmem:[#allocation3 + $0x2ac] sm:$0xf]  ;;  %v6205_v50 = vadd.f32 %v11428_v57, %v6192_v23 }
 0x537   :  { %6461 = vmatpush.bf16.msra.mxu1 %v9663_v36  ;;  %v8883_v36 = vor.u32 %v10559_v26, %v8880_v27  ;;  %v8631_v42 = vor.u32 %v10496_v32, %v8628_v58  ;;  %v10531_v26 = vld [vmem:[#allocation3 + $0x3c4] sm:$0xf]  ;;  %v8292_v32 = vld [vmem:[#allocation3 + $0x24] sm:$0xf0]  ;;  %v8547_v58 = vor.u32 %v10475_v19, %v8544_v20  ;;  %v9328_v19 = vld [vmem:[#allocation3 + $0x83c] sm:$0xf0] }
 0x538   :  { %6436 = vmatpush.bf16.msrb.mxu3 %v9187_v30  ;;  %v8376_v30 = vld [vmem:[#allocation3 + $0xcc] sm:$0xf0]  ;;  %v6218_v15 = vadd.f32 %v11432_v3, %v6205_v50  ;;  %v10538_v3 = vld [vmem:[#allocation3 + $0x3fc] sm:$0xf]  ;;  %v10580_v50 = vld [vmem:[#allocation3 + $0x54c] sm:$0xf] }
 0x539   :  { %6449 = vmatpush.bf16.msra.mxu0 %v9411_v11  ;;  %v10489_v11 = vld [vmem:[#allocation3 + $0x274] sm:$0xf]  ;;  %v8379_v57 = vor.u32 %v10433_v25, %v8376_v30  ;;  %v8799_v23 = vor.u32 %v10538_v3, %v8796_v10  ;;  %v10028_v3 = vld [vmem:[#allocation3 + $0xdb4] sm:$0xf0]  ;;  %v10790_v10 = vld [vmem:[#allocation3 + $0xbdc] sm:$0xf] }
 0x53a   :  { %6475 = vmatpush.bf16.msra.mxu2 %v9859_v14  ;;  %v8855_v14 = vor.u32 %v10552_v38, %v8852_v41  ;;  %v8964_v38 = vld [vmem:[#allocation3 + $0x564] sm:$0xf0]  ;;  %v10741_v30 = vld [vmem:[#allocation3 + $0xa54] sm:$0xf]  ;;  %v10727_v20 = vld [vmem:[#allocation3 + $0x9e4] sm:$0xf] }
 0x53b   :  { %6462 = vmatpush.bf16.msra.mxu1 %v9635_v45  ;;  %6437 = vmatmul.bf16.vlgmr.msrb.gmra.mxu3 %v11398_v12  ;;  %v6256_v45 = vpop.f32.mrf.mxu1 }
 0x53c   :  { %6481 = vmatpush.bf16.msra.mxu3 %v8491_v52  ;;  %6450 = vmatmul.bf16.vlgmr.msra.gmra.mxu0 %v11400_v51  ;;  %v6243_v52 = vpop.f32.mrf.mxu0 }
 0x53d   :  { %6494 = vmatpush.bf16.msrb.mxu0 %v8715_v54  ;;  %6476 = vmatmul.bf16.vlgmr.msra.gmra.mxu2 %v11404_v33  ;;  %v8603_v54 = vor.u32 %v10489_v11, %v8600_v46  ;;  %v9608_v11 = vld [vmem:[#allocation3 + $0xa6c] sm:$0xf0]  ;;  %v10853_v46 = vld [vmem:[#allocation3 + $0xdd4] sm:$0xf] }
 0x53e   :  { %6520 = vmatpush.bf16.msrb.mxu2 %v9163_v53  ;;  %6463 = vmatmul.bf16.vlgmr.msra.gmra.mxu1 %v11402_v63  ;;  %v9051_v53 = vor.u32 %v10601_v47, %v9048_v40  ;;  %v8295_v40 = vor.u32 %v10412_v31, %v8292_v32  ;;  %v9611_v60 = vor.u32 %v10741_v30, %v9608_v11  ;;  %v9300_v32 = vld [vmem:[#allocation3 + $0x804] sm:$0xf0]  ;;  %v9272_v30 = vld [vmem:[#allocation3 + $0x7cc] sm:$0xf0]  ;;  %v10713_v11 = vld [vmem:[#allocation3 + $0x974] sm:$0xf] }
 0x53f   :  { %6507 = vmatpush.bf16.msrb.mxu1 %v8939_v56  ;;  %v8827_v56 = vor.u32 %v10545_v1, %v8824_v44  ;;  %v8967_v44 = vor.u32 %v10580_v50, %v8964_v38  ;;  %v9972_v50 = vld [vmem:[#allocation3 + $0xd44] sm:$0xf0] }
 0x540   :  { %6482 = vmatpush.bf16.msra.mxu3 %v8463_v34  ;;  %v6230_v34 = vpop.f32.mrf.mxu3  ;;  %v9748_v38 = vld [vmem:[#allocation3 + $0xb84] sm:$0xf0] }
 0x541   :  { %6495 = vmatpush.bf16.msrb.mxu0 %v8687_v48  ;;  %v6231_v13 = vadd.f32 %v6230_v34, %v6218_v15  ;;  %v6269_v48 = vpop.f32.mrf.mxu2  ;;  %v8740_v15 = vld [vmem:[#allocation3 + $0x3a4] sm:$0xf0] }
 0x542   :  { %6521 = vmatpush.bf16.msrb.mxu2 %v9135_v4  ;;  %v8575_v4 = vor.u32 %v10482_v61, %v8572_v62  ;;  %v10678_v61 = vld [vmem:[#allocation3 + $0x85c] sm:$0xf] }
 0x543   :  { %6508 = vmatpush.bf16.msrb.mxu1 %v8911_v22  ;;  %v8992_v22 = vld [vmem:[#allocation3 + $0x59c] sm:$0xf0] }
 0x544   :  { %6483 = vmatpush.bf16.msra.mxu3 %v8435_v24  ;;  %v6244_v24 = vadd.f32 %v6243_v52, %v6231_v13  ;;  %v6245_v27 = vpop.f32.mrf.mxu0  ;;  %v8995_v35 = vor.u32 %v10587_v21, %v8992_v22  ;;  %v10524_v52 = vld [vmem:[#allocation3 + $0x38c] sm:$0xf]  ;;  %v9804_v13 = vld [vmem:[#allocation3 + $0xbf4] sm:$0xf0]  ;;  %v9552_v21 = vld [vmem:[#allocation3 + $0x9fc] sm:$0xf0] }
 0x545   :  { %6496 = vmatpush.bf16.msrb.mxu0 %v8659_v28  ;;  %v8323_v28 = vor.u32 %v10419_v6, %v8320_v18  ;;  %v8743_v62 = vor.u32 %v10524_v52, %v8740_v15  ;;  %v10671_v6 = vld [vmem:[#allocation3 + $0x824] sm:$0xf]  ;;  %v9807_v22 = vor.u32 %v10790_v10, %v9804_v13  ;;  %v9776_v27 = vld [vmem:[#allocation3 + $0xbbc] sm:$0xf0]  ;;  %v10769_v15 = vld [vmem:[#allocation3 + $0xb34] sm:$0xf] }
 0x546   :  { %6522 = vmatpush.bf16.msrb.mxu2 %v9107_v17  ;;  %v8768_v17 = vld [vmem:[#allocation3 + $0x3dc] sm:$0xf0]  ;;  %v6257_v29 = vadd.f32 %v6256_v45, %v6244_v24  ;;  %v10839_v24 = vld [vmem:[#allocation3 + $0xd64] sm:$0xf] }
 0x547   :  { %6509 = vmatpush.bf16.msrb.mxu1 %v8883_v36  ;;  %v8516_v36 = vld [vmem:[#allocation3 + $0x1e4] sm:$0xf0]  ;;  %v8771_v25 = vor.u32 %v10531_v26, %v8768_v17  ;;  %v10783_v26 = vld [vmem:[#allocation3 + $0xba4] sm:$0xf]  ;;  %v9555_v17 = vor.u32 %v10727_v20, %v9552_v21  ;;  %v9888_v21 = vld [vmem:[#allocation3 + $0xc9c] sm:$0xf0] }
 0x548   :  { %6484 = vmatpush.bf16.msra.mxu3 %v8407_v37  ;;  %v6258_v37 = vpop.f32.mrf.mxu1  ;;  %v6270_v41 = vadd.f32 %v6269_v48, %v6257_v29  ;;  %v6232_v47 = vpop.f32.mrf.mxu3  ;;  %v8519_v1 = vor.u32 %v10468_v55, %v8516_v36  ;;  %v10664_v29 = vld [vmem:[#allocation3 + $0x7ec] sm:$0xf]  ;;  %v9779_v55 = vor.u32 %v10783_v26, %v9776_v27  ;;  %v10643_v13 = vld [vmem:[#allocation3 + $0x744] sm:$0xf] }
 0x549   :  { %6497 = vmatpush.bf16.msrb.mxu0 %v8631_v42  ;;  %v10685_v42 = vld [vmem:[#allocation3 + $0x894] sm:$0xf]  ;;  %v10832_v36 = vld [vmem:[#allocation3 + $0xd2c] sm:$0xf]  ;;  %v10811_v20 = vld [vmem:[#allocation3 + $0xc84] sm:$0xf] }
 0x54a   :  { %6523 = vmatpush.bf16.msrb.mxu2 %v9079_v43  ;;  %v9384_v43 = vld [vmem:[#allocation3 + $0x8ac] sm:$0xf0]  ;;  %10906 = vtanh.f32 %v6270_v41  ;;  %v10776_v37 = vld [vmem:[#allocation3 + $0xb6c] sm:$0xf]  ;;  %v9303_v41 = vor.u32 %v10664_v29, %v9300_v32  ;;  %v9891_v32 = vor.u32 %v10811_v20, %v9888_v21  ;;  %v10507_v20 = vld [vmem:[#allocation3 + $0x300] sm:$0xf0] }
 0x54b   :  { %6510 = vmatpush.bf16.msrb.mxu1 %v8855_v14  ;;  %v10056_v14 = vld [vmem:[#allocation3 + $0xdec] sm:$0xf0]  ;;  %v9387_v59 = vor.u32 %v10685_v42, %v9384_v43  ;;  %v10657_v43 = vld [vmem:[#allocation3 + $0x7b4] sm:$0xf]  ;;  %v9751_v47 = vor.u32 %v10776_v37, %v9748_v38  ;;  %v10692_v29 = vld [vmem:[#allocation3 + $0x8cc] sm:$0xf] }
 0x54c   :  { %6485 = vmatpush.bf16.msra.mxu3 %v8379_v57  ;;  %v6271_v57 = vpop.f32.mrf.mxu2  ;;  %v10059_v45 = vor.u32 %v10853_v46, %v10056_v14  ;;  %v9496_v46 = vld [vmem:[#allocation3 + $0x98c] sm:$0xf0]  ;;  %v10465_v37 = vld [vmem:[#allocation3 + $0x1b0] sm:$0xf0]  ;;  %v8718_v38 = vld [vmem:[#allocation3 + $0x358] sm:$0xf] }
 0x54d   :  { %6498 = vmatpush.bf16.msrb.mxu0 %v8603_v54  ;;  %v10797_v54 = vld [vmem:[#allocation3 + $0xc14] sm:$0xf]  ;;  %v9944_v14 = vld [vmem:[#allocation3 + $0xd0c] sm:$0xf0]  ;;  %v9110_v21 = vld [vmem:[#allocation3 + $0x668] sm:$0xf] }
 0x54e   :  { %6524 = vmatpush.bf16.msrb.mxu2 %v9051_v53  ;;  %v9832_v53 = vld [vmem:[#allocation3 + $0xc2c] sm:$0xf0] }
 0x54f   :  { %6511 = vmatpush.bf16.msrb.mxu1 %v8827_v56  ;;  %v9580_v56 = vld [vmem:[#allocation3 + $0xa34] sm:$0xf0]  ;;  %v9835_v34 = vor.u32 %v10797_v54, %v9832_v53  ;;  %v9720_v57 = vld [vmem:[#allocation3 + $0xb4c] sm:$0xf0]  ;;  %v10650_v54 = vld [vmem:[#allocation3 + $0x77c] sm:$0xf] }
 0x550   :  { %6486 = vmatpush.bf16.msra.mxu3 %v8351_v2  ;;  %v10846_v2 = vld [vmem:[#allocation3 + $0xd9c] sm:$0xf]  ;;  %v10907_v48 = vpop.eup %10906 }
 0x551   :  { %6499 = vmatpush.bf16.msrb.mxu0 %v8575_v4  ;;  %v9359_v4 = vor.u32 %v10678_v61, %v9356_v16  ;;  %6904 = vst [vmem:[%s11557_s7] sm:$0xff] %v10907_v48  ;;  %v10031_v18 = vor.u32 %v10846_v2, %v10028_v3  ;;  %v10706_v61 = vld [vmem:[#allocation3 + $0x93c] sm:$0xf] }
 0x552   :  { %6525 = vmatpush.bf16.msrb.mxu2 %v9023_v5  ;;  %v9583_v5 = vor.u32 %v10734_v0, %v9580_v56  ;;  %v10818_v16 = vld [vmem:[#allocation3 + $0xcbc] sm:$0xf]  ;;  %v9916_v0 = vld [vmem:[#allocation3 + $0xcd4] sm:$0xf0] }
 0x553   :  { %6512 = vmatpush.bf16.msrb.mxu1 %v8799_v23  ;;  %v10000_v23 = vld [vmem:[#allocation3 + $0xd7c] sm:$0xf0]  ;;  %v10762_v56 = vld [vmem:[#allocation3 + $0xafc] sm:$0xf] }
 0x554   :  { %6487 = vmatpush.bf16.msra.mxu3 %v8323_v28  ;;  %v9331_v28 = vor.u32 %v10671_v6, %v9328_v19  ;;  %v10003_v31 = vor.u32 %v10839_v24, %v10000_v23  ;;  %v10699_v6 = vld [vmem:[#allocation3 + $0x904] sm:$0xf]  ;;  %v9664_v23 = vld [vmem:[#allocation3 + $0xadc] sm:$0xf0] }
 0x555   :  { %6500 = vmatpush.bf16.msrb.mxu0 %v8547_v58  ;;  %v10720_v58 = vld [vmem:[#allocation3 + $0x9ac] sm:$0xf]  ;;  %v10755_v24 = vld [vmem:[#allocation3 + $0xac4] sm:$0xf] }
 0x556   :  { %6526 = vmatpush.bf16.msrb.mxu2 %v8995_v35  ;;  %v9524_v35 = vld [vmem:[#allocation3 + $0x9c4] sm:$0xf0] }
 0x557   :  { %6513 = vmatpush.bf16.msrb.mxu1 %v8771_v25  ;;  %v9527_v42 = vor.u32 %v10720_v58, %v9524_v35  ;;  %v9975_v25 = vor.u32 %v10832_v36, %v9972_v50  ;;  %v9412_v58 = vld [vmem:[#allocation3 + $0x8e4] sm:$0xf0]  ;;  %v10804_v35 = vld [vmem:[#allocation3 + $0xc4c] sm:$0xf]  ;;  %v9667_v36 = vor.u32 %v10755_v24, %v9664_v23  ;;  %v8494_v50 = vld [vmem:[#allocation3 + $0x198] sm:$0xf] }
 0x558   :  { %6488 = vmatpush.bf16.msra.mxu3 %v8295_v40  ;;  %v10825_v40 = vld [vmem:[#allocation3 + $0xcf4] sm:$0xf] }
 0x559   :  { %6501 = vmatpush.bf16.msrb.mxu0 %v8519_v1  ;;  %v11452_v52 = vpop.f32.mrf.mxu0  ;;  %v9275_v1 = vor.u32 %v10657_v43, %v9272_v30  ;;  %v10633_v43 = vld [vmem:[#allocation3 + $0x6f0] sm:$0xf0] }
 0x55a   :  { %6527 = vmatpush.bf16.msrb.mxu2 %v8967_v44  ;;  %v9499_v44 = vor.u32 %v10713_v11, %v9496_v46  ;;  %v9415_v11 = vor.u32 %v10692_v29, %v9412_v58  ;;  %v10748_v46 = vld [vmem:[#allocation3 + $0xa8c] sm:$0xf]  ;;  %v8410_v29 = vld [vmem:[#allocation3 + $0xf0] sm:$0xf] }
 0x55b   :  { %6514 = vmatpush.bf16.msrb.mxu1 %v8743_v62  ;;  %6489 = vmatmul.bf16.vlgmr.msra.gmra.mxu3 %v11390_v7  ;;  %v11454_v53 = vpop.f32.mrf.mxu1  ;;  %v9723_v62 = vor.u32 %v10769_v15, %v9720_v57  ;;  %v8495_v15 = vor.u32 %v10465_v37, %v8494_v50  ;;  %v8942_v57 = vld [vmem:[#allocation3 + $0x518] sm:$0xf]  ;;  %v10500_v58 = vld [vmem:[#allocation3 + $0x2c8] sm:$0xf0]  ;;  %v8858_v37 = vld [vmem:[#allocation3 + $0x470] sm:$0xf] }
 0x55c   :  { %6533 = vmatpush.bf16.msrb.mxu3 %v9387_v59  ;;  %6502 = vmatmul.bf16.vlgmr.msrb.gmra.mxu0 %v11392_v8  ;;  %v9947_v59 = vor.u32 %v10825_v40, %v9944_v14 }
 0x55d   :  { %6546 = vmatpush.bf16.msra.mxu0 %v9611_v60  ;;  %6528 = vmatmul.bf16.vlgmr.msrb.gmra.mxu2 %v11396_v49  ;;  %v9244_v60 = vld [vmem:[#allocation3 + $0x794] sm:$0xf0] }
 0x55e   :  { %6572 = vmatpush.bf16.msra.mxu2 %v10059_v45  ;;  %6515 = vmatmul.bf16.vlgmr.msrb.gmra.mxu1 %v11394_v9  ;;  %v9468_v45 = vld [vmem:[#allocation3 + $0x954] sm:$0xf0]  ;;  %v11456_v2 = vpop.f32.mrf.mxu3  ;;  %v9247_v3 = vor.u32 %v10650_v54, %v9244_v60  ;;  %v8466_v60 = vld [vmem:[#allocation3 + $0x160] sm:$0xf] }
 0x55f   :  { %6559 = vmatpush.bf16.msra.mxu1 %v9835_v34  ;;  %v9692_v34 = vld [vmem:[#allocation3 + $0xb14] sm:$0xf0]  ;;  %v9471_v10 = vor.u32 %v10706_v61, %v9468_v45  ;;  %v10458_v61 = vld [vmem:[#allocation3 + $0x178] sm:$0xf0]  ;;  %v8690_v45 = vld [vmem:[#allocation3 + $0x320] sm:$0xf] }
 0x560   :  { %6534 = vmatpush.bf16.msrb.mxu3 %v9359_v4  ;;  %v11458_v48 = vpop.f32.mrf.mxu2  ;;  %v9919_v4 = vor.u32 %v10818_v16, %v9916_v0  ;;  %v9695_v19 = vor.u32 %v10762_v56, %v9692_v34  ;;  %v10514_v16 = vld [vmem:[#allocation3 + $0x338] sm:$0xf0]  ;;  %v9138_v0 = vld [vmem:[#allocation3 + $0x6a0] sm:$0xf] }
 0x561   :  { %6547 = vmatpush.bf16.msra.mxu0 %v9583_v5  ;;  %v9216_v5 = vld [vmem:[#allocation3 + $0x75c] sm:$0xf0]  ;;  %v10626_v56 = vld [vmem:[#allocation3 + $0x6b8] sm:$0xf0] }
 0x562   :  { %6573 = vmatpush.bf16.msra.mxu2 %v10031_v18  ;;  %v9440_v18 = vld [vmem:[#allocation3 + $0x91c] sm:$0xf0]  ;;  %v9219_v26 = vor.u32 %v10643_v13, %v9216_v5  ;;  %v10570_v13 = vld [vmem:[#allocation3 + $0x4f8] sm:$0xf0]  ;;  %v9139_v5 = vor.u32 %v10626_v56, %v9138_v0 }
 0x563   :  { %6560 = vmatpush.bf16.msra.mxu1 %v9807_v22  ;;  %v6297_v22 = vpop.f32.mrf.mxu0  ;;  %v9443_v27 = vor.u32 %v10699_v6, %v9440_v18  ;;  %v8438_v6 = vld [vmem:[#allocation3 + $0x128] sm:$0xf]  ;;  %v10451_v18 = vld [vmem:[#allocation3 + $0x140] sm:$0xf0]  ;;  %v10598_v0 = vld [vmem:[#allocation3 + $0x5d8] sm:$0xf0] }
 0x564   :  { %6535 = vmatpush.bf16.msrb.mxu3 %v9331_v28  ;;  %v10636_v28 = vld [vmem:[#allocation3 + $0x70c] sm:$0xf]  ;;  %v10619_v22 = vld [vmem:[#allocation3 + $0x680] sm:$0xf0]  ;;  %v8439_v23 = vor.u32 %v10451_v18, %v8438_v6  ;;  %v8326_v6 = vld [vmem:[#allocation3 + $0x48] sm:$0xf] }
 0x565   :  { %6548 = vmatpush.bf16.msra.mxu0 %v9555_v17  ;;  %v9188_v17 = vld [vmem:[#allocation3 + $0x724] sm:$0xf0]  ;;  %v10423_v18 = vld [vmem:[#allocation3 + $0x60] sm:$0xf0] }
 0x566   :  { %6574 = vmatpush.bf16.msra.mxu2 %v10003_v31  ;;  %v6310_v31 = vpop.f32.mrf.mxu1  ;;  %v9191_v30 = vor.u32 %v10636_v28, %v9188_v17  ;;  %v9111_v17 = vor.u32 %v10619_v22, %v9110_v21  ;;  %v8998_v21 = vld [vmem:[#allocation3 + $0x588] sm:$0xf]  ;;  %v10591_v22 = vld [vmem:[#allocation3 + $0x5a0] sm:$0xf0] }
 0x567   :  { %6561 = vmatpush.bf16.msra.mxu1 %v9779_v55  ;;  %v9860_v55 = vld [vmem:[#allocation3 + $0xc64] sm:$0xf0]  ;;  %v10444_v31 = vld [vmem:[#allocation3 + $0x108] sm:$0xf0] }
 0x568   :  { %6536 = vmatpush.bf16.msrb.mxu3 %v9303_v41  ;;  %v10521_v41 = vld [vmem:[#allocation3 + $0x370] sm:$0xf0]  ;;  %v6323_v40 = vpop.f32.mrf.mxu2  ;;  %v9863_v14 = vor.u32 %v10804_v35, %v9860_v55  ;;  %v9082_v35 = vld [vmem:[#allocation3 + $0x630] sm:$0xf]  ;;  %v10612_v55 = vld [vmem:[#allocation3 + $0x648] sm:$0xf0]  ;;  %v8411_v50 = vor.u32 %v10444_v31, %v8410_v29 }
 0x569   :  { %6549 = vmatpush.bf16.msra.mxu0 %v9527_v42  ;;  %v9166_v42 = vld [vmem:[#allocation3 + $0x6d8] sm:$0xf]  ;;  %v8719_v54 = vor.u32 %v10521_v41, %v8718_v38  ;;  %v10556_v38 = vld [vmem:[#allocation3 + $0x488] sm:$0xf0]  ;;  %v8298_v29 = vld [vmem:[#allocation3 + $0x10] sm:$0xf] }
 0x56a   :  { %6575 = vmatpush.bf16.msra.mxu2 %v9975_v25  ;;  %v6284_v25 = vpop.f32.mrf.mxu3  ;;  %v8859_v40 = vor.u32 %v10556_v38, %v8858_v37  ;;  %v10416_v31 = vld [vmem:[#allocation3 + $0x28] sm:$0xf0]  ;;  %v9390_v38 = vld [vmem:[#allocation3 + $0x898] sm:$0xf] }
 0x56b   :  { %6562 = vmatpush.bf16.msra.mxu1 %v9751_v47  ;;  %v9636_v47 = vld [vmem:[#allocation3 + $0xaa4] sm:$0xf0]  ;;  %v10437_v25 = vld [vmem:[#allocation3 + $0xd0] sm:$0xf0] }
 0x56c   :  { %6537 = vmatpush.bf16.msrb.mxu3 %v9275_v1  ;;  %v10577_v1 = vld [vmem:[#allocation3 + $0x530] sm:$0xf0] }
 0x56d   :  { %6550 = vmatpush.bf16.msra.mxu0 %v9499_v44  ;;  %v3852_v44 = vperm.slane %v11434_v39, 1  ;;  %v8943_v34 = vor.u32 %v10577_v1, %v8942_v57  ;;  %v8830_v57 = vld [vmem:[#allocation3 + $0x438] sm:$0xf]  ;;  %v10549_v1 = vld [vmem:[#allocation3 + $0x450] sm:$0xf0] }
 0x56e   :  { %6576 = vmatpush.bf16.msra.mxu2 %v9947_v59  ;;  %v9167_v59 = vor.u32 %v10633_v43, %v9166_v42  ;;  %v9083_v42 = vor.u32 %v10612_v55, %v9082_v35  ;;  %v8382_v43 = vld [vmem:[#allocation3 + $0xb8] sm:$0xf]  ;;  %v8831_v56 = vor.u32 %v10549_v1, %v8830_v57  ;;  %v8522_v35 = vld [vmem:[#allocation3 + $0x1d0] sm:$0xf]  ;;  %v10472_v55 = vld [vmem:[#allocation3 + $0x1e8] sm:$0xf0] }
 0x56f   :  { %6563 = vmatpush.bf16.msra.mxu1 %v9723_v62  ;;  %v9639_v62 = vor.u32 %v10748_v46, %v9636_v47  ;;  %v6283_v39 = vadd.f32 %v11456_v2, %v3852_v44  ;;  %v9054_v46 = vld [vmem:[#allocation3 + $0x5f8] sm:$0xf]  ;;  %v10605_v47 = vld [vmem:[#allocation3 + $0x610] sm:$0xf0] }
 0x570   :  { %6538 = vmatpush.bf16.msrb.mxu3 %v9247_v3  ;;  %v8467_v3 = vor.u32 %v10458_v61, %v8466_v60  ;;  %v10430_v60 = vld [vmem:[#allocation3 + $0x98] sm:$0xf0]  ;;  %v8578_v61 = vld [vmem:[#allocation3 + $0x240] sm:$0xf]  ;;  %v9838_v1 = vld [vmem:[#allocation3 + $0xc18] sm:$0xf] }
 0x571   :  { %6551 = vmatpush.bf16.msra.mxu0 %v9471_v10  ;;  %v8914_v10 = vld [vmem:[#allocation3 + $0x4e0] sm:$0xf]  ;;  %v6296_v2 = vadd.f32 %v11452_v52, %v6283_v39 }
 0x572   :  { %6577 = vmatpush.bf16.msra.mxu2 %v9919_v4  ;;  %v8691_v4 = vor.u32 %v10514_v16, %v8690_v45  ;;  %v8915_v24 = vor.u32 %v10570_v13, %v8914_v10  ;;  %v9026_v16 = vld [vmem:[#allocation3 + $0x5c0] sm:$0xf]  ;;  %v10542_v10 = vld [vmem:[#allocation3 + $0x418] sm:$0xf0] }
 0x573   :  { %6564 = vmatpush.bf16.msra.mxu1 %v9695_v19  ;;  %v8662_v19 = vld [vmem:[#allocation3 + $0x2e8] sm:$0xf]  ;;  %v6309_v52 = vadd.f32 %v11454_v53, %v6296_v2  ;;  %v8383_v53 = vor.u32 %v10437_v25, %v8382_v43  ;;  %v9614_v43 = vld [vmem:[#allocation3 + $0xa58] sm:$0xf]  ;;  %v10745_v25 = vld [vmem:[#allocation3 + $0xa70] sm:$0xf0] }
 0x574   :  { %6539 = vmatpush.bf16.msrb.mxu3 %v9219_v26  ;;  %v8886_v26 = vld [vmem:[#allocation3 + $0x4a8] sm:$0xf]  ;;  %v8663_v28 = vor.u32 %v10507_v20, %v8662_v19  ;;  %v10479_v20 = vld [vmem:[#allocation3 + $0x220] sm:$0xf0] }
 0x575   :  { %6552 = vmatpush.bf16.msra.mxu0 %v9443_v27  ;;  %v10563_v27 = vld [vmem:[#allocation3 + $0x4c0] sm:$0xf0]  ;;  %v8550_v19 = vld [vmem:[#allocation3 + $0x208] sm:$0xf] }
 0x576   :  { %6578 = vmatpush.bf16.msra.mxu2 %v9891_v32  ;;  %v8634_v32 = vld [vmem:[#allocation3 + $0x2b0] sm:$0xf]  ;;  %v8774_v2 = vld [vmem:[#allocation3 + $0x3c8] sm:$0xf] }
 0x577   :  { %6565 = vmatpush.bf16.msra.mxu1 %v9667_v36  ;;  %v8887_v36 = vor.u32 %v10563_v27, %v8886_v26  ;;  %v8635_v41 = vor.u32 %v10500_v58, %v8634_v32  ;;  %v8327_v27 = vor.u32 %v10423_v18, %v8326_v6  ;;  %v8551_v32 = vor.u32 %v10479_v20, %v8550_v19  ;;  %v10675_v6 = vld [vmem:[#allocation3 + $0x840] sm:$0xf0]  ;;  %v9558_v19 = vld [vmem:[#allocation3 + $0x9e8] sm:$0xf] }
 0x578   :  { %6540 = vmatpush.bf16.msrb.mxu3 %v9191_v30  ;;  %v8606_v30 = vld [vmem:[#allocation3 + $0x278] sm:$0xf]  ;;  %v8999_v58 = vor.u32 %v10591_v22, %v8998_v21  ;;  %v10731_v20 = vld [vmem:[#allocation3 + $0xa00] sm:$0xf0]  ;;  %v10006_v22 = vld [vmem:[#allocation3 + $0xd68] sm:$0xf] }
 0x579   :  { %6553 = vmatpush.bf16.msra.mxu0 %v9415_v11  ;;  %v10493_v11 = vld [vmem:[#allocation3 + $0x290] sm:$0xf0] }
 0x57a   :  { %6579 = vmatpush.bf16.msra.mxu2 %v9863_v14  ;;  %v6347_v14 = vpop.f32.mrf.mxu0  ;;  %v8607_v44 = vor.u32 %v10493_v11, %v8606_v30  ;;  %v10062_v30 = vld [vmem:[#allocation3 + $0xdd8] sm:$0xf] }
 0x57b   :  { %6566 = vmatpush.bf16.msra.mxu1 %v9639_v62  ;;  %6541 = vmatmul.bf16.vlgmr.msrb.gmra.mxu3 %v11398_v12  ;;  %v6360_v45 = vpop.f32.mrf.mxu1  ;;  %v10486_v62 = vld [vmem:[#allocation3 + $0x258] sm:$0xf0] }
 0x57c   :  { %6585 = vmatpush.bf16.msra.mxu3 %v8495_v15  ;;  %6554 = vmatmul.bf16.vlgmr.msra.gmra.mxu0 %v11400_v51  ;;  %v6322_v15 = vadd.f32 %v11458_v48, %v6309_v52  ;;  %v8802_v48 = vld [vmem:[#allocation3 + $0x400] sm:$0xf] }
 0x57d   :  { %6598 = vmatpush.bf16.msrb.mxu0 %v8719_v54  ;;  %6580 = vmatmul.bf16.vlgmr.msra.gmra.mxu2 %v11404_v33  ;;  %v9055_v54 = vor.u32 %v10605_v47, %v9054_v46  ;;  %v8299_v46 = vor.u32 %v10416_v31, %v8298_v29  ;;  %v10857_v47 = vld [vmem:[#allocation3 + $0xdf0] sm:$0xf0]  ;;  %v10668_v29 = vld [vmem:[#allocation3 + $0x808] sm:$0xf0]  ;;  %v9530_v31 = vld [vmem:[#allocation3 + $0x9b0] sm:$0xf] }
 0x57e   :  { %6624 = vmatpush.bf16.msrb.mxu2 %v9167_v59  ;;  %6567 = vmatmul.bf16.vlgmr.msra.gmra.mxu1 %v11402_v63  ;;  %v8354_v59 = vld [vmem:[#allocation3 + $0x80] sm:$0xf] }
 0x57f   :  { %6611 = vmatpush.bf16.msrb.mxu1 %v8943_v34  ;;  %v6334_v34 = vpop.f32.mrf.mxu3 }
 0x580   :  { %6586 = vmatpush.bf16.msra.mxu3 %v8467_v3  ;;  %v8355_v3 = vor.u32 %v10430_v60, %v8354_v59  ;;  %v6335_v13 = vadd.f32 %v6334_v34, %v6322_v15  ;;  %v6373_v39 = vpop.f32.mrf.mxu2  ;;  %v9615_v59 = vor.u32 %v10745_v25, %v9614_v43  ;;  %v9362_v60 = vld [vmem:[#allocation3 + $0x860] sm:$0xf]  ;;  %v9502_v43 = vld [vmem:[#allocation3 + $0x978] sm:$0xf]  ;;  %v10717_v25 = vld [vmem:[#allocation3 + $0x990] sm:$0xf0] }
 0x581   :  { %6599 = vmatpush.bf16.msrb.mxu0 %v8691_v4  ;;  %v8579_v4 = vor.u32 %v10486_v62, %v8578_v61  ;;  %v10063_v61 = vor.u32 %v10857_v47, %v10062_v30  ;;  %v10682_v62 = vld [vmem:[#allocation3 + $0x878] sm:$0xf0]  ;;  %v10034_v34 = vld [vmem:[#allocation3 + $0xda0] sm:$0xf] }
 0x582   :  { %6625 = vmatpush.bf16.msrb.mxu2 %v9139_v5  ;;  %v9027_v5 = vor.u32 %v10598_v0, %v9026_v16  ;;  %v6349_v26 = vpop.f32.mrf.mxu0  ;;  %v9586_v16 = vld [vmem:[#allocation3 + $0xa20] sm:$0xf]  ;;  %v10738_v0 = vld [vmem:[#allocation3 + $0xa38] sm:$0xf0] }
 0x583   :  { %6612 = vmatpush.bf16.msrb.mxu1 %v8915_v24  ;;  %v6348_v24 = vadd.f32 %v6347_v14, %v6335_v13  ;;  %v6362_v52 = vpop.f32.mrf.mxu1  ;;  %v10528_v14 = vld [vmem:[#allocation3 + $0x3a8] sm:$0xf0] }
 0x584   :  { %6587 = vmatpush.bf16.msra.mxu3 %v8439_v23  ;;  %v8803_v23 = vor.u32 %v10542_v10, %v8802_v48  ;;  %v9810_v48 = vld [vmem:[#allocation3 + $0xbe0] sm:$0xf]  ;;  %v10794_v10 = vld [vmem:[#allocation3 + $0xbf8] sm:$0xf0]  ;;  %v10780_v52 = vld [vmem:[#allocation3 + $0xb88] sm:$0xf0] }
 0x585   :  { %6600 = vmatpush.bf16.msrb.mxu0 %v8663_v28  ;;  %v10535_v28 = vld [vmem:[#allocation3 + $0x3e0] sm:$0xf0]  ;;  %v9811_v21 = vor.u32 %v10794_v10, %v9810_v48  ;;  %v9222_v48 = vld [vmem:[#allocation3 + $0x748] sm:$0xf] }
 0x586   :  { %6626 = vmatpush.bf16.msrb.mxu2 %v9111_v17  ;;  %v6361_v17 = vadd.f32 %v6360_v45, %v6348_v24  ;;  %v10843_v24 = vld [vmem:[#allocation3 + $0xd80] sm:$0xf0] }
 0x587   :  { %6613 = vmatpush.bf16.msrb.mxu1 %v8887_v36  ;;  %v8970_v36 = vld [vmem:[#allocation3 + $0x550] sm:$0xf]  ;;  %v6336_v11 = vpop.f32.mrf.mxu3 }
 0x588   :  { %6588 = vmatpush.bf16.msra.mxu3 %v8411_v50  ;;  %v10584_v50 = vld [vmem:[#allocation3 + $0x568] sm:$0xf0]  ;;  %v6374_v37 = vadd.f32 %v6373_v39, %v6361_v17  ;;  %v6375_v15 = vpop.f32.mrf.mxu2  ;;  %v9363_v39 = vor.u32 %v10682_v62, %v9362_v60  ;;  %v10007_v17 = vor.u32 %v10843_v24, %v10006_v22  ;;  %v9950_v11 = vld [vmem:[#allocation3 + $0xcf8] sm:$0xf]  ;;  %v10710_v60 = vld [vmem:[#allocation3 + $0x958] sm:$0xf0] }
 0x589   :  { %6601 = vmatpush.bf16.msrb.mxu0 %v8635_v41  ;;  %v10689_v41 = vld [vmem:[#allocation3 + $0x8b0] sm:$0xf0]  ;;  %v8971_v57 = vor.u32 %v10584_v50, %v8970_v36  ;;  %v9754_v36 = vld [vmem:[#allocation3 + $0xb70] sm:$0xf]  ;;  %v10822_v62 = vld [vmem:[#allocation3 + $0xcd8] sm:$0xf0] }
 0x58a   :  { %6627 = vmatpush.bf16.msrb.mxu2 %v9083_v42  ;;  %v8775_v42 = vor.u32 %v10535_v28, %v8774_v2  ;;  %10908 = vtanh.f32 %v6374_v37  ;;  %v10787_v2 = vld [vmem:[#allocation3 + $0xbc0] sm:$0xf0]  ;;  %v9306_v28 = vld [vmem:[#allocation3 + $0x7f0] sm:$0xf]  ;;  %v9755_v30 = vor.u32 %v10780_v52, %v9754_v36  ;;  %v10518_v36 = vld [vmem:[#allocation3 + $0x35c] sm:$0xf] }
 0x58b   :  { %6614 = vmatpush.bf16.msrb.mxu1 %v8859_v40  ;;  %v8746_v40 = vld [vmem:[#allocation3 + $0x390] sm:$0xf]  ;;  %v9307_v50 = vor.u32 %v10668_v29, %v9306_v28  ;;  %v10759_v22 = vld [vmem:[#allocation3 + $0xae0] sm:$0xf0]  ;;  %v10696_v29 = vld [vmem:[#allocation3 + $0x8e8] sm:$0xf0] }
 0x58c   :  { %6589 = vmatpush.bf16.msra.mxu3 %v8383_v53  ;;  %v8523_v53 = vor.u32 %v10472_v55, %v8522_v35  ;;  %v8747_v45 = vor.u32 %v10528_v14, %v8746_v40  ;;  %v9978_v35 = vld [vmem:[#allocation3 + $0xd30] sm:$0xf]  ;;  %v10836_v55 = vld [vmem:[#allocation3 + $0xd48] sm:$0xf0]  ;;  %v9726_v40 = vld [vmem:[#allocation3 + $0xb38] sm:$0xf] }
 0x58d   :  { %6602 = vmatpush.bf16.msrb.mxu0 %v8607_v44  ;;  %v10801_v44 = vld [vmem:[#allocation3 + $0xc30] sm:$0xf0]  ;;  %v8720_v52 = vld [vmem:[#allocation3 + $0x374] sm:$0xf0] }
 0x58e   :  { %6628 = vmatpush.bf16.msrb.mxu2 %v9055_v54  ;;  %v9391_v54 = vor.u32 %v10689_v41, %v9390_v38  ;;  %v9278_v38 = vld [vmem:[#allocation3 + $0x7b8] sm:$0xf]  ;;  %v9979_v41 = vor.u32 %v10836_v55, %v9978_v35  ;;  %v10773_v14 = vld [vmem:[#allocation3 + $0xb50] sm:$0xf0]  ;;  %v10462_v35 = vld [vmem:[#allocation3 + $0x19c] sm:$0xf] }
 0x58f   :  { %6615 = vmatpush.bf16.msrb.mxu1 %v8831_v56  ;;  %v9839_v56 = vor.u32 %v10801_v44, %v9838_v1  ;;  %v8496_v55 = vld [vmem:[#allocation3 + $0x1b4] sm:$0xf0] }
 0x590   :  { %6590 = vmatpush.bf16.msra.mxu3 %v8355_v3  ;;  %v10850_v3 = vld [vmem:[#allocation3 + $0xdb8] sm:$0xf0]  ;;  %v10909_v13 = vpop.eup %10908 }
 0x591   :  { %6603 = vmatpush.bf16.msrb.mxu0 %v8579_v4  ;;  %v9587_v4 = vor.u32 %v10738_v0, %v9586_v16  ;;  %6905 = vst [vmem:[%s11557_s7 + $0x8] sm:$0xff] %v10909_v13  ;;  %v10035_v18 = vor.u32 %v10850_v3, %v10034_v34  ;;  %v9698_v16 = vld [vmem:[#allocation3 + $0xb00] sm:$0xf]  ;;  %v10766_v0 = vld [vmem:[#allocation3 + $0xb18] sm:$0xf0] }
 0x592   :  { %6629 = vmatpush.bf16.msrb.mxu2 %v9027_v5  ;;  %v9334_v5 = vld [vmem:[#allocation3 + $0x828] sm:$0xf] }
 0x593   :  { %6616 = vmatpush.bf16.msrb.mxu1 %v8803_v23  ;;  %v9782_v23 = vld [vmem:[#allocation3 + $0xba8] sm:$0xf]  ;;  %v9335_v26 = vor.u32 %v10675_v6, %v9334_v5  ;;  %v10703_v5 = vld [vmem:[#allocation3 + $0x920] sm:$0xf0]  ;;  %v9699_v6 = vor.u32 %v10766_v0, %v9698_v16  ;;  %v9140_v16 = vld [vmem:[#allocation3 + $0x6bc] sm:$0xf0] }
 0x594   :  { %6591 = vmatpush.bf16.msra.mxu3 %v8327_v27  ;;  %v9559_v27 = vor.u32 %v10731_v20, %v9558_v19  ;;  %v10815_v19 = vld [vmem:[#allocation3 + $0xca0] sm:$0xf0] }
 0x595   :  { %6604 = vmatpush.bf16.msrb.mxu0 %v8551_v32  ;;  %v10724_v32 = vld [vmem:[#allocation3 + $0x9c8] sm:$0xf0] }
 0x596   :  { %6630 = vmatpush.bf16.msrb.mxu2 %v8999_v58  ;;  %v9783_v58 = vor.u32 %v10787_v2, %v9782_v23  ;;  %v9531_v37 = vor.u32 %v10724_v32, %v9530_v31  ;;  %v9194_v2 = vld [vmem:[#allocation3 + $0x710] sm:$0xf]  ;;  %v10808_v32 = vld [vmem:[#allocation3 + $0xc68] sm:$0xf0] }
 0x597   :  { %6617 = vmatpush.bf16.msrb.mxu1 %v8775_v42  ;;  %v10661_v42 = vld [vmem:[#allocation3 + $0x7d0] sm:$0xf0]  ;;  %v9866_v31 = vld [vmem:[#allocation3 + $0xc50] sm:$0xf] }
 0x598   :  { %6592 = vmatpush.bf16.msra.mxu3 %v8299_v46  ;;  %v10829_v46 = vld [vmem:[#allocation3 + $0xd10] sm:$0xf0]  ;;  %v9279_v15 = vor.u32 %v10661_v42, %v9278_v38 }
 0x599   :  { %6605 = vmatpush.bf16.msrb.mxu0 %v8523_v53  ;;  %v11476_v47 = vpop.f32.mrf.mxu0  ;;  %v9503_v53 = vor.u32 %v10717_v25, %v9502_v43  ;;  %v9951_v44 = vor.u32 %v10829_v46, %v9950_v11  ;;  %v9642_v43 = vld [vmem:[#allocation3 + $0xa90] sm:$0xf]  ;;  %v10752_v25 = vld [vmem:[#allocation3 + $0xaa8] sm:$0xf0]  ;;  %v9867_v11 = vor.u32 %v10808_v32, %v9866_v31  ;;  %v8499_v46 = vor.u32 %v10462_v35, %v8496_v55  ;;  %v10609_v32 = vld [vmem:[#allocation3 + $0x634] sm:$0xf] }
 0x59a   :  { %6631 = vmatpush.bf16.msrb.mxu2 %v8971_v57  ;;  %v9250_v57 = vld [vmem:[#allocation3 + $0x780] sm:$0xf]  ;;  %v8636_v31 = vld [vmem:[#allocation3 + $0x2cc] sm:$0xf0] }
 0x59b   :  { %6618 = vmatpush.bf16.msrb.mxu1 %v8747_v45  ;;  %6593 = vmatmul.bf16.vlgmr.msra.gmra.mxu3 %v11390_v7  ;;  %v11478_v1 = vpop.f32.mrf.mxu1  ;;  %v9922_v45 = vld [vmem:[#allocation3 + $0xcc0] sm:$0xf] }
 0x59c   :  { %6637 = vmatpush.bf16.msrb.mxu3 %v9391_v54  ;;  %6606 = vmatmul.bf16.vlgmr.msrb.gmra.mxu0 %v11392_v8  ;;  %v10654_v54 = vld [vmem:[#allocation3 + $0x798] sm:$0xf0]  ;;  %v9923_v13 = vor.u32 %v10822_v62, %v9922_v45  ;;  %v8692_v45 = vld [vmem:[#allocation3 + $0x33c] sm:$0xf0]  ;;  %v10623_v62 = vld [vmem:[#allocation3 + $0x6a4] sm:$0xf] }
 0x59d   :  { %6650 = vmatpush.bf16.msra.mxu0 %v9615_v59  ;;  %6632 = vmatmul.bf16.vlgmr.msrb.gmra.mxu2 %v11396_v49  ;;  %v9474_v59 = vld [vmem:[#allocation3 + $0x940] sm:$0xf]  ;;  %v9251_v34 = vor.u32 %v10654_v54, %v9250_v57  ;;  %v8723_v57 = vor.u32 %v10518_v36, %v8720_v52  ;;  %v10455_v54 = vld [vmem:[#allocation3 + $0x164] sm:$0xf]  ;;  %v10553_v36 = vld [vmem:[#allocation3 + $0x474] sm:$0xf] }
 0x59e   :  { %6676 = vmatpush.bf16.msra.mxu2 %v10063_v61  ;;  %6619 = vmatmul.bf16.vlgmr.msrb.gmra.mxu1 %v11394_v9  ;;  %v9727_v61 = vor.u32 %v10773_v14, %v9726_v40  ;;  %v9475_v3 = vor.u32 %v10710_v60, %v9474_v59  ;;  %v10574_v40 = vld [vmem:[#allocation3 + $0x51c] sm:$0xf]  ;;  %v8944_v14 = vld [vmem:[#allocation3 + $0x534] sm:$0xf0]  ;;  %v8468_v59 = vld [vmem:[#allocation3 + $0x17c] sm:$0xf0] }
 0x59f   :  { %6663 = vmatpush.bf16.msra.mxu1 %v9839_v56  ;;  %v11480_v56 = vpop.f32.mrf.mxu3  ;;  %v10511_v60 = vld [vmem:[#allocation3 + $0x324] sm:$0xf]  ;;  %v8947_v0 = vor.u32 %v10574_v40, %v8944_v14  ;;  %v8860_v52 = vld [vmem:[#allocation3 + $0x48c] sm:$0xf0]  ;;  %v10546_v14 = vld [vmem:[#allocation3 + $0x43c] sm:$0xf] }
 0x5a0   :  { %6638 = vmatpush.bf16.msrb.mxu3 %v9363_v39  ;;  %v11482_v10 = vpop.f32.mrf.mxu2  ;;  %v10647_v39 = vld [vmem:[#allocation3 + $0x760] sm:$0xf0] }
 0x5a1   :  { %6651 = vmatpush.bf16.msra.mxu0 %v9587_v4  ;;  %v9446_v4 = vld [vmem:[#allocation3 + $0x908] sm:$0xf]  ;;  %v6401_v20 = vpop.f32.mrf.mxu0  ;;  %v9223_v24 = vor.u32 %v10647_v39, %v9222_v48  ;;  %v8916_v48 = vld [vmem:[#allocation3 + $0x4fc] sm:$0xf0]  ;;  %v8695_v39 = vor.u32 %v10511_v60, %v8692_v45  ;;  %v10483_v60 = vld [vmem:[#allocation3 + $0x244] sm:$0xf] }
 0x5a2   :  { %6677 = vmatpush.bf16.msra.mxu2 %v10035_v18  ;;  %v9894_v18 = vld [vmem:[#allocation3 + $0xc88] sm:$0xf]  ;;  %v9447_v23 = vor.u32 %v10703_v5, %v9446_v4  ;;  %v9143_v4 = vor.u32 %v10623_v62, %v9140_v16  ;;  %v10448_v5 = vld [vmem:[#allocation3 + $0x12c] sm:$0xf]  ;;  %v8580_v45 = vld [vmem:[#allocation3 + $0x25c] sm:$0xf0] }
 0x5a3   :  { %6664 = vmatpush.bf16.msra.mxu1 %v9811_v21  ;;  %v9670_v21 = vld [vmem:[#allocation3 + $0xac8] sm:$0xf]  ;;  %v6414_v28 = vpop.f32.mrf.mxu1  ;;  %v10616_v20 = vld [vmem:[#allocation3 + $0x66c] sm:$0xf]  ;;  %v10595_v62 = vld [vmem:[#allocation3 + $0x5c4] sm:$0xf] }
 0x5a4   :  { %6639 = vmatpush.bf16.msrb.mxu3 %v9335_v26  ;;  %v10640_v26 = vld [vmem:[#allocation3 + $0x728] sm:$0xf0]  ;;  %v10441_v28 = vld [vmem:[#allocation3 + $0xf4] sm:$0xf]  ;;  %v9028_v16 = vld [vmem:[#allocation3 + $0x5dc] sm:$0xf0] }
 0x5a5   :  { %6652 = vmatpush.bf16.msra.mxu0 %v9559_v27  ;;  %v9418_v27 = vld [vmem:[#allocation3 + $0x8d0] sm:$0xf] }
 0x5a6   :  { %6678 = vmatpush.bf16.msra.mxu2 %v10007_v17  ;;  %v9895_v17 = vor.u32 %v10815_v19, %v9894_v18  ;;  %v9419_v42 = vor.u32 %v10696_v29, %v9418_v27  ;;  %v10504_v18 = vld [vmem:[#allocation3 + $0x2ec] sm:$0xf]  ;;  %v8664_v19 = vld [vmem:[#allocation3 + $0x304] sm:$0xf0]  ;;  %v10497_v29 = vld [vmem:[#allocation3 + $0x2b4] sm:$0xf] }
 0x5a7   :  { %6665 = vmatpush.bf16.msra.mxu1 %v9783_v58  ;;  %v9671_v58 = vor.u32 %v10759_v22, %v9670_v21  ;;  %v6388_v38 = vpop.f32.mrf.mxu3  ;;  %v9112_v21 = vld [vmem:[#allocation3 + $0x684] sm:$0xf0] }
 0x5a8   :  { %6640 = vmatpush.bf16.msrb.mxu3 %v9307_v50  ;;  %v10630_v50 = vld [vmem:[#allocation3 + $0x6dc] sm:$0xf]  ;;  %v9115_v27 = vor.u32 %v10616_v20, %v9112_v21  ;;  %v8552_v20 = vld [vmem:[#allocation3 + $0x224] sm:$0xf0]  ;;  %v10588_v21 = vld [vmem:[#allocation3 + $0x58c] sm:$0xf] }
 0x5a9   :  { %6653 = vmatpush.bf16.msra.mxu0 %v9531_v37  ;;  %v9168_v37 = vld [vmem:[#allocation3 + $0x6f4] sm:$0xf0]  ;;  %v10434_v38 = vld [vmem:[#allocation3 + $0xbc] sm:$0xf] }
 0x5aa   :  { %6679 = vmatpush.bf16.msra.mxu2 %v9979_v41  ;;  %v9195_v41 = vor.u32 %v10640_v26, %v9194_v2  ;;  %v8888_v2 = vld [vmem:[#allocation3 + $0x4c4] sm:$0xf0]  ;;  %v8667_v26 = vor.u32 %v10504_v18, %v8664_v19  ;;  %v10476_v19 = vld [vmem:[#allocation3 + $0x20c] sm:$0xf] }
 0x5ab   :  { %6666 = vmatpush.bf16.msra.mxu1 %v9755_v30  ;;  %v6427_v30 = vpop.f32.mrf.mxu2  ;;  %v8328_v18 = vld [vmem:[#allocation3 + $0x64] sm:$0xf0] }
 0x5ac   :  { %6641 = vmatpush.bf16.msrb.mxu3 %v9279_v15  ;;  %v11484_v15 = vld [vmem:[#allocation7 + $0x1e] sm:$0xff]  ;;  %v9056_v30 = vld [vmem:[#allocation3 + $0x614] sm:$0xf0] }
 0x5ad   :  { %6654 = vmatpush.bf16.msra.mxu0 %v9503_v53  ;;  %v3853_v53 = vperm.slane %v11484_v15, 2 }
 0x5ae   :  { %6680 = vmatpush.bf16.msra.mxu2 %v9951_v44  ;;  %v9171_v44 = vor.u32 %v10630_v50, %v9168_v37  ;;  %v8639_v50 = vor.u32 %v10497_v29, %v8636_v31  ;;  %v8300_v29 = vld [vmem:[#allocation3 + $0x2c] sm:$0xf0]  ;;  %v8555_v31 = vor.u32 %v10476_v19, %v8552_v20  ;;  %v10728_v20 = vld [vmem:[#allocation3 + $0x9ec] sm:$0xf] }
 0x5af   :  { %6667 = vmatpush.bf16.msra.mxu1 %v9727_v61  ;;  %v9643_v61 = vor.u32 %v10752_v25, %v9642_v43  ;;  %v8608_v43 = vld [vmem:[#allocation3 + $0x294] sm:$0xf0]  ;;  %v10602_v25 = vld [vmem:[#allocation3 + $0x5fc] sm:$0xf] }
 0x5b0   :  { %6642 = vmatpush.bf16.msrb.mxu3 %v9251_v34  ;;  %v8471_v34 = vor.u32 %v10455_v54, %v8468_v59  ;;  %v10427_v54 = vld [vmem:[#allocation3 + $0x84] sm:$0xf]  ;;  %v8356_v59 = vld [vmem:[#allocation3 + $0x9c] sm:$0xf0] }
 0x5b1   :  { %6655 = vmatpush.bf16.msra.mxu0 %v9475_v3  ;;  %v10567_v3 = vld [vmem:[#allocation3 + $0x4e4] sm:$0xf] }
 0x5b2   :  { %6681 = vmatpush.bf16.msra.mxu2 %v9923_v13  ;;  %v6387_v13 = vadd.f32 %v11480_v56, %v3853_v53  ;;  %v8919_v22 = vor.u32 %v10567_v3, %v8916_v48  ;;  %v8832_v53 = vld [vmem:[#allocation3 + $0x454] sm:$0xf0]  ;;  %v8359_v3 = vor.u32 %v10427_v54, %v8356_v59  ;;  %v8804_v48 = vld [vmem:[#allocation3 + $0x41c] sm:$0xf0] }
 0x5b3   :  { %6668 = vmatpush.bf16.msra.mxu1 %v9699_v6  ;;  %v8440_v6 = vld [vmem:[#allocation3 + $0x144] sm:$0xf0] }
 0x5b4   :  { %6643 = vmatpush.bf16.msrb.mxu3 %v9223_v24  ;;  %v8443_v24 = vor.u32 %v10448_v5, %v8440_v6  ;;  %v6400_v56 = vadd.f32 %v11476_v47, %v6387_v13  ;;  %v9031_v5 = vor.u32 %v10595_v62, %v9028_v16  ;;  %v10420_v6 = vld [vmem:[#allocation3 + $0x4c] sm:$0xf]  ;;  %v9364_v62 = vld [vmem:[#allocation3 + $0x87c] sm:$0xf0]  ;;  %v10735_v16 = vld [vmem:[#allocation3 + $0xa24] sm:$0xf] }
 0x5b5   :  { %6656 = vmatpush.bf16.msra.mxu0 %v9447_v23  ;;  %v10560_v23 = vld [vmem:[#allocation3 + $0x4ac] sm:$0xf] }
 0x5b6   :  { %6682 = vmatpush.bf16.msra.mxu2 %v9895_v17  ;;  %v8412_v17 = vld [vmem:[#allocation3 + $0x10c] sm:$0xf0]  ;;  %v8891_v35 = vor.u32 %v10560_v23, %v8888_v2  ;;  %v6413_v47 = vadd.f32 %v11478_v1, %v6400_v56  ;;  %v10532_v23 = vld [vmem:[#allocation3 + $0x3cc] sm:$0xf] }
 0x5b7   :  { %6669 = vmatpush.bf16.msra.mxu1 %v9671_v58  ;;  %v9084_v58 = vld [vmem:[#allocation3 + $0x64c] sm:$0xf0]  ;;  %v8415_v55 = vor.u32 %v10441_v28, %v8412_v17  ;;  %v10413_v17 = vld [vmem:[#allocation3 + $0x14] sm:$0xf] }
 0x5b8   :  { %6644 = vmatpush.bf16.msrb.mxu3 %v9195_v41  ;;  %v9087_v37 = vor.u32 %v10609_v32, %v9084_v58  ;;  %v8384_v41 = vld [vmem:[#allocation3 + $0xd4] sm:$0xf0]  ;;  %v6426_v40 = vadd.f32 %v11482_v10, %v6413_v47  ;;  %v10539_v10 = vld [vmem:[#allocation3 + $0x404] sm:$0xf]  ;;  %v10469_v58 = vld [vmem:[#allocation3 + $0x1d4] sm:$0xf] }
 0x5b9   :  { %6657 = vmatpush.bf16.msra.mxu0 %v9419_v42  ;;  %v10490_v42 = vld [vmem:[#allocation3 + $0x27c] sm:$0xf]  ;;  %v8387_v1 = vor.u32 %v10434_v38, %v8384_v41  ;;  %v8807_v56 = vor.u32 %v10539_v10, %v8804_v48  ;;  %v10581_v47 = vld [vmem:[#allocation3 + $0x554] sm:$0xf]  ;;  %v10036_v10 = vld [vmem:[#allocation3 + $0xdbc] sm:$0xf0] }
 0x5ba   :  { %6683 = vmatpush.bf16.msra.mxu2 %v9867_v11  ;;  %v8863_v11 = vor.u32 %v10553_v36, %v8860_v52  ;;  %v8972_v36 = vld [vmem:[#allocation3 + $0x56c] sm:$0xf0]  ;;  %v10742_v41 = vld [vmem:[#allocation3 + $0xa5c] sm:$0xf]  ;;  %v10791_v48 = vld [vmem:[#allocation3 + $0xbe4] sm:$0xf] }
 0x5bb   :  { %6670 = vmatpush.bf16.msra.mxu1 %v9643_v61  ;;  %6645 = vmatmul.bf16.vlgmr.msrb.gmra.mxu3 %v11398_v12  ;;  %v6464_v61 = vpop.f32.mrf.mxu1 }
 0x5bc   :  { %6689 = vmatpush.bf16.msra.mxu3 %v8499_v46  ;;  %6658 = vmatmul.bf16.vlgmr.msra.gmra.mxu0 %v11400_v51  ;;  %v6451_v46 = vpop.f32.mrf.mxu0 }
 0x5bd   :  { %6702 = vmatpush.bf16.msrb.mxu0 %v8723_v57  ;;  %6684 = vmatmul.bf16.vlgmr.msra.gmra.mxu2 %v11404_v33  ;;  %v8611_v57 = vor.u32 %v10490_v42, %v8608_v43  ;;  %v9616_v42 = vld [vmem:[#allocation3 + $0xa74] sm:$0xf0]  ;;  %v10854_v43 = vld [vmem:[#allocation3 + $0xddc] sm:$0xf] }
 0x5be   :  { %6728 = vmatpush.bf16.msrb.mxu2 %v9171_v44  ;;  %6671 = vmatmul.bf16.vlgmr.msra.gmra.mxu1 %v11402_v63  ;;  %v9059_v44 = vor.u32 %v10602_v25, %v9056_v30  ;;  %v8303_v30 = vor.u32 %v10413_v17, %v8300_v29  ;;  %v9619_v59 = vor.u32 %v10742_v41, %v9616_v42  ;;  %v9308_v29 = vld [vmem:[#allocation3 + $0x80c] sm:$0xf0]  ;;  %v9280_v41 = vld [vmem:[#allocation3 + $0x7d4] sm:$0xf0]  ;;  %v10714_v42 = vld [vmem:[#allocation3 + $0x97c] sm:$0xf] }
 0x5bf   :  { %6715 = vmatpush.bf16.msrb.mxu1 %v8947_v0  ;;  %v8835_v0 = vor.u32 %v10546_v14, %v8832_v53  ;;  %v8975_v53 = vor.u32 %v10581_v47, %v8972_v36  ;;  %v9980_v47 = vld [vmem:[#allocation3 + $0xd4c] sm:$0xf0] }
 0x5c0   :  { %6690 = vmatpush.bf16.msra.mxu3 %v8471_v34  ;;  %v6438_v34 = vpop.f32.mrf.mxu3  ;;  %v9756_v36 = vld [vmem:[#allocation3 + $0xb8c] sm:$0xf0] }
 0x5c1   :  { %6703 = vmatpush.bf16.msrb.mxu0 %v8695_v39  ;;  %v6439_v13 = vadd.f32 %v6438_v34, %v6426_v40  ;;  %v6477_v39 = vpop.f32.mrf.mxu2  ;;  %v8748_v40 = vld [vmem:[#allocation3 + $0x3ac] sm:$0xf0] }
 0x5c2   :  { %6729 = vmatpush.bf16.msrb.mxu2 %v9143_v4  ;;  %v8583_v4 = vor.u32 %v10483_v60, %v8580_v45  ;;  %v10679_v60 = vld [vmem:[#allocation3 + $0x864] sm:$0xf] }
 0x5c3   :  { %6716 = vmatpush.bf16.msrb.mxu1 %v8919_v22  ;;  %v9000_v22 = vld [vmem:[#allocation3 + $0x5a4] sm:$0xf0] }
 0x5c4   :  { %6691 = vmatpush.bf16.msra.mxu3 %v8443_v24  ;;  %v6452_v24 = vadd.f32 %v6451_v46, %v6439_v13  ;;  %v6453_v2 = vpop.f32.mrf.mxu0  ;;  %v9003_v32 = vor.u32 %v10588_v21, %v9000_v22  ;;  %v10525_v46 = vld [vmem:[#allocation3 + $0x394] sm:$0xf]  ;;  %v9812_v13 = vld [vmem:[#allocation3 + $0xbfc] sm:$0xf0]  ;;  %v9560_v21 = vld [vmem:[#allocation3 + $0xa04] sm:$0xf0] }
 0x5c5   :  { %6704 = vmatpush.bf16.msrb.mxu0 %v8667_v26  ;;  %v8331_v26 = vor.u32 %v10420_v6, %v8328_v18  ;;  %v8751_v45 = vor.u32 %v10525_v46, %v8748_v40  ;;  %v10672_v6 = vld [vmem:[#allocation3 + $0x82c] sm:$0xf]  ;;  %v9336_v18 = vld [vmem:[#allocation3 + $0x844] sm:$0xf0]  ;;  %v9815_v22 = vor.u32 %v10791_v48, %v9812_v13  ;;  %v10770_v40 = vld [vmem:[#allocation3 + $0xb3c] sm:$0xf] }
 0x5c6   :  { %6730 = vmatpush.bf16.msrb.mxu2 %v9115_v27  ;;  %v8776_v27 = vld [vmem:[#allocation3 + $0x3e4] sm:$0xf0]  ;;  %v6465_v28 = vadd.f32 %v6464_v61, %v6452_v24  ;;  %v10840_v24 = vld [vmem:[#allocation3 + $0xd6c] sm:$0xf] }
 0x5c7   :  { %6717 = vmatpush.bf16.msrb.mxu1 %v8891_v35  ;;  %v8524_v35 = vld [vmem:[#allocation3 + $0x1ec] sm:$0xf0]  ;;  %v8779_v38 = vor.u32 %v10532_v23, %v8776_v27  ;;  %v10784_v23 = vld [vmem:[#allocation3 + $0xbac] sm:$0xf]  ;;  %v9784_v2 = vld [vmem:[#allocation3 + $0xbc4] sm:$0xf0]  ;;  %v9563_v27 = vor.u32 %v10728_v20, %v9560_v21 }
 0x5c8   :  { %6692 = vmatpush.bf16.msra.mxu3 %v8415_v55  ;;  %v6466_v55 = vpop.f32.mrf.mxu1  ;;  %v6478_v52 = vadd.f32 %v6477_v39, %v6465_v28  ;;  %v6440_v25 = vpop.f32.mrf.mxu3  ;;  %v8527_v14 = vor.u32 %v10469_v58, %v8524_v35  ;;  %v10665_v28 = vld [vmem:[#allocation3 + $0x7f4] sm:$0xf]  ;;  %v9787_v58 = vor.u32 %v10784_v23, %v9784_v2  ;;  %v10644_v13 = vld [vmem:[#allocation3 + $0x74c] sm:$0xf]  ;;  %v9896_v21 = vld [vmem:[#allocation3 + $0xca4] sm:$0xf0] }
 0x5c9   :  { %6705 = vmatpush.bf16.msrb.mxu0 %v8639_v50  ;;  %v10686_v50 = vld [vmem:[#allocation3 + $0x89c] sm:$0xf]  ;;  %v10833_v35 = vld [vmem:[#allocation3 + $0xd34] sm:$0xf]  ;;  %v10812_v20 = vld [vmem:[#allocation3 + $0xc8c] sm:$0xf] }
 0x5ca   :  { %6731 = vmatpush.bf16.msrb.mxu2 %v9087_v37  ;;  %v9392_v37 = vld [vmem:[#allocation3 + $0x8b4] sm:$0xf0]  ;;  %10910 = vtanh.f32 %v6478_v52  ;;  %v10777_v55 = vld [vmem:[#allocation3 + $0xb74] sm:$0xf]  ;;  %v9311_v52 = vor.u32 %v10665_v28, %v9308_v29  ;;  %v9899_v29 = vor.u32 %v10812_v20, %v9896_v21  ;;  %v10508_v20 = vld [vmem:[#allocation3 + $0x308] sm:$0xf0] }
 0x5cb   :  { %6718 = vmatpush.bf16.msrb.mxu1 %v8863_v11  ;;  %v10064_v11 = vld [vmem:[#allocation3 + $0xdf4] sm:$0xf0]  ;;  %v9395_v54 = vor.u32 %v10686_v50, %v9392_v37  ;;  %v10658_v37 = vld [vmem:[#allocation3 + $0x7bc] sm:$0xf]  ;;  %v9759_v25 = vor.u32 %v10777_v55, %v9756_v36  ;;  %v10693_v28 = vld [vmem:[#allocation3 + $0x8d4] sm:$0xf] }
 0x5cc   :  { %6693 = vmatpush.bf16.msra.mxu3 %v8387_v1  ;;  %v6479_v1 = vpop.f32.mrf.mxu2  ;;  %v10067_v61 = vor.u32 %v10854_v43, %v10064_v11  ;;  %v9504_v43 = vld [vmem:[#allocation3 + $0x994] sm:$0xf0]  ;;  %v10466_v55 = vld [vmem:[#allocation3 + $0x1b8] sm:$0xf0]  ;;  %v8726_v36 = vld [vmem:[#allocation3 + $0x360] sm:$0xf] }
 0x5cd   :  { %6706 = vmatpush.bf16.msrb.mxu0 %v8611_v57  ;;  %v10798_v57 = vld [vmem:[#allocation3 + $0xc1c] sm:$0xf]  ;;  %v9952_v11 = vld [vmem:[#allocation3 + $0xd14] sm:$0xf0]  ;;  %v9118_v21 = vld [vmem:[#allocation3 + $0x670] sm:$0xf] }
 0x5ce   :  { %6732 = vmatpush.bf16.msrb.mxu2 %v9059_v44  ;;  %v9840_v44 = vld [vmem:[#allocation3 + $0xc34] sm:$0xf0] }
 0x5cf   :  { %6719 = vmatpush.bf16.msrb.mxu1 %v8835_v0  ;;  %v9588_v0 = vld [vmem:[#allocation3 + $0xa3c] sm:$0xf0]  ;;  %v9843_v34 = vor.u32 %v10798_v57, %v9840_v44  ;;  %v9728_v1 = vld [vmem:[#allocation3 + $0xb54] sm:$0xf0]  ;;  %v10651_v57 = vld [vmem:[#allocation3 + $0x784] sm:$0xf] }
 0x5d0   :  { %6694 = vmatpush.bf16.msra.mxu3 %v8359_v3  ;;  %v10847_v3 = vld [vmem:[#allocation3 + $0xda4] sm:$0xf]  ;;  %v10911_v39 = vpop.eup %10910 }
 0x5d1   :  { %6707 = vmatpush.bf16.msrb.mxu0 %v8583_v4  ;;  %v9367_v4 = vor.u32 %v10679_v60, %v9364_v62  ;;  %6906 = vst [vmem:[%s11557_s7 + $0x10] sm:$0xff] %v10911_v39  ;;  %v10039_v19 = vor.u32 %v10847_v3, %v10036_v10  ;;  %v10707_v60 = vld [vmem:[#allocation3 + $0x944] sm:$0xf] }
 0x5d2   :  { %6733 = vmatpush.bf16.msrb.mxu2 %v9031_v5  ;;  %v9591_v5 = vor.u32 %v10735_v16, %v9588_v0  ;;  %v10819_v62 = vld [vmem:[#allocation3 + $0xcc4] sm:$0xf]  ;;  %v9924_v16 = vld [vmem:[#allocation3 + $0xcdc] sm:$0xf0] }
 0x5d3   :  { %6720 = vmatpush.bf16.msrb.mxu1 %v8807_v56  ;;  %v10008_v56 = vld [vmem:[#allocation3 + $0xd84] sm:$0xf0]  ;;  %v10763_v0 = vld [vmem:[#allocation3 + $0xb04] sm:$0xf] }
 0x5d4   :  { %6695 = vmatpush.bf16.msra.mxu3 %v8331_v26  ;;  %v9339_v26 = vor.u32 %v10672_v6, %v9336_v18  ;;  %v10011_v17 = vor.u32 %v10840_v24, %v10008_v56  ;;  %v10700_v6 = vld [vmem:[#allocation3 + $0x90c] sm:$0xf]  ;;  %v9448_v18 = vld [vmem:[#allocation3 + $0x924] sm:$0xf0] }
 0x5d5   :  { %6708 = vmatpush.bf16.msrb.mxu0 %v8555_v31  ;;  %v10721_v31 = vld [vmem:[#allocation3 + $0x9b4] sm:$0xf]  ;;  %v10756_v24 = vld [vmem:[#allocation3 + $0xacc] sm:$0xf]  ;;  %v9672_v56 = vld [vmem:[#allocation3 + $0xae4] sm:$0xf0]  ;;  %v9451_v2 = vor.u32 %v10700_v6, %v9448_v18 }
 0x5d6   :  { %6734 = vmatpush.bf16.msrb.mxu2 %v9003_v32  ;;  %v9532_v32 = vld [vmem:[#allocation3 + $0x9cc] sm:$0xf0]  ;;  %v10452_v18 = vld [vmem:[#allocation3 + $0x148] sm:$0xf0] }
 0x5d7   :  { %6721 = vmatpush.bf16.msrb.mxu1 %v8779_v38  ;;  %v9535_v50 = vor.u32 %v10721_v31, %v9532_v32  ;;  %v9983_v38 = vor.u32 %v10833_v35, %v9980_v47  ;;  %v9420_v31 = vld [vmem:[#allocation3 + $0x8ec] sm:$0xf0]  ;;  %v10805_v32 = vld [vmem:[#allocation3 + $0xc54] sm:$0xf]  ;;  %v9675_v35 = vor.u32 %v10756_v24, %v9672_v56  ;;  %v8502_v47 = vld [vmem:[#allocation3 + $0x1a0] sm:$0xf] }
 0x5d8   :  { %6696 = vmatpush.bf16.msra.mxu3 %v8303_v30  ;;  %v10826_v30 = vld [vmem:[#allocation3 + $0xcfc] sm:$0xf]  ;;  %v8446_v6 = vld [vmem:[#allocation3 + $0x130] sm:$0xf] }
 0x5d9   :  { %6709 = vmatpush.bf16.msrb.mxu0 %v8527_v14  ;;  %v11502_v46 = vpop.f32.mrf.mxu0  ;;  %v9283_v14 = vor.u32 %v10658_v37, %v9280_v41  ;;  %v10634_v37 = vld [vmem:[#allocation3 + $0x6f8] sm:$0xf0]  ;;  %v8447_v56 = vor.u32 %v10452_v18, %v8446_v6  ;;  %v8334_v6 = vld [vmem:[#allocation3 + $0x50] sm:$0xf]  ;;  %v10424_v18 = vld [vmem:[#allocation3 + $0x68] sm:$0xf0] }
 0x5da   :  { %6735 = vmatpush.bf16.msrb.mxu2 %v8975_v53  ;;  %v9507_v53 = vor.u32 %v10714_v42, %v9504_v43  ;;  %v9423_v42 = vor.u32 %v10693_v28, %v9420_v31  ;;  %v10749_v43 = vld [vmem:[#allocation3 + $0xa94] sm:$0xf]  ;;  %v8418_v28 = vld [vmem:[#allocation3 + $0xf8] sm:$0xf] }
 0x5db   :  { %6722 = vmatpush.bf16.msrb.mxu1 %v8751_v45  ;;  %6697 = vmatmul.bf16.vlgmr.msra.gmra.mxu3 %v11390_v7  ;;  %v11504_v44 = vpop.f32.mrf.mxu1  ;;  %v9731_v45 = vor.u32 %v10770_v40, %v9728_v1  ;;  %v8503_v40 = vor.u32 %v10466_v55, %v8502_v47  ;;  %v8950_v1 = vld [vmem:[#allocation3 + $0x520] sm:$0xf]  ;;  %v10501_v31 = vld [vmem:[#allocation3 + $0x2d0] sm:$0xf0]  ;;  %v8866_v55 = vld [vmem:[#allocation3 + $0x478] sm:$0xf] }
 0x5dc   :  { %6741 = vmatpush.bf16.msrb.mxu3 %v9395_v54  ;;  %6710 = vmatmul.bf16.vlgmr.msrb.gmra.mxu0 %v11392_v8  ;;  %v9955_v54 = vor.u32 %v10826_v30, %v9952_v11 }
 0x5dd   :  { %6754 = vmatpush.bf16.msra.mxu0 %v9619_v59  ;;  %6736 = vmatmul.bf16.vlgmr.msrb.gmra.mxu2 %v11396_v49  ;;  %v9252_v59 = vld [vmem:[#allocation3 + $0x79c] sm:$0xf0] }
 0x5de   :  { %6780 = vmatpush.bf16.msra.mxu2 %v10067_v61  ;;  %6723 = vmatmul.bf16.vlgmr.msrb.gmra.mxu1 %v11394_v9  ;;  %v9476_v61 = vld [vmem:[#allocation3 + $0x95c] sm:$0xf0]  ;;  %v11506_v3 = vpop.f32.mrf.mxu3  ;;  %v9255_v10 = vor.u32 %v10651_v57, %v9252_v59  ;;  %v8474_v59 = vld [vmem:[#allocation3 + $0x168] sm:$0xf] }
 0x5df   :  { %6767 = vmatpush.bf16.msra.mxu1 %v9843_v34  ;;  %v9700_v34 = vld [vmem:[#allocation3 + $0xb1c] sm:$0xf0]  ;;  %v9479_v48 = vor.u32 %v10707_v60, %v9476_v61  ;;  %v10459_v60 = vld [vmem:[#allocation3 + $0x180] sm:$0xf0]  ;;  %v8698_v61 = vld [vmem:[#allocation3 + $0x328] sm:$0xf] }
 0x5e0   :  { %6742 = vmatpush.bf16.msrb.mxu3 %v9367_v4  ;;  %v11508_v39 = vpop.f32.mrf.mxu2  ;;  %v9927_v4 = vor.u32 %v10819_v62, %v9924_v16  ;;  %v10515_v62 = vld [vmem:[#allocation3 + $0x340] sm:$0xf0]  ;;  %v9146_v16 = vld [vmem:[#allocation3 + $0x6a8] sm:$0xf] }
 0x5e1   :  { %6755 = vmatpush.bf16.msra.mxu0 %v9591_v5  ;;  %v9224_v5 = vld [vmem:[#allocation3 + $0x764] sm:$0xf0] }
 0x5e2   :  { %6781 = vmatpush.bf16.msra.mxu2 %v10039_v19  ;;  %v9703_v19 = vor.u32 %v10763_v0, %v9700_v34  ;;  %v9227_v23 = vor.u32 %v10644_v13, %v9224_v5  ;;  %v10627_v0 = vld [vmem:[#allocation3 + $0x6c0] sm:$0xf0] }
 0x5e3   :  { %6768 = vmatpush.bf16.msra.mxu1 %v9815_v22  ;;  %v6505_v22 = vpop.f32.mrf.mxu0  ;;  %v10571_v13 = vld [vmem:[#allocation3 + $0x500] sm:$0xf0]  ;;  %v9147_v5 = vor.u32 %v10627_v0, %v9146_v16 }
 0x5e4   :  { %6743 = vmatpush.bf16.msrb.mxu3 %v9339_v26  ;;  %v10637_v26 = vld [vmem:[#allocation3 + $0x714] sm:$0xf]  ;;  %v10620_v22 = vld [vmem:[#allocation3 + $0x688] sm:$0xf0]  ;;  %v10599_v16 = vld [vmem:[#allocation3 + $0x5e0] sm:$0xf0] }
 0x5e5   :  { %6756 = vmatpush.bf16.msra.mxu0 %v9563_v27  ;;  %v9196_v27 = vld [vmem:[#allocation3 + $0x72c] sm:$0xf0] }
 0x5e6   :  { %6782 = vmatpush.bf16.msra.mxu2 %v10011_v17  ;;  %v6518_v17 = vpop.f32.mrf.mxu1  ;;  %v9199_v41 = vor.u32 %v10637_v26, %v9196_v27  ;;  %v9119_v27 = vor.u32 %v10620_v22, %v9118_v21  ;;  %v9006_v21 = vld [vmem:[#allocation3 + $0x590] sm:$0xf]  ;;  %v10592_v22 = vld [vmem:[#allocation3 + $0x5a8] sm:$0xf0] }
 0x5e7   :  { %6769 = vmatpush.bf16.msra.mxu1 %v9787_v58  ;;  %v9868_v58 = vld [vmem:[#allocation3 + $0xc6c] sm:$0xf0]  ;;  %v10445_v17 = vld [vmem:[#allocation3 + $0x110] sm:$0xf0] }
 0x5e8   :  { %6744 = vmatpush.bf16.msrb.mxu3 %v9311_v52  ;;  %v10522_v52 = vld [vmem:[#allocation3 + $0x378] sm:$0xf0]  ;;  %v6531_v30 = vpop.f32.mrf.mxu2  ;;  %v9871_v11 = vor.u32 %v10805_v32, %v9868_v58  ;;  %v9090_v32 = vld [vmem:[#allocation3 + $0x638] sm:$0xf]  ;;  %v10613_v58 = vld [vmem:[#allocation3 + $0x650] sm:$0xf0]  ;;  %v8419_v47 = vor.u32 %v10445_v17, %v8418_v28 }
 0x5e9   :  { %6757 = vmatpush.bf16.msra.mxu0 %v9535_v50  ;;  %v9174_v50 = vld [vmem:[#allocation3 + $0x6e0] sm:$0xf]  ;;  %v8727_v57 = vor.u32 %v10522_v52, %v8726_v36  ;;  %v10557_v36 = vld [vmem:[#allocation3 + $0x490] sm:$0xf0]  ;;  %v8306_v28 = vld [vmem:[#allocation3 + $0x18] sm:$0xf] }
 0x5ea   :  { %6783 = vmatpush.bf16.msra.mxu2 %v9983_v38  ;;  %v6492_v38 = vpop.f32.mrf.mxu3  ;;  %v8867_v30 = vor.u32 %v10557_v36, %v8866_v55  ;;  %v10417_v17 = vld [vmem:[#allocation3 + $0x30] sm:$0xf0]  ;;  %v9398_v36 = vld [vmem:[#allocation3 + $0x8a0] sm:$0xf] }
 0x5eb   :  { %6770 = vmatpush.bf16.msra.mxu1 %v9759_v25  ;;  %v9644_v25 = vld [vmem:[#allocation3 + $0xaac] sm:$0xf0]  ;;  %v10438_v38 = vld [vmem:[#allocation3 + $0xd8] sm:$0xf0] }
 0x5ec   :  { %6745 = vmatpush.bf16.msrb.mxu3 %v9283_v14  ;;  %v10578_v14 = vld [vmem:[#allocation3 + $0x538] sm:$0xf0] }
 0x5ed   :  { %6758 = vmatpush.bf16.msra.mxu0 %v9507_v53  ;;  %v3854_v53 = vperm.slane %v11484_v15, 3  ;;  %v8951_v34 = vor.u32 %v10578_v14, %v8950_v1  ;;  %v8838_v1 = vld [vmem:[#allocation3 + $0x440] sm:$0xf]  ;;  %v10550_v14 = vld [vmem:[#allocation3 + $0x458] sm:$0xf0] }
 0x5ee   :  { %6784 = vmatpush.bf16.msra.mxu2 %v9955_v54  ;;  %v9175_v54 = vor.u32 %v10634_v37, %v9174_v50  ;;  %v9091_v50 = vor.u32 %v10613_v58, %v9090_v32  ;;  %v8390_v37 = vld [vmem:[#allocation3 + $0xc0] sm:$0xf]  ;;  %v8839_v0 = vor.u32 %v10550_v14, %v8838_v1  ;;  %v8530_v32 = vld [vmem:[#allocation3 + $0x1d8] sm:$0xf]  ;;  %v10473_v58 = vld [vmem:[#allocation3 + $0x1f0] sm:$0xf0] }
 0x5ef   :  { %6771 = vmatpush.bf16.msra.mxu1 %v9731_v45  ;;  %v9647_v45 = vor.u32 %v10749_v43, %v9644_v25  ;;  %v6491_v15 = vadd.f32 %v11506_v3, %v3854_v53  ;;  %v9062_v43 = vld [vmem:[#allocation3 + $0x600] sm:$0xf]  ;;  %v10606_v25 = vld [vmem:[#allocation3 + $0x618] sm:$0xf0] }
 0x5f0   :  { %6746 = vmatpush.bf16.msrb.mxu3 %v9255_v10  ;;  %v8475_v10 = vor.u32 %v10459_v60, %v8474_v59  ;;  %v10431_v59 = vld [vmem:[#allocation3 + $0xa0] sm:$0xf0]  ;;  %v8586_v60 = vld [vmem:[#allocation3 + $0x248] sm:$0xf]  ;;  %v9846_v14 = vld [vmem:[#allocation3 + $0xc20] sm:$0xf] }
 0x5f1   :  { %6759 = vmatpush.bf16.msra.mxu0 %v9479_v48  ;;  %v8922_v48 = vld [vmem:[#allocation3 + $0x4e8] sm:$0xf]  ;;  %v6504_v3 = vadd.f32 %v11502_v46, %v6491_v15 }
 0x5f2   :  { %6785 = vmatpush.bf16.msra.mxu2 %v9927_v4  ;;  %v8699_v4 = vor.u32 %v10515_v62, %v8698_v61  ;;  %v8923_v24 = vor.u32 %v10571_v13, %v8922_v48  ;;  %v9034_v62 = vld [vmem:[#allocation3 + $0x5c8] sm:$0xf]  ;;  %v10543_v48 = vld [vmem:[#allocation3 + $0x420] sm:$0xf0] }
 0x5f3   :  { %6772 = vmatpush.bf16.msra.mxu1 %v9703_v19  ;;  %v8670_v19 = vld [vmem:[#allocation3 + $0x2f0] sm:$0xf]  ;;  %v6517_v46 = vadd.f32 %v11504_v44, %v6504_v3  ;;  %v8391_v44 = vor.u32 %v10438_v38, %v8390_v37  ;;  %v9622_v37 = vld [vmem:[#allocation3 + $0xa60] sm:$0xf]  ;;  %v10746_v38 = vld [vmem:[#allocation3 + $0xa78] sm:$0xf0] }
 0x5f4   :  { %6747 = vmatpush.bf16.msrb.mxu3 %v9227_v23  ;;  %v8894_v23 = vld [vmem:[#allocation3 + $0x4b0] sm:$0xf]  ;;  %v8671_v26 = vor.u32 %v10508_v20, %v8670_v19  ;;  %v10480_v20 = vld [vmem:[#allocation3 + $0x228] sm:$0xf0] }
 0x5f5   :  { %6760 = vmatpush.bf16.msra.mxu0 %v9451_v2  ;;  %v10564_v2 = vld [vmem:[#allocation3 + $0x4c8] sm:$0xf0]  ;;  %v8558_v19 = vld [vmem:[#allocation3 + $0x210] sm:$0xf] }
 0x5f6   :  { %6786 = vmatpush.bf16.msra.mxu2 %v9899_v29  ;;  %v8642_v29 = vld [vmem:[#allocation3 + $0x2b8] sm:$0xf]  ;;  %v8782_v3 = vld [vmem:[#allocation3 + $0x3d0] sm:$0xf] }
 0x5f7   :  { %6773 = vmatpush.bf16.msra.mxu1 %v9675_v35  ;;  %v8895_v35 = vor.u32 %v10564_v2, %v8894_v23  ;;  %v8643_v52 = vor.u32 %v10501_v31, %v8642_v29  ;;  %v8335_v2 = vor.u32 %v10424_v18, %v8334_v6  ;;  %v8559_v29 = vor.u32 %v10480_v20, %v8558_v19  ;;  %v10676_v6 = vld [vmem:[#allocation3 + $0x848] sm:$0xf0]  ;;  %v9566_v19 = vld [vmem:[#allocation3 + $0x9f0] sm:$0xf] }
 0x5f8   :  { %6748 = vmatpush.bf16.msrb.mxu3 %v9199_v41  ;;  %v8614_v41 = vld [vmem:[#allocation3 + $0x280] sm:$0xf]  ;;  %v9007_v31 = vor.u32 %v10592_v22, %v9006_v21  ;;  %v10732_v20 = vld [vmem:[#allocation3 + $0xa08] sm:$0xf0]  ;;  %v10014_v22 = vld [vmem:[#allocation3 + $0xd70] sm:$0xf] }
 0x5f9   :  { %6761 = vmatpush.bf16.msra.mxu0 %v9423_v42  ;;  %v10494_v42 = vld [vmem:[#allocation3 + $0x298] sm:$0xf0] }
 0x5fa   :  { %6787 = vmatpush.bf16.msra.mxu2 %v9871_v11  ;;  %v6555_v11 = vpop.f32.mrf.mxu0  ;;  %v8615_v53 = vor.u32 %v10494_v42, %v8614_v41  ;;  %v10070_v41 = vld [vmem:[#allocation3 + $0xde0] sm:$0xf] }
 0x5fb   :  { %6774 = vmatpush.bf16.msra.mxu1 %v9647_v45  ;;  %6749 = vmatmul.bf16.vlgmr.msrb.gmra.mxu3 %v11398_v12  ;;  %v6568_v61 = vpop.f32.mrf.mxu1  ;;  %v10487_v45 = vld [vmem:[#allocation3 + $0x260] sm:$0xf0] }
 0x5fc   :  { %6793 = vmatpush.bf16.msra.mxu3 %v8503_v40  ;;  %6762 = vmatmul.bf16.vlgmr.msra.gmra.mxu0 %v11400_v51  ;;  %v6530_v40 = vadd.f32 %v11508_v39, %v6517_v46  ;;  %v8810_v39 = vld [vmem:[#allocation3 + $0x408] sm:$0xf] }
 0x5fd   :  { %6806 = vmatpush.bf16.msrb.mxu0 %v8727_v57  ;;  %6788 = vmatmul.bf16.vlgmr.msra.gmra.mxu2 %v11404_v33  ;;  %v9063_v57 = vor.u32 %v10606_v25, %v9062_v43  ;;  %v8307_v43 = vor.u32 %v10417_v17, %v8306_v28  ;;  %v10858_v25 = vld [vmem:[#allocation3 + $0xdf8] sm:$0xf0]  ;;  %v10669_v28 = vld [vmem:[#allocation3 + $0x810] sm:$0xf0]  ;;  %v9538_v17 = vld [vmem:[#allocation3 + $0x9b8] sm:$0xf] }
 0x5fe   :  { %6832 = vmatpush.bf16.msrb.mxu2 %v9175_v54  ;;  %6775 = vmatmul.bf16.vlgmr.msra.gmra.mxu1 %v11402_v63  ;;  %v8362_v54 = vld [vmem:[#allocation3 + $0x88] sm:$0xf] }
 0x5ff   :  { %6819 = vmatpush.bf16.msrb.mxu1 %v8951_v34  ;;  %v6542_v34 = vpop.f32.mrf.mxu3 }
 0x600   :  { %6794 = vmatpush.bf16.msra.mxu3 %v8475_v10  ;;  %v8363_v10 = vor.u32 %v10431_v59, %v8362_v54  ;;  %v6543_v13 = vadd.f32 %v6542_v34, %v6530_v40  ;;  %v6581_v15 = vpop.f32.mrf.mxu2  ;;  %v9623_v54 = vor.u32 %v10746_v38, %v9622_v37  ;;  %v9370_v59 = vld [vmem:[#allocation3 + $0x868] sm:$0xf]  ;;  %v9958_v37 = vld [vmem:[#allocation3 + $0xd00] sm:$0xf] }
 0x601   :  { %6807 = vmatpush.bf16.msrb.mxu0 %v8699_v4  ;;  %v8587_v4 = vor.u32 %v10487_v45, %v8586_v60  ;;  %v10071_v60 = vor.u32 %v10858_v25, %v10070_v41  ;;  %v10683_v45 = vld [vmem:[#allocation3 + $0x880] sm:$0xf0]  ;;  %v10042_v34 = vld [vmem:[#allocation3 + $0xda8] sm:$0xf]  ;;  %v9734_v41 = vld [vmem:[#allocation3 + $0xb40] sm:$0xf] }
 0x602   :  { %6833 = vmatpush.bf16.msrb.mxu2 %v9147_v5  ;;  %v9035_v5 = vor.u32 %v10599_v16, %v9034_v62  ;;  %v6557_v23 = vpop.f32.mrf.mxu0  ;;  %v9594_v62 = vld [vmem:[#allocation3 + $0xa28] sm:$0xf]  ;;  %v10739_v16 = vld [vmem:[#allocation3 + $0xa40] sm:$0xf0] }
 0x603   :  { %6820 = vmatpush.bf16.msrb.mxu1 %v8923_v24  ;;  %v6556_v24 = vadd.f32 %v6555_v11, %v6543_v13  ;;  %v6570_v46 = vpop.f32.mrf.mxu1  ;;  %v10529_v11 = vld [vmem:[#allocation3 + $0x3b0] sm:$0xf0] }
 0x604   :  { %6795 = vmatpush.bf16.msra.mxu3 %v8447_v56  ;;  %v8811_v56 = vor.u32 %v10543_v48, %v8810_v39  ;;  %v9818_v39 = vld [vmem:[#allocation3 + $0xbe8] sm:$0xf]  ;;  %v10795_v48 = vld [vmem:[#allocation3 + $0xc00] sm:$0xf0]  ;;  %v9286_v46 = vld [vmem:[#allocation3 + $0x7c0] sm:$0xf] }
 0x605   :  { %6808 = vmatpush.bf16.msrb.mxu0 %v8671_v26  ;;  %v10536_v26 = vld [vmem:[#allocation3 + $0x3e8] sm:$0xf0]  ;;  %v9819_v21 = vor.u32 %v10795_v48, %v9818_v39  ;;  %v9454_v39 = vld [vmem:[#allocation3 + $0x910] sm:$0xf] }
 0x606   :  { %6834 = vmatpush.bf16.msrb.mxu2 %v9119_v27  ;;  %v6569_v27 = vadd.f32 %v6568_v61, %v6556_v24  ;;  %v10844_v24 = vld [vmem:[#allocation3 + $0xd88] sm:$0xf0] }
 0x607   :  { %6821 = vmatpush.bf16.msrb.mxu1 %v8895_v35  ;;  %v8978_v35 = vld [vmem:[#allocation3 + $0x558] sm:$0xf]  ;;  %v6544_v42 = vpop.f32.mrf.mxu3  ;;  %v10704_v48 = vld [vmem:[#allocation3 + $0x928] sm:$0xf0] }
 0x608   :  { %6796 = vmatpush.bf16.msra.mxu3 %v8419_v47  ;;  %v10585_v47 = vld [vmem:[#allocation3 + $0x570] sm:$0xf0]  ;;  %v6582_v55 = vadd.f32 %v6581_v15, %v6569_v27  ;;  %v6583_v40 = vpop.f32.mrf.mxu2  ;;  %v9371_v15 = vor.u32 %v10683_v45, %v9370_v59  ;;  %v10015_v27 = vor.u32 %v10844_v24, %v10014_v22  ;;  %v10774_v42 = vld [vmem:[#allocation3 + $0xb58] sm:$0xf0]  ;;  %v9706_v59 = vld [vmem:[#allocation3 + $0xb08] sm:$0xf] }
 0x609   :  { %6809 = vmatpush.bf16.msrb.mxu0 %v8643_v52  ;;  %v10690_v52 = vld [vmem:[#allocation3 + $0x8b8] sm:$0xf0]  ;;  %v8979_v1 = vor.u32 %v10585_v47, %v8978_v35 }
 0x60a   :  { %6835 = vmatpush.bf16.msrb.mxu2 %v9091_v50  ;;  %v8783_v50 = vor.u32 %v10536_v26, %v8782_v3  ;;  %10912 = vtanh.f32 %v6582_v55  ;;  %v10788_v3 = vld [vmem:[#allocation3 + $0xbc8] sm:$0xf0]  ;;  %v9314_v26 = vld [vmem:[#allocation3 + $0x7f8] sm:$0xf]  ;;  %v10662_v55 = vld [vmem:[#allocation3 + $0x7d8] sm:$0xf0] }
 0x60b   :  { %6822 = vmatpush.bf16.msrb.mxu1 %v8867_v30  ;;  %v8754_v30 = vld [vmem:[#allocation3 + $0x398] sm:$0xf] }
 0x60c   :  { %6797 = vmatpush.bf16.msra.mxu3 %v8391_v44  ;;  %v8531_v44 = vor.u32 %v10473_v58, %v8530_v32  ;;  %v8755_v61 = vor.u32 %v10529_v11, %v8754_v30  ;;  %v10837_v32 = vld [vmem:[#allocation3 + $0xd50] sm:$0xf0]  ;;  %v9762_v58 = vld [vmem:[#allocation3 + $0xb78] sm:$0xf]  ;;  %v9258_v30 = vld [vmem:[#allocation3 + $0x788] sm:$0xf] }
 0x60d   :  { %6810 = vmatpush.bf16.msrb.mxu0 %v8615_v53  ;;  %v10802_v53 = vld [vmem:[#allocation3 + $0xc38] sm:$0xf0] }
 0x60e   :  { %6836 = vmatpush.bf16.msrb.mxu2 %v9063_v57  ;;  %v9399_v57 = vor.u32 %v10690_v52, %v9398_v36  ;;  %v9510_v36 = vld [vmem:[#allocation3 + $0x980] sm:$0xf]  ;;  %v10718_v52 = vld [vmem:[#allocation3 + $0x998] sm:$0xf0] }
 0x60f   :  { %6823 = vmatpush.bf16.msrb.mxu1 %v8839_v0  ;;  %v9847_v0 = vor.u32 %v10802_v53, %v9846_v14  ;;  %v9511_v25 = vor.u32 %v10718_v52, %v9510_v36  ;;  %v10711_v14 = vld [vmem:[#allocation3 + $0x960] sm:$0xf0]  ;;  %v9735_v53 = vor.u32 %v10774_v42, %v9734_v41 }
 0x610   :  { %6798 = vmatpush.bf16.msra.mxu3 %v8363_v10  ;;  %v10851_v10 = vld [vmem:[#allocation3 + $0xdc0] sm:$0xf0]  ;;  %v10913_v13 = vpop.eup %10912 }
 0x611   :  { %6811 = vmatpush.bf16.msrb.mxu0 %v8587_v4  ;;  %v9595_v4 = vor.u32 %v10739_v16, %v9594_v62  ;;  %6907 = vst [vmem:[%s11557_s7 + $0x18] sm:$0xff] %v10913_v13  ;;  %v10043_v18 = vor.u32 %v10851_v10, %v10042_v34  ;;  %v9230_v16 = vld [vmem:[#allocation3 + $0x750] sm:$0xf]  ;;  %v10648_v10 = vld [vmem:[#allocation3 + $0x768] sm:$0xf0] }
 0x612   :  { %6837 = vmatpush.bf16.msrb.mxu2 %v9035_v5  ;;  %v9342_v5 = vld [vmem:[#allocation3 + $0x830] sm:$0xf] }
 0x613   :  { %6824 = vmatpush.bf16.msrb.mxu1 %v8811_v56  ;;  %v9790_v56 = vld [vmem:[#allocation3 + $0xbb0] sm:$0xf]  ;;  %v9343_v23 = vor.u32 %v10676_v6, %v9342_v5 }
 0x614   :  { %6799 = vmatpush.bf16.msra.mxu3 %v8335_v2  ;;  %v9567_v2 = vor.u32 %v10732_v20, %v9566_v19  ;;  %v9678_v6 = vld [vmem:[#allocation3 + $0xad0] sm:$0xf]  ;;  %v9231_v19 = vor.u32 %v10648_v10, %v9230_v16  ;;  %v9455_v20 = vor.u32 %v10704_v48, %v9454_v39 }
 0x615   :  { %6812 = vmatpush.bf16.msrb.mxu0 %v8559_v29  ;;  %v10725_v29 = vld [vmem:[#allocation3 + $0x9d0] sm:$0xf0] }
 0x616   :  { %6838 = vmatpush.bf16.msrb.mxu2 %v9007_v31  ;;  %v9986_v31 = vld [vmem:[#allocation3 + $0xd38] sm:$0xf]  ;;  %v9539_v35 = vor.u32 %v10725_v29, %v9538_v17  ;;  %v10753_v17 = vld [vmem:[#allocation3 + $0xab0] sm:$0xf0] }
 0x617   :  { %6825 = vmatpush.bf16.msrb.mxu1 %v8783_v50  ;;  %v9987_v47 = vor.u32 %v10837_v32, %v9986_v31 }
 0x618   :  { %6800 = vmatpush.bf16.msra.mxu3 %v8307_v43  ;;  %v9287_v43 = vor.u32 %v10662_v55, %v9286_v46 }
 0x619   :  { %6813 = vmatpush.bf16.msrb.mxu0 %v8531_v44  ;;  %v11526_v38 = vpop.f32.mrf.mxu0  ;;  %v10655_v44 = vld [vmem:[#allocation3 + $0x7a0] sm:$0xf0] }
 0x61a   :  { %6839 = vmatpush.bf16.msrb.mxu2 %v8979_v1  ;;  %v9482_v1 = vld [vmem:[#allocation3 + $0x948] sm:$0xf]  ;;  %v9259_v45 = vor.u32 %v10655_v44, %v9258_v30 }
 0x61b   :  { %6826 = vmatpush.bf16.msrb.mxu1 %v8755_v61  ;;  %6801 = vmatmul.bf16.vlgmr.msra.gmra.mxu3 %v11390_v7  ;;  %v9791_v7 = vor.u32 %v10788_v3, %v9790_v56  ;;  %v11528_v11 = vpop.f32.mrf.mxu1  ;;  %v9483_v62 = vor.u32 %v10711_v14, %v9482_v1  ;;  %v10641_v56 = vld [vmem:[#allocation3 + $0x730] sm:$0xf0]  ;;  %v9426_v3 = vld [vmem:[#allocation3 + $0x8d8] sm:$0xf] }
 0x61c   :  { %6845 = vmatpush.bf16.msrb.mxu3 %v9399_v57  ;;  %6814 = vmatmul.bf16.vlgmr.msrb.gmra.mxu0 %v11392_v8  ;;  %v9315_v8 = vor.u32 %v10669_v28, %v9314_v26  ;;  %v9930_v57 = vld [vmem:[#allocation3 + $0xcc8] sm:$0xf]  ;;  %v9874_v26 = vld [vmem:[#allocation3 + $0xc58] sm:$0xf] }
 0x61d   :  { %6858 = vmatpush.bf16.msra.mxu0 %v9623_v54  ;;  %6840 = vmatmul.bf16.vlgmr.msrb.gmra.mxu2 %v11396_v49  ;;  %v10781_v49 = vld [vmem:[#allocation3 + $0xb90] sm:$0xf0]  ;;  %v10823_v54 = vld [vmem:[#allocation3 + $0xce0] sm:$0xf0]  ;;  %v9650_v28 = vld [vmem:[#allocation3 + $0xa98] sm:$0xf] }
 0x61e   :  { %6884 = vmatpush.bf16.msra.mxu2 %v10071_v60  ;;  %6827 = vmatmul.bf16.vlgmr.msrb.gmra.mxu1 %v11394_v9  ;;  %v9763_v50 = vor.u32 %v10781_v49, %v9762_v58  ;;  %v10830_v9 = vld [vmem:[#allocation3 + $0xd18] sm:$0xf0]  ;;  %v10767_v60 = vld [vmem:[#allocation3 + $0xb20] sm:$0xf0]  ;;  %v6594_v61 = vpop.f32.mrf.mxu3  ;;  %v9931_v34 = vor.u32 %v10823_v54, %v9930_v57 }
 0x61f   :  { %6871 = vmatpush.bf16.msra.mxu1 %v9847_v0  ;;  %v9959_v40 = vor.u32 %v10830_v9, %v9958_v37  ;;  %v9707_v13 = vor.u32 %v10767_v60, %v9706_v59  ;;  %v11530_v49 = vld [vmem:[#allocation7 + $0x1e] sm:$0xff] }
 0x620   :  { %6846 = vmatpush.bf16.msrb.mxu3 %v9371_v15  ;;  %v6633_v0 = vpop.f32.mrf.mxu2  ;;  %v9902_v15 = vld [vmem:[#allocation3 + $0xc90] sm:$0xf]  ;;  %v3856_v54 = vperm.slane %v11530_v49, 5 }
 0x621   :  { %6859 = vmatpush.bf16.msra.mxu0 %v9595_v4  ;;  %v10816_v4 = vld [vmem:[#allocation3 + $0xca8] sm:$0xf0]  ;;  %v6609_v5 = vpop.f32.mrf.mxu0 }
 0x622   :  { %6885 = vmatpush.bf16.msra.mxu2 %v10043_v18  ;;  %v10760_v18 = vld [vmem:[#allocation3 + $0xae8] sm:$0xf0]  ;;  %v9903_v24 = vor.u32 %v10816_v4, %v9902_v15 }
 0x623   :  { %6872 = vmatpush.bf16.msra.mxu1 %v9819_v21  ;;  %v9202_v21 = vld [vmem:[#allocation3 + $0x718] sm:$0xf]  ;;  %v6622_v22 = vpop.f32.mrf.mxu1 }
 0x624   :  { %6847 = vmatpush.bf16.msrb.mxu3 %v9343_v23  ;;  %v10697_v23 = vld [vmem:[#allocation3 + $0x8f0] sm:$0xf0] }
 0x625   :  { %6860 = vmatpush.bf16.msra.mxu0 %v9567_v2  ;;  %v9679_v2 = vor.u32 %v10760_v18, %v9678_v6  ;;  %v9427_v31 = vor.u32 %v10697_v23, %v9426_v3 }
 0x626   :  { %6886 = vmatpush.bf16.msra.mxu2 %v10015_v27  ;;  %v10809_v27 = vld [vmem:[#allocation3 + $0xc70] sm:$0xf0]  ;;  %v6596_v29 = vpop.f32.mrf.mxu3 }
 0x627   :  { %6873 = vmatpush.bf16.msra.mxu1 %v9791_v7  ;;  %v9203_v7 = vor.u32 %v10641_v56, %v9202_v21  ;;  %v9875_v58 = vor.u32 %v10809_v27, %v9874_v26 }
 0x628   :  { %6848 = vmatpush.bf16.msrb.mxu3 %v9315_v8  ;;  %v6635_v32 = vpop.f32.mrf.mxu2  ;;  %v3855_v8 = vperm.slane %v11530_v49, 4 }
 0x629   :  { %6861 = vmatpush.bf16.msra.mxu0 %v9539_v35  ;;  %v9651_v35 = vor.u32 %v10753_v17, %v9650_v28 }
 0x62a   :  { %6887 = vmatpush.bf16.msra.mxu2 %v9987_v47  ;;  %v6595_v46 = vadd.f32 %v6594_v61, %v3855_v8 }
 0x62b   :  { %6874 = vmatpush.bf16.msra.mxu1 %v9763_v50 }
 0x62c   :  { %6849 = vmatpush.bf16.msrb.mxu3 %v9287_v43  ;;  %v6608_v47 = vadd.f32 %v11526_v38, %v6595_v46 }
 0x62d   :  { %6862 = vmatpush.bf16.msra.mxu0 %v9511_v25 }
 0x62e   :  { %6888 = vmatpush.bf16.msra.mxu2 %v9959_v40  ;;  %v6621_v55 = vadd.f32 %v11528_v11, %v6608_v47 }
 0x62f   :  { %6875 = vmatpush.bf16.msra.mxu1 %v9735_v53 }
 0x630   :  { %6850 = vmatpush.bf16.msrb.mxu3 %v9259_v45  ;;  %v6634_v52 = vadd.f32 %v6633_v0, %v6621_v55 }
 0x631   :  { %6863 = vmatpush.bf16.msra.mxu0 %v9483_v62 }
 0x632   :  { %6889 = vmatpush.bf16.msra.mxu2 %v9931_v34 }
 0x633   :  { %6876 = vmatpush.bf16.msra.mxu1 %v9707_v13 }
 0x634   :  { %6851 = vmatpush.bf16.msrb.mxu3 %v9231_v19 }
 0x635   :  { %6864 = vmatpush.bf16.msra.mxu0 %v9455_v20 }
 0x636   :  { %6890 = vmatpush.bf16.msra.mxu2 %v9903_v24 }
 0x637   :  { %6877 = vmatpush.bf16.msra.mxu1 %v9679_v2  ;;  %v3857_v2 = vperm.slane %v11530_v49, 6 }
 0x638   :  { %6852 = vmatpush.bf16.msrb.mxu3 %v9203_v7 }
 0x639   :  { %6865 = vmatpush.bf16.msra.mxu0 %v9427_v31  ;;  %v6659_v36 = vpop.f32.mrf.mxu0 }
 0x63a   :  { %6891 = vmatpush.bf16.msra.mxu2 %v9875_v58 }
 0x63b   :  { %6878 = vmatpush.bf16.msra.mxu1 %v9651_v35  ;;  %6853 = vmatmul.bf16.vlgmr.msrb.gmra.mxu3 %v11398_v12  ;;  %v6672_v50 = vpop.f32.mrf.mxu1 }
 0x63c   :  { %6866 = vmatmul.bf16.vlgmr.msra.gmra.mxu0 %v11400_v51 }
 0x63d   :  { %6892 = vmatmul.bf16.vlgmr.msra.gmra.mxu2 %v11404_v33 }
 0x63e   :  { %6879 = vmatmul.bf16.vlgmr.msra.gmra.mxu1 %v11402_v63  ;;  %v6646_v37 = vpop.f32.mrf.mxu3 }
 0x63f   :  { %v6647_v9 = vadd.f32 %v6646_v37, %v6634_v52 }
 0x640   :  { %v6685_v41 = vpop.f32.mrf.mxu2 }
 0x641   :  { %v6660_v42 = vadd.f32 %v6659_v36, %v6647_v9  ;;  %v6661_v43 = vpop.f32.mrf.mxu0 }
 0x643   :  { %v6673_v25 = vadd.f32 %v6672_v50, %v6660_v42  ;;  %v6674_v12 = vpop.f32.mrf.mxu1 }
 0x645   :  { %v6686_v30 = vadd.f32 %v6685_v41, %v6673_v25 }
 0x646   :  { %v6648_v51 = vpop.f32.mrf.mxu3 }
 0x647   :  { %10914 = vtanh.f32 %v6686_v30 }
 0x648   :  { %v6687_v33 = vpop.f32.mrf.mxu2 }
 0x64d   :  { %v10915_v40 = vpop.eup %10914 }
 0x64e   :  { %6908 = vst [vmem:[%s11557_s7 + $0x20] sm:$0xff] %v10915_v40 }
 0x659   :  { %v6711_v63 = vpop.f32.mrf.mxu0 }
 0x65b   :  { %v6724_v38 = vpop.f32.mrf.mxu1 }
 0x65e   :  { %v6698_v11 = vpop.f32.mrf.mxu3 }
 0x65f   :  { %v6699_v59 = vadd.f32 %v6698_v11, %v3856_v54 }
 0x660   :  { %v6737_v44 = vpop.f32.mrf.mxu2 }
 0x661   :  { %v6713_v1 = vpop.f32.mrf.mxu0  ;;  %v6712_v60 = vadd.f32 %v6711_v63, %v6699_v59 }
 0x663   :  { %v6726_v14 = vpop.f32.mrf.mxu1  ;;  %v6725_v61 = vadd.f32 %v6724_v38, %v6712_v60 }
 0x665   :  { %v6738_v62 = vadd.f32 %v6737_v44, %v6725_v61 }
 0x666   :  { %v6700_v53 = vpop.f32.mrf.mxu3 }
 0x668   :  { %v6739_v57 = vpop.f32.mrf.mxu2 }
 0x679   :  { %v6763_v45 = vpop.f32.mrf.mxu0 }
 0x67b   :  { %v6776_v16 = vpop.f32.mrf.mxu1 }
 0x67e   :  { %v6750_v0 = vpop.f32.mrf.mxu3 }
 0x67f   :  { %v6751_v34 = vadd.f32 %v6750_v0, %v6738_v62 }
 0x680   :  { %v6789_v10 = vpop.f32.mrf.mxu2 }
 0x681   :  { %v6764_v39 = vadd.f32 %v6763_v45, %v6751_v34  ;;  %v6765_v48 = vpop.f32.mrf.mxu0 }
 0x683   :  { %v6777_v13 = vadd.f32 %v6776_v16, %v6764_v39  ;;  %v6778_v15 = vpop.f32.mrf.mxu1 }
 0x685   :  { %v6790_v4 = vadd.f32 %v6789_v10, %v6777_v13 }
 0x686   :  { %v6752_v5 = vpop.f32.mrf.mxu3 }
 0x687   :  { %10916 = vtanh.f32 %v6790_v4 }
 0x688   :  { %v6791_v6 = vpop.f32.mrf.mxu2 }
 0x68d   :  { %v10917_v18 = vpop.eup %10916 }
 0x68e   :  { %6909 = vst [vmem:[%s11557_s7 + $0x28] sm:$0xff] %v10917_v18 }
 0x699   :  { %v6815_v19 = vpop.f32.mrf.mxu0 }
 0x69b   :  { %v6828_v20 = vpop.f32.mrf.mxu1 }
 0x69e   :  { %v6802_v21 = vpop.f32.mrf.mxu3 }
 0x69f   :  { %v6803_v26 = vadd.f32 %v6802_v21, %v3857_v2 }
 0x6a0   :  { %v6841_v22 = vpop.f32.mrf.mxu2 }
 0x6a1   :  { %v6817_v24 = vpop.f32.mrf.mxu0  ;;  %v6816_v27 = vadd.f32 %v6815_v19, %v6803_v26 }
 0x6a3   :  { %v6830_v56 = vpop.f32.mrf.mxu1  ;;  %v6829_v17 = vadd.f32 %v6828_v20, %v6816_v27 }
 0x6a5   :  { %v6842_v7 = vadd.f32 %v6841_v22, %v6829_v17 }
 0x6a6   :  { %v6804_v3 = vpop.f32.mrf.mxu3 }
 0x6a8   :  { %v6843_v23 = vpop.f32.mrf.mxu2 }
 0x6b9   :  { %v6867_v28 = vpop.f32.mrf.mxu0 }
 0x6bb   :  { %v6880_v29 = vpop.f32.mrf.mxu1 }
 0x6be   :  { %v6854_v31 = vpop.f32.mrf.mxu3 }
 0x6bf   :  { %v6855_v32 = vadd.f32 %v6854_v31, %v6842_v7 }
 0x6c0   :  { %v6893_v58 = vpop.f32.mrf.mxu2 }
 0x6c1   :  { %v6869_v8 = vpop.f32.mrf.mxu0  ;;  %v6868_v35 = vadd.f32 %v6867_v28, %v6855_v32 }
 0x6c3   :  { %v6882_v46 = vpop.f32.mrf.mxu1  ;;  %v6881_v47 = vadd.f32 %v6880_v29, %v6868_v35 }
 0x6c5   :  { %v6894_v55 = vadd.f32 %v6893_v58, %v6881_v47 }
 0x6c6   :  { %v6856_v36 = vpop.f32.mrf.mxu3 }
 0x6c7   :  { %10918 = vtanh.f32 %v6894_v55 }
 0x6c8   :  { %v6895_v52 = vpop.f32.mrf.mxu2 }
 0x6cd   :  { %v10919_v50 = vpop.eup %10918 }
 0x6ce   :  { %6910 = vst [vmem:[%s11557_s7 + $0x30] sm:$0xff] %v10919_v50 }
 0x6cf   :  { %6915 = vsyncpa [#allocation6], 1 }
 0x6d0   :  { %6916 = vsyncpa [#allocation8], 1 }
 0x6d1   :  { %6917 = vsyncpa [#allocation11], 1 }
 0x6d2   :  { %6918 = vsyncmov [#allocation4] }
 0x6d5   :  { %s6919_s24 = vpop.sfrf %6918 }
 0x6d6   :  { %p10072_p0 = scmp.ne.s32.totalorder %s6919_s24, 0 }
 0x6d8   :  { %6923 = shalt.err (%p10072_p0)  }
 0x6d9   :  { %6925 = vsyncmov [#allocation4 + $0x1] }
 0x6dc   :  { %s6926_s0 = vpop.sfrf %6925 }
 0x6dd   :  { %p10073_p1 = scmp.ne.s32.totalorder %s6926_s0, 0 }
 0x6df   :  { %6930 = shalt.err (%p10073_p1)  }

</bundles_post_ra>
